<compile_context>
chip_gen: v7x
topology: tpu7x:2x2x1
jax: 0.10.0
libtpu: 0.0.40
codegen_flags: <defaults>
</compile_context>

<pallas_src>
import jax
import jax.numpy as jnp
import numpy as np
from jax.experimental import pallas as pl
from jax.experimental.pallas import tpu as pltpu

EPS = 1e-5


# ----------------------------------------------------------------------------
# Fused 3x3 "same" conv + BatchNorm2d(batch stats) + ReLU on a VMEM-resident
# NHWC value.  The conv is a single K = 9*C matmul over an in-VMEM im2col.
# ----------------------------------------------------------------------------
def _conv3x3_bn_relu(x, wmat, b, g, be):
    # x    : (N, H, W, C)    activation value (f32)
    # wmat : (9*C, Cout)     HWIO conv weights reshaped (kh, kw, cin) -> rows
    # b, g, be : (1, Cout)   conv bias, BN gamma, BN beta
    # returns (N*H*W, Cout) f32
    n, h, w, c = x.shape
    rows = n * h * w

    # In-kernel zero padding (padding=1): concat zero borders, stays in VMEM.
    zw = jnp.zeros((n, h, 1, c), x.dtype)
    zh = jnp.zeros((n, 1, w + 2, c), x.dtype)
    xpad = jnp.concatenate(
        [zh, jnp.concatenate([zw, x, zw], axis=2), zh], axis=1)  # (N,H+2,W+2,C)

    # im2col: 3 width shifts (second-minor axis) + 3 height shifts (major axis),
    # taps concatenated along the lane (channel) axis.  Channel order is
    # (kh, kw, cin), matching the HWIO -> (9*C, Cout) weight reshape.
    xk = jnp.concatenate([xpad[:, :, kw:kw + w, :] for kw in range(3)], axis=-1)
    patches = jnp.concatenate([xk[:, kh:kh + h, :, :] for kh in range(3)],
                              axis=-1)                           # (N,H,W,9C)
    patches = patches.reshape(rows, 9 * c)

    # Single MXU matmul with K = 9*C, f32 accumulation; conv bias added.
    acc = jnp.dot(patches, wmat, preferred_element_type=jnp.float32) + b

    # BatchNorm2d (training mode): biased batch stats over N*H*W, single pass.
    inv_m = 1.0 / rows
    mean = jnp.sum(acc, axis=0, keepdims=True) * inv_m
    var = jnp.sum(acc * acc, axis=0, keepdims=True) * inv_m - mean * mean
    y = (acc - mean) * jax.lax.rsqrt(var + EPS) * g + be
    return jnp.maximum(y, 0.0)                                   # ReLU


def conv_block_kernel(x_ref, w1_ref, b1_ref, g1_ref, be1_ref,
                      w2_ref, b2_ref, g2_ref, be2_ref, out_ref):
    n, h, w, _ = x_ref.shape
    cout = out_ref.shape[-1]

    # Stage 1: conv1 -> bn1 -> relu.  x1 stays resident in VMEM (no HBM trip).
    y1 = _conv3x3_bn_relu(x_ref[...], w1_ref[...], b1_ref[...],
                          g1_ref[...], be1_ref[...])

    # Stage 2: conv2 -> bn2 -> relu, consuming the VMEM-resident x1.
    y2 = _conv3x3_bn_relu(y1.reshape(n, h, w, cout), w2_ref[...], b2_ref[...],
                          g2_ref[...], be2_ref[...])

    # TODO(synk): for Cout < 128 a lane-dense (N*H, W*Cout) output slab would
    # avoid masked partial stores; kept NHWC to avoid a minor-dim-merging
    # reshape inside the kernel.
    out_ref[...] = y2.reshape(n, h, w, cout)


def conv_block_forward(x_nhwc, p):
    n, h, w, cin = x_nhwc.shape
    cout = p["w1"].shape[-1]
    rows = n * h * w
    vmem = pl.BlockSpec(memory_space=pltpu.MemorySpace.VMEM)

    flops = 2 * rows * (9 * cin) * cout + 2 * rows * (9 * cout) * cout
    bytes_accessed = 4 * (rows * cin + 9 * cin * cout + 9 * cout * cout
                          + 6 * cout + rows * cout)

    return pl.pallas_call(
        conv_block_kernel,
        out_shape=jax.ShapeDtypeStruct((n, h, w, cout), jnp.float32),
        in_specs=[vmem] * 9,
        out_specs=vmem,
        compiler_params=pltpu.CompilerParams(
            vmem_limit_bytes=32 * 1024 * 1024),
        cost_estimate=pl.CostEstimate(flops=flops,
                                      transcendentals=2 * cout,
                                      bytes_accessed=bytes_accessed),
    )(x_nhwc,
      p["w1"].reshape(9 * cin, cout),
      p["b1"].reshape(1, cout), p["g1"].reshape(1, cout), p["be1"].reshape(1, cout),
      p["w2"].reshape(9 * cout, cout),
      p["b2"].reshape(1, cout), p["g2"].reshape(1, cout), p["be2"].reshape(1, cout))


# ----------------------------------------------------------------------------
# Pure-JAX reference (matches the PyTorch module semantics) and param init.
# ----------------------------------------------------------------------------
def _conv_bn_relu_ref(x, w_hwio, b, g, be):
    y = jax.lax.conv_general_dilated(
        x, w_hwio, window_strides=(1, 1), padding="SAME",
        dimension_numbers=("NHWC", "HWIO", "NHWC")) + b
    mean = y.mean(axis=(0, 1, 2), keepdims=True)
    var = ((y - mean) ** 2).mean(axis=(0, 1, 2), keepdims=True)
    return jnp.maximum((y - mean) * jax.lax.rsqrt(var + EPS) * g + be, 0.0)


def conv_block_ref(x_nhwc, p):
    x1 = _conv_bn_relu_ref(x_nhwc, p["w1"], p["b1"], p["g1"], p["be1"])
    return _conv_bn_relu_ref(x1, p["w2"], p["b2"], p["g2"], p["be2"])


def init_params(key, in_c, out_c):
    ks = jax.random.split(key, 8)
    # PyTorch conv weights are OIHW; build them that way, then transpose to HWIO.
    w1_oihw = 0.1 * jax.random.normal(ks[0], (out_c, in_c, 3, 3), jnp.float32)
    w2_oihw = 0.1 * jax.random.normal(ks[1], (out_c, out_c, 3, 3), jnp.float32)
    return {
        "w1": jnp.transpose(w1_oihw, (2, 3, 1, 0)),
        "b1": 0.1 * jax.random.normal(ks[2], (out_c,), jnp.float32),
        "g1": 1.0 + 0.1 * jax.random.normal(ks[3], (out_c,), jnp.float32),
        "be1": 0.1 * jax.random.normal(ks[4], (out_c,), jnp.float32),
        "w2": jnp.transpose(w2_oihw, (2, 3, 1, 0)),
        "b2": 0.1 * jax.random.normal(ks[5], (out_c,), jnp.float32),
        "g2": 1.0 + 0.1 * jax.random.normal(ks[6], (out_c,), jnp.float32),
        "be2": 0.1 * jax.random.normal(ks[7], (out_c,), jnp.float32),
    }


if __name__ == "__main__":
    N, IN_C, OUT_C, H, W = 2, 4, 8, 16, 16

    key = jax.random.PRNGKey(0)
    kx, kp = jax.random.split(key)
    # PyTorch-convention NCHW input, transposed to NHWC for the kernel.
    x_nchw = jax.random.normal(kx, (N, IN_C, H, W), jnp.float32)
    x_nhwc = jnp.transpose(x_nchw, (0, 2, 3, 1))
    params = init_params(kp, IN_C, OUT_C)

    out_nhwc = jax.block_until_ready(conv_block_forward(x_nhwc, params))

    ref_nhwc = conv_block_ref(x_nhwc, params)
    np.testing.assert_allclose(np.asarray(out_nhwc), np.asarray(ref_nhwc),
                               rtol=1e-4, atol=1e-4)

    out_nchw = jnp.transpose(out_nhwc, (0, 3, 1, 2))  # back to PyTorch NCHW
    assert out_nchw.shape == (N, OUT_C, H, W)

    print("KERNEL_OK")
</pallas_src>

<mosaic_0001>
module attributes {stable_mosaic.version = 11 : i64} {
  func.func @conv_block_kernel(%arg0: memref<2x16x16x4xf32, #tpu.memory_space<vmem>>, %arg1: memref<36x8xf32, #tpu.memory_space<vmem>>, %arg2: memref<1x8xf32, #tpu.memory_space<vmem>>, %arg3: memref<1x8xf32, #tpu.memory_space<vmem>>, %arg4: memref<1x8xf32, #tpu.memory_space<vmem>>, %arg5: memref<72x8xf32, #tpu.memory_space<vmem>>, %arg6: memref<1x8xf32, #tpu.memory_space<vmem>>, %arg7: memref<1x8xf32, #tpu.memory_space<vmem>>, %arg8: memref<1x8xf32, #tpu.memory_space<vmem>>, %arg9: memref<2x16x16x8xf32, #tpu.memory_space<vmem>>) attributes {dimension_semantics = [], scalar_prefetch = 0 : i64, scratch_operands = 0 : i64, tpu.core_type = #tpu.core_type<tc>} {
    %c0 = arith.constant 0 : index
    %c0_0 = arith.constant 0 : index
    %c0_1 = arith.constant 0 : index
    %c0_2 = arith.constant 0 : index
    %0 = vector.load %arg0[%c0, %c0_0, %c0_1, %c0_2] : memref<2x16x16x4xf32, #tpu.memory_space<vmem>>, vector<2x16x16x4xf32>
    %c0_3 = arith.constant 0 : index
    %c0_4 = arith.constant 0 : index
    %1 = vector.load %arg1[%c0_3, %c0_4] : memref<36x8xf32, #tpu.memory_space<vmem>>, vector<36x8xf32>
    %c0_5 = arith.constant 0 : index
    %c0_6 = arith.constant 0 : index
    %2 = vector.load %arg2[%c0_5, %c0_6] : memref<1x8xf32, #tpu.memory_space<vmem>>, vector<1x8xf32>
    %c0_7 = arith.constant 0 : index
    %c0_8 = arith.constant 0 : index
    %3 = vector.load %arg3[%c0_7, %c0_8] : memref<1x8xf32, #tpu.memory_space<vmem>>, vector<1x8xf32>
    %c0_9 = arith.constant 0 : index
    %c0_10 = arith.constant 0 : index
    %4 = vector.load %arg4[%c0_9, %c0_10] : memref<1x8xf32, #tpu.memory_space<vmem>>, vector<1x8xf32>
    %cst = arith.constant 0.000000e+00 : f32
    %5 = vector.broadcast %cst : f32 to vector<2x16x1x4xf32>
    %cst_11 = arith.constant 0.000000e+00 : f32
    %6 = vector.broadcast %cst_11 : f32 to vector<2x1x18x4xf32>
    %7 = tpu.concatenate %5, %0, %5 in 2 : vector<2x16x1x4xf32>, vector<2x16x16x4xf32>, vector<2x16x1x4xf32> -> vector<2x16x18x4xf32>
    %8 = tpu.concatenate %6, %7, %6 in 1 : vector<2x1x18x4xf32>, vector<2x16x18x4xf32>, vector<2x1x18x4xf32> -> vector<2x18x18x4xf32>
    %9 = vector.extract_strided_slice %8 {offsets = [0, 0, 0, 0], sizes = [2, 18, 16, 4], strides = [1, 1, 1, 1]} : vector<2x18x18x4xf32> to vector<2x18x16x4xf32>
    %10 = vector.extract_strided_slice %8 {offsets = [0, 0, 1, 0], sizes = [2, 18, 16, 4], strides = [1, 1, 1, 1]} : vector<2x18x18x4xf32> to vector<2x18x16x4xf32>
    %11 = vector.extract_strided_slice %8 {offsets = [0, 0, 2, 0], sizes = [2, 18, 16, 4], strides = [1, 1, 1, 1]} : vector<2x18x18x4xf32> to vector<2x18x16x4xf32>
    %12 = tpu.concatenate %9, %10, %11 in 3 : vector<2x18x16x4xf32>, vector<2x18x16x4xf32>, vector<2x18x16x4xf32> -> vector<2x18x16x12xf32>
    %13 = vector.extract_strided_slice %12 {offsets = [0, 0, 0, 0], sizes = [2, 16, 16, 12], strides = [1, 1, 1, 1]} : vector<2x18x16x12xf32> to vector<2x16x16x12xf32>
    %14 = vector.extract_strided_slice %12 {offsets = [0, 1, 0, 0], sizes = [2, 16, 16, 12], strides = [1, 1, 1, 1]} : vector<2x18x16x12xf32> to vector<2x16x16x12xf32>
    %15 = vector.extract_strided_slice %12 {offsets = [0, 2, 0, 0], sizes = [2, 16, 16, 12], strides = [1, 1, 1, 1]} : vector<2x18x16x12xf32> to vector<2x16x16x12xf32>
    %16 = tpu.concatenate %13, %14, %15 in 3 : vector<2x16x16x12xf32>, vector<2x16x16x12xf32>, vector<2x16x16x12xf32> -> vector<2x16x16x36xf32>
    %17 = vector.shape_cast %16 : vector<2x16x16x36xf32> to vector<512x36xf32>
    %cst_12 = arith.constant dense<0.000000e+00> : vector<512x8xf32>
    %18 = tpu.matmul %17, %1, %cst_12 {dimension_numbers = #tpu.dot_dimension_numbers<[1], [0], [0], [1], [0, 0, 1, 1], [], []>} : vector<512x36xf32>, vector<36x8xf32>, vector<512x8xf32> -> vector<512x8xf32>
    %19 = vector.broadcast %2 : vector<1x8xf32> to vector<512x8xf32>
    %20 = arith.addf %18, %19 : vector<512x8xf32>
    %cst_13 = arith.constant dense<0.000000e+00> : vector<8xf32>
    %21 = vector.multi_reduction <add>, %20, %cst_13 [0] : vector<512x8xf32> to vector<8xf32>
    %22 = vector.shape_cast %21 : vector<8xf32> to vector<1x8xf32>
    %cst_14 = arith.constant 0.001953125 : f32
    %23 = vector.broadcast %cst_14 : f32 to vector<1x8xf32>
    %24 = arith.mulf %22, %23 : vector<1x8xf32>
    %25 = arith.mulf %20, %20 : vector<512x8xf32>
    %cst_15 = arith.constant dense<0.000000e+00> : vector<8xf32>
    %26 = vector.multi_reduction <add>, %25, %cst_15 [0] : vector<512x8xf32> to vector<8xf32>
    %27 = vector.shape_cast %26 : vector<8xf32> to vector<1x8xf32>
    %cst_16 = arith.constant 0.001953125 : f32
    %28 = vector.broadcast %cst_16 : f32 to vector<1x8xf32>
    %29 = arith.mulf %27, %28 : vector<1x8xf32>
    %30 = arith.mulf %24, %24 : vector<1x8xf32>
    %31 = arith.subf %29, %30 : vector<1x8xf32>
    %32 = vector.broadcast %24 : vector<1x8xf32> to vector<512x8xf32>
    %33 = arith.subf %20, %32 : vector<512x8xf32>
    %cst_17 = arith.constant 9.99999974E-6 : f32
    %34 = vector.broadcast %cst_17 : f32 to vector<1x8xf32>
    %35 = arith.addf %31, %34 : vector<1x8xf32>
    %36 = math.rsqrt %35 : vector<1x8xf32>
    %37 = vector.broadcast %36 : vector<1x8xf32> to vector<512x8xf32>
    %38 = arith.mulf %33, %37 : vector<512x8xf32>
    %39 = vector.broadcast %3 : vector<1x8xf32> to vector<512x8xf32>
    %40 = arith.mulf %38, %39 : vector<512x8xf32>
    %41 = vector.broadcast %4 : vector<1x8xf32> to vector<512x8xf32>
    %42 = arith.addf %40, %41 : vector<512x8xf32>
    %cst_18 = arith.constant 0.000000e+00 : f32
    %43 = vector.broadcast %cst_18 : f32 to vector<512x8xf32>
    %44 = arith.maximumf %42, %43 : vector<512x8xf32>
    %45 = vector.shape_cast %44 : vector<512x8xf32> to vector<2x16x16x8xf32>
    %c0_19 = arith.constant 0 : index
    %c0_20 = arith.constant 0 : index
    %46 = vector.load %arg5[%c0_19, %c0_20] : memref<72x8xf32, #tpu.memory_space<vmem>>, vector<72x8xf32>
    %c0_21 = arith.constant 0 : index
    %c0_22 = arith.constant 0 : index
    %47 = vector.load %arg6[%c0_21, %c0_22] : memref<1x8xf32, #tpu.memory_space<vmem>>, vector<1x8xf32>
    %c0_23 = arith.constant 0 : index
    %c0_24 = arith.constant 0 : index
    %48 = vector.load %arg7[%c0_23, %c0_24] : memref<1x8xf32, #tpu.memory_space<vmem>>, vector<1x8xf32>
    %c0_25 = arith.constant 0 : index
    %c0_26 = arith.constant 0 : index
    %49 = vector.load %arg8[%c0_25, %c0_26] : memref<1x8xf32, #tpu.memory_space<vmem>>, vector<1x8xf32>
    %cst_27 = arith.constant 0.000000e+00 : f32
    %50 = vector.broadcast %cst_27 : f32 to vector<2x16x1x8xf32>
    %cst_28 = arith.constant 0.000000e+00 : f32
    %51 = vector.broadcast %cst_28 : f32 to vector<2x1x18x8xf32>
    %52 = tpu.concatenate %50, %45, %50 in 2 : vector<2x16x1x8xf32>, vector<2x16x16x8xf32>, vector<2x16x1x8xf32> -> vector<2x16x18x8xf32>
    %53 = tpu.concatenate %51, %52, %51 in 1 : vector<2x1x18x8xf32>, vector<2x16x18x8xf32>, vector<2x1x18x8xf32> -> vector<2x18x18x8xf32>
    %54 = vector.extract_strided_slice %53 {offsets = [0, 0, 0, 0], sizes = [2, 18, 16, 8], strides = [1, 1, 1, 1]} : vector<2x18x18x8xf32> to vector<2x18x16x8xf32>
    %55 = vector.extract_strided_slice %53 {offsets = [0, 0, 1, 0], sizes = [2, 18, 16, 8], strides = [1, 1, 1, 1]} : vector<2x18x18x8xf32> to vector<2x18x16x8xf32>
    %56 = vector.extract_strided_slice %53 {offsets = [0, 0, 2, 0], sizes = [2, 18, 16, 8], strides = [1, 1, 1, 1]} : vector<2x18x18x8xf32> to vector<2x18x16x8xf32>
    %57 = tpu.concatenate %54, %55, %56 in 3 : vector<2x18x16x8xf32>, vector<2x18x16x8xf32>, vector<2x18x16x8xf32> -> vector<2x18x16x24xf32>
    %58 = vector.extract_strided_slice %57 {offsets = [0, 0, 0, 0], sizes = [2, 16, 16, 24], strides = [1, 1, 1, 1]} : vector<2x18x16x24xf32> to vector<2x16x16x24xf32>
    %59 = vector.extract_strided_slice %57 {offsets = [0, 1, 0, 0], sizes = [2, 16, 16, 24], strides = [1, 1, 1, 1]} : vector<2x18x16x24xf32> to vector<2x16x16x24xf32>
    %60 = vector.extract_strided_slice %57 {offsets = [0, 2, 0, 0], sizes = [2, 16, 16, 24], strides = [1, 1, 1, 1]} : vector<2x18x16x24xf32> to vector<2x16x16x24xf32>
    %61 = tpu.concatenate %58, %59, %60 in 3 : vector<2x16x16x24xf32>, vector<2x16x16x24xf32>, vector<2x16x16x24xf32> -> vector<2x16x16x72xf32>
    %62 = vector.shape_cast %61 : vector<2x16x16x72xf32> to vector<512x72xf32>
    %cst_29 = arith.constant dense<0.000000e+00> : vector<512x8xf32>
    %63 = tpu.matmul %62, %46, %cst_29 {dimension_numbers = #tpu.dot_dimension_numbers<[1], [0], [0], [1], [0, 0, 1, 1], [], []>} : vector<512x72xf32>, vector<72x8xf32>, vector<512x8xf32> -> vector<512x8xf32>
    %64 = vector.broadcast %47 : vector<1x8xf32> to vector<512x8xf32>
    %65 = arith.addf %63, %64 : vector<512x8xf32>
    %cst_30 = arith.constant dense<0.000000e+00> : vector<8xf32>
    %66 = vector.multi_reduction <add>, %65, %cst_30 [0] : vector<512x8xf32> to vector<8xf32>
    %67 = vector.shape_cast %66 : vector<8xf32> to vector<1x8xf32>
    %cst_31 = arith.constant 0.001953125 : f32
    %68 = vector.broadcast %cst_31 : f32 to vector<1x8xf32>
    %69 = arith.mulf %67, %68 : vector<1x8xf32>
    %70 = arith.mulf %65, %65 : vector<512x8xf32>
    %cst_32 = arith.constant dense<0.000000e+00> : vector<8xf32>
    %71 = vector.multi_reduction <add>, %70, %cst_32 [0] : vector<512x8xf32> to vector<8xf32>
    %72 = vector.shape_cast %71 : vector<8xf32> to vector<1x8xf32>
    %cst_33 = arith.constant 0.001953125 : f32
    %73 = vector.broadcast %cst_33 : f32 to vector<1x8xf32>
    %74 = arith.mulf %72, %73 : vector<1x8xf32>
    %75 = arith.mulf %69, %69 : vector<1x8xf32>
    %76 = arith.subf %74, %75 : vector<1x8xf32>
    %77 = vector.broadcast %69 : vector<1x8xf32> to vector<512x8xf32>
    %78 = arith.subf %65, %77 : vector<512x8xf32>
    %cst_34 = arith.constant 9.99999974E-6 : f32
    %79 = vector.broadcast %cst_34 : f32 to vector<1x8xf32>
    %80 = arith.addf %76, %79 : vector<1x8xf32>
    %81 = math.rsqrt %80 : vector<1x8xf32>
    %82 = vector.broadcast %81 : vector<1x8xf32> to vector<512x8xf32>
    %83 = arith.mulf %78, %82 : vector<512x8xf32>
    %84 = vector.broadcast %48 : vector<1x8xf32> to vector<512x8xf32>
    %85 = arith.mulf %83, %84 : vector<512x8xf32>
    %86 = vector.broadcast %49 : vector<1x8xf32> to vector<512x8xf32>
    %87 = arith.addf %85, %86 : vector<512x8xf32>
    %cst_35 = arith.constant 0.000000e+00 : f32
    %88 = vector.broadcast %cst_35 : f32 to vector<512x8xf32>
    %89 = arith.maximumf %87, %88 : vector<512x8xf32>
    %90 = vector.shape_cast %89 : vector<512x8xf32> to vector<2x16x16x8xf32>
    %c0_36 = arith.constant 0 : index
    %c0_37 = arith.constant 0 : index
    %c0_38 = arith.constant 0 : index
    %c0_39 = arith.constant 0 : index
    %91 = vector.load %arg9[%c0_36, %c0_37, %c0_38, %c0_39] : memref<2x16x16x8xf32, #tpu.memory_space<vmem>>, vector<2x16x16x8xf32>
    tpu.vector_store %arg9[%c0_36, %c0_37, %c0_38, %c0_39], %90 {strides = array<i32>} : memref<2x16x16x8xf32, #tpu.memory_space<vmem>>, vector<2x16x16x8xf32>,
    return
  }
}

</mosaic_0001>

<bundles_post_ra>
// kernel: tpu_custom_call.1
= control target key start
LH: loop header
LB: loop body
LE: loop exit
PB: predicated region body
PF: predicated region fallthrough
CT: control target
= control target key end

     0   :  { %v6832_v0 = vmov 0.0   ;;  %vm168_vm0 = vcmask 1040384   ;;  %s6833_s17 = smov 4   ;;  %vm490_vm1 = vcmask 1046528   ;;  %vm848_vm2 = vcmask 1045504   ;;  %s6834_s26 = smov 8   ;;  %s14410_s0 = inlined_call_operand.vmem [shape: f32[2,16,16,4], index: 0, kind: input, shape index: {}]   ;;  %s14411_s1 = inlined_call_operand.vmem [shape: f32[36,8], index: 1, kind: input, shape index: {}]   ;;  %s14412_s2 = inlined_call_operand.vmem [shape: f32[1,8], index: 2, kind: input, shape index: {}]   ;;  %s14413_s3 = inlined_call_operand.vmem [shape: f32[1,8], index: 3, kind: input, shape index: {}]   ;;  %s14414_s4 = inlined_call_operand.vmem [shape: f32[1,8], index: 4, kind: input, shape index: {}]   ;;  %s14415_s5 = inlined_call_operand.vmem [shape: f32[72,8], index: 5, kind: input, shape index: {}]   ;;  %s14416_s6 = inlined_call_operand.vmem [shape: f32[1,8], index: 6, kind: input, shape index: {}]   ;;  %s14417_s7 = inlined_call_operand.vmem [shape: f32[1,8], index: 7, kind: input, shape index: {}]   ;;  %s14418_s8 = inlined_call_operand.vmem [shape: f32[1,8], index: 8, kind: input, shape index: {}]   ;;  %s14419_s9 = inlined_call_operand.vmem [shape: f32[2,16,16,8], index: 9, kind: output, shape index: {}]  }
   0x1   :  { %v6890_v1 = vrot.slane %v6832_v0, 1  ;;  %v32_v2 = vld [vmem:[%s14410_s0] sm:$0xff]  ;;  %v33_v3 = vld [vmem:[%s14410_s0 + $0x8] sm:$0xff]  ;;  %v34_v4 = vld [vmem:[%s14410_s0 + $0x10] sm:$0xff]  ;;  %vm2107_vm3 = vcmask 1043456   ;;  %vm1272_vm4 = vcmask 64512  }
   0x2   :  { %v169_v5 = vrot.slane %v32_v2, 7  ;;  %v170_v6 = vrot.slane %v33_v3, 7  ;;  %v35_v7 = vld [vmem:[%s14410_s0 + $0x18] sm:$0xff]  ;;  %v172_v8 = vrot.slane %v34_v4, 7  ;;  %v36_v24 = vld [vmem:[%s14410_s0 + $0x20] sm:$0xff]  ;;  %v37_v25 = vld [vmem:[%s14410_s0 + $0x28] sm:$0xff] }
   0x3   :  { %14634 = vst [vmem:[#allocation2_spill] sm:$0xff] %v6890_v1  ;;  %653 = vrot.lane.b32.xlu0 %v6890_v1, %s6833_s17  ;;  %v173_v9 = vrot.slane %v35_v7, 7  ;;  %v175_v31 = vrot.slane %v36_v24, 7  ;;  %v176_v32 = vrot.slane %v37_v25, 7  ;;  %v38_v41 = vld [vmem:[%s14410_s0 + $0x30] sm:$0xff]  ;;  %v39_v42 = vld [vmem:[%s14410_s0 + $0x38] sm:$0xff] }
   0x4   :  { %v6907_v10 = vsel %vm168_vm0, %v169_v5, %v170_v6  ;;  %v393_v11 = vsel %vm168_vm0, %v170_v6, 0.0  ;;  %v6911_v12 = vsel %vm168_vm0, 0.0, %v169_v5  ;;  %v6914_v13 = vsel %vm168_vm0, 0.0, %v172_v8  ;;  %v40_v58 = vld [vmem:[%s14410_s0 + $0x40] sm:$0xff]  ;;  %v41_v59 = vld [vmem:[%s14410_s0 + $0x48] sm:$0xff]  ;;  %s6835_s14 = smov 12  }
   0x5   :  { %v494_v14 = vrot.slane %v6907_v10, 1  ;;  %v496_v15 = vrot.slane %v393_v11, 1  ;;  %v493_v16 = vrot.slane %v6911_v12, 1  ;;  %v6919_v17 = vsel %vm168_vm0, %v172_v8, %v173_v9  ;;  %s6836_s15 = smov 24   ;;  %s6838_s20 = smov 48  }
   0x6   :  { %v498_v18 = vrot.slane %v6914_v13, 1  ;;  %v499_v19 = vrot.slane %v6919_v17, 1  ;;  %v394_v20 = vsel %vm168_vm0, %v173_v9, 0.0  ;;  %v851_v26 = vrot.slane %v6911_v12, 2 }
   0x7   :  { %v497_v21 = vsel %vm490_vm1, %v494_v14, %v496_v15  ;;  %v495_v22 = vsel %vm490_vm1, %v493_v16, %v494_v14  ;;  %v501_v23 = vrot.slane %v394_v20, 1  ;;  %v852_v29 = vrot.slane %v6907_v10, 2 }
   0x8   :  { %657 = vrot.lane.b32.xlu1 %v497_v21, %s6833_s17  ;;  %655 = vrot.lane.b32.xlu0 %v495_v22, %s6833_s17  ;;  %v500_v27 = vsel %vm490_vm1, %v498_v18, %v499_v19  ;;  %v854_v30 = vrot.slane %v393_v11, 2  ;;  %v856_v33 = vrot.slane %v6914_v13, 2  ;;  %v857_v34 = vrot.slane %v6919_v17, 2  ;;  %v42_v11 = vld [vmem:[%s14410_s0 + $0x50] sm:$0xff]  ;;  %v43_v18 = vld [vmem:[%s14410_s0 + $0x58] sm:$0xff] }
   0x9   :  { %v502_v28 = vsel %vm490_vm1, %v499_v19, %v501_v23  ;;  %v853_v35 = vsel %vm848_vm2, %v851_v26, %v852_v29  ;;  %v859_v37 = vrot.slane %v394_v20, 2  ;;  %v6945_v38 = vsel %vm168_vm0, %v175_v31, %v176_v32 }
   0xa   :  { %v855_v36 = vsel %vm848_vm2, %v852_v29, %v854_v30  ;;  %v6948_v39 = vsel %vm168_vm0, 0.0, %v175_v31  ;;  %v395_v40 = vsel %vm168_vm0, %v176_v32, 0.0  ;;  %v858_v43 = vsel %vm848_vm2, %v856_v33, %v857_v34 }
   0xb   :  { %v860_v44 = vsel %vm848_vm2, %v857_v34, %v859_v37  ;;  %v503_v45 = vrot.slane %v6948_v39, 1  ;;  %v504_v46 = vrot.slane %v6945_v38, 1  ;;  %v506_v47 = vrot.slane %v395_v40, 1  ;;  %v44_v34 = vld [vmem:[%s14410_s0 + $0x60] sm:$0xff] }
   0xc   :  { %659 = vrot.lane.b32.xlu1 %v500_v27, %s6833_s17  ;;  %661 = vrot.lane.b32.xlu0 %v502_v28, %s6833_s17  ;;  %v178_v48 = vrot.slane %v38_v41, 7  ;;  %v179_v49 = vrot.slane %v39_v42, 7  ;;  %v861_v50 = vrot.slane %v6948_v39, 2  ;;  %v862_v51 = vrot.slane %v6945_v38, 2 }
   0xd   :  { %v505_v52 = vsel %vm490_vm1, %v503_v45, %v504_v46  ;;  %v507_v53 = vsel %vm490_vm1, %v504_v46, %v506_v47  ;;  %v864_v54 = vrot.slane %v395_v40, 2  ;;  %v181_v3 = vrot.slane %v40_v58, 7 }
   0xe   :  { %v6970_v55 = vsel %vm168_vm0, %v178_v48, %v179_v49  ;;  %v6973_v56 = vsel %vm168_vm0, 0.0, %v178_v48  ;;  %v396_v57 = vsel %vm168_vm0, %v179_v49, 0.0  ;;  %v863_v60 = vsel %vm848_vm2, %v861_v50, %v862_v51  ;;  %v46_v50 = vld [vmem:[%s14410_s0 + $0x70] sm:$0xff] }
   0xf   :  { %v865_v61 = vsel %vm848_vm2, %v862_v51, %v864_v54  ;;  %v508_v62 = vrot.slane %v6973_v56, 1  ;;  %v509_v63 = vrot.slane %v6970_v55, 1  ;;  %v511_v2 = vrot.slane %v396_v57, 1  ;;  %v47_v51 = vld [vmem:[%s14410_s0 + $0x78] sm:$0xff] }
  0x10   :  { %1013 = vrot.lane.b32.xlu1 %v853_v35, %s6834_s26  ;;  %1015 = vrot.lane.b32.xlu0 %v855_v36, %s6834_s26  ;;  %v182_v4 = vrot.slane %v41_v59, 7  ;;  %v866_v5 = vrot.slane %v6973_v56, 2  ;;  %v867_v6 = vrot.slane %v6970_v55, 2  ;;  %v869_v9 = vrot.slane %v396_v57, 2  ;;  %v45_v35 = vld [vmem:[%s14410_s0 + $0x68] sm:$0xff] }
  0x11   :  { %v510_v7 = vsel %vm490_vm1, %v508_v62, %v509_v63  ;;  %v512_v8 = vsel %vm490_vm1, %v509_v63, %v511_v2  ;;  %v7001_v15 = vsel %vm168_vm0, 0.0, %v181_v3  ;;  %v184_v20 = vrot.slane %v42_v11, 7  ;;  %v48_v11 = vld [vmem:[%s14410_s0 + $0x80] sm:$0xff] }
  0x12   :  { %v6998_v14 = vsel %vm168_vm0, %v181_v3, %v182_v4  ;;  %v397_v16 = vsel %vm168_vm0, %v182_v4, 0.0  ;;  %v868_v19 = vsel %vm848_vm2, %v866_v5, %v867_v6  ;;  %v870_v21 = vsel %vm848_vm2, %v867_v6, %v869_v9 }
  0x13   :  { %v513_v22 = vrot.slane %v7001_v15, 1  ;;  %v514_v23 = vrot.slane %v6998_v14, 1  ;;  %v516_v24 = vrot.slane %v397_v16, 1  ;;  %v185_v25 = vrot.slane %v43_v18, 7 }
  0x14   :  { %1017 = vrot.lane.b32.xlu1 %v858_v43, %s6834_s26  ;;  %1019 = vrot.lane.b32.xlu0 %v860_v44, %s6834_s26  ;;  %v871_v26 = vrot.slane %v7001_v15, 2  ;;  %v872_v27 = vrot.slane %v6998_v14, 2  ;;  %v874_v30 = vrot.slane %v397_v16, 2  ;;  %v7020_v31 = vsel %vm168_vm0, 0.0, %v184_v20  ;;  %v49_v16 = vld [vmem:[%s14410_s0 + $0x88] sm:$0xff] }
  0x15   :  { %v515_v28 = vsel %vm490_vm1, %v513_v22, %v514_v23  ;;  %v517_v29 = vsel %vm490_vm1, %v514_v23, %v516_v24  ;;  %v7023_v32 = vsel %vm168_vm0, %v184_v20, %v185_v25  ;;  %v398_v33 = vsel %vm168_vm0, %v185_v25, 0.0 }
  0x16   :  { %v518_v36 = vrot.slane %v7020_v31, 1  ;;  %v873_v37 = vsel %vm848_vm2, %v871_v26, %v872_v27  ;;  %v875_v40 = vsel %vm848_vm2, %v872_v27, %v874_v30  ;;  %v519_v41 = vrot.slane %v7023_v32, 1 }
  0x17   :  { %v521_v42 = vrot.slane %v398_v33, 1  ;;  %v187_v43 = vrot.slane %v44_v34, 7  ;;  %v188_v44 = vrot.slane %v45_v35, 7  ;;  %v876_v45 = vrot.slane %v7020_v31, 2  ;;  %v50_v35 = vld [vmem:[%s14410_s0 + $0x90] sm:$0xff] }
  0x18   :  { %663 = vrot.lane.b32.xlu1 %v505_v52, %s6833_s17  ;;  %665 = vrot.lane.b32.xlu0 %v507_v53, %s6833_s17  ;;  %v877_v46 = vrot.slane %v7023_v32, 2  ;;  %v520_v47 = vsel %vm490_vm1, %v518_v36, %v519_v41  ;;  %v879_v49 = vrot.slane %v398_v33, 2  ;;  %v190_v58 = vrot.slane %v46_v50, 7  ;;  %v51_v36 = vld [vmem:[%s14410_s0 + $0x98] sm:$0xff] }
  0x19   :  { %v522_v48 = vsel %vm490_vm1, %v519_v41, %v521_v42  ;;  %v7051_v52 = vsel %vm168_vm0, %v187_v43, %v188_v44  ;;  %v7054_v53 = vsel %vm168_vm0, 0.0, %v187_v43  ;;  %v399_v54 = vsel %vm168_vm0, %v188_v44, 0.0 }
  0x1a   :  { %v878_v57 = vsel %vm848_vm2, %v876_v45, %v877_v46  ;;  %v191_v59 = vrot.slane %v47_v51, 7  ;;  %v524_v62 = vrot.slane %v7051_v52, 1  ;;  %v526_v63 = vrot.slane %v399_v54, 1  ;;  %v52_v51 = vld [vmem:[%s14410_s0 + $0xa0] sm:$0xff] }
  0x1b   :  { %v881_v2 = vrot.slane %v7054_v53, 2  ;;  %v882_v6 = vrot.slane %v7051_v52, 2  ;;  %v193_v23 = vrot.slane %v48_v11, 7  ;;  %v194_v24 = vrot.slane %v49_v16, 7 }
  0x1c   :  { %1021 = vrot.lane.b32.xlu1 %v863_v60, %s6834_s26  ;;  %1023 = vrot.lane.b32.xlu0 %v865_v61, %s6834_s26  ;;  %v880_v60 = vsel %vm848_vm2, %v877_v46, %v879_v49  ;;  %v523_v61 = vrot.slane %v7054_v53, 1  ;;  %v7067_v3 = vsel %vm168_vm0, %v190_v58, %v191_v59  ;;  %v527_v5 = vsel %vm490_vm1, %v524_v62, %v526_v63 }
  0x1d   :  { %v400_v9 = vsel %vm168_vm0, %v191_v59, 0.0  ;;  %v529_v18 = vrot.slane %v7067_v3, 1  ;;  %v887_v26 = vrot.slane %v7067_v3, 2  ;;  %v7095_v30 = vsel %vm168_vm0, %v193_v23, %v194_v24  ;;  %v53_v59 = vld [vmem:[%s14410_s0 + $0xa8] sm:$0xff] }
  0x1e   :  { %v525_v4 = vsel %vm490_vm1, %v523_v61, %v524_v62  ;;  %v531_v22 = vrot.slane %v400_v9, 1  ;;  %v7098_v33 = vsel %vm168_vm0, 0.0, %v193_v23  ;;  %v401_v34 = vsel %vm168_vm0, %v194_v24, 0.0 }
  0x1f   :  { %v533_v41 = vrot.slane %v7098_v33, 1  ;;  %v534_v42 = vrot.slane %v7095_v30, 1  ;;  %v536_v43 = vrot.slane %v401_v34, 1  ;;  %v196_v44 = vrot.slane %v50_v35, 7 }
  0x20   :  { %667 = vrot.lane.b32.xlu1 %v510_v7, %s6833_s17  ;;  %669 = vrot.lane.b32.xlu0 %v512_v8, %s6833_s17  ;;  %v884_v7 = vrot.slane %v399_v54, 2  ;;  %v7073_v8 = vsel %vm168_vm0, 0.0, %v190_v58  ;;  %v197_v45 = vrot.slane %v51_v36, 7  ;;  %v891_v46 = vrot.slane %v7098_v33, 2 }
  0x21   :  { %v886_v25 = vrot.slane %v7073_v8, 2  ;;  %v537_v49 = vsel %vm490_vm1, %v534_v42, %v536_v43  ;;  %v894_v50 = vrot.slane %v401_v34, 2  ;;  %v199_v61 = vrot.slane %v52_v51, 7 }
  0x22   :  { %v885_v20 = vsel %vm848_vm2, %v882_v6, %v884_v7  ;;  %v7123_v54 = vsel %vm168_vm0, %v196_v44, %v197_v45  ;;  %v402_v58 = vsel %vm168_vm0, %v197_v45, 0.0  ;;  %vm1206_vm5 = vcmask 31744  }
  0x23   :  { %v897_v7 = vrot.slane %v7123_v54, 2  ;;  %v899_v16 = vrot.slane %v402_v58, 2  ;;  %vm1778_vm6 = vcmask 97280   ;;  %vm1843_vm7 = vcmask 195584  }
  0x24   :  { %1025 = vrot.lane.b32.xlu1 %v868_v19, %s6834_s26  ;;  %1027 = vrot.lane.b32.xlu0 %v870_v21, %s6834_s26  ;;  %v883_v19 = vsel %vm848_vm2, %v881_v2, %v882_v6  ;;  %v528_v21 = vrot.slane %v7073_v8, 1  ;;  %v539_v2 = vrot.slane %v7123_v54, 1  ;;  %vm1914_vm8 = vcmask 293888  }
  0x25   :  { %vm4335_vm9 = vcmask 130048   ;;  %vm4905_vm10 = vcmask 392192   ;;  %vm4976_vm11 = vcmask 588800  }
  0x26   :  { %v530_v27 = vsel %vm490_vm1, %v528_v21, %v529_v18  ;;  %v54_v21 = vld [vmem:[%s14410_s0 + $0xb0] sm:$0xff] }
  0x28   :  { %671 = vrot.lane.b32.xlu1 %v515_v28, %s6833_s17  ;;  %673 = vrot.lane.b32.xlu0 %v517_v29, %s6833_s17  ;;  %v532_v28 = vsel %vm490_vm1, %v529_v18, %v531_v22  ;;  %v889_v29 = vrot.slane %v400_v9, 2  ;;  %v7145_v18 = vsel %vm168_vm0, 0.0, %v199_v61  ;;  %v55_v22 = vld [vmem:[%s14410_s0 + $0xb8] sm:$0xff] }
  0x29   :  { %v543_v23 = vrot.slane %v7145_v18, 1  ;;  %v901_v34 = vrot.slane %v7145_v18, 2 }
  0x2c   :  { %1029 = vrot.lane.b32.xlu1 %v873_v37, %s6834_s26  ;;  %1031 = vrot.lane.b32.xlu0 %v875_v40, %s6834_s26  ;;  %v888_v37 = vsel %vm848_vm2, %v886_v25, %v887_v26  ;;  %v890_v40 = vsel %vm848_vm2, %v887_v26, %v889_v29  ;;  %v900_v25 = vsel %vm848_vm2, %v897_v7, %v899_v16  ;;  %v203_v29 = vrot.slane %v55_v22, 7 }
  0x2e   :  { %v404_v45 = vsel %vm168_vm0, %v203_v29, 0.0 }
  0x30   :  { %675 = vrot.lane.b32.xlu1 %v520_v47, %s6833_s17  ;;  %677 = vrot.lane.b32.xlu0 %v522_v48, %s6833_s17  ;;  %v892_v47 = vrot.slane %v7095_v30, 2  ;;  %v535_v48 = vsel %vm490_vm1, %v533_v41, %v534_v42  ;;  %v56_v41 = vld [vmem:[%s14410_s0 + $0xc0] sm:$0xff]  ;;  %v57_v42 = vld [vmem:[%s14410_s0 + $0xc8] sm:$0xff] }
  0x32   :  { %v895_v62 = vsel %vm848_vm2, %v892_v47, %v894_v50 }
  0x34   :  { %1033 = vrot.lane.b32.xlu1 %v878_v57, %s6834_s26  ;;  %1035 = vrot.lane.b32.xlu0 %v880_v60, %s6834_s26  ;;  %v7126_v57 = vsel %vm168_vm0, 0.0, %v196_v44  ;;  %v893_v60 = vsel %vm848_vm2, %v891_v46, %v892_v47  ;;  %v205_v47 = vrot.slane %v56_v41, 7 }
  0x35   :  { %v538_v63 = vrot.slane %v7126_v57, 1  ;;  %v896_v6 = vrot.slane %v7126_v57, 2 }
  0x37   :  { %v540_v9 = vsel %vm490_vm1, %v538_v63, %v539_v2  ;;  %v898_v24 = vsel %vm848_vm2, %v896_v6, %v897_v7  ;;  %v58_v6 = vld [vmem:[%s14410_s0 + $0xd0] sm:$0xff]  ;;  %v59_v7 = vld [vmem:[%s14410_s0 + $0xd8] sm:$0xff] }
  0x38   :  { %679 = vrot.lane.b32.xlu1 %v525_v4, %s6833_s17  ;;  %681 = vrot.lane.b32.xlu0 %v527_v5, %s6833_s17  ;;  %v541_v4 = vrot.slane %v402_v58, 1  ;;  %v200_v5 = vrot.slane %v53_v59, 7  ;;  %v551_v58 = vrot.slane %v404_v45, 1  ;;  %v208_v22 = vrot.slane %v58_v6, 7 }
  0x3a   :  { %v542_v11 = vsel %vm490_vm1, %v539_v2, %v541_v4  ;;  %v909_v2 = vrot.slane %v404_v45, 2  ;;  %v7198_v4 = vsel %vm168_vm0, 0.0, %v205_v47 }
  0x3c   :  { %1037 = vrot.lane.b32.xlu1 %v883_v19, %s6834_s26  ;;  %1039 = vrot.lane.b32.xlu0 %v885_v20, %s6834_s26  ;;  %v7148_v19 = vsel %vm168_vm0, %v199_v61, %v200_v5  ;;  %v403_v20 = vsel %vm168_vm0, %v200_v5, 0.0 }
  0x3d   :  { %v544_v26 = vrot.slane %v7148_v19, 1  ;;  %v902_v35 = vrot.slane %v7148_v19, 2 }
  0x3f   :  { %v545_v36 = vsel %vm490_vm1, %v543_v23, %v544_v26  ;;  %v903_v46 = vsel %vm848_vm2, %v901_v34, %v902_v35  ;;  %v209_v23 = vrot.slane %v59_v7, 7  ;;  %v7223_v34 = vsel %vm168_vm0, 0.0, %v208_v22 }
  0x40   :  { %683 = vrot.lane.b32.xlu1 %v530_v27, %s6833_s17  ;;  %685 = vrot.lane.b32.xlu0 %v532_v28, %s6833_s17  ;;  %v546_v27 = vrot.slane %v403_v20, 1  ;;  %v202_v28 = vrot.slane %v54_v21, 7  ;;  %14636 = vst [vmem:[#allocation4_spill] sm:$0xff] %v7223_v34 }
  0x42   :  { %v7176_v43 = vsel %vm168_vm0, %v202_v28, %v203_v29  ;;  %v7179_v44 = vsel %vm168_vm0, 0.0, %v202_v28  ;;  %v7220_v29 = vsel %vm168_vm0, %v208_v22, %v209_v23 }
  0x43   :  { %v548_v50 = vrot.slane %v7179_v44, 1  ;;  %v549_v51 = vrot.slane %v7176_v43, 1  ;;  %v906_v59 = vrot.slane %v7179_v44, 2  ;;  %v907_v63 = vrot.slane %v7176_v43, 2  ;;  %14635 = vst [vmem:[#allocation3_spill] sm:$0xff] %v7220_v29 }
  0x44   :  { %1041 = vrot.lane.b32.xlu1 %v888_v37, %s6834_s26  ;;  %1043 = vrot.lane.b32.xlu0 %v890_v40, %s6834_s26  ;;  %v547_v37 = vsel %vm490_vm1, %v544_v26, %v546_v27  ;;  %v904_v40 = vrot.slane %v403_v20, 2  ;;  %v553_v20 = vrot.slane %v7198_v4, 1  ;;  %v559_v45 = vrot.slane %v7220_v29, 1 }
  0x45   :  { %v550_v61 = vsel %vm490_vm1, %v548_v50, %v549_v51  ;;  %v910_v16 = vsel %vm848_vm2, %v907_v63, %v909_v2  ;;  %v917_v50 = vrot.slane %v7220_v29, 2  ;;  %v62_v2 = vld [vmem:[%s14410_s0 + $0xf0] sm:$0xff] }
  0x48   :  { %687 = vrot.lane.b32.xlu1 %v535_v48, %s6833_s17  ;;  %689 = vrot.lane.b32.xlu0 %v537_v49, %s6833_s17  ;;  %v206_v48 = vrot.slane %v57_v42, 7  ;;  %v905_v49 = vsel %vm848_vm2, %v902_v35, %v904_v40  ;;  %v406_v35 = vsel %vm168_vm0, %v209_v23, 0.0  ;;  %v558_v42 = vrot.slane %v7223_v34, 1 }
  0x4a   :  { %v405_v5 = vsel %vm168_vm0, %v206_v48, 0.0 }
  0x4b   :  { %v556_v21 = vrot.slane %v405_v5, 1  ;;  %v914_v28 = vrot.slane %v405_v5, 2  ;;  %v63_v5 = vld [vmem:[%s14410_s0 + $0xf8] sm:$0xff] }
  0x4c   :  { %1045 = vrot.lane.b32.xlu1 %v893_v60, %s6834_s26  ;;  %1047 = vrot.lane.b32.xlu0 %v895_v62, %s6834_s26  ;;  %v7192_v60 = vsel %vm168_vm0, %v205_v47, %v206_v48  ;;  %v552_v62 = vsel %vm490_vm1, %v549_v51, %v551_v58  ;;  %v560_v51 = vsel %vm490_vm1, %v558_v42, %v559_v45 }
  0x50   :  { %691 = vrot.lane.b32.xlu1 %v540_v9, %s6833_s17  ;;  %693 = vrot.lane.b32.xlu0 %v542_v11, %s6833_s17  ;;  %v554_v9 = vrot.slane %v7192_v60, 1  ;;  %v908_v11 = vsel %vm848_vm2, %v906_v59, %v907_v63  ;;  %v919_v59 = vrot.slane %v406_v35, 2 }
  0x52   :  { %v555_v26 = vsel %vm490_vm1, %v553_v20, %v554_v9  ;;  %v557_v27 = vsel %vm490_vm1, %v554_v9, %v556_v21  ;;  %v920_v7 = vsel %vm848_vm2, %v917_v50, %v919_v59  ;;  %v214_v20 = vrot.slane %v62_v2, 7 }
  0x53   :  { %v215_v21 = vrot.slane %v63_v5, 7 }
  0x54   :  { %1049 = vrot.lane.b32.xlu1 %v898_v24, %s6834_s26  ;;  %1051 = vrot.lane.b32.xlu0 %v900_v25, %s6834_s26  ;;  %v911_v24 = vrot.slane %v7198_v4, 2  ;;  %v912_v25 = vrot.slane %v7192_v60, 2 }
  0x56   :  { %v913_v40 = vsel %vm848_vm2, %v911_v24, %v912_v25  ;;  %v915_v41 = vsel %vm848_vm2, %v912_v25, %v914_v28  ;;  %v7272_v28 = vsel %vm168_vm0, %v214_v20, %v215_v21 }
  0x57   :  { %14639 = vst [vmem:[#allocation7_spill] sm:$0xff] %v7272_v28 }
  0x58   :  { %695 = vrot.lane.b32.xlu1 %v545_v36, %s6833_s17  ;;  %697 = vrot.lane.b32.xlu0 %v547_v37, %s6833_s17  ;;  %v60_v36 = vld [vmem:[%s14410_s0 + $0xe0] sm:$0xff]  ;;  %v61_v37 = vld [vmem:[%s14410_s0 + $0xe8] sm:$0xff] }
  0x59   :  { %v211_v47 = vrot.slane %v60_v36, 7  ;;  %v212_v48 = vrot.slane %v61_v37, 7  ;;  %v408_v36 = vsel %vm168_vm0, %v215_v21, 0.0  ;;  %v96_v37 = vld [vmem:[%s14411_s1] sm:$0xff] }
  0x5b   :  { %v407_v63 = vsel %vm168_vm0, %v212_v48, 0.0 }
  0x5c   :  { %1053 = vrot.lane.b32.xlu1 %v903_v46, %s6834_s26  ;;  %1055 = vrot.lane.b32.xlu0 %v905_v49, %s6834_s26  ;;  %v561_v46 = vrot.slane %v406_v35, 1  ;;  %v916_v49 = vrot.slane %v7223_v34, 2  ;;  %v7275_v35 = vsel %vm168_vm0, 0.0, %v214_v20  ;;  %v7309_v20 = vrot.slane %v6832_v0, 2 }
  0x5d   :  { %14640 = vst [vmem:[#allocation8_spill] sm:$0xff] %v7275_v35  ;;  %v926_v5 = vrot.slane %v7275_v35, 2 }
  0x5e   :  { %v562_v58 = vsel %vm490_vm1, %v559_v45, %v561_v46  ;;  %v918_v6 = vsel %vm848_vm2, %v916_v49, %v917_v50  ;;  %v568_v46 = vrot.slane %v7275_v35, 1  ;;  %14641 = vst [vmem:[#allocation9_spill] sm:$0xff] %v7309_v20 }
  0x60   :  { %699 = vrot.lane.b32.xlu1 %v550_v61, %s6833_s17  ;;  %701 = vrot.lane.b32.xlu0 %v552_v62, %s6833_s17  ;;  %v7245_v61 = vsel %vm168_vm0, %v211_v47, %v212_v48  ;;  %v7248_v62 = vsel %vm168_vm0, 0.0, %v211_v47  ;;  %v569_v47 = vrot.slane %v7272_v28, 1  ;;  %v571_v48 = vrot.slane %v408_v36, 1 }
  0x61   :  { %14637 = vst [vmem:[#allocation5_spill] sm:$0xff] %v7245_v61  ;;  %14638 = vst [vmem:[#allocation6_spill] sm:$0xff] %v7248_v62  ;;  %v563_v9 = vrot.slane %v7248_v62, 1  ;;  %v921_v22 = vrot.slane %v7248_v62, 2  ;;  %v922_v23 = vrot.slane %v7245_v61, 2 }
  0x62   :  { %v572_v2 = vsel %vm490_vm1, %v569_v47, %v571_v48  ;;  %v67_v48 = vld [vmem:[%s14410_s0 + $0x118] sm:$0xff] }
  0x64   :  { %1057 = vrot.lane.b32.xlu1 %v908_v11, %s6834_s26  ;;  %1059 = vrot.lane.b32.xlu0 %v910_v16, %s6834_s26  ;;  %v564_v11 = vrot.slane %v7245_v61, 1  ;;  %v566_v16 = vrot.slane %v407_v63, 1 }
  0x66   :  { %v565_v25 = vsel %vm490_vm1, %v563_v9, %v564_v11 }
  0x68   :  { %703 = vrot.lane.b32.xlu1 %v555_v26, %s6833_s17  ;;  %705 = vrot.lane.b32.xlu0 %v557_v27, %s6833_s17  ;;  %v567_v26 = vsel %vm490_vm1, %v564_v11, %v566_v16  ;;  %v924_v27 = vrot.slane %v407_v63, 2  ;;  %v570_v63 = vsel %vm490_vm1, %v568_v46, %v569_v47  ;;  %v64_v11 = vld [vmem:[%s14410_s0 + $0x100] sm:$0xff]  ;;  %v65_v16 = vld [vmem:[%s14410_s0 + $0x108] sm:$0xff] }
  0x69   :  { %v66_v47 = vld [vmem:[%s14410_s0 + $0x110] sm:$0xff] }
  0x6a   :  { %v925_v45 = vsel %vm848_vm2, %v922_v23, %v924_v27  ;;  %v217_v27 = vrot.slane %v64_v11, 7 }
  0x6c   :  { %1061 = vrot.lane.b32.xlu1 %v913_v40, %s6834_s26  ;;  %1063 = vrot.lane.b32.xlu0 %v915_v41, %s6834_s26  ;;  %v97_v40 = vld [vmem:[%s14411_s1 + $0x8] sm:$0xff]  ;;  %v923_v41 = vsel %vm848_vm2, %v921_v22, %v922_v23  ;;  %v929_v22 = vrot.slane %v408_v36, 2  ;;  %v100_v23 = vld [vmem:[%s14411_s1 + $0x20] sm:$0xf] }
  0x6d   :  { %v6787_v42 = vpack.c.bf16 %v97_v40, %v96_v37  ;;  %v218_v37 = vrot.slane %v65_v16, 7 }
  0x6f   :  { %6788 = vmatprep.subr.bf16.mxu0 %v6787_v42 }
  0x70   :  { %707 = vrot.lane.b32.xlu1 %v560_v51, %s6833_s17  ;;  %709 = vrot.lane.b32.xlu0 %v562_v58, %s6833_s17  ;;  %v98_v51 = vld [vmem:[%s14411_s1 + $0x10] sm:$0xff]  ;;  %v99_v58 = vld [vmem:[%s14411_s1 + $0x18] sm:$0xff] }
  0x71   :  { %6790 = vmatpush3.bf16.msra.mxu0 %v6787_v42  ;;  %v6791_v59 = vpack.c.bf16 %v99_v58, %v98_v51  ;;  %v7324_v42 = vsel %vm168_vm0, %v217_v27, %v218_v37  ;;  %v409_v51 = vsel %vm168_vm0, %v218_v37, 0.0 }
  0x72   :  { %14642 = vst [vmem:[#allocation10_spill] sm:$0xff] %v7324_v42 }
  0x73   :  { %6792 = vmatprep.subr.bf16.mxu0 %v6791_v59 }
  0x74   :  { %1065 = vrot.lane.b32.xlu1 %v918_v6, %s6834_s26  ;;  %1067 = vrot.lane.b32.xlu0 %v920_v7, %s6834_s26  ;;  %v927_v6 = vrot.slane %v7272_v28, 2 }
  0x75   :  { %v7267_v24 = vpop.permute.xlu0 %653  ;;  %6794 = vmatpush3.bf16.msra.mxu0 %v6791_v59 }
  0x76   :  { %v928_v21 = vsel %vm848_vm2, %v926_v5, %v927_v6  ;;  %6575 = vmatprep.subr.msk.mxu0 %vm2107_vm3, %v100_v23  ;;  %v930_v0 = vsel %vm848_vm2, %v927_v6, %v929_v22  ;;  %v220_v5 = vrot.slane %v66_v47, 7  ;;  %v221_v6 = vrot.slane %v67_v48, 7 }
  0x78   :  { %711 = vrot.lane.b32.xlu1 %v565_v25, %s6833_s17  ;;  %713 = vrot.lane.b32.xlu0 %v567_v26, %s6833_s17  ;;  %v7362_v22 = vsel %vm168_vm0, %v220_v5, %v221_v6 }
  0x79   :  { %6576 = vmatpush3.msk.msra.mxu0 %vm2107_vm3, %v100_v23  ;;  %14644 = vst [vmem:[#allocation12_spill] sm:$0xff] %v7362_v22  ;;  %v7365_v23 = vsel %vm168_vm0, 0.0, %v220_v5  ;;  %v579_v37 = vrot.slane %v7362_v22, 1 }
  0x7a   :  { %v658_v49 = vpop.permute.xlu1 %657  ;;  %v656_v50 = vpop.permute.xlu0 %655  ;;  %14645 = vst [vmem:[#allocation13_spill] sm:$0xff] %v7365_v23 }
  0x7b   :  { %v1208_v36 = vsel %vm1206_vm5, %v6911_v12, %v656_v50  ;;  %v574_v50 = vrot.slane %v7324_v42, 1  ;;  %v1209_v58 = vsel %vm1206_vm5, %v6907_v10, %v658_v49 }
  0x7c   :  { %1069 = vrot.lane.b32.xlu1 %v923_v41, %s6834_s26  ;;  %1071 = vrot.lane.b32.xlu0 %v925_v45, %s6834_s26  ;;  %v7327_v45 = vsel %vm168_vm0, 0.0, %v217_v27  ;;  %v578_v27 = vrot.slane %v7365_v23, 1 }
  0x7d   :  { %14643 = vst [vmem:[#allocation11_spill] sm:$0xff] %v7327_v45  ;;  %v573_v12 = vrot.slane %v7327_v45, 1 }
  0x7e   :  { %v660_v7 = vpop.permute.xlu1 %659  ;;  %v662_v9 = vpop.permute.xlu0 %661 }
  0x7f   :  { %v1210_v59 = vsel %vm1206_vm5, %v6914_v13, %v660_v7  ;;  %v575_v10 = vsel %vm490_vm1, %v573_v12, %v574_v50  ;;  %v576_v13 = vrot.slane %v409_v51, 1  ;;  %v1211_v49 = vsel %vm1206_vm5, %v6919_v17, %v662_v9 }
  0x80   :  { %715 = vrot.lane.b32.xlu1 %v570_v63, %s6833_s17  ;;  %717 = vrot.lane.b32.xlu0 %v572_v2, %s6833_s17  ;;  %v932_v9 = vrot.slane %v7324_v42, 2  ;;  %v410_v12 = vsel %vm168_vm0, %v221_v6, 0.0  ;;  %v68_v6 = vld [vmem:[%s14410_s0 + $0x120] sm:$0xff] }
  0x81   :  { %v577_v17 = vsel %vm490_vm1, %v574_v50, %v576_v13  ;;  %v934_v50 = vrot.slane %v409_v51, 2 }
  0x82   :  { %v1014_v25 = vpop.permute.xlu1 %1013  ;;  %v1016_v26 = vpop.permute.xlu0 %1015 }
  0x83   :  { %v7330_v46 = vsel %vm1272_vm4, %v1208_v36, %v1014_v25  ;;  %v7352_v16 = vsel %vm1272_vm4, %v1209_v58, %v1016_v26  ;;  %v931_v26 = vrot.slane %v7327_v45, 2  ;;  %v581_v58 = vrot.slane %v410_v12, 1 }
  0x84   :  { %1073 = vrot.lane.b32.xlu1 %v928_v21, %s6834_s26  ;;  %1011 = vrot.lane.b32.xlu0 %v7309_v20, %s6834_s26 }
  0x85   :  { %v582_v51 = vsel %vm490_vm1, %v579_v37, %v581_v58 }
  0x86   :  { %v1018_v40 = vpop.permute.xlu1 %1017  ;;  %v1020_v41 = vpop.permute.xlu0 %1019 }
  0x87   :  { %v7349_v11 = vsel %vm1272_vm4, %v1210_v59, %v1018_v40  ;;  %v7368_v25 = vsel %vm1272_vm4, %v1211_v49, %v1020_v41  ;;  %v933_v40 = vsel %vm848_vm2, %v931_v26, %v932_v9  ;;  %v580_v41 = vsel %vm490_vm1, %v578_v27, %v579_v37  ;;  %v69_v49 = vld [vmem:[%s14410_s0 + $0x128] sm:$0xff] }
  0x88   :  { %1075 = vrot.lane.b32.xlu1 %v930_v0, %s6834_s26  ;;  %1402 = vrot.lane.b32.xlu0 %v7330_v46, %s6835_s14  ;;  %v223_v27 = vrot.slane %v68_v6, 7 }
  0x8a   :  { %v664_v63 = vpop.permute.xlu1 %663  ;;  %v666_v2 = vpop.permute.xlu0 %665  ;;  %v7430_v6 = vsel %vm168_vm0, 0.0, %v223_v27 }
  0x8b   :  { %v1212_v59 = vsel %vm1206_vm5, %v6948_v39, %v664_v63  ;;  %v935_v39 = vsel %vm848_vm2, %v932_v9, %v934_v50  ;;  %v936_v63 = vrot.slane %v7365_v23, 2  ;;  %v1213_v9 = vsel %vm1206_vm5, %v6945_v38, %v666_v2  ;;  %14647 = vst [vmem:[#allocation15_spill] sm:$0xff] %v7430_v6 }
  0x8c   :  { %1595 = vrot.lane.b32.xlu0 %v7349_v11, %s6836_s15  ;;  %1404 = vrot.lane.b32.xlu1 %v7352_v16, %s6835_s14  ;;  %v583_v2 = vrot.slane %v7430_v6, 1 }
  0x8e   :  { %v1022_v7 = vpop.permute.xlu1 %1021  ;;  %v1024_v21 = vpop.permute.xlu0 %1023 }
  0x8f   :  { %v7397_v13 = vsel %vm1272_vm4, %v1212_v59, %v1022_v7  ;;  %v937_v7 = vrot.slane %v7362_v22, 2  ;;  %v939_v59 = vrot.slane %v410_v12, 2 }
  0x90   :  { %719 = vrot.lane.b32.xlu0 %v575_v10, %s6833_s17  ;;  %1597 = vrot.lane.b32.xlu1 %v7368_v25, %s6836_s15 }
  0x91   :  { %v940_v38 = vsel %vm848_vm2, %v937_v7, %v939_v59  ;;  %v70_v59 = vld [vmem:[%s14410_s0 + $0x130] sm:$0xff] }
  0x92   :  { %v668_v0 = vpop.permute.xlu1 %667  ;;  %v7378_v36 = vpop.permute.xlu0 %669  ;;  %v226_v23 = vrot.slane %v70_v59, 7 }
  0x93   :  { %v1214_v20 = vsel %vm1206_vm5, %v6973_v56, %v668_v0  ;;  %v1215_v56 = vsel %vm1206_vm5, %v6970_v55, %v7378_v36 }
  0x94   :  { %721 = vrot.lane.b32.xlu0 %v577_v17, %s6833_s17  ;;  %1406 = vrot.lane.b32.xlu1 %v7349_v11, %s6835_s14 }
  0x96   :  { %v1026_v47 = vpop.permute.xlu1 %1025  ;;  %v7385_v48 = vpop.permute.xlu0 %1027 }
  0x98   :  { %1077 = vrot.lane.b32.xlu0 %v933_v40, %s6834_s26  ;;  %723 = vrot.lane.b32.xlu1 %v580_v41, %s6833_s17  ;;  %v224_v40 = vrot.slane %v69_v49, 7  ;;  %v938_v41 = vsel %vm848_vm2, %v936_v63, %v937_v7  ;;  %v7433_v49 = vsel %vm1272_vm4, %v1213_v9, %v1024_v21 }
  0x9a   :  { %v7392_v5 = vpop.permute.xlu1 %671  ;;  %v7394_v10 = vpop.permute.xlu0 %673  ;;  %v7427_v58 = vsel %vm168_vm0, %v223_v27, %v224_v40  ;;  %v411_v63 = vsel %vm168_vm0, %v224_v40, 0.0  ;;  %v71_v40 = vld [vmem:[%s14410_s0 + $0x138] sm:$0xff] }
  0x9b   :  { %14646 = vst [vmem:[#allocation14_spill] sm:$0xff] %v7427_v58  ;;  %v584_v12 = vrot.slane %v7427_v58, 1  ;;  %v586_v27 = vrot.slane %v411_v63, 1  ;;  %v227_v42 = vrot.slane %v71_v40, 7 }
  0x9c   :  { %1599 = vrot.lane.b32.xlu0 %v7397_v13, %s6836_s15  ;;  %1408 = vrot.lane.b32.xlu1 %v7368_v25, %s6835_s14 }
  0x9d   :  { %v585_v21 = vsel %vm490_vm1, %v583_v2, %v584_v12  ;;  %v587_v9 = vsel %vm490_vm1, %v584_v12, %v586_v27  ;;  %v942_v2 = vrot.slane %v7427_v58, 2  ;;  %v944_v27 = vrot.slane %v411_v63, 2 }
  0x9e   :  { %v7413_v26 = vpop.permute.xlu1 %1029  ;;  %v7415_v17 = vpop.permute.xlu0 %1031  ;;  %v7487_v59 = vsel %vm168_vm0, %v226_v23, %v227_v42 }
  0x9f   :  { %14649 = vst [vmem:[#allocation17_spill] sm:$0xff] %v7487_v59  ;;  %v945_v55 = vsel %vm848_vm2, %v942_v2, %v944_v27  ;;  %v589_v63 = vrot.slane %v7487_v59, 1  ;;  %v72_v27 = vld [vmem:[%s14410_s0 + $0x140] sm:$0xff] }
  0xa0   :  { %1079 = vrot.lane.b32.xlu0 %v935_v39, %s6834_s26  ;;  %725 = vrot.lane.b32.xlu1 %v582_v51, %s6833_s17  ;;  %v229_v35 = vrot.slane %v72_v27, 7 }
  0xa2   :  { %v7422_v37 = vpop.permute.xlu1 %675  ;;  %v7424_v50 = vpop.permute.xlu0 %677 }
  0xa4   :  { %1081 = vrot.lane.b32.xlu1 %v938_v41, %s6834_s26  ;;  %1601 = vrot.lane.b32.xlu0 %v7433_v49, %s6836_s15 }
  0xa6   :  { %v7441_v39 = vpop.permute.xlu1 %1033  ;;  %v7443_v51 = vpop.permute.xlu0 %1035 }
  0xa8   :  { %1083 = vrot.lane.b32.xlu1 %v940_v38, %s6834_s26  ;;  %1410 = vrot.lane.b32.xlu0 %v7397_v13, %s6835_s14  ;;  %v941_v38 = vrot.slane %v7430_v6, 2  ;;  %v1216_v6 = vsel %vm1206_vm5, %v7001_v15, %v7392_v5  ;;  %v1217_v15 = vsel %vm1206_vm5, %v6998_v14, %v7394_v10 }
  0xaa   :  { %v7450_v41 = vpop.permute.xlu1 %679  ;;  %v7452_v7 = vpop.permute.xlu0 %681  ;;  %v943_v12 = vsel %vm848_vm2, %v941_v38, %v942_v2 }
  0xac   :  { %727 = vrot.lane.b32.xlu1 %v585_v21, %s6833_s17  ;;  %1412 = vrot.lane.b32.xlu0 %v7433_v49, %s6835_s14  ;;  %v7473_v21 = vsel %vm1272_vm4, %v1214_v20, %v1026_v47  ;;  %v7490_v20 = vsel %vm168_vm0, 0.0, %v226_v23  ;;  %v7494_v47 = vsel %vm1272_vm4, %v1215_v56, %v7385_v48  ;;  %v412_v23 = vsel %vm168_vm0, %v227_v42, 0.0  ;;  %v73_v42 = vld [vmem:[%s14410_s0 + $0x148] sm:$0xff] }
  0xad   :  { %14648 = vst [vmem:[#allocation16_spill] sm:$0xff] %v7473_v21  ;;  %14650 = vst [vmem:[#allocation18_spill] sm:$0xff] %v7490_v20  ;;  %v588_v36 = vrot.slane %v7490_v20, 1  ;;  %v591_v38 = vrot.slane %v412_v23, 1  ;;  %v230_v61 = vrot.slane %v73_v42, 7 }
  0xae   :  { %v7468_v1 = vpop.permute.xlu1 %1037  ;;  %v7470_v22 = vpop.permute.xlu0 %1039  ;;  %14651 = vst [vmem:[#allocation19_spill] sm:$0xff] %v7494_v47 }
  0xaf   :  { %v590_v48 = vsel %vm490_vm1, %v588_v36, %v589_v63  ;;  %v592_v56 = vsel %vm490_vm1, %v589_v63, %v591_v38  ;;  %v947_v36 = vrot.slane %v7487_v59, 2  ;;  %v949_v38 = vrot.slane %v412_v23, 2 }
  0xb0   :  { %1603 = vrot.lane.b32.xlu1 %v7473_v21, %s6836_s15  ;;  %729 = vrot.lane.b32.xlu0 %v587_v9, %s6833_s17  ;;  %v7550_v42 = vsel %vm168_vm0, %v229_v35, %v230_v61 }
  0xb1   :  { %14653 = vst [vmem:[#allocation21_spill] sm:$0xff] %v7550_v42  ;;  %v950_v14 = vsel %vm848_vm2, %v947_v36, %v949_v38  ;;  %v594_v23 = vrot.slane %v7550_v42, 1  ;;  %v74_v38 = vld [vmem:[%s14410_s0 + $0x150] sm:$0xff]  ;;  %v952_v59 = vrot.slane %v7550_v42, 2 }
  0xb2   :  { %v7482_v0 = vpop.permute.xlu1 %683  ;;  %v7484_v58 = vpop.permute.xlu0 %685  ;;  %v232_v29 = vrot.slane %v74_v38, 7 }
  0xb4   :  { %1085 = vrot.lane.b32.xlu1 %v943_v12, %s6834_s26  ;;  %1605 = vrot.lane.b32.xlu0 %v7494_v47, %s6836_s15 }
  0xb6   :  { %v7502_v40 = vpop.permute.xlu1 %1041  ;;  %v7504_v9 = vpop.permute.xlu0 %1043 }
  0xb8   :  { %1087 = vrot.lane.b32.xlu1 %v945_v55, %s6834_s26  ;;  %1414 = vrot.lane.b32.xlu0 %v7473_v21, %s6835_s14  ;;  %v946_v55 = vrot.slane %v7490_v20, 2  ;;  %v1218_v20 = vsel %vm1206_vm5, %v7020_v31, %v7422_v37  ;;  %v1219_v31 = vsel %vm1206_vm5, %v7023_v32, %v7424_v50 }
  0xba   :  { %v7511_v12 = vpop.permute.xlu1 %687  ;;  %v7513_v2 = vpop.permute.xlu0 %689  ;;  %v948_v63 = vsel %vm848_vm2, %v946_v55, %v947_v36 }
  0xbc   :  { %731 = vrot.lane.b32.xlu1 %v590_v48, %s6833_s17  ;;  %1416 = vrot.lane.b32.xlu0 %v7494_v47, %s6835_s14  ;;  %v7536_v48 = vsel %vm1272_vm4, %v1216_v6, %v7413_v26  ;;  %v7553_v26 = vsel %vm168_vm0, 0.0, %v229_v35  ;;  %v7557_v6 = vsel %vm1272_vm4, %v1217_v15, %v7415_v17  ;;  %v413_v35 = vsel %vm168_vm0, %v230_v61, 0.0  ;;  %v75_v61 = vld [vmem:[%s14410_s0 + $0x158] sm:$0xff] }
  0xbd   :  { %14652 = vst [vmem:[#allocation20_spill] sm:$0xff] %v7536_v48  ;;  %14654 = vst [vmem:[#allocation22_spill] sm:$0xff] %v7553_v26  ;;  %v593_v10 = vrot.slane %v7553_v26, 1  ;;  %v233_v34 = vrot.slane %v75_v61, 7 }
  0xbe   :  { %v7530_v45 = vpop.permute.xlu1 %1045  ;;  %v7532_v28 = vpop.permute.xlu0 %1047  ;;  %14655 = vst [vmem:[#allocation23_spill] sm:$0xff] %v7557_v6 }
  0xbf   :  { %v595_v17 = vsel %vm490_vm1, %v593_v10, %v594_v23  ;;  %v951_v10 = vrot.slane %v7553_v26, 2  ;;  %v7613_v61 = vsel %vm168_vm0, %v232_v29, %v233_v34  ;;  %v1220_v26 = vsel %vm1206_vm5, %v7054_v53, %v7450_v41 }
  0xc0   :  { %1607 = vrot.lane.b32.xlu1 %v7536_v48, %s6836_s15  ;;  %733 = vrot.lane.b32.xlu0 %v592_v56, %s6833_s17  ;;  %14657 = vst [vmem:[#allocation25_spill] sm:$0xff] %v7613_v61  ;;  %v957_v42 = vrot.slane %v7613_v61, 2  ;;  %v1221_v53 = vsel %vm1206_vm5, %v7051_v52, %v7452_v7 }
  0xc2   :  { %v7545_v5 = vpop.permute.xlu1 %691  ;;  %v7547_v27 = vpop.permute.xlu0 %693 }
  0xc4   :  { %1089 = vrot.lane.b32.xlu1 %v948_v63, %s6834_s26  ;;  %1609 = vrot.lane.b32.xlu0 %v7557_v6, %s6836_s15  ;;  %v596_v63 = vrot.slane %v413_v35, 1 }
  0xc6   :  { %v7565_v56 = vpop.permute.xlu1 %1049  ;;  %v7567_v55 = vpop.permute.xlu0 %1051 }
  0xc8   :  { %1091 = vrot.lane.b32.xlu1 %v950_v14, %s6834_s26  ;;  %1418 = vrot.lane.b32.xlu0 %v7536_v48, %s6835_s14  ;;  %v597_v14 = vsel %vm490_vm1, %v594_v23, %v596_v63  ;;  %v953_v23 = vsel %vm848_vm2, %v951_v10, %v952_v59  ;;  %v954_v63 = vrot.slane %v413_v35, 2  ;;  %v599_v35 = vrot.slane %v7613_v61, 1 }
  0xca   :  { %v7574_v15 = vpop.permute.xlu1 %695  ;;  %v7576_v36 = vpop.permute.xlu0 %697  ;;  %v955_v32 = vsel %vm848_vm2, %v952_v59, %v954_v63  ;;  %v76_v63 = vld [vmem:[%s14410_s0 + $0x160] sm:$0xff] }
  0xcb   :  { %v235_v47 = vrot.slane %v76_v63, 7 }
  0xcc   :  { %735 = vrot.lane.b32.xlu1 %v595_v17, %s6833_s17  ;;  %1420 = vrot.lane.b32.xlu0 %v7557_v6, %s6835_s14  ;;  %v7599_v17 = vsel %vm1272_vm4, %v1218_v20, %v7441_v39  ;;  %v7616_v39 = vsel %vm168_vm0, 0.0, %v232_v29  ;;  %v7620_v20 = vsel %vm1272_vm4, %v1219_v31, %v7443_v51  ;;  %v414_v29 = vsel %vm168_vm0, %v233_v34, 0.0  ;;  %v77_v34 = vld [vmem:[%s14410_s0 + $0x168] sm:$0xff] }
  0xcd   :  { %14656 = vst [vmem:[#allocation24_spill] sm:$0xff] %v7599_v17  ;;  %14658 = vst [vmem:[#allocation26_spill] sm:$0xff] %v7616_v39  ;;  %v598_v50 = vrot.slane %v7616_v39, 1  ;;  %v236_v21 = vrot.slane %v77_v34, 7 }
  0xce   :  { %v7593_v62 = vpop.permute.xlu1 %1053  ;;  %v7595_v48 = vpop.permute.xlu0 %1055  ;;  %14659 = vst [vmem:[#allocation27_spill] sm:$0xff] %v7620_v20 }
  0xcf   :  { %v600_v51 = vsel %vm490_vm1, %v598_v50, %v599_v35  ;;  %v956_v50 = vrot.slane %v7616_v39, 2  ;;  %v7676_v34 = vsel %vm168_vm0, %v235_v47, %v236_v21  ;;  %v1222_v39 = vsel %vm1206_vm5, %v7073_v8, %v7482_v0 }
  0xd0   :  { %1611 = vrot.lane.b32.xlu1 %v7599_v17, %s6836_s15  ;;  %737 = vrot.lane.b32.xlu0 %v597_v14, %s6833_s17  ;;  %14661 = vst [vmem:[#allocation29_spill] sm:$0xff] %v7676_v34  ;;  %v962_v61 = vrot.slane %v7676_v34, 2  ;;  %v1223_v8 = vsel %vm1206_vm5, %v7067_v3, %v7484_v58 }
  0xd2   :  { %v7608_v37 = vpop.permute.xlu1 %699  ;;  %v7610_v38 = vpop.permute.xlu0 %701 }
  0xd4   :  { %1093 = vrot.lane.b32.xlu1 %v953_v23, %s6834_s26  ;;  %1613 = vrot.lane.b32.xlu0 %v7620_v20, %s6836_s15  ;;  %v601_v23 = vrot.slane %v414_v29, 1 }
  0xd6   :  { %v7628_v14 = vpop.permute.xlu1 %1057  ;;  %v7630_v10 = vpop.permute.xlu0 %1059 }
  0xd8   :  { %1095 = vrot.lane.b32.xlu1 %v955_v32, %s6834_s26  ;;  %1422 = vrot.lane.b32.xlu0 %v7599_v17, %s6835_s14  ;;  %v602_v32 = vsel %vm490_vm1, %v599_v35, %v601_v23  ;;  %v958_v35 = vsel %vm848_vm2, %v956_v50, %v957_v42  ;;  %v959_v23 = vrot.slane %v414_v29, 2  ;;  %v604_v29 = vrot.slane %v7676_v34, 1 }
  0xda   :  { %v7637_v31 = vpop.permute.xlu1 %703  ;;  %v7639_v59 = vpop.permute.xlu0 %705  ;;  %v960_v52 = vsel %vm848_vm2, %v957_v42, %v959_v23  ;;  %v78_v23 = vld [vmem:[%s14410_s0 + $0x170] sm:$0xff] }
  0xdc   :  { %739 = vrot.lane.b32.xlu1 %v600_v51, %s6833_s17  ;;  %1424 = vrot.lane.b32.xlu0 %v7620_v20, %s6835_s14  ;;  %v7662_v51 = vsel %vm1272_vm4, %v1220_v26, %v7468_v1  ;;  %v7679_v1 = vsel %vm168_vm0, 0.0, %v235_v47  ;;  %v7683_v26 = vsel %vm1272_vm4, %v1221_v53, %v7470_v22  ;;  %v415_v47 = vsel %vm168_vm0, %v236_v21, 0.0  ;;  %v79_v21 = vld [vmem:[%s14410_s0 + $0x178] sm:$0xff] }
  0xdd   :  { %14660 = vst [vmem:[#allocation28_spill] sm:$0xff] %v7662_v51  ;;  %14662 = vst [vmem:[#allocation30_spill] sm:$0xff] %v7679_v1  ;;  %v603_v7 = vrot.slane %v7679_v1, 1 }
  0xde   :  { %v7656_v17 = vpop.permute.xlu1 %1061  ;;  %v7658_v6 = vpop.permute.xlu0 %1063  ;;  %14663 = vst [vmem:[#allocation31_spill] sm:$0xff] %v7683_v26 }
  0xdf   :  { %v605_v22 = vsel %vm490_vm1, %v603_v7, %v604_v29  ;;  %v961_v7 = vrot.slane %v7679_v1, 2 }
  0xe0   :  { %1615 = vrot.lane.b32.xlu1 %v7662_v51, %s6836_s15  ;;  %741 = vrot.lane.b32.xlu0 %v602_v32, %s6833_s17 }
  0xe2   :  { %v7671_v41 = vpop.permute.xlu1 %707  ;;  %v7673_v63 = vpop.permute.xlu0 %709 }
  0xe4   :  { %1097 = vrot.lane.b32.xlu1 %v958_v35, %s6834_s26  ;;  %1617 = vrot.lane.b32.xlu0 %v7683_v26, %s6836_s15  ;;  %v606_v35 = vrot.slane %v415_v47, 1 }
  0xe6   :  { %v7691_v32 = vpop.permute.xlu1 %1065  ;;  %v7693_v50 = vpop.permute.xlu0 %1067 }
  0xe8   :  { %1099 = vrot.lane.b32.xlu1 %v960_v52, %s6834_s26  ;;  %1426 = vrot.lane.b32.xlu0 %v7662_v51, %s6835_s14  ;;  %v607_v52 = vsel %vm490_vm1, %v604_v29, %v606_v35  ;;  %v963_v29 = vsel %vm848_vm2, %v961_v7, %v962_v61  ;;  %v964_v35 = vrot.slane %v415_v47, 2 }
  0xea   :  { %v7700_v53 = vpop.permute.xlu1 %711  ;;  %v7702_v42 = vpop.permute.xlu0 %713  ;;  %v965_v3 = vsel %vm848_vm2, %v962_v61, %v964_v35  ;;  %v80_v35 = vld [vmem:[%s14410_s0 + $0x180] sm:$0xff] }
  0xeb   :  { %14664 = vst [vmem:[#allocation32_spill] sm:$0xff] %v7700_v53  ;;  %14665 = vst [vmem:[#allocation33_spill] sm:$0xff] %v7702_v42  ;;  %v238_v42 = vrot.slane %v78_v23, 7  ;;  %v239_v53 = vrot.slane %v79_v21, 7 }
  0xec   :  { %743 = vrot.lane.b32.xlu1 %v605_v22, %s6833_s17  ;;  %1428 = vrot.lane.b32.xlu0 %v7683_v26, %s6835_s14  ;;  %v7725_v22 = vsel %vm1272_vm4, %v1222_v39, %v7502_v40  ;;  %v7746_v39 = vsel %vm1272_vm4, %v1223_v8, %v7504_v9 }
  0xed   :  { %14666 = vst [vmem:[#allocation34_spill] sm:$0xff] %v7725_v22  ;;  %v7739_v21 = vsel %vm168_vm0, %v238_v42, %v239_v53  ;;  %v7742_v40 = vsel %vm168_vm0, 0.0, %v238_v42  ;;  %14669 = vst [vmem:[#allocation37_spill] sm:$0xff] %v7746_v39 }
  0xee   :  { %v7719_v51 = vpop.permute.xlu1 %1069  ;;  %v7721_v20 = vpop.permute.xlu0 %1071  ;;  %14667 = vst [vmem:[#allocation35_spill] sm:$0xff] %v7739_v21  ;;  %14668 = vst [vmem:[#allocation36_spill] sm:$0xff] %v7742_v40  ;;  %v608_v58 = vrot.slane %v7742_v40, 1  ;;  %v609_v47 = vrot.slane %v7739_v21, 1  ;;  %v966_v1 = vrot.slane %v7742_v40, 2 }
  0xf0   :  { %1619 = vrot.lane.b32.xlu1 %v7725_v22, %s6836_s15  ;;  %745 = vrot.lane.b32.xlu0 %v607_v52, %s6833_s17  ;;  %v416_v52 = vsel %vm168_vm0, %v239_v53, 0.0  ;;  %v81_v53 = vld [vmem:[%s14410_s0 + $0x188] sm:$0xff] }
  0xf1   :  { %v611_v9 = vrot.slane %v416_v52, 1 }
  0xf2   :  { %v7734_v0 = vpop.permute.xlu1 %715  ;;  %v7736_v23 = vpop.permute.xlu0 %717 }
  0xf4   :  { %1101 = vrot.lane.b32.xlu1 %v963_v29, %s6834_s26  ;;  %1621 = vrot.lane.b32.xlu0 %v7746_v39, %s6836_s15  ;;  %v610_v29 = vsel %vm490_vm1, %v608_v58, %v609_v47  ;;  %v612_v58 = vsel %vm490_vm1, %v609_v47, %v611_v9  ;;  %v242_v47 = vrot.slane %v81_v53, 7 }
  0xf6   :  { %v7755_v7 = vpop.permute.xlu1 %1073  ;;  %v1012_v42 = vpop.permute.xlu0 %1011 }
  0xf8   :  { %1103 = vrot.lane.b32.xlu1 %v965_v3, %s6834_s26  ;;  %1430 = vrot.lane.b32.xlu0 %v7725_v22, %s6835_s14  ;;  %v1207_v3 = vsel %vm1206_vm5, 0.0, %v7267_v24  ;;  %v967_v22 = vrot.slane %v7739_v21, 2  ;;  %v1224_v24 = vsel %vm1206_vm5, %v7098_v33, %v7511_v12  ;;  %v969_v12 = vrot.slane %v416_v52, 2 }
  0xf9   :  { %v7776_v34 = vsel %vm1272_vm4, %v1207_v3, %v1012_v42  ;;  %v7787_v42 = vsel %vm1272_vm4, %v1224_v24, %v7530_v45 }
  0xfa   :  { %v7761_v8 = vpop.permute.xlu1 %1075  ;;  %v1403_v61 = vpop.permute.xlu0 %1402  ;;  %v968_v33 = vsel %vm848_vm2, %v966_v1, %v967_v22 }
  0xfb   :  { %14670 = vst [vmem:[#allocation38_spill] sm:$0xff] %v7761_v8  ;;  %v241_v8 = vrot.slane %v80_v35, 7 }
  0xfc   :  { %747 = vrot.lane.b32.xlu1 %v610_v29, %s6833_s17  ;;  %1432 = vrot.lane.b32.xlu0 %v7746_v39, %s6835_s14  ;;  %v1779_v29 = vsel %vm1778_vm6, %v7776_v34, %v1403_v61  ;;  %v1225_v61 = vsel %vm1206_vm5, %v7095_v30, %v7513_v2  ;;  %v970_v30 = vsel %vm848_vm2, %v967_v22, %v969_v12 }
  0xfd   :  { %v7806_v3 = vsel %vm168_vm0, 0.0, %v241_v8  ;;  %v7810_v1 = vsel %vm1272_vm4, %v1225_v61, %v7532_v28  ;;  %v417_v28 = vsel %vm168_vm0, %v242_v47, 0.0 }
  0xfe   :  { %v1405_v26 = vpop.permute.xlu1 %1404  ;;  %v1596_v39 = vpop.permute.xlu0 %1595  ;;  %v613_v2 = vrot.slane %v7806_v3, 1  ;;  %v971_v61 = vrot.slane %v7806_v3, 2 }
  0xff   :  { %v1844_v9 = vsel %vm1843_vm7, %v1779_v29, %v1596_v39  ;;  %v1780_v45 = vsel %vm1778_vm6, %v7776_v34, %v1405_v26  ;;  %v7803_v39 = vsel %vm168_vm0, %v241_v8, %v242_v47  ;;  %v616_v29 = vrot.slane %v417_v28, 1  ;;  %v83_v47 = vld [vmem:[%s14410_s0 + $0x198] sm:$0xff] }
 0x100   :  { %1623 = vrot.lane.b32.xlu1 %v7787_v42, %s6836_s15  ;;  %749 = vrot.lane.b32.xlu0 %v612_v58, %s6833_s17  ;;  %v614_v26 = vrot.slane %v7803_v39, 1 }
 0x101   :  { %6577 = vmatprep.mubr.msk.f32.mxu0 %vm1914_vm8, %v1844_v9 }
 0x102   :  { %v1598_v35 = vpop.permute.xlu1 %1597  ;;  %v7800_v53 = vpop.permute.xlu0 %719  ;;  %v615_v24 = vsel %vm490_vm1, %v613_v2, %v614_v26  ;;  %v617_v12 = vsel %vm490_vm1, %v614_v26, %v616_v29 }
 0x103   :  { %v1845_v52 = vsel %vm1843_vm7, %v1780_v45, %v1598_v35  ;;  %v972_v45 = vrot.slane %v7803_v39, 2  ;;  %v1226_v35 = vsel %vm1206_vm5, %v7126_v57, %v7545_v5  ;;  %v1227_v5 = vsel %vm1206_vm5, %v7123_v54, %v7547_v27 }
 0x104   :  { %1105 = vrot.lane.b32.xlu1 %v968_v33, %s6834_s26  ;;  %1625 = vrot.lane.b32.xlu0 %v7810_v1, %s6836_s15  ;;  %v82_v33 = vld [vmem:[%s14410_s0 + $0x190] sm:$0xff]  ;;  %v7850_v40 = vsel %vm1272_vm4, %v1226_v35, %v7565_v56 }
 0x105   :  { %6578 = vmatmul.mubr.msk.f32.vlgmr.msra.gmra.mrb[0].mxu0 %vm1914_vm8, %v1845_v52  ;;  %v244_v21 = vrot.slane %v82_v33, 7  ;;  %v973_v57 = vsel %vm848_vm2, %v971_v61, %v972_v45 }
 0x106   :  { %v1407_v8 = vpop.permute.xlu1 %1406  ;;  %v7820_v58 = vpop.permute.xlu0 %721 }
 0x107   :  { %v1781_v52 = vsel %vm1778_vm6, %v7330_v46, %v1407_v8  ;;  %v974_v46 = vrot.slane %v417_v28, 2  ;;  %v7869_v33 = vsel %vm168_vm0, 0.0, %v244_v21 }
 0x108   :  { %1107 = vrot.lane.b32.xlu1 %v970_v30, %s6834_s26  ;;  %1434 = vrot.lane.b32.xlu0 %v7787_v42, %s6835_s14  ;;  %v618_v27 = vrot.slane %v7869_v33, 1 }
 0x109   :  { %v975_v54 = vsel %vm848_vm2, %v972_v45, %v974_v46 }
 0x10a   :  { %v7827_v9 = vpop.permute.xlu1 %723  ;;  %v7829_v22 = vpop.permute.xlu0 %1077 }
 0x10c   :  { %751 = vrot.lane.b32.xlu1 %v615_v24, %s6833_s17  ;;  %1436 = vrot.lane.b32.xlu0 %v7810_v1, %s6835_s14  ;;  %v245_v24 = vrot.slane %v83_v47, 7  ;;  %v7873_v47 = vsel %vm1272_vm4, %v1227_v5, %v7567_v55  ;;  %v1228_v5 = vsel %vm1206_vm5, %v7145_v18, %v7574_v15  ;;  %v1229_v18 = vsel %vm1206_vm5, %v7148_v19, %v7576_v36 }
 0x10e   :  { %v1409_v30 = vpop.permute.xlu1 %1408  ;;  %v1600_v2 = vpop.permute.xlu0 %1599  ;;  %v7866_v29 = vsel %vm168_vm0, %v244_v21, %v245_v24  ;;  %v418_v55 = vsel %vm168_vm0, %v245_v24, 0.0  ;;  %v85_v24 = vld [vmem:[%s14410_s0 + $0x1a8] sm:$0xff] }
 0x10f   :  { %v1846_v26 = vsel %vm1843_vm7, %v1781_v52, %v1600_v2  ;;  %v619_v28 = vrot.slane %v7866_v29, 1  ;;  %v621_v52 = vrot.slane %v418_v55, 1  ;;  %v977_v46 = vrot.slane %v7866_v29, 2 }
 0x110   :  { %1627 = vrot.lane.b32.xlu1 %v7850_v40, %s6836_s15  ;;  %753 = vrot.lane.b32.xlu0 %v617_v12, %s6833_s17  ;;  %v1782_v12 = vsel %vm1778_vm6, %v7352_v16, %v1409_v30  ;;  %v84_v30 = vld [vmem:[%s14410_s0 + $0x1a0] sm:$0xff] }
 0x111   :  { %6580 = vmatprep.mubr.msk.f32.mxu0 %vm1914_vm8, %v1846_v26  ;;  %v620_v45 = vsel %vm490_vm1, %v618_v27, %v619_v28  ;;  %v622_v26 = vsel %vm490_vm1, %v619_v28, %v621_v52 }
 0x112   :  { %v7861_v8 = vpop.permute.xlu1 %725  ;;  %v7863_v56 = vpop.permute.xlu0 %1079 }
 0x114   :  { %1109 = vrot.lane.b32.xlu1 %v973_v57, %s6834_s26  ;;  %1629 = vrot.lane.b32.xlu0 %v7873_v47, %s6836_s15  ;;  %v976_v57 = vrot.slane %v7869_v33, 2 }
 0x116   :  { %v7883_v21 = vpop.permute.xlu1 %1081  ;;  %v1602_v61 = vpop.permute.xlu0 %1601  ;;  %v978_v28 = vsel %vm848_vm2, %v976_v57, %v977_v46 }
 0x117   :  { %v1847_v35 = vsel %vm1843_vm7, %v1782_v12, %v1602_v61  ;;  %v247_v12 = vrot.slane %v84_v30, 7  ;;  %v248_v61 = vrot.slane %v85_v24, 7 }
 0x118   :  { %1111 = vrot.lane.b32.xlu1 %v975_v54, %s6834_s26  ;;  %1438 = vrot.lane.b32.xlu0 %v7850_v40, %s6835_s14 }
 0x119   :  { %6581 = vmatmul.mubr.msk.f32.gmra.mrb[2].mxu0 %vm1914_vm8, %v1847_v35  ;;  %v7913_v35 = vsel %vm1272_vm4, %v1228_v5, %v7593_v62  ;;  %v7927_v62 = vsel %vm168_vm0, %v247_v12, %v248_v61  ;;  %v7930_v24 = vsel %vm168_vm0, 0.0, %v247_v12  ;;  %v419_v5 = vsel %vm168_vm0, %v248_v61, 0.0  ;;  %v87_v61 = vld [vmem:[%s14410_s0 + $0x1b8] sm:$0xff] }
 0x11a   :  { %v7892_v2 = vpop.permute.xlu1 %1083  ;;  %v1411_v16 = vpop.permute.xlu0 %1410  ;;  %14671 = vst [vmem:[#allocation39_spill] sm:$0xff] %v7927_v62  ;;  %v624_v36 = vrot.slane %v7927_v62, 1 }
 0x11b   :  { %v1783_v15 = vsel %vm1778_vm6, %v7349_v11, %v1411_v16  ;;  %v623_v11 = vrot.slane %v7930_v24, 1 }
 0x11c   :  { %755 = vrot.lane.b32.xlu1 %v620_v45, %s6833_s17  ;;  %1440 = vrot.lane.b32.xlu0 %v7873_v47, %s6835_s14  ;;  %v979_v45 = vrot.slane %v418_v55, 2 }
 0x11e   :  { %v7909_v54 = vpop.permute.xlu1 %727  ;;  %v1413_v27 = vpop.permute.xlu0 %1412  ;;  %v980_v19 = vsel %vm848_vm2, %v977_v46, %v979_v45  ;;  %v625_v46 = vsel %vm490_vm1, %v623_v11, %v624_v36 }
 0x11f   :  { %v1784_v16 = vsel %vm1778_vm6, %v7368_v25, %v1413_v27  ;;  %v86_v27 = vld [vmem:[%s14410_s0 + $0x1b0] sm:$0xff] }
 0x120   :  { %1631 = vrot.lane.b32.xlu1 %v7913_v35, %s6836_s15  ;;  %757 = vrot.lane.b32.xlu0 %v622_v26, %s6833_s17  ;;  %v7934_v26 = vsel %vm1272_vm4, %v1229_v18, %v7595_v48 }
 0x122   :  { %v1604_v52 = vpop.permute.xlu1 %1603  ;;  %v7924_v30 = vpop.permute.xlu0 %729 }
 0x123   :  { %v1848_v55 = vsel %vm1843_vm7, %v1783_v15, %v1604_v52  ;;  %v981_v15 = vrot.slane %v7930_v24, 2  ;;  %v982_v52 = vrot.slane %v7927_v62, 2 }
 0x124   :  { %1113 = vrot.lane.b32.xlu1 %v978_v28, %s6834_s26  ;;  %1633 = vrot.lane.b32.xlu0 %v7934_v26, %s6836_s15  ;;  %v626_v28 = vrot.slane %v419_v5, 1 }
 0x125   :  { %6583 = vmatprep.mubr.msk.f32.mxu0 %vm1914_vm8, %v1848_v55  ;;  %v1230_v55 = vsel %vm1206_vm5, %v7179_v44, %v7608_v37  ;;  %v1231_v44 = vsel %vm1206_vm5, %v7176_v43, %v7610_v38 }
 0x126   :  { %v7946_v48 = vpop.permute.xlu1 %1085  ;;  %v1606_v57 = vpop.permute.xlu0 %1605  ;;  %v627_v18 = vsel %vm490_vm1, %v624_v36, %v626_v28  ;;  %v983_v36 = vsel %vm848_vm2, %v981_v15, %v982_v52 }
 0x127   :  { %v1849_v12 = vsel %vm1843_vm7, %v1784_v16, %v1606_v57  ;;  %v250_v16 = vrot.slane %v86_v27, 7  ;;  %v251_v57 = vrot.slane %v87_v61, 7 }
 0x128   :  { %1115 = vrot.lane.b32.xlu1 %v980_v19, %s6834_s26  ;;  %1442 = vrot.lane.b32.xlu0 %v7913_v35, %s6835_s14 }
 0x129   :  { %6584 = vmatmul.mubr.msk.f32.gmra.mrb[4].mxu0 %vm1914_vm8, %v1849_v12  ;;  %v7976_v12 = vsel %vm1272_vm4, %v1230_v55, %v7628_v14  ;;  %v7990_v14 = vsel %vm168_vm0, %v250_v16, %v251_v57  ;;  %v7993_v61 = vsel %vm168_vm0, 0.0, %v250_v16  ;;  %v420_v55 = vsel %vm168_vm0, %v251_v57, 0.0  ;;  %v89_v57 = vld [vmem:[%s14410_s0 + $0x1c8] sm:$0xff] }
 0x12a   :  { %v7955_v45 = vpop.permute.xlu1 %1087  ;;  %v1415_v25 = vpop.permute.xlu0 %1414  ;;  %14672 = vst [vmem:[#allocation40_spill] sm:$0xff] %v7990_v14  ;;  %14673 = vst [vmem:[#allocation41_spill] sm:$0xff] %v7993_v61  ;;  %v629_v38 = vrot.slane %v7990_v14, 1 }
 0x12b   :  { %v1785_v37 = vsel %vm1778_vm6, %v7397_v13, %v1415_v25  ;;  %v628_v13 = vrot.slane %v7993_v61, 1 }
 0x12c   :  { %759 = vrot.lane.b32.xlu1 %v625_v46, %s6833_s17  ;;  %1444 = vrot.lane.b32.xlu0 %v7934_v26, %s6835_s14  ;;  %v984_v46 = vrot.slane %v419_v5, 2 }
 0x12e   :  { %v7972_v19 = vpop.permute.xlu1 %731  ;;  %v1417_v11 = vpop.permute.xlu0 %1416  ;;  %v985_v43 = vsel %vm848_vm2, %v982_v52, %v984_v46  ;;  %v630_v52 = vsel %vm490_vm1, %v628_v13, %v629_v38 }
 0x12f   :  { %v1786_v25 = vsel %vm1778_vm6, %v7433_v49, %v1417_v11  ;;  %v88_v11 = vld [vmem:[%s14410_s0 + $0x1c0] sm:$0xff] }
 0x130   :  { %1635 = vrot.lane.b32.xlu1 %v7976_v12, %s6836_s15  ;;  %761 = vrot.lane.b32.xlu0 %v627_v18, %s6833_s17  ;;  %v7997_v18 = vsel %vm1272_vm4, %v1231_v44, %v7630_v10 }
 0x132   :  { %v1608_v28 = vpop.permute.xlu1 %1607  ;;  %v7987_v27 = vpop.permute.xlu0 %733 }
 0x133   :  { %v1850_v5 = vsel %vm1843_vm7, %v1785_v37, %v1608_v28  ;;  %v986_v37 = vrot.slane %v7993_v61, 2  ;;  %v987_v28 = vrot.slane %v7990_v14, 2 }
 0x134   :  { %1117 = vrot.lane.b32.xlu1 %v983_v36, %s6834_s26  ;;  %1637 = vrot.lane.b32.xlu0 %v7997_v18, %s6836_s15  ;;  %v631_v36 = vrot.slane %v420_v55, 1 }
 0x135   :  { %6586 = vmatprep.mubr.msk.f32.mxu0 %vm1914_vm8, %v1850_v5  ;;  %v1232_v5 = vsel %vm1206_vm5, %v7198_v4, %v7637_v31  ;;  %v1233_v4 = vsel %vm1206_vm5, %v7192_v60, %v7639_v59  ;;  %v14675_v31 = vld [vmem:[#allocation16_spill] sm:$0xff] }
 0x136   :  { %v8009_v10 = vpop.permute.xlu1 %1089  ;;  %v1610_v15 = vpop.permute.xlu0 %1609  ;;  %v632_v44 = vsel %vm490_vm1, %v629_v38, %v631_v36  ;;  %v988_v38 = vsel %vm848_vm2, %v986_v37, %v987_v28  ;;  %v14679_v37 = vld [vmem:[#allocation19_spill] sm:$0xff] }
 0x137   :  { %v1851_v16 = vsel %vm1843_vm7, %v1786_v25, %v1610_v15  ;;  %v253_v25 = vrot.slane %v88_v11, 7  ;;  %v254_v15 = vrot.slane %v89_v57, 7 }
 0x138   :  { %1119 = vrot.lane.b32.xlu1 %v985_v43, %s6834_s26  ;;  %1446 = vrot.lane.b32.xlu0 %v7976_v12, %s6835_s14 }
 0x139   :  { %6587 = vmatmul.mubr.msk.f32.gmra.mrb[6].mxu0 %vm1914_vm8, %v1851_v16  ;;  %v8039_v16 = vsel %vm1272_vm4, %v1232_v5, %v7656_v17  ;;  %v8053_v17 = vsel %vm168_vm0, %v253_v25, %v254_v15  ;;  %v8056_v5 = vsel %vm168_vm0, 0.0, %v253_v25 }
 0x13a   :  { %v8018_v46 = vpop.permute.xlu1 %1091  ;;  %v1419_v49 = vpop.permute.xlu0 %1418  ;;  %14674 = vst [vmem:[#allocation42_spill] sm:$0xff] %v8039_v16  ;;  %14676 = vst [vmem:[#allocation16_spill] sm:$0xff] %v8053_v17  ;;  %v633_v59 = vrot.slane %v8056_v5, 1 }
 0x13b   :  { %v1787_v36 = vsel %vm1778_vm6, %v14675_v31, %v1419_v49  ;;  %14677 = vst [vmem:[#allocation43_spill] sm:$0xff] %v8056_v5  ;;  %v634_v49 = vrot.slane %v8053_v17, 1  ;;  %v421_v31 = vsel %vm168_vm0, %v254_v15, 0.0  ;;  %v91_v15 = vld [vmem:[%s14410_s0 + $0x1d8] sm:$0xff] }
 0x13c   :  { %763 = vrot.lane.b32.xlu1 %v630_v52, %s6833_s17  ;;  %1448 = vrot.lane.b32.xlu0 %v7997_v18, %s6835_s14  ;;  %v989_v52 = vrot.slane %v420_v55, 2  ;;  %v257_v61 = vrot.slane %v91_v15, 7 }
 0x13e   :  { %v8035_v43 = vpop.permute.xlu1 %735  ;;  %v1421_v13 = vpop.permute.xlu0 %1420  ;;  %v990_v60 = vsel %vm848_vm2, %v987_v28, %v989_v52  ;;  %v635_v28 = vsel %vm490_vm1, %v633_v59, %v634_v49  ;;  %v636_v52 = vrot.slane %v421_v31, 1  ;;  %v992_v59 = vrot.slane %v8053_v17, 2  ;;  %v14682_v17 = vld [vmem:[#allocation3_spill] sm:$0xff] }
 0x13f   :  { %v1788_v25 = vsel %vm1778_vm6, %v14679_v37, %v1421_v13  ;;  %v14680_v37 = vld [vmem:[#allocation4_spill] sm:$0xff] }
 0x140   :  { %1639 = vrot.lane.b32.xlu1 %v8039_v16, %s6836_s15  ;;  %765 = vrot.lane.b32.xlu0 %v632_v44, %s6833_s17  ;;  %v8060_v44 = vsel %vm1272_vm4, %v1233_v4, %v7658_v6 }
 0x141   :  { %14678 = vst [vmem:[#allocation44_spill] sm:$0xff] %v8060_v44 }
 0x142   :  { %v1612_v11 = vpop.permute.xlu1 %1611  ;;  %v8050_v57 = vpop.permute.xlu0 %737 }
 0x143   :  { %v1852_v55 = vsel %vm1843_vm7, %v1787_v36, %v1612_v11  ;;  %v90_v11 = vld [vmem:[%s14410_s0 + $0x1d0] sm:$0xff] }
 0x144   :  { %1121 = vrot.lane.b32.xlu1 %v988_v38, %s6834_s26  ;;  %1641 = vrot.lane.b32.xlu0 %v8060_v44, %s6836_s15  ;;  %v256_v14 = vrot.slane %v90_v11, 7 }
 0x145   :  { %6589 = vmatprep.mubr.msk.f32.mxu0 %vm1914_vm8, %v1852_v55  ;;  %v637_v55 = vsel %vm490_vm1, %v634_v49, %v636_v52  ;;  %v994_v52 = vrot.slane %v421_v31, 2 }
 0x146   :  { %v8072_v6 = vpop.permute.xlu1 %1093  ;;  %v1614_v4 = vpop.permute.xlu0 %1613 }
 0x147   :  { %v1853_v38 = vsel %vm1843_vm7, %v1788_v25, %v1614_v4  ;;  %v1234_v25 = vsel %vm1206_vm5, %v14680_v37, %v7671_v41  ;;  %v1235_v41 = vsel %vm1206_vm5, %v14682_v17, %v7673_v63  ;;  %v14683_v37 = vld [vmem:[#allocation20_spill] sm:$0xff]  ;;  %v995_v63 = vsel %vm848_vm2, %v992_v59, %v994_v52 }
 0x148   :  { %1123 = vrot.lane.b32.xlu1 %v990_v60, %s6834_s26  ;;  %1450 = vrot.lane.b32.xlu0 %v8039_v16, %s6835_s14  ;;  %v991_v60 = vrot.slane %v8056_v5, 2 }
 0x149   :  { %6590 = vmatmul.mubr.msk.f32.gmra.mrb[8].mxu0 %vm1914_vm8, %v1853_v38 }
 0x14a   :  { %v8081_v36 = vpop.permute.xlu1 %1095  ;;  %v1423_v13 = vpop.permute.xlu0 %1422  ;;  %v993_v49 = vsel %vm848_vm2, %v991_v60, %v992_v59 }
 0x14b   :  { %v1789_v11 = vsel %vm1778_vm6, %v14683_v37, %v1423_v13  ;;  %v14687_v13 = vld [vmem:[#allocation23_spill] sm:$0xff]  ;;  %v422_v37 = vsel %vm168_vm0, %v257_v61, 0.0 }
 0x14c   :  { %767 = vrot.lane.b32.xlu1 %v635_v28, %s6833_s17  ;;  %1452 = vrot.lane.b32.xlu0 %v8060_v44, %s6835_s14  ;;  %v8102_v28 = vsel %vm1272_vm4, %v1234_v25, %v7691_v32  ;;  %v8116_v32 = vsel %vm168_vm0, %v256_v14, %v257_v61  ;;  %v8119_v25 = vsel %vm168_vm0, 0.0, %v256_v14  ;;  %v641_v52 = vrot.slane %v422_v37, 1  ;;  %v93_v61 = vld [vmem:[%s14410_s0 + $0x1e8] sm:$0xff] }
 0x14d   :  { %14681 = vst [vmem:[#allocation19_spill] sm:$0xff] %v8102_v28  ;;  %14684 = vst [vmem:[#allocation4_spill] sm:$0xff] %v8116_v32  ;;  %v638_v17 = vrot.slane %v8119_v25, 1  ;;  %v639_v14 = vrot.slane %v8116_v32, 1  ;;  %v260_v16 = vrot.slane %v93_v61, 7 }
 0x14e   :  { %v8098_v4 = vpop.permute.xlu1 %739  ;;  %v1425_v38 = vpop.permute.xlu0 %1424  ;;  %14685 = vst [vmem:[#allocation3_spill] sm:$0xff] %v8119_v25 }
 0x14f   :  { %v1790_v60 = vsel %vm1778_vm6, %v14687_v13, %v1425_v38  ;;  %v640_v59 = vsel %vm490_vm1, %v638_v17, %v639_v14  ;;  %v997_v17 = vrot.slane %v8116_v32, 2  ;;  %v14688_v13 = vld [vmem:[#allocation32_spill] sm:$0xff]  ;;  %v14691_v32 = vld [vmem:[#allocation33_spill] sm:$0xff] }
 0x150   :  { %1643 = vrot.lane.b32.xlu1 %v8102_v28, %s6836_s15  ;;  %769 = vrot.lane.b32.xlu0 %v637_v55, %s6833_s17  ;;  %v8123_v55 = vsel %vm1272_vm4, %v1235_v41, %v7693_v50 }
 0x151   :  { %14686 = vst [vmem:[#allocation20_spill] sm:$0xff] %v8123_v55 }
 0x152   :  { %v1616_v15 = vpop.permute.xlu1 %1615  ;;  %v8113_v5 = vpop.permute.xlu0 %741 }
 0x153   :  { %v1854_v31 = vsel %vm1843_vm7, %v1789_v11, %v1616_v15  ;;  %v92_v15 = vld [vmem:[%s14410_s0 + $0x1e0] sm:$0xff] }
 0x154   :  { %1125 = vrot.lane.b32.xlu1 %v993_v49, %s6834_s26  ;;  %1645 = vrot.lane.b32.xlu0 %v8123_v55, %s6836_s15  ;;  %v259_v44 = vrot.slane %v92_v15, 7 }
 0x155   :  { %6592 = vmatprep.mubr.msk.f32.mxu0 %vm1914_vm8, %v1854_v31  ;;  %v642_v31 = vsel %vm490_vm1, %v639_v14, %v641_v52  ;;  %v999_v52 = vrot.slane %v422_v37, 2 }
 0x156   :  { %v8135_v50 = vpop.permute.xlu1 %1097  ;;  %v1618_v41 = vpop.permute.xlu0 %1617 }
 0x157   :  { %v1855_v49 = vsel %vm1843_vm7, %v1790_v60, %v1618_v41  ;;  %v14689_v60 = vld [vmem:[#allocation6_spill] sm:$0xff] }
 0x158   :  { %1127 = vrot.lane.b32.xlu1 %v995_v63, %s6834_s26  ;;  %1454 = vrot.lane.b32.xlu0 %v8102_v28, %s6835_s14  ;;  %v996_v63 = vrot.slane %v8119_v25, 2  ;;  %v1236_v41 = vsel %vm1206_vm5, %v14689_v60, %v14688_v13  ;;  %v14692_v25 = vld [vmem:[#allocation5_spill] sm:$0xff]  ;;  %v14693_v60 = vld [vmem:[#allocation24_spill] sm:$0xff] }
 0x159   :  { %6593 = vmatmul.mubr.msk.f32.gmra.mrb[10].mxu0 %vm1914_vm8, %v1855_v49  ;;  %v1237_v13 = vsel %vm1206_vm5, %v14692_v25, %v14691_v32  ;;  %v1000_v32 = vsel %vm848_vm2, %v997_v17, %v999_v52 }
 0x15a   :  { %v8144_v11 = vpop.permute.xlu1 %1099  ;;  %v1427_v38 = vpop.permute.xlu0 %1426  ;;  %v998_v14 = vsel %vm848_vm2, %v996_v63, %v997_v17 }
 0x15b   :  { %v1791_v15 = vsel %vm1778_vm6, %v14693_v60, %v1427_v38  ;;  %v14697_v38 = vld [vmem:[#allocation27_spill] sm:$0xff]  ;;  %v423_v60 = vsel %vm168_vm0, %v260_v16, 0.0 }
 0x15c   :  { %771 = vrot.lane.b32.xlu1 %v640_v59, %s6833_s17  ;;  %1456 = vrot.lane.b32.xlu0 %v8123_v55, %s6835_s14  ;;  %v8165_v59 = vsel %vm1272_vm4, %v1236_v41, %v7719_v51  ;;  %v8179_v51 = vsel %vm168_vm0, %v259_v44, %v260_v16  ;;  %v8182_v41 = vsel %vm168_vm0, 0.0, %v259_v44  ;;  %v646_v52 = vrot.slane %v423_v60, 1  ;;  %v95_v16 = vld [vmem:[%s14410_s0 + $0x1f8] sm:$0xff] }
 0x15d   :  { %14690 = vst [vmem:[#allocation23_spill] sm:$0xff] %v8165_v59  ;;  %14694 = vst [vmem:[#allocation32_spill] sm:$0xff] %v8179_v51  ;;  %v643_v25 = vrot.slane %v8182_v41, 1  ;;  %v644_v44 = vrot.slane %v8179_v51, 1  ;;  %v263_v62 = vrot.slane %v95_v16, 7 }
 0x15e   :  { %v8161_v49 = vpop.permute.xlu1 %743  ;;  %v1429_v28 = vpop.permute.xlu0 %1428  ;;  %14695 = vst [vmem:[#allocation6_spill] sm:$0xff] %v8182_v41 }
 0x15f   :  { %v1792_v63 = vsel %vm1778_vm6, %v14697_v38, %v1429_v28  ;;  %v645_v17 = vsel %vm490_vm1, %v643_v25, %v644_v44  ;;  %v1002_v25 = vrot.slane %v8179_v51, 2  ;;  %v14698_v38 = vld [vmem:[#allocation8_spill] sm:$0xff] }
 0x160   :  { %1647 = vrot.lane.b32.xlu1 %v8165_v59, %s6836_s15  ;;  %773 = vrot.lane.b32.xlu0 %v642_v31, %s6833_s17  ;;  %v8186_v31 = vsel %vm1272_vm4, %v1237_v13, %v7721_v20 }
 0x161   :  { %14696 = vst [vmem:[#allocation33_spill] sm:$0xff] %v8186_v31 }
 0x162   :  { %v1620_v61 = vpop.permute.xlu1 %1619  ;;  %v8176_v55 = vpop.permute.xlu0 %745 }
 0x163   :  { %v1856_v37 = vsel %vm1843_vm7, %v1791_v15, %v1620_v61  ;;  %v94_v61 = vld [vmem:[%s14410_s0 + $0x1f0] sm:$0xff] }
 0x164   :  { %1129 = vrot.lane.b32.xlu1 %v998_v14, %s6834_s26  ;;  %1649 = vrot.lane.b32.xlu0 %v8186_v31, %s6836_s15 }
 0x165   :  { %6595 = vmatprep.mubr.msk.f32.mxu0 %vm1914_vm8, %v1856_v37  ;;  %v647_v37 = vsel %vm490_vm1, %v644_v44, %v646_v52  ;;  %v1004_v52 = vrot.slane %v423_v60, 2 }
 0x166   :  { %v8198_v20 = vpop.permute.xlu1 %1101  ;;  %v1622_v13 = vpop.permute.xlu0 %1621 }
 0x167   :  { %v1857_v14 = vsel %vm1843_vm7, %v1792_v63, %v1622_v13  ;;  %v1238_v63 = vsel %vm1206_vm5, %v14698_v38, %v7734_v0  ;;  %v14700_v0 = vld [vmem:[#allocation28_spill] sm:$0xff] }
 0x168   :  { %1131 = vrot.lane.b32.xlu1 %v1000_v32, %s6834_s26  ;;  %1458 = vrot.lane.b32.xlu0 %v8165_v59, %s6835_s14  ;;  %v1001_v32 = vrot.slane %v8182_v41, 2  ;;  %v262_v59 = vrot.slane %v94_v61, 7 }
 0x169   :  { %6596 = vmatmul.mubr.msk.f32.gmra.mrb[12].mxu0 %vm1914_vm8, %v1857_v14 }
 0x16a   :  { %v8207_v15 = vpop.permute.xlu1 %1103  ;;  %v1431_v28 = vpop.permute.xlu0 %1430  ;;  %v1003_v44 = vsel %vm848_vm2, %v1001_v32, %v1002_v25  ;;  %v8239_v16 = vsel %vm168_vm0, %v262_v59, %v263_v62 }
 0x16b   :  { %v1793_v38 = vsel %vm1778_vm6, %v14700_v0, %v1431_v28  ;;  %v649_v28 = vrot.slane %v8239_v16, 1 }
 0x16c   :  { %775 = vrot.lane.b32.xlu1 %v645_v17, %s6833_s17  ;;  %1460 = vrot.lane.b32.xlu0 %v8186_v31, %s6835_s14  ;;  %v1304_v17 = vsel %vm1272_vm4, %v1238_v63, %v7755_v7  ;;  %v14699_v31 = vld [vmem:[#allocation7_spill] sm:$0xff]  ;;  %v8242_v7 = vsel %vm168_vm0, 0.0, %v262_v59 }
 0x16d   :  { %v1239_v51 = vsel %vm1206_vm5, %v14699_v31, %v7736_v23  ;;  %v1005_v23 = vsel %vm848_vm2, %v1002_v25, %v1004_v52  ;;  %v648_v31 = vrot.slane %v8242_v7, 1  ;;  %v14702_v63 = vld [vmem:[#allocation31_spill] sm:$0xff] }
 0x16e   :  { %v8224_v13 = vpop.permute.xlu1 %747  ;;  %v1433_v14 = vpop.permute.xlu0 %1432 }
 0x16f   :  { %v1794_v59 = vsel %vm1778_vm6, %v14702_v63, %v1433_v14  ;;  %v650_v25 = vsel %vm490_vm1, %v648_v31, %v649_v28  ;;  %v1006_v14 = vrot.slane %v8242_v7, 2 }
 0x170   :  { %1651 = vrot.lane.b32.xlu1 %v1304_v17, %s6836_s15  ;;  %777 = vrot.lane.b32.xlu0 %v647_v37, %s6833_s17  ;;  %v14701_v37 = vld [vmem:[#allocation38_spill] sm:$0xff] }
 0x171   :  { %v1305_v32 = vsel %vm1272_vm4, %v1239_v51, %v14701_v37 }
 0x172   :  { %v1624_v41 = vpop.permute.xlu1 %1623  ;;  %v8236_v61 = vpop.permute.xlu0 %749 }
 0x173   :  { %v1858_v60 = vsel %vm1843_vm7, %v1793_v38, %v1624_v41  ;;  %v424_v41 = vsel %vm168_vm0, %v263_v62, 0.0 }
 0x174   :  { %1133 = vrot.lane.b32.xlu1 %v1003_v44, %s6834_s26  ;;  %1653 = vrot.lane.b32.xlu0 %v1305_v32, %s6836_s15  ;;  %v651_v52 = vrot.slane %v424_v41, 1 }
 0x175   :  { %6598 = vmatprep.mubr.msk.f32.mxu0 %vm1914_vm8, %v1858_v60  ;;  %v1007_v60 = vrot.slane %v8239_v16, 2 }
 0x176   :  { %v8255_v0 = vpop.permute.xlu1 %1105  ;;  %v1626_v51 = vpop.permute.xlu0 %1625  ;;  %v652_v62 = vsel %vm490_vm1, %v649_v28, %v651_v52 }
 0x177   :  { %v1859_v44 = vsel %vm1843_vm7, %v1794_v59, %v1626_v51  ;;  %v1008_v31 = vsel %vm848_vm2, %v1006_v14, %v1007_v60 }
 0x178   :  { %1135 = vrot.lane.b32.xlu1 %v1005_v23, %s6834_s26  ;;  %1462 = vrot.lane.b32.xlu0 %v1304_v17, %s6835_s14  ;;  %v1009_v23 = vrot.slane %v424_v41, 2 }
 0x179   :  { %6599 = vmatmul.mubr.msk.f32.gmra.mrb[14].mxu0 %vm1914_vm8, %v1859_v44 }
 0x17a   :  { %v8263_v38 = vpop.permute.xlu1 %1107  ;;  %v1435_v37 = vpop.permute.xlu0 %1434  ;;  %v1010_v59 = vsel %vm848_vm2, %v1007_v60, %v1009_v23 }
 0x17c   :  { %779 = vrot.lane.b32.xlu1 %v650_v25, %s6833_s17  ;;  %1464 = vrot.lane.b32.xlu0 %v1305_v32, %s6835_s14  ;;  %v14703_v32 = vld [vmem:[#allocation34_spill] sm:$0xff]  ;;  %v14704_v25 = vld [vmem:[#allocation11_spill] sm:$0xff] }
 0x17d   :  { %v1795_v28 = vsel %vm1778_vm6, %v14703_v32, %v1435_v37  ;;  %v1240_v52 = vsel %vm1206_vm5, %v14704_v25, %v7800_v53  ;;  %v14706_v37 = vld [vmem:[#allocation37_spill] sm:$0xff] }
 0x17e   :  { %v8270_v17 = vpop.permute.xlu1 %751  ;;  %v1437_v63 = vpop.permute.xlu0 %1436 }
 0x17f   :  { %v1796_v60 = vsel %vm1778_vm6, %v14706_v37, %v1437_v63 }
 0x180   :  { %1655 = vrot.lane.b32.xlu1 %v7776_v34, %s6836_s15  ;;  %781 = vrot.lane.b32.xlu0 %v652_v62, %s6833_s17  ;;  %v14705_v62 = vld [vmem:[#allocation10_spill] sm:$0xff] }
 0x181   :  { %v1241_v14 = vsel %vm1206_vm5, %v14705_v62, %v7820_v58  ;;  %v14707_v58 = vld [vmem:[#allocation13_spill] sm:$0xff] }
 0x182   :  { %v1628_v51 = vpop.permute.xlu1 %1627  ;;  %v8279_v44 = vpop.permute.xlu0 %753  ;;  %v1242_v63 = vsel %vm1206_vm5, %v14707_v58, %v7827_v9 }
 0x183   :  { %v1860_v41 = vsel %vm1843_vm7, %v1795_v28, %v1628_v51 }
 0x184   :  { %1137 = vrot.lane.b32.xlu1 %v1008_v31, %s6834_s26  ;;  %1139 = vrot.lane.b32.xlu0 %v1010_v59, %s6834_s26  ;;  %v8297_v31 = vsel %vm1272_vm4, %v1240_v52, %v7829_v22  ;;  %v8301_v59 = vsel %vm1272_vm4, %v1241_v14, %v7863_v56  ;;  %v14708_v22 = vld [vmem:[#allocation12_spill] sm:$0xff]  ;;  %v14710_v52 = vld [vmem:[#allocation14_spill] sm:$0xff] }
 0x185   :  { %6601 = vmatprep.mubr.msk.f32.mxu0 %vm1914_vm8, %v1860_v41  ;;  %v1243_v28 = vsel %vm1206_vm5, %v14708_v22, %v7861_v8  ;;  %v8319_v41 = vsel %vm1272_vm4, %v1242_v63, %v7883_v21  ;;  %v14709_v21 = vld [vmem:[#allocation15_spill] sm:$0xff]  ;;  %v1245_v62 = vsel %vm1206_vm5, %v14710_v52, %v7924_v30  ;;  %v14712_v22 = vld [vmem:[#allocation17_spill] sm:$0xff] }
 0x186   :  { %v8293_v23 = vpop.permute.xlu1 %1109  ;;  %v1630_v32 = vpop.permute.xlu0 %1629  ;;  %v8323_v25 = vsel %vm1272_vm4, %v1243_v28, %v7892_v2  ;;  %v1244_v2 = vsel %vm1206_vm5, %v14709_v21, %v7909_v54 }
 0x187   :  { %v1861_v53 = vsel %vm1843_vm7, %v1796_v60, %v1630_v32  ;;  %v8347_v32 = vsel %vm1272_vm4, %v1244_v2, %v7946_v48  ;;  %v14714_v2 = vld [vmem:[#allocation21_spill] sm:$0xff] }
 0x188   :  { %1466 = vrot.lane.b32.xlu1 %v8297_v31, %s6835_s14  ;;  %1468 = vrot.lane.b32.xlu0 %v8301_v59, %s6835_s14  ;;  %v1249_v52 = vsel %vm1206_vm5, %v14714_v2, %v8050_v57 }
 0x189   :  { %6602 = vmatmul.mubr.msk.f32.gmra.mrb[16].mxu0 %vm1914_vm8, %v1861_v53  ;;  %v8351_v53 = vsel %vm1272_vm4, %v1245_v62, %v7955_v45  ;;  %v14711_v45 = vld [vmem:[#allocation18_spill] sm:$0xff] }
 0x18a   :  { %v8315_v56 = vpop.permute.xlu1 %1111  ;;  %v1439_v51 = vpop.permute.xlu0 %1438  ;;  %v1246_v63 = vsel %vm1206_vm5, %v14711_v45, %v7972_v19  ;;  %v14716_v45 = vld [vmem:[#allocation25_spill] sm:$0xff] }
 0x18b   :  { %v1797_v14 = vsel %vm1778_vm6, %v7787_v42, %v1439_v51 }
 0x18c   :  { %1657 = vrot.lane.b32.xlu1 %v8319_v41, %s6836_s15  ;;  %1659 = vrot.lane.b32.xlu0 %v8323_v25, %s6836_s15 }
 0x18e   :  { %v8329_v9 = vpop.permute.xlu1 %755  ;;  %v1441_v8 = vpop.permute.xlu0 %1440 }
 0x18f   :  { %v1798_v42 = vsel %vm1778_vm6, %v7810_v1, %v1441_v8  ;;  %v1247_v1 = vsel %vm1206_vm5, %v14712_v22, %v7987_v27  ;;  %v8379_v8 = vsel %vm1272_vm4, %v1246_v63, %v8009_v10  ;;  %v14713_v10 = vld [vmem:[#allocation22_spill] sm:$0xff] }
 0x190   :  { %1470 = vrot.lane.b32.xlu1 %v8319_v41, %s6835_s14  ;;  %1472 = vrot.lane.b32.xlu0 %v8323_v25, %s6835_s14  ;;  %v8383_v21 = vsel %vm1272_vm4, %v1247_v1, %v8018_v46  ;;  %v1248_v46 = vsel %vm1206_vm5, %v14713_v10, %v8035_v43 }
 0x192   :  { %v1632_v37 = vpop.permute.xlu1 %1631  ;;  %v8343_v60 = vpop.permute.xlu0 %757 }
 0x193   :  { %v1862_v54 = vsel %vm1843_vm7, %v1797_v14, %v1632_v37 }
 0x194   :  { %1661 = vrot.lane.b32.xlu1 %v8347_v32, %s6836_s15  ;;  %1663 = vrot.lane.b32.xlu0 %v8351_v53, %s6836_s15 }
 0x195   :  { %6604 = vmatprep.mubr.msk.f32.mxu0 %vm1914_vm8, %v1862_v54  ;;  %v8407_v54 = vsel %vm1272_vm4, %v1248_v46, %v8072_v6 }
 0x196   :  { %v8361_v30 = vpop.permute.xlu1 %1113  ;;  %v1634_v48 = vpop.permute.xlu0 %1633 }
 0x197   :  { %v1863_v58 = vsel %vm1843_vm7, %v1798_v42, %v1634_v48  ;;  %v8411_v42 = vsel %vm1272_vm4, %v1249_v52, %v8081_v36  ;;  %v14715_v36 = vld [vmem:[#allocation26_spill] sm:$0xff] }
 0x198   :  { %1474 = vrot.lane.b32.xlu1 %v8347_v32, %s6835_s14  ;;  %1476 = vrot.lane.b32.xlu0 %v8351_v53, %s6835_s14 }
 0x199   :  { %6605 = vmatmul.mubr.msk.f32.gmra.mrb[18].mxu0 %vm1914_vm8, %v1863_v58  ;;  %v1250_v58 = vsel %vm1206_vm5, %v14715_v36, %v8098_v4 }
 0x19a   :  { %v8375_v28 = vpop.permute.xlu1 %1115  ;;  %v1443_v51 = vpop.permute.xlu0 %1442  ;;  %v8439_v1 = vsel %vm1272_vm4, %v1250_v58, %v8135_v50  ;;  %v14717_v50 = vld [vmem:[#allocation30_spill] sm:$0xff] }
 0x19b   :  { %v1799_v62 = vsel %vm1778_vm6, %v7850_v40, %v1443_v51 }
 0x19c   :  { %1665 = vrot.lane.b32.xlu1 %v8379_v8, %s6836_s15  ;;  %1667 = vrot.lane.b32.xlu0 %v8383_v21, %s6836_s15 }
 0x19e   :  { %v8389_v19 = vpop.permute.xlu1 %759  ;;  %v1445_v27 = vpop.permute.xlu0 %1444 }
 0x19f   :  { %v1800_v40 = vsel %vm1778_vm6, %v7873_v47, %v1445_v27  ;;  %v1251_v47 = vsel %vm1206_vm5, %v14716_v45, %v8113_v5  ;;  %v14718_v27 = vld [vmem:[#allocation29_spill] sm:$0xff] }
 0x1a0   :  { %1478 = vrot.lane.b32.xlu1 %v8379_v8, %s6835_s14  ;;  %1480 = vrot.lane.b32.xlu0 %v8383_v21, %s6835_s14  ;;  %v8443_v51 = vsel %vm1272_vm4, %v1251_v47, %v8144_v11  ;;  %v1252_v11 = vsel %vm1206_vm5, %v14717_v50, %v8161_v49  ;;  %v1253_v10 = vsel %vm1206_vm5, %v14718_v27, %v8176_v55 }
 0x1a2   :  { %v1636_v14 = vpop.permute.xlu1 %1635  ;;  %v8403_v37 = vpop.permute.xlu0 %761 }
 0x1a3   :  { %v1864_v43 = vsel %vm1843_vm7, %v1799_v62, %v1636_v14  ;;  %v8467_v62 = vsel %vm1272_vm4, %v1252_v11, %v8198_v20  ;;  %v8471_v14 = vsel %vm1272_vm4, %v1253_v10, %v8207_v15  ;;  %v14719_v15 = vld [vmem:[#allocation36_spill] sm:$0xff] }
 0x1a4   :  { %1669 = vrot.lane.b32.xlu1 %v8407_v54, %s6836_s15  ;;  %1671 = vrot.lane.b32.xlu0 %v8411_v42, %s6836_s15 }
 0x1a5   :  { %6607 = vmatprep.mubr.msk.f32.mxu0 %vm1914_vm8, %v1864_v43 }
 0x1a6   :  { %v8421_v57 = vpop.permute.xlu1 %1117  ;;  %v1638_v6 = vpop.permute.xlu0 %1637 }
 0x1a7   :  { %v1865_v48 = vsel %vm1843_vm7, %v1800_v40, %v1638_v6  ;;  %v1254_v40 = vsel %vm1206_vm5, %v14719_v15, %v8224_v13  ;;  %v14720_v6 = vld [vmem:[#allocation35_spill] sm:$0xff] }
 0x1a8   :  { %1482 = vrot.lane.b32.xlu1 %v8407_v54, %s6835_s14  ;;  %1484 = vrot.lane.b32.xlu0 %v8411_v42, %s6835_s14  ;;  %v8499_v58 = vsel %vm1272_vm4, %v1254_v40, %v8255_v0  ;;  %v1256_v0 = vsel %vm1206_vm5, %v7806_v3, %v8270_v17 }
 0x1a9   :  { %6608 = vmatmul.mubr.msk.f32.gmra.mrb[20].mxu0 %vm1914_vm8, %v1865_v48  ;;  %v8525_v50 = vsel %vm1272_vm4, %v1256_v0, %v8293_v23 }
 0x1aa   :  { %v8435_v63 = vpop.permute.xlu1 %1119  ;;  %v1447_v22 = vpop.permute.xlu0 %1446 }
 0x1ab   :  { %v1801_v46 = vsel %vm1778_vm6, %v7913_v35, %v1447_v22 }
 0x1ac   :  { %1673 = vrot.lane.b32.xlu1 %v8439_v1, %s6836_s15  ;;  %1675 = vrot.lane.b32.xlu0 %v8443_v51, %s6836_s15 }
 0x1ae   :  { %v8449_v4 = vpop.permute.xlu1 %763  ;;  %v1449_v5 = vpop.permute.xlu0 %1448 }
 0x1af   :  { %v1802_v35 = vsel %vm1778_vm6, %v7934_v26, %v1449_v5  ;;  %v1255_v26 = vsel %vm1206_vm5, %v14720_v6, %v8236_v61 }
 0x1b0   :  { %1486 = vrot.lane.b32.xlu1 %v8439_v1, %s6835_s14  ;;  %1488 = vrot.lane.b32.xlu0 %v8443_v51, %s6835_s14  ;;  %v8503_v45 = vsel %vm1272_vm4, %v1255_v26, %v8263_v38  ;;  %v1257_v38 = vsel %vm1206_vm5, %v7803_v39, %v8279_v44  ;;  %v1258_v44 = vsel %vm1206_vm5, %v7869_v33, %v8329_v9  ;;  %v14724_v26 = vld [vmem:[#allocation41_spill] sm:$0xff] }
 0x1b1   :  { %v8529_v11 = vsel %vm1272_vm4, %v1257_v38, %v8315_v56  ;;  %v8553_v10 = vsel %vm1272_vm4, %v1258_v44, %v8361_v30 }
 0x1b2   :  { %v1640_v2 = vpop.permute.xlu1 %1639  ;;  %v8463_v52 = vpop.permute.xlu0 %765 }
 0x1b3   :  { %v1866_v49 = vsel %vm1843_vm7, %v1801_v46, %v1640_v2 }
 0x1b4   :  { %1677 = vrot.lane.b32.xlu1 %v8467_v62, %s6836_s15  ;;  %1679 = vrot.lane.b32.xlu0 %v8471_v14, %s6836_s15 }
 0x1b5   :  { %6610 = vmatprep.mubr.msk.f32.mxu0 %vm1914_vm8, %v1866_v49 }
 0x1b6   :  { %v8481_v55 = vpop.permute.xlu1 %1121  ;;  %v1642_v20 = vpop.permute.xlu0 %1641 }
 0x1b7   :  { %v1867_v43 = vsel %vm1843_vm7, %v1802_v35, %v1642_v20 }
 0x1b8   :  { %1490 = vrot.lane.b32.xlu1 %v8467_v62, %s6835_s14  ;;  %1492 = vrot.lane.b32.xlu0 %v8471_v14, %s6835_s14 }
 0x1b9   :  { %6611 = vmatmul.mubr.msk.f32.gmra.mrb[22].mxu0 %vm1914_vm8, %v1867_v43 }
 0x1ba   :  { %v8495_v48 = vpop.permute.xlu1 %1123  ;;  %v1451_v36 = vpop.permute.xlu0 %1450 }
 0x1bb   :  { %v1803_v47 = vsel %vm1778_vm6, %v7976_v12, %v1451_v36  ;;  %v1262_v36 = vsel %vm1206_vm5, %v14724_v26, %v8449_v4 }
 0x1bc   :  { %1681 = vrot.lane.b32.xlu1 %v8499_v58, %s6836_s15  ;;  %1683 = vrot.lane.b32.xlu0 %v8503_v45, %s6836_s15 }
 0x1be   :  { %v8509_v13 = vpop.permute.xlu1 %767  ;;  %v1453_v61 = vpop.permute.xlu0 %1452 }
 0x1bf   :  { %v1804_v39 = vsel %vm1778_vm6, %v7997_v18, %v1453_v61  ;;  %v1259_v18 = vsel %vm1206_vm5, %v7866_v29, %v8343_v60  ;;  %v1260_v29 = vsel %vm1206_vm5, %v7930_v24, %v8389_v19  ;;  %v14721_v60 = vld [vmem:[#allocation39_spill] sm:$0xff]  ;;  %v14723_v24 = vld [vmem:[#allocation44_spill] sm:$0xff] }
 0x1c0   :  { %1494 = vrot.lane.b32.xlu1 %v8499_v58, %s6835_s14  ;;  %1496 = vrot.lane.b32.xlu0 %v8503_v45, %s6835_s14  ;;  %v8557_v46 = vsel %vm1272_vm4, %v1259_v18, %v8375_v28  ;;  %v1261_v30 = vsel %vm1206_vm5, %v14721_v60, %v8403_v37  ;;  %v14722_v28 = vld [vmem:[#allocation42_spill] sm:$0xff]  ;;  %v8577_v20 = vsel %vm1272_vm4, %v1260_v29, %v8421_v57  ;;  %v14725_v61 = vld [vmem:[#allocation40_spill] sm:$0xff] }
 0x1c1   :  { %v8581_v43 = vsel %vm1272_vm4, %v1261_v30, %v8435_v63  ;;  %v1263_v0 = vsel %vm1206_vm5, %v14725_v61, %v8463_v52  ;;  %v14726_v52 = vld [vmem:[#allocation43_spill] sm:$0xff] }
 0x1c2   :  { %v1644_v22 = vpop.permute.xlu1 %1643  ;;  %v770_v5 = vpop.permute.xlu0 %769 }
 0x1c3   :  { %v1868_v27 = vsel %vm1843_vm7, %v1803_v47, %v1644_v22  ;;  %v8609_v22 = vsel %vm1272_vm4, %v1262_v36, %v8481_v55  ;;  %v1264_v55 = vsel %vm1206_vm5, %v14726_v52, %v8509_v13  ;;  %v14729_v13 = vld [vmem:[#allocation20_spill] sm:$0xff] }
 0x1c4   :  { %1685 = vrot.lane.b32.xlu1 %v8525_v50, %s6836_s15  ;;  %1687 = vrot.lane.b32.xlu0 %v8529_v11, %s6836_s15 }
 0x1c5   :  { %6613 = vmatprep.mubr.msk.f32.mxu0 %vm1914_vm8, %v1868_v27  ;;  %v8613_v27 = vsel %vm1272_vm4, %v1263_v0, %v8495_v48  ;;  %v14727_v48 = vld [vmem:[#allocation16_spill] sm:$0xff] }
 0x1c6   :  { %v1126_v3 = vpop.permute.xlu1 %1125  ;;  %v1646_v12 = vpop.permute.xlu0 %1645  ;;  %v14733_v0 = vld [vmem:[#allocation32_spill] sm:$0xff] }
 0x1c7   :  { %v1869_v17 = vsel %vm1843_vm7, %v1804_v39, %v1646_v12  ;;  %v1265_v12 = vsel %vm1206_vm5, %v14727_v48, %v770_v5 }
 0x1c8   :  { %1498 = vrot.lane.b32.xlu1 %v8525_v50, %s6835_s14  ;;  %1500 = vrot.lane.b32.xlu0 %v8529_v11, %s6835_s14 }
 0x1c9   :  { %6614 = vmatmul.mubr.msk.f32.gmra.mrb[24].mxu0 %vm1914_vm8, %v1869_v17  ;;  %v14728_v17 = vld [vmem:[#allocation19_spill] sm:$0xff] }
 0x1ca   :  { %v1128_v23 = vpop.permute.xlu1 %1127  ;;  %v1455_v56 = vpop.permute.xlu0 %1454 }
 0x1cb   :  { %v1805_v2 = vsel %vm1778_vm6, %v14722_v28, %v1455_v56  ;;  %v8634_v29 = vsel %vm1272_vm4, %v1265_v12, %v1128_v23  ;;  %v14730_v23 = vld [vmem:[#allocation3_spill] sm:$0xff] }
 0x1cc   :  { %1689 = vrot.lane.b32.xlu1 %v8553_v10, %s6836_s15  ;;  %1691 = vrot.lane.b32.xlu0 %v8557_v46, %s6836_s15 }
 0x1ce   :  { %v772_v33 = vpop.permute.xlu1 %771  ;;  %v1457_v9 = vpop.permute.xlu0 %1456 }
 0x1cf   :  { %v1806_v19 = vsel %vm1778_vm6, %v14723_v24, %v1457_v9  ;;  %v8631_v9 = vsel %vm1272_vm4, %v1264_v55, %v1126_v3 }
 0x1d0   :  { %1502 = vrot.lane.b32.xlu1 %v8553_v10, %s6835_s14  ;;  %1504 = vrot.lane.b32.xlu0 %v8557_v46, %s6835_s14 }
 0x1d2   :  { %v1648_v49 = vpop.permute.xlu1 %1647  ;;  %v774_v35 = vpop.permute.xlu0 %773 }
 0x1d3   :  { %v1870_v15 = vsel %vm1843_vm7, %v1805_v2, %v1648_v49  ;;  %v1266_v2 = vsel %vm1206_vm5, %v14730_v23, %v772_v33  ;;  %v14731_v49 = vld [vmem:[#allocation4_spill] sm:$0xff] }
 0x1d4   :  { %1693 = vrot.lane.b32.xlu1 %v8577_v20, %s6836_s15  ;;  %1695 = vrot.lane.b32.xlu0 %v8581_v43, %s6836_s15 }
 0x1d5   :  { %6616 = vmatprep.mubr.msk.f32.mxu0 %vm1914_vm8, %v1870_v15  ;;  %v1267_v15 = vsel %vm1206_vm5, %v14731_v49, %v774_v35 }
 0x1d6   :  { %v1130_v37 = vpop.permute.xlu1 %1129  ;;  %v1650_v57 = vpop.permute.xlu0 %1649 }
 0x1d7   :  { %v1871_v40 = vsel %vm1843_vm7, %v1806_v19, %v1650_v57  ;;  %v8655_v57 = vsel %vm1272_vm4, %v1266_v2, %v1130_v37  ;;  %v14732_v37 = vld [vmem:[#allocation6_spill] sm:$0xff] }
 0x1d8   :  { %v8592_v6 = vpop.f32.mrb[0].mxu0  ;;  %1506 = vrot.lane.b32.xlu1 %v8577_v20, %s6835_s14  ;;  %1508 = vrot.lane.b32.xlu0 %v8581_v43, %s6835_s14 }
 0x1d9   :  { %v8598_v63 = vpop.f32.mrb[1].mxu0  ;;  %6617 = vmatmul.mubr.msk.f32.gmra.mrb[26].mxu0 %vm1914_vm8, %v1871_v40 }
 0x1da   :  { %v1132_v38 = vpop.permute.xlu1 %1131  ;;  %v1459_v47 = vpop.permute.xlu0 %1458 }
 0x1db   :  { %v1807_v44 = vsel %vm1778_vm6, %v14728_v17, %v1459_v47  ;;  %v8658_v40 = vsel %vm1272_vm4, %v1267_v15, %v1132_v38  ;;  %v14734_v47 = vld [vmem:[#allocation23_spill] sm:$0xff]  ;;  %v14735_v17 = vld [vmem:[#allocation33_spill] sm:$0xff] }
 0x1dc   :  { %1697 = vrot.lane.b32.xlu1 %v8609_v22, %s6836_s15  ;;  %1699 = vrot.lane.b32.xlu0 %v8613_v27, %s6836_s15 }
 0x1de   :  { %v776_v4 = vpop.permute.xlu1 %775  ;;  %v1461_v39 = vpop.permute.xlu0 %1460 }
 0x1df   :  { %v1808_v5 = vsel %vm1778_vm6, %v14729_v13, %v1461_v39  ;;  %v1268_v61 = vsel %vm1206_vm5, %v14732_v37, %v776_v4 }
 0x1e0   :  { %1510 = vrot.lane.b32.xlu1 %v8609_v22, %s6835_s14  ;;  %1512 = vrot.lane.b32.xlu0 %v8613_v27, %s6835_s14 }
 0x1e2   :  { %v1652_v18 = vpop.permute.xlu1 %1651  ;;  %v778_v56 = vpop.permute.xlu0 %777 }
 0x1e3   :  { %v1872_v60 = vsel %vm1843_vm7, %v1807_v44, %v1652_v18  ;;  %v1269_v38 = vsel %vm1206_vm5, %v14733_v0, %v778_v56 }
 0x1e4   :  { %1701 = vrot.lane.b32.xlu1 %v8631_v9, %s6836_s15  ;;  %1703 = vrot.lane.b32.xlu0 %v8634_v29, %s6836_s15 }
 0x1e5   :  { %6619 = vmatprep.mubr.msk.f32.mxu0 %vm1914_vm8, %v1872_v60 }
 0x1e6   :  { %v1134_v30 = vpop.permute.xlu1 %1133  ;;  %v1654_v28 = vpop.permute.xlu0 %1653 }
 0x1e7   :  { %v1873_v3 = vsel %vm1843_vm7, %v1808_v5, %v1654_v28  ;;  %v8681_v48 = vsel %vm1272_vm4, %v1268_v61, %v1134_v30  ;;  %v14736_v61 = vld [vmem:[#allocation2_spill] sm:$0xff] }
 0x1e8   :  { %1514 = vrot.lane.b32.xlu1 %v8631_v9, %s6835_s14  ;;  %1516 = vrot.lane.b32.xlu0 %v8634_v29, %s6835_s14 }
 0x1e9   :  { %6620 = vmatmul.mubr.msk.f32.gmra.mrb[28].mxu0 %vm1914_vm8, %v1873_v3 }
 0x1ea   :  { %v1136_v24 = vpop.permute.xlu1 %1135  ;;  %v1463_v19 = vpop.permute.xlu0 %1462 }
 0x1eb   :  { %v1809_v39 = vsel %vm1778_vm6, %v14734_v47, %v1463_v19  ;;  %v8684_v12 = vsel %vm1272_vm4, %v1269_v38, %v1136_v24 }
 0x1ec   :  { %v8660_v26 = vpop.f32.mrb[2].mxu0  ;;  %1705 = vrot.lane.b32.xlu1 %v8655_v57, %s6836_s15  ;;  %1707 = vrot.lane.b32.xlu0 %v8658_v40, %s6836_s15 }
 0x1ed   :  { %v8666_v33 = vpop.f32.mrb[3].mxu0 }
 0x1ee   :  { %v780_v36 = vpop.permute.xlu1 %779  ;;  %v1465_v35 = vpop.permute.xlu0 %1464 }
 0x1ef   :  { %v1810_v44 = vsel %vm1778_vm6, %v14735_v17, %v1465_v35  ;;  %v1270_v13 = vsel %vm1206_vm5, %v8242_v7, %v780_v36 }
 0x1f0   :  { %1518 = vrot.lane.b32.xlu1 %v8655_v57, %s6835_s14  ;;  %1520 = vrot.lane.b32.xlu0 %v8658_v40, %s6835_s14 }
 0x1f2   :  { %v8678_v52 = vpop.permute.xlu1 %1655  ;;  %v782_v55 = vpop.permute.xlu0 %781 }
 0x1f3   :  { %v1874_v4 = vsel %vm1843_vm7, %v1809_v39, %v8678_v52  ;;  %v1875_v18 = vsel %vm1843_vm7, %v1810_v44, %v8678_v52  ;;  %v1271_v5 = vsel %vm1206_vm5, %v8239_v16, %v782_v55 }
 0x1f4   :  { %1709 = vrot.lane.b32.xlu1 %v8681_v48, %s6836_s15  ;;  %1711 = vrot.lane.b32.xlu0 %v8684_v12, %s6836_s15 }
 0x1f5   :  { %6622 = vmatprep.mubr.msk.f32.mxu0 %vm1914_vm8, %v1874_v4 }
 0x1f6   :  { %6623 = vmatmul.mubr.msk.f32.gmra.mrb[30].mxu0 %vm1914_vm8, %v1875_v18  ;;  %v1138_v56 = vpop.permute.xlu1 %1137  ;;  %v1140_v60 = vpop.permute.xlu0 %1139 }
 0x1f7   :  { %v1336_v3 = vsel %vm1272_vm4, %v1270_v13, %v1138_v56  ;;  %v1337_v23 = vsel %vm1272_vm4, %v1271_v5, %v1140_v60 }
 0x1f8   :  { %1522 = vrot.lane.b32.xlu1 %v8681_v48, %s6835_s14  ;;  %1524 = vrot.lane.b32.xlu0 %v8684_v12, %s6835_s14 }
 0x1fa   :  { %v1467_v30 = vpop.permute.xlu1 %1466  ;;  %v1469_v28 = vpop.permute.xlu0 %1468 }
 0x1fb   :  { %v1811_v7 = vsel %vm1778_vm6, %v7776_v34, %v1467_v30  ;;  %v1812_v16 = vsel %vm1778_vm6, %v7776_v34, %v1469_v28 }
 0x1fc   :  { %v8708_v2 = vpop.f32.mrb[4].mxu0  ;;  %1713 = vrot.lane.b32.xlu1 %v1336_v3, %s6836_s15  ;;  %1715 = vrot.lane.b32.xlu0 %v1337_v23, %s6836_s15 }
 0x1fd   :  { %v8712_v49 = vpop.f32.mrb[5].mxu0 }
 0x1fe   :  { %v1658_v15 = vpop.permute.xlu1 %1657  ;;  %v1660_v24 = vpop.permute.xlu0 %1659 }
 0x1ff   :  { %v1876_v19 = vsel %vm1843_vm7, %v1811_v7, %v1658_v15  ;;  %v1877_v36 = vsel %vm1843_vm7, %v1812_v16, %v1660_v24 }
 0x200   :  { %1526 = vrot.lane.b32.xlu1 %v1336_v3, %s6835_s14  ;;  %6625 = vmatprep.mubr.msk.f32.mxu0 %vm1914_vm8, %v1876_v19 }
 0x201   :  { %1528 = vrot.lane.b32.xlu0 %v1337_v23, %s6835_s14  ;;  %6626 = vmatmul.mubr.msk.f32.gmra.mrb[32].mxu0 %vm1914_vm8, %v1877_v36 }
 0x202   :  { %v1471_v35 = vpop.permute.xlu1 %1470  ;;  %v1473_v37 = vpop.permute.xlu0 %1472 }
 0x203   :  { %v1813_v34 = vsel %vm1778_vm6, %v8297_v31, %v1471_v35  ;;  %v1814_v0 = vsel %vm1778_vm6, %v8301_v59, %v1473_v37 }
 0x204   :  { %3720 = vrot.lane.b32.xlu1 %v14736_v61, %s6834_s26 }
 0x206   :  { %v1662_v38 = vpop.permute.xlu1 %1661  ;;  %v1664_v47 = vpop.permute.xlu0 %1663 }
 0x207   :  { %v1878_v39 = vsel %vm1843_vm7, %v1813_v34, %v1662_v38  ;;  %v1879_v55 = vsel %vm1843_vm7, %v1814_v0, %v1664_v47 }
 0x208   :  { %6628 = vmatprep.mubr.msk.f32.mxu0 %vm1914_vm8, %v1878_v39 }
 0x209   :  { %6629 = vmatmul.mubr.msk.f32.gmra.mrb[34].mxu0 %vm1914_vm8, %v1879_v55 }
 0x20a   :  { %v1475_v17 = vpop.permute.xlu1 %1474  ;;  %v1477_v44 = vpop.permute.xlu0 %1476 }
 0x20b   :  { %v1815_v31 = vsel %vm1778_vm6, %v8319_v41, %v1475_v17  ;;  %v1816_v59 = vsel %vm1778_vm6, %v8323_v25, %v1477_v44 }
 0x20c   :  { %v8734_v4 = vpop.f32.mrb[6].mxu0 }
 0x20d   :  { %v8736_v18 = vpop.f32.mrb[7].mxu0 }
 0x20e   :  { %v1666_v56 = vpop.permute.xlu1 %1665  ;;  %v1668_v60 = vpop.permute.xlu0 %1667 }
 0x20f   :  { %v1880_v13 = vsel %vm1843_vm7, %v1815_v31, %v1666_v56  ;;  %v1881_v5 = vsel %vm1843_vm7, %v1816_v59, %v1668_v60 }
 0x210   :  { %6631 = vmatprep.mubr.msk.f32.mxu0 %vm1914_vm8, %v1880_v13 }
 0x211   :  { %6632 = vmatmul.mubr.msk.f32.gmra.mrb[36].mxu0 %vm1914_vm8, %v1881_v5 }
 0x212   :  { %v1479_v30 = vpop.permute.xlu1 %1478  ;;  %v1481_v28 = vpop.permute.xlu0 %1480 }
 0x213   :  { %v1817_v3 = vsel %vm1778_vm6, %v8347_v32, %v1479_v30  ;;  %v1818_v41 = vsel %vm1778_vm6, %v8351_v53, %v1481_v28 }
 0x216   :  { %v1670_v23 = vpop.permute.xlu1 %1669  ;;  %v1672_v25 = vpop.permute.xlu0 %1671 }
 0x217   :  { %v1882_v7 = vsel %vm1843_vm7, %v1817_v3, %v1670_v23  ;;  %v1883_v16 = vsel %vm1843_vm7, %v1818_v41, %v1672_v25 }
 0x218   :  { %6634 = vmatprep.mubr.msk.f32.mxu0 %vm1914_vm8, %v1882_v7 }
 0x219   :  { %6635 = vmatmul.mubr.msk.f32.gmra.mrb[38].mxu0 %vm1914_vm8, %v1883_v16 }
 0x21a   :  { %v1483_v15 = vpop.permute.xlu1 %1482  ;;  %v1485_v24 = vpop.permute.xlu0 %1484 }
 0x21b   :  { %v1819_v32 = vsel %vm1778_vm6, %v8379_v8, %v1483_v15  ;;  %v1820_v53 = vsel %vm1778_vm6, %v8383_v21, %v1485_v24 }
 0x21c   :  { %v8754_v19 = vpop.f32.mrb[8].mxu0 }
 0x21d   :  { %v8756_v36 = vpop.f32.mrb[9].mxu0 }
 0x21e   :  { %v1674_v35 = vpop.permute.xlu1 %1673  ;;  %v1676_v37 = vpop.permute.xlu0 %1675 }
 0x21f   :  { %v1884_v61 = vsel %vm1843_vm7, %v1819_v32, %v1674_v35  ;;  %v1885_v34 = vsel %vm1843_vm7, %v1820_v53, %v1676_v37 }
 0x220   :  { %6637 = vmatprep.mubr.msk.f32.mxu0 %vm1914_vm8, %v1884_v61 }
 0x221   :  { %6638 = vmatmul.mubr.msk.f32.gmra.mrb[40].mxu0 %vm1914_vm8, %v1885_v34 }
 0x222   :  { %v1487_v0 = vpop.permute.xlu1 %1486  ;;  %v1489_v38 = vpop.permute.xlu0 %1488 }
 0x223   :  { %v1821_v47 = vsel %vm1778_vm6, %v8407_v54, %v1487_v0  ;;  %v1822_v8 = vsel %vm1778_vm6, %v8411_v42, %v1489_v38 }
 0x226   :  { %v1678_v39 = vpop.permute.xlu1 %1677  ;;  %v1680_v21 = vpop.permute.xlu0 %1679 }
 0x227   :  { %v1886_v55 = vsel %vm1843_vm7, %v1821_v47, %v1678_v39  ;;  %v1887_v17 = vsel %vm1843_vm7, %v1822_v8, %v1680_v21 }
 0x228   :  { %6640 = vmatprep.mubr.msk.f32.mxu0 %vm1914_vm8, %v1886_v55 }
 0x229   :  { %6641 = vmatmul.mubr.msk.f32.gmra.mrb[42].mxu0 %vm1914_vm8, %v1887_v17 }
 0x22a   :  { %v1491_v44 = vpop.permute.xlu1 %1490  ;;  %v1493_v31 = vpop.permute.xlu0 %1492 }
 0x22b   :  { %v1823_v54 = vsel %vm1778_vm6, %v8439_v1, %v1491_v44  ;;  %v1824_v42 = vsel %vm1778_vm6, %v8443_v51, %v1493_v31 }
 0x22c   :  { %v8774_v59 = vpop.f32.mrb[10].mxu0 }
 0x22d   :  { %v8776_v56 = vpop.f32.mrb[11].mxu0 }
 0x22e   :  { %v1682_v60 = vpop.permute.xlu1 %1681  ;;  %v1684_v13 = vpop.permute.xlu0 %1683 }
 0x22f   :  { %v1888_v5 = vsel %vm1843_vm7, %v1823_v54, %v1682_v60  ;;  %v1889_v30 = vsel %vm1843_vm7, %v1824_v42, %v1684_v13 }
 0x230   :  { %6643 = vmatprep.mubr.msk.f32.mxu0 %vm1914_vm8, %v1888_v5 }
 0x231   :  { %6644 = vmatmul.mubr.msk.f32.gmra.mrb[44].mxu0 %vm1914_vm8, %v1889_v30 }
 0x232   :  { %v1495_v28 = vpop.permute.xlu1 %1494  ;;  %v1497_v3 = vpop.permute.xlu0 %1496 }
 0x233   :  { %v1825_v41 = vsel %vm1778_vm6, %v8467_v62, %v1495_v28  ;;  %v1826_v1 = vsel %vm1778_vm6, %v8471_v14, %v1497_v3 }
 0x236   :  { %v1686_v23 = vpop.permute.xlu1 %1685  ;;  %v1688_v51 = vpop.permute.xlu0 %1687 }
 0x237   :  { %v1890_v25 = vsel %vm1843_vm7, %v1825_v41, %v1686_v23  ;;  %v1891_v7 = vsel %vm1843_vm7, %v1826_v1, %v1688_v51 }
 0x238   :  { %6646 = vmatprep.mubr.msk.f32.mxu0 %vm1914_vm8, %v1890_v25 }
 0x239   :  { %6647 = vmatmul.mubr.msk.f32.gmra.mrb[46].mxu0 %vm1914_vm8, %v1891_v7 }
 0x23a   :  { %v1499_v16 = vpop.permute.xlu1 %1498  ;;  %v1501_v15 = vpop.permute.xlu0 %1500 }
 0x23b   :  { %v1827_v62 = vsel %vm1778_vm6, %v8499_v58, %v1499_v16  ;;  %v1828_v14 = vsel %vm1778_vm6, %v8503_v45, %v1501_v15 }
 0x23c   :  { %v8794_v24 = vpop.f32.mrb[12].mxu0 }
 0x23d   :  { %v8796_v32 = vpop.f32.mrb[13].mxu0 }
 0x23e   :  { %v1690_v53 = vpop.permute.xlu1 %1689  ;;  %v1692_v35 = vpop.permute.xlu0 %1691 }
 0x23f   :  { %v1892_v37 = vsel %vm1843_vm7, %v1827_v62, %v1690_v53  ;;  %v1893_v61 = vsel %vm1843_vm7, %v1828_v14, %v1692_v35 }
 0x240   :  { %6649 = vmatprep.mubr.msk.f32.mxu0 %vm1914_vm8, %v1892_v37 }
 0x241   :  { %6650 = vmatmul.mubr.msk.f32.gmra.mrb[48].mxu0 %vm1914_vm8, %v1893_v61 }
 0x242   :  { %v1503_v34 = vpop.permute.xlu1 %1502  ;;  %v1505_v0 = vpop.permute.xlu0 %1504 }
 0x243   :  { %v1829_v38 = vsel %vm1778_vm6, %v8525_v50, %v1503_v34  ;;  %v1830_v58 = vsel %vm1778_vm6, %v8529_v11, %v1505_v0 }
 0x246   :  { %v1694_v47 = vpop.permute.xlu1 %1693  ;;  %v1696_v45 = vpop.permute.xlu0 %1695 }
 0x247   :  { %v1894_v8 = vsel %vm1843_vm7, %v1829_v38, %v1694_v47  ;;  %v1895_v39 = vsel %vm1843_vm7, %v1830_v58, %v1696_v45 }
 0x248   :  { %6652 = vmatprep.mubr.msk.f32.mxu0 %vm1914_vm8, %v1894_v8 }
 0x249   :  { %6653 = vmatmul.mubr.msk.f32.gmra.mrb[50].mxu0 %vm1914_vm8, %v1895_v39 }
 0x24a   :  { %v1507_v21 = vpop.permute.xlu1 %1506  ;;  %v1509_v55 = vpop.permute.xlu0 %1508 }
 0x24b   :  { %v1831_v50 = vsel %vm1778_vm6, %v8553_v10, %v1507_v21  ;;  %v1832_v11 = vsel %vm1778_vm6, %v8557_v46, %v1509_v55 }
 0x24c   :  { %v8814_v17 = vpop.f32.mrb[14].mxu0 }
 0x24d   :  { %v8816_v44 = vpop.f32.mrb[15].mxu0 }
 0x24e   :  { %v1698_v31 = vpop.permute.xlu1 %1697  ;;  %v1700_v54 = vpop.permute.xlu0 %1699 }
 0x24f   :  { %v1896_v42 = vsel %vm1843_vm7, %v1831_v50, %v1698_v31  ;;  %v1897_v60 = vsel %vm1843_vm7, %v1832_v11, %v1700_v54 }
 0x250   :  { %6655 = vmatprep.mubr.msk.f32.mxu0 %vm1914_vm8, %v1896_v42 }
 0x251   :  { %6656 = vmatmul.mubr.msk.f32.gmra.mrb[52].mxu0 %vm1914_vm8, %v1897_v60 }
 0x252   :  { %v1511_v13 = vpop.permute.xlu1 %1510  ;;  %v1513_v5 = vpop.permute.xlu0 %1512 }
 0x253   :  { %v1833_v30 = vsel %vm1778_vm6, %v8577_v20, %v1511_v13  ;;  %v1834_v10 = vsel %vm1778_vm6, %v8581_v43, %v1513_v5 }
 0x256   :  { %v1702_v28 = vpop.permute.xlu1 %1701  ;;  %v1704_v46 = vpop.permute.xlu0 %1703 }
 0x257   :  { %v1898_v3 = vsel %vm1843_vm7, %v1833_v30, %v1702_v28  ;;  %v1899_v41 = vsel %vm1843_vm7, %v1834_v10, %v1704_v46 }
 0x258   :  { %6658 = vmatprep.mubr.msk.f32.mxu0 %vm1914_vm8, %v1898_v3 }
 0x259   :  { %6659 = vmatmul.mubr.msk.f32.gmra.mrb[54].mxu0 %vm1914_vm8, %v1899_v41 }
 0x25a   :  { %v1515_v1 = vpop.permute.xlu1 %1514  ;;  %v1517_v23 = vpop.permute.xlu0 %1516 }
 0x25b   :  { %v1835_v20 = vsel %vm1778_vm6, %v8609_v22, %v1515_v1  ;;  %v1836_v43 = vsel %vm1778_vm6, %v8613_v27, %v1517_v23 }
 0x25c   :  { %v8834_v51 = vpop.f32.mrb[16].mxu0 }
 0x25d   :  { %v8836_v25 = vpop.f32.mrb[17].mxu0 }
 0x25e   :  { %v1706_v7 = vpop.permute.xlu1 %1705  ;;  %v1708_v16 = vpop.permute.xlu0 %1707 }
 0x25f   :  { %v1900_v15 = vsel %vm1843_vm7, %v1835_v20, %v1706_v7  ;;  %v1901_v62 = vsel %vm1843_vm7, %v1836_v43, %v1708_v16 }
 0x260   :  { %6661 = vmatprep.mubr.msk.f32.mxu0 %vm1914_vm8, %v1900_v15 }
 0x261   :  { %6662 = vmatmul.mubr.msk.f32.gmra.mrb[56].mxu0 %vm1914_vm8, %v1901_v62 }
 0x262   :  { %v1519_v14 = vpop.permute.xlu1 %1518  ;;  %v1521_v53 = vpop.permute.xlu0 %1520 }
 0x263   :  { %v1837_v35 = vsel %vm1778_vm6, %v8631_v9, %v1519_v14  ;;  %v1838_v22 = vsel %vm1778_vm6, %v8634_v29, %v1521_v53 }
 0x266   :  { %v1710_v37 = vpop.permute.xlu1 %1709  ;;  %v1712_v27 = vpop.permute.xlu0 %1711 }
 0x267   :  { %v1902_v61 = vsel %vm1843_vm7, %v1837_v35, %v1710_v37  ;;  %v1903_v34 = vsel %vm1843_vm7, %v1838_v22, %v1712_v27 }
 0x268   :  { %6664 = vmatprep.mubr.msk.f32.mxu0 %vm1914_vm8, %v1902_v61 }
 0x269   :  { %6665 = vmatmul.mubr.msk.f32.gmra.mrb[58].mxu0 %vm1914_vm8, %v1903_v34 }
 0x26a   :  { %v1523_v0 = vpop.permute.xlu1 %1522  ;;  %v1525_v38 = vpop.permute.xlu0 %1524 }
 0x26b   :  { %v1839_v9 = vsel %vm1778_vm6, %v8655_v57, %v1523_v0  ;;  %v1840_v29 = vsel %vm1778_vm6, %v8658_v40, %v1525_v38 }
 0x26c   :  { %v8854_v58 = vpop.f32.mrb[18].mxu0 }
 0x26d   :  { %v8856_v47 = vpop.f32.mrb[19].mxu0 }
 0x26e   :  { %v1714_v45 = vpop.permute.xlu1 %1713  ;;  %v1716_v8 = vpop.permute.xlu0 %1715 }
 0x26f   :  { %v1904_v39 = vsel %vm1843_vm7, %v1839_v9, %v1714_v45  ;;  %v1905_v21 = vsel %vm1843_vm7, %v1840_v29, %v1716_v8 }
 0x270   :  { %6667 = vmatprep.mubr.msk.f32.mxu0 %vm1914_vm8, %v1904_v39 }
 0x271   :  { %6668 = vmatmul.mubr.msk.f32.gmra.mrb[60].mxu0 %vm1914_vm8, %v1905_v21 }
 0x272   :  { %v1527_v55 = vpop.permute.xlu1 %1526 }
 0x273   :  { %v1841_v50 = vsel %vm1778_vm6, %v8681_v48, %v1527_v55  ;;  %v1529_v11 = vpop.permute.xlu0 %1528  ;;  %v8883_v48 = vld [vmem:[%s14412_s2] ss:$0 sm:$0xff] }
 0x274   :  { %v1842_v57 = vsel %vm1778_vm6, %v8684_v12, %v1529_v11  ;;  %v1906_v40 = vsel %vm1843_vm7, %v1841_v50, %v8678_v52  ;;  %v8887_v12 = vadd.f32 %v8592_v6, %v8883_v48  ;;  %v8891_v60 = vadd.f32 %v8883_v48, %v8598_v63 }
 0x275   :  { %6670 = vmatprep.mubr.msk.f32.mxu0 %vm1914_vm8, %v1906_v40  ;;  %v1907_v31 = vsel %vm1843_vm7, %v1842_v57, %v8678_v52  ;;  %v8895_v52 = vadd.f32 %v8883_v48, %v8666_v33  ;;  %v8915_v3 = vadd.f32 %v8660_v26, %v8883_v48  ;;  %v8921_v1 = vadd.f32 %v8883_v48, %v8712_v49 }
 0x276   :  { %6671 = vmatmul.mubr.msk.f32.gmra.mrb[62].mxu0 %vm1914_vm8, %v1907_v31  ;;  %v2631_v5 = vmul.f32 %v8887_v12, %v8887_v12  ;;  %v2630_v10 = vmul.f32 %v8891_v60, %v8891_v60  ;;  %v2497_v6 = vsel %vm1272_vm4, %v8887_v12, 0.0  ;;  %v2496_v63 = vsel %vm1272_vm4, %v8891_v60, 0.0 }
 0x277   :  { %v2632_v33 = vmul.f32 %v8895_v52, %v8895_v52  ;;  %v2499_v41 = vsel %vm1272_vm4, %v8895_v52, 0.0  ;;  %v2498_v23 = vadd.f32 %v2497_v6, %v2496_v63  ;;  %v2633_v16 = vmul.f32 %v8915_v3, %v8915_v3 }
 0x278   :  { %v2695_v28 = vsel %vm1272_vm4, %v2631_v5, 0.0  ;;  %v2694_v46 = vsel %vm1272_vm4, %v2630_v10, 0.0  ;;  %v2634_v15 = vmul.f32 %v8921_v1, %v8921_v1  ;;  %v2501_v62 = vsel %vm1272_vm4, %v8915_v3, 0.0 }
 0x279   :  { %v2697_v20 = vsel %vm1272_vm4, %v2632_v33, 0.0  ;;  %v2696_v43 = vadd.f32 %v2695_v28, %v2694_v46  ;;  %v2500_v7 = vadd.f32 %v2499_v41, %v2498_v23  ;;  %v8932_v14 = vadd.f32 %v8708_v2, %v8883_v48 }
 0x27a   :  { %v2503_v49 = vsel %vm1272_vm4, %v8921_v1, 0.0  ;;  %v8938_v53 = vadd.f32 %v8883_v48, %v8736_v18  ;;  %v2699_v22 = vsel %vm1272_vm4, %v2633_v16, 0.0  ;;  %v2701_v37 = vsel %vm1272_vm4, %v2634_v15, 0.0 }
 0x27b   :  { %v2698_v26 = vadd.f32 %v2697_v20, %v2696_v43  ;;  %v2502_v35 = vadd.f32 %v2501_v62, %v2500_v7  ;;  %v2635_v34 = vmul.f32 %v8932_v14, %v8932_v14  ;;  %v2505_v18 = vsel %vm1272_vm4, %v8932_v14, 0.0 }
 0x27c   :  { %v8876_v54 = vpop.f32.mrb[20].mxu0  ;;  %v2636_v2 = vmul.f32 %v8938_v53, %v8938_v53  ;;  %v8954_v29 = vadd.f32 %v8734_v4, %v8883_v48  ;;  %v2507_v45 = vsel %vm1272_vm4, %v8938_v53, 0.0  ;;  %v8960_v8 = vadd.f32 %v8883_v48, %v8756_v36 }
 0x27d   :  { %v8878_v42 = vpop.f32.mrb[21].mxu0  ;;  %v2700_v27 = vadd.f32 %v2699_v22, %v2698_v26  ;;  %v2504_v61 = vadd.f32 %v2503_v49, %v2502_v35  ;;  %v2703_v21 = vsel %vm1272_vm4, %v2635_v34, 0.0  ;;  %v8972_v36 = vadd.f32 %v8754_v19, %v8883_v48 }
 0x27e   :  { %v2705_v55 = vsel %vm1272_vm4, %v2636_v2, 0.0  ;;  %v2637_v57 = vmul.f32 %v8954_v29, %v8954_v29  ;;  %v2638_v4 = vmul.f32 %v8960_v8, %v8960_v8  ;;  %v2509_v31 = vsel %vm1272_vm4, %v8954_v29, 0.0 }
 0x27f   :  { %v2702_v38 = vadd.f32 %v2701_v37, %v2700_v27  ;;  %v2506_v39 = vadd.f32 %v2505_v18, %v2504_v61  ;;  %v2511_v5 = vsel %vm1272_vm4, %v8960_v8, 0.0  ;;  %v8978_v10 = vadd.f32 %v8883_v48, %v8776_v56 }
 0x280   :  { %v2707_v63 = vsel %vm1272_vm4, %v2637_v57, 0.0  ;;  %v2709_v33 = vsel %vm1272_vm4, %v2638_v4, 0.0  ;;  %v2639_v41 = vmul.f32 %v8972_v36, %v8972_v36  ;;  %v2513_v20 = vsel %vm1272_vm4, %v8972_v36, 0.0 }
 0x281   :  { %v2508_v50 = vadd.f32 %v2507_v45, %v2506_v39  ;;  %v2704_v11 = vadd.f32 %v2703_v21, %v2702_v38  ;;  %v2640_v19 = vmul.f32 %v8978_v10, %v8978_v10  ;;  %v8990_v56 = vadd.f32 %v8774_v59, %v8883_v48 }
 0x282   :  { %v2515_v43 = vsel %vm1272_vm4, %v8978_v10, 0.0  ;;  %v8996_v7 = vadd.f32 %v8883_v48, %v8796_v32  ;;  %v2711_v15 = vsel %vm1272_vm4, %v2639_v41, 0.0  ;;  %v9012_v61 = vadd.f32 %v8794_v24, %v8883_v48 }
 0x283   :  { %v2706_v40 = vadd.f32 %v2705_v55, %v2704_v11  ;;  %v2510_v6 = vadd.f32 %v2509_v31, %v2508_v50  ;;  %v2713_v26 = vsel %vm1272_vm4, %v2640_v19, 0.0  ;;  %v2641_v59 = vmul.f32 %v8990_v56, %v8990_v56 }
 0x284   :  { %v2642_v37 = vmul.f32 %v8996_v7, %v8996_v7  ;;  %v2517_v32 = vsel %vm1272_vm4, %v8990_v56, 0.0  ;;  %v2519_v34 = vsel %vm1272_vm4, %v8996_v7, 0.0  ;;  %v9018_v2 = vadd.f32 %v8883_v48, %v8816_v44 }
 0x285   :  { %v2512_v28 = vadd.f32 %v2511_v5, %v2510_v6  ;;  %v2708_v46 = vadd.f32 %v2707_v63, %v2706_v40  ;;  %v2715_v18 = vsel %vm1272_vm4, %v2641_v59, 0.0  ;;  %v2643_v55 = vmul.f32 %v9012_v61, %v9012_v61 }
 0x286   :  { %v2717_v45 = vsel %vm1272_vm4, %v2642_v37, 0.0  ;;  %v2644_v24 = vmul.f32 %v9018_v2, %v9018_v2  ;;  %v2521_v11 = vsel %vm1272_vm4, %v9012_v61, 0.0  ;;  %v9030_v44 = vadd.f32 %v8814_v17, %v8883_v48 }
 0x287   :  { %v2710_v23 = vadd.f32 %v2709_v33, %v2708_v46  ;;  %v2514_v16 = vadd.f32 %v2513_v20, %v2512_v28  ;;  %v2523_v57 = vsel %vm1272_vm4, %v9018_v2, 0.0  ;;  %v9036_v4 = vadd.f32 %v8883_v48, %v8836_v25 }
 0x288   :  { %v2719_v31 = vsel %vm1272_vm4, %v2643_v55, 0.0  ;;  %v2721_v5 = vsel %vm1272_vm4, %v2644_v24, 0.0  ;;  %v2645_v33 = vmul.f32 %v9030_v44, %v9030_v44  ;;  %v2525_v46 = vsel %vm1272_vm4, %v9030_v44, 0.0 }
 0x289   :  { %v2516_v49 = vadd.f32 %v2515_v43, %v2514_v16  ;;  %v2712_v35 = vadd.f32 %v2711_v15, %v2710_v23  ;;  %v2646_v17 = vmul.f32 %v9036_v4, %v9036_v4  ;;  %v9048_v25 = vadd.f32 %v8834_v51, %v8883_v48 }
 0x28a   :  { %v2527_v41 = vsel %vm1272_vm4, %v9036_v4, 0.0  ;;  %v9054_v19 = vadd.f32 %v8883_v48, %v8856_v47  ;;  %v2723_v16 = vsel %vm1272_vm4, %v2645_v33, 0.0  ;;  %v9070_v37 = vadd.f32 %v8854_v58, %v8883_v48 }
 0x28b   :  { %v2714_v27 = vadd.f32 %v2713_v26, %v2712_v35  ;;  %v2518_v38 = vadd.f32 %v2517_v32, %v2516_v49  ;;  %v2725_v15 = vsel %vm1272_vm4, %v2646_v17, 0.0  ;;  %v2647_v51 = vmul.f32 %v9048_v25, %v9048_v25 }
 0x28c   :  { %v8897_v13 = vpop.f32.mrb[22].mxu0  ;;  %v2648_v35 = vmul.f32 %v9054_v19, %v9054_v19  ;;  %v2529_v47 = vsel %vm1272_vm4, %v9048_v25, 0.0  ;;  %v9076_v32 = vadd.f32 %v8883_v48, %v8878_v42  ;;  %v2533_v24 = vsel %vm1272_vm4, %v9070_v37, 0.0 }
 0x28d   :  { %v8901_v30 = vpop.f32.mrb[23].mxu0  ;;  %v2520_v39 = vadd.f32 %v2519_v34, %v2518_v38  ;;  %v2716_v21 = vadd.f32 %v2715_v18, %v2714_v27  ;;  %v2531_v27 = vsel %vm1272_vm4, %v9054_v19, 0.0  ;;  %v2727_v38 = vsel %vm1272_vm4, %v2647_v51, 0.0 }
 0x28e   :  { %v2729_v18 = vsel %vm1272_vm4, %v2648_v35, 0.0  ;;  %v2650_v58 = vmul.f32 %v9076_v32, %v9076_v32  ;;  %v9088_v42 = vadd.f32 %v8876_v54, %v8883_v48 }
 0x28f   :  { %v2718_v50 = vadd.f32 %v2717_v45, %v2716_v21  ;;  %v2522_v40 = vadd.f32 %v2521_v11, %v2520_v39  ;;  %v2649_v21 = vmul.f32 %v9070_v37, %v9070_v37  ;;  %v9094_v11 = vadd.f32 %v8883_v48, %v8901_v30 }
 0x290   :  { %v2651_v54 = vmul.f32 %v9088_v42, %v9088_v42  ;;  %v2537_v30 = vsel %vm1272_vm4, %v9088_v42, 0.0 }
 0x291   :  { %v2524_v6 = vadd.f32 %v2523_v57, %v2522_v40  ;;  %v2720_v63 = vadd.f32 %v2719_v31, %v2718_v50  ;;  %v2535_v50 = vsel %vm1272_vm4, %v9076_v32, 0.0  ;;  %v2731_v31 = vsel %vm1272_vm4, %v2649_v21, 0.0 }
 0x292   :  { %v2652_v17 = vmul.f32 %v9094_v11, %v9094_v11 }
 0x293   :  { %v2722_v28 = vadd.f32 %v2721_v5, %v2720_v63  ;;  %v2526_v20 = vadd.f32 %v2525_v46, %v2524_v6  ;;  %v2733_v5 = vsel %vm1272_vm4, %v2650_v58, 0.0  ;;  %v9108_v46 = vadd.f32 %v8897_v13, %v8883_v48 }
 0x295   :  { %v2528_v26 = vadd.f32 %v2527_v41, %v2526_v20  ;;  %v2724_v49 = vadd.f32 %v2723_v16, %v2722_v28  ;;  %v2539_v41 = vsel %vm1272_vm4, %v9094_v11, 0.0  ;;  %v2653_v35 = vmul.f32 %v9108_v46, %v9108_v46 }
 0x297   :  { %v2726_v59 = vadd.f32 %v2725_v15, %v2724_v49  ;;  %v2530_v34 = vadd.f32 %v2529_v47, %v2528_v26  ;;  %v2735_v15 = vsel %vm1272_vm4, %v2651_v54, 0.0  ;;  %v2737_v26 = vsel %vm1272_vm4, %v2652_v17, 0.0 }
 0x298   :  { %v2541_v47 = vsel %vm1272_vm4, %v9108_v46, 0.0 }
 0x299   :  { %v2532_v45 = vadd.f32 %v2531_v27, %v2530_v34  ;;  %v2728_v39 = vadd.f32 %v2727_v38, %v2726_v59 }
 0x29b   :  { %v2730_v55 = vadd.f32 %v2729_v18, %v2728_v39  ;;  %v2534_v57 = vadd.f32 %v2533_v24, %v2532_v45  ;;  %v2739_v39 = vsel %vm1272_vm4, %v2653_v35, 0.0 }
 0x29c   :  { %v8946_v0 = vpop.f32.mrb[24].mxu0 }
 0x29d   :  { %v8948_v9 = vpop.f32.mrb[25].mxu0  ;;  %v2536_v63 = vadd.f32 %v2535_v50, %v2534_v57  ;;  %v2732_v33 = vadd.f32 %v2731_v31, %v2730_v55 }
 0x29e   :  { %v9114_v20 = vadd.f32 %v8883_v48, %v8948_v9  ;;  %v9126_v9 = vadd.f32 %v8946_v0, %v8883_v48 }
 0x29f   :  { %v2734_v28 = vadd.f32 %v2733_v5, %v2732_v33  ;;  %v2538_v16 = vadd.f32 %v2537_v30, %v2536_v63 }
 0x2a0   :  { %v2654_v13 = vmul.f32 %v9114_v20, %v9114_v20  ;;  %v2543_v27 = vsel %vm1272_vm4, %v9114_v20, 0.0  ;;  %v2655_v0 = vmul.f32 %v9126_v9, %v9126_v9 }
 0x2a1   :  { %v2540_v49 = vadd.f32 %v2539_v41, %v2538_v16  ;;  %v2736_v51 = vadd.f32 %v2735_v15, %v2734_v28 }
 0x2a2   :  { %v2741_v21 = vsel %vm1272_vm4, %v2654_v13, 0.0  ;;  %v2743_v33 = vsel %vm1272_vm4, %v2655_v0, 0.0 }
 0x2a3   :  { %v2738_v59 = vadd.f32 %v2737_v26, %v2736_v51  ;;  %v2542_v18 = vadd.f32 %v2541_v47, %v2540_v49 }
 0x2a5   :  { %v2544_v58 = vadd.f32 %v2543_v27, %v2542_v18  ;;  %v2740_v55 = vadd.f32 %v2739_v39, %v2738_v59 }
 0x2a7   :  { %v2742_v50 = vadd.f32 %v2741_v21, %v2740_v55 }
 0x2a9   :  { %v2744_v30 = vadd.f32 %v2743_v33, %v2742_v50 }
 0x2ac   :  { %v9000_v62 = vpop.f32.mrb[26].mxu0 }
 0x2ad   :  { %v9002_v22 = vpop.f32.mrb[27].mxu0  ;;  %v9144_v57 = vadd.f32 %v9000_v62, %v8883_v48 }
 0x2ae   :  { %v9132_v34 = vadd.f32 %v8883_v48, %v9002_v22  ;;  %v2545_v22 = vsel %vm1272_vm4, %v9126_v9, 0.0 }
 0x2af   :  { %v2546_v63 = vadd.f32 %v2545_v22, %v2544_v58  ;;  %v2657_v62 = vmul.f32 %v9144_v57, %v9144_v57 }
 0x2b0   :  { %v2656_v24 = vmul.f32 %v9132_v34, %v9132_v34  ;;  %v2547_v31 = vsel %vm1272_vm4, %v9132_v34, 0.0 }
 0x2b1   :  { %v2548_v28 = vadd.f32 %v2547_v31, %v2546_v63  ;;  %v2747_v13 = vsel %vm1272_vm4, %v2657_v62, 0.0 }
 0x2b2   :  { %v2745_v54 = vsel %vm1272_vm4, %v2656_v24, 0.0 }
 0x2b3   :  { %v2746_v15 = vadd.f32 %v2745_v54, %v2744_v30 }
 0x2b5   :  { %v2748_v27 = vadd.f32 %v2747_v13, %v2746_v15 }
 0x2bc   :  { %v9056_v23 = vpop.f32.mrb[28].mxu0 }
 0x2bd   :  { %v9058_v43 = vpop.f32.mrb[29].mxu0  ;;  %v9162_v26 = vadd.f32 %v9056_v23, %v8883_v48 }
 0x2be   :  { %v9150_v5 = vadd.f32 %v8883_v48, %v9058_v43  ;;  %v2549_v43 = vsel %vm1272_vm4, %v9144_v57, 0.0 }
 0x2bf   :  { %v2550_v35 = vadd.f32 %v2549_v43, %v2548_v28  ;;  %v2659_v18 = vmul.f32 %v9162_v26, %v9162_v26 }
 0x2c0   :  { %v2658_v16 = vmul.f32 %v9150_v5, %v9150_v5  ;;  %v2551_v49 = vsel %vm1272_vm4, %v9150_v5, 0.0 }
 0x2c1   :  { %v2552_v47 = vadd.f32 %v2551_v49, %v2550_v35  ;;  %v2751_v22 = vsel %vm1272_vm4, %v2659_v18, 0.0 }
 0x2c2   :  { %v2749_v59 = vsel %vm1272_vm4, %v2658_v16, 0.0 }
 0x2c3   :  { %v2750_v21 = vadd.f32 %v2749_v59, %v2748_v27 }
 0x2c5   :  { %v2752_v33 = vadd.f32 %v2751_v22, %v2750_v21 }
 0x2c9   :  { %v9096_v40 = vpop.f32.mrb[30].mxu0 }
 0x2ca   :  { %v2327_v6 = vpop.f32.mrb[31].mxu0  ;;  %v9179_v55 = vadd.f32 %v9096_v40, %v8883_v48 }
 0x2cb   :  { %v9167_v51 = vadd.f32 %v8883_v48, %v2327_v6  ;;  %v2553_v6 = vsel %vm1272_vm4, %v9162_v26, 0.0 }
 0x2cc   :  { %v2554_v50 = vadd.f32 %v2553_v6, %v2552_v47  ;;  %v2661_v54 = vmul.f32 %v9179_v55, %v9179_v55  ;;  %v2557_v30 = vsel %vm1272_vm4, %v9179_v55, 0.0 }
 0x2cd   :  { %v2660_v23 = vmul.f32 %v9167_v51, %v9167_v51  ;;  %v2555_v0 = vsel %vm1272_vm4, %v9167_v51, 0.0 }
 0x2ce   :  { %v2556_v63 = vadd.f32 %v2555_v0, %v2554_v50  ;;  %v2755_v35 = vsel %vm1272_vm4, %v2661_v54, 0.0 }
 0x2cf   :  { %v2753_v31 = vsel %vm1272_vm4, %v2660_v23, 0.0 }
 0x2d0   :  { %v2754_v28 = vadd.f32 %v2753_v31, %v2752_v33  ;;  %v2558_v43 = vadd.f32 %v2557_v30, %v2556_v63 }
 0x2d2   :  { %v2756_v47 = vadd.f32 %v2755_v35, %v2754_v28 }
 0x2d4   :  { %v6627_v38 = vpop.f32.mrb[32].mxu0 }
 0x2d5   :  { %v2337_v45 = vpop.f32.mrb[33].mxu0 }
 0x2d6   :  { %v9184_v24 = vadd.f32 %v8883_v48, %v2337_v45  ;;  %v9195_v45 = vadd.f32 %v6627_v38, %v8883_v48 }
 0x2d8   :  { %v2662_v40 = vmul.f32 %v9184_v24, %v9184_v24  ;;  %v2559_v62 = vsel %vm1272_vm4, %v9184_v24, 0.0  ;;  %v2663_v27 = vmul.f32 %v9195_v45, %v9195_v45 }
 0x2d9   :  { %v2560_v59 = vadd.f32 %v2559_v62, %v2558_v43 }
 0x2da   :  { %v2757_v13 = vsel %vm1272_vm4, %v2662_v40, 0.0  ;;  %v2759_v50 = vsel %vm1272_vm4, %v2663_v27, 0.0 }
 0x2db   :  { %v2758_v18 = vadd.f32 %v2757_v13, %v2756_v47 }
 0x2dc   :  { %v6630_v17 = vpop.f32.mrb[34].mxu0 }
 0x2dd   :  { %v2347_v41 = vpop.f32.mrb[35].mxu0  ;;  %v9211_v23 = vadd.f32 %v6630_v17, %v8883_v48  ;;  %v2760_v33 = vadd.f32 %v2759_v50, %v2758_v18 }
 0x2de   :  { %v9200_v16 = vadd.f32 %v8883_v48, %v2347_v41  ;;  %v2561_v41 = vsel %vm1272_vm4, %v9195_v45, 0.0 }
 0x2df   :  { %v2562_v0 = vadd.f32 %v2561_v41, %v2560_v59  ;;  %v2665_v40 = vmul.f32 %v9211_v23, %v9211_v23 }
 0x2e0   :  { %v2664_v38 = vmul.f32 %v9200_v16, %v9200_v16  ;;  %v2563_v21 = vsel %vm1272_vm4, %v9200_v16, 0.0 }
 0x2e1   :  { %v2564_v63 = vadd.f32 %v2563_v21, %v2562_v0  ;;  %v2763_v13 = vsel %vm1272_vm4, %v2665_v40, 0.0 }
 0x2e2   :  { %v2761_v22 = vsel %vm1272_vm4, %v2664_v38, 0.0 }
 0x2e3   :  { %v2762_v28 = vadd.f32 %v2761_v22, %v2760_v33 }
 0x2e4   :  { %v6633_v39 = vpop.f32.mrb[36].mxu0 }
 0x2e5   :  { %v2357_v58 = vpop.f32.mrb[37].mxu0  ;;  %v9227_v30 = vadd.f32 %v6633_v39, %v8883_v48  ;;  %v2764_v27 = vadd.f32 %v2763_v13, %v2762_v28 }
 0x2e6   :  { %v9216_v6 = vadd.f32 %v8883_v48, %v2357_v58  ;;  %v2565_v58 = vsel %vm1272_vm4, %v9211_v23, 0.0 }
 0x2e7   :  { %v2566_v35 = vadd.f32 %v2565_v58, %v2564_v63  ;;  %v2667_v38 = vmul.f32 %v9227_v30, %v9227_v30 }
 0x2e8   :  { %v2666_v17 = vmul.f32 %v9216_v6, %v9216_v6  ;;  %v2567_v62 = vsel %vm1272_vm4, %v9216_v6, 0.0 }
 0x2e9   :  { %v2568_v47 = vadd.f32 %v2567_v62, %v2566_v35  ;;  %v2767_v33 = vsel %vm1272_vm4, %v2667_v38, 0.0 }
 0x2ea   :  { %v2765_v59 = vsel %vm1272_vm4, %v2666_v17, 0.0 }
 0x2eb   :  { %v2766_v41 = vadd.f32 %v2765_v59, %v2764_v27 }
 0x2ec   :  { %v6636_v15 = vpop.f32.mrb[38].mxu0 }
 0x2ed   :  { %v2367_v49 = vpop.f32.mrb[39].mxu0  ;;  %v9243_v0 = vadd.f32 %v6636_v15, %v8883_v48  ;;  %v2768_v28 = vadd.f32 %v2767_v33, %v2766_v41 }
 0x2ee   :  { %v9232_v43 = vadd.f32 %v8883_v48, %v2367_v49  ;;  %v2569_v49 = vsel %vm1272_vm4, %v9227_v30, 0.0 }
 0x2ef   :  { %v2570_v63 = vadd.f32 %v2569_v49, %v2568_v47  ;;  %v2669_v58 = vmul.f32 %v9243_v0, %v9243_v0  ;;  %v2573_v35 = vsel %vm1272_vm4, %v9243_v0, 0.0 }
 0x2f0   :  { %v2668_v39 = vmul.f32 %v9232_v43, %v9232_v43  ;;  %v2571_v50 = vsel %vm1272_vm4, %v9232_v43, 0.0 }
 0x2f1   :  { %v2572_v17 = vadd.f32 %v2571_v50, %v2570_v63 }
 0x2f2   :  { %v2769_v40 = vsel %vm1272_vm4, %v2668_v39, 0.0  ;;  %v2771_v39 = vsel %vm1272_vm4, %v2669_v58, 0.0 }
 0x2f3   :  { %v2770_v62 = vadd.f32 %v2769_v40, %v2768_v28  ;;  %v2574_v27 = vadd.f32 %v2573_v35, %v2572_v17 }
 0x2f4   :  { %v6639_v31 = vpop.f32.mrb[40].mxu0 }
 0x2f5   :  { %v2377_v54 = vpop.f32.mrb[41].mxu0  ;;  %v2772_v50 = vadd.f32 %v2771_v39, %v2770_v62 }
 0x2f6   :  { %v9248_v22 = vadd.f32 %v8883_v48, %v2377_v54  ;;  %v9259_v54 = vadd.f32 %v6639_v31, %v8883_v48 }
 0x2f8   :  { %14737 = vst [vmem:[#allocation5_spill] sm:$0xff] %v9248_v22  ;;  %v2670_v15 = vmul.f32 %v9248_v22, %v9248_v22  ;;  %14738 = vst [vmem:[#allocation24_spill] sm:$0xff] %v9259_v54  ;;  %v2575_v13 = vsel %vm1272_vm4, %v9248_v22, 0.0  ;;  %v2671_v63 = vmul.f32 %v9259_v54, %v9259_v54 }
 0x2f9   :  { %v2576_v49 = vadd.f32 %v2575_v13, %v2574_v27 }
 0x2fa   :  { %v2773_v41 = vsel %vm1272_vm4, %v2670_v15, 0.0  ;;  %v2775_v15 = vsel %vm1272_vm4, %v2671_v63, 0.0 }
 0x2fb   :  { %v2774_v33 = vadd.f32 %v2773_v41, %v2772_v50 }
 0x2fc   :  { %v6642_v18 = vpop.f32.mrb[42].mxu0 }
 0x2fd   :  { %v2387_v21 = vpop.f32.mrb[43].mxu0  ;;  %v9275_v40 = vadd.f32 %v6642_v18, %v8883_v48  ;;  %v2776_v27 = vadd.f32 %v2775_v15, %v2774_v33 }
 0x2fe   :  { %v9264_v59 = vadd.f32 %v8883_v48, %v2387_v21  ;;  %v2577_v21 = vsel %vm1272_vm4, %v9259_v54, 0.0 }
 0x2ff   :  { %14740 = vst [vmem:[#allocation8_spill] sm:$0xff] %v9275_v40  ;;  %v2578_v58 = vadd.f32 %v2577_v21, %v2576_v49  ;;  %v2673_v41 = vmul.f32 %v9275_v40, %v9275_v40 }
 0x300   :  { %14739 = vst [vmem:[#allocation27_spill] sm:$0xff] %v9264_v59  ;;  %v2672_v31 = vmul.f32 %v9264_v59, %v9264_v59  ;;  %v2579_v17 = vsel %vm1272_vm4, %v9264_v59, 0.0 }
 0x301   :  { %v2580_v13 = vadd.f32 %v2579_v17, %v2578_v58  ;;  %v2779_v21 = vsel %vm1272_vm4, %v2673_v41, 0.0 }
 0x302   :  { %v2777_v62 = vsel %vm1272_vm4, %v2672_v31, 0.0 }
 0x303   :  { %v2778_v50 = vadd.f32 %v2777_v62, %v2776_v27 }
 0x304   :  { %v6645_v47 = vpop.f32.mrb[44].mxu0 }
 0x305   :  { %v2397_v38 = vpop.f32.mrb[45].mxu0  ;;  %v9291_v49 = vadd.f32 %v6645_v47, %v8883_v48  ;;  %v2780_v15 = vadd.f32 %v2779_v21, %v2778_v50 }
 0x306   :  { %v9280_v28 = vadd.f32 %v8883_v48, %v2397_v38  ;;  %v2581_v38 = vsel %vm1272_vm4, %v9275_v40, 0.0 }
 0x307   :  { %14742 = vst [vmem:[#allocation28_spill] sm:$0xff] %v9291_v49  ;;  %v2582_v33 = vadd.f32 %v2581_v38, %v2580_v13  ;;  %v2675_v62 = vmul.f32 %v9291_v49, %v9291_v49 }
 0x308   :  { %14741 = vst [vmem:[#allocation7_spill] sm:$0xff] %v9280_v28  ;;  %v2674_v18 = vmul.f32 %v9280_v28, %v9280_v28  ;;  %v2583_v63 = vsel %vm1272_vm4, %v9280_v28, 0.0 }
 0x309   :  { %v2584_v58 = vadd.f32 %v2583_v63, %v2582_v33  ;;  %v2783_v38 = vsel %vm1272_vm4, %v2675_v62, 0.0 }
 0x30a   :  { %v2781_v17 = vsel %vm1272_vm4, %v2674_v18, 0.0 }
 0x30b   :  { %v2782_v40 = vadd.f32 %v2781_v17, %v2780_v15 }
 0x30c   :  { %v6648_v35 = vpop.f32.mrb[46].mxu0 }
 0x30d   :  { %v2407_v39 = vpop.f32.mrb[47].mxu0  ;;  %v9307_v13 = vadd.f32 %v6648_v35, %v8883_v48  ;;  %v2784_v21 = vadd.f32 %v2783_v38, %v2782_v40 }
 0x30e   :  { %v9296_v31 = vadd.f32 %v8883_v48, %v2407_v39  ;;  %v2585_v39 = vsel %vm1272_vm4, %v9291_v49, 0.0 }
 0x30f   :  { %14744 = vst [vmem:[#allocation31_spill] sm:$0xff] %v9307_v13  ;;  %v2586_v50 = vadd.f32 %v2585_v39, %v2584_v58  ;;  %v2677_v17 = vmul.f32 %v9307_v13, %v9307_v13 }
 0x310   :  { %14743 = vst [vmem:[#allocation38_spill] sm:$0xff] %v9296_v31  ;;  %v2676_v47 = vmul.f32 %v9296_v31, %v9296_v31  ;;  %v2587_v41 = vsel %vm1272_vm4, %v9296_v31, 0.0  ;;  %v2589_v31 = vsel %vm1272_vm4, %v9307_v13, 0.0 }
 0x311   :  { %v2588_v33 = vadd.f32 %v2587_v41, %v2586_v50  ;;  %v2787_v40 = vsel %vm1272_vm4, %v2677_v17, 0.0 }
 0x312   :  { %v2785_v63 = vsel %vm1272_vm4, %v2676_v47, 0.0 }
 0x313   :  { %v2786_v15 = vadd.f32 %v2785_v63, %v2784_v21  ;;  %v2590_v47 = vadd.f32 %v2589_v31, %v2588_v33 }
 0x314   :  { %v6651_v27 = vpop.f32.mrb[48].mxu0 }
 0x315   :  { %v2417_v59 = vpop.f32.mrb[49].mxu0  ;;  %v2788_v63 = vadd.f32 %v2787_v40, %v2786_v15 }
 0x316   :  { %v9312_v18 = vadd.f32 %v8883_v48, %v2417_v59  ;;  %v9323_v59 = vadd.f32 %v6651_v27, %v8883_v48 }
 0x318   :  { %14745 = vst [vmem:[#allocation34_spill] sm:$0xff] %v9312_v18  ;;  %v2678_v35 = vmul.f32 %v9312_v18, %v9312_v18  ;;  %14746 = vst [vmem:[#allocation11_spill] sm:$0xff] %v9323_v59  ;;  %v2591_v58 = vsel %vm1272_vm4, %v9312_v18, 0.0  ;;  %v2679_v21 = vmul.f32 %v9323_v59, %v9323_v59  ;;  %v2593_v31 = vsel %vm1272_vm4, %v9323_v59, 0.0 }
 0x319   :  { %v2592_v38 = vadd.f32 %v2591_v58, %v2590_v47 }
 0x31a   :  { %v2789_v41 = vsel %vm1272_vm4, %v2678_v35, 0.0  ;;  %v2791_v58 = vsel %vm1272_vm4, %v2679_v21, 0.0 }
 0x31b   :  { %v2790_v13 = vadd.f32 %v2789_v41, %v2788_v63  ;;  %v2594_v35 = vadd.f32 %v2593_v31, %v2592_v38 }
 0x31c   :  { %v6654_v62 = vpop.f32.mrb[50].mxu0 }
 0x31d   :  { %v2427_v39 = vpop.f32.mrb[51].mxu0  ;;  %v9339_v33 = vadd.f32 %v6654_v62, %v8883_v48  ;;  %v2792_v40 = vadd.f32 %v2791_v58, %v2790_v13 }
 0x31e   :  { %v9330_v50 = vadd.f32 %v8883_v48, %v2427_v39 }
 0x31f   :  { %14748 = vst [vmem:[#allocation37_spill] sm:$0xff] %v9339_v33  ;;  %v2681_v41 = vmul.f32 %v9339_v33, %v9339_v33  ;;  %v2597_v59 = vsel %vm1272_vm4, %v9339_v33, 0.0 }
 0x320   :  { %14747 = vst [vmem:[#allocation10_spill] sm:$0xff] %v9330_v50  ;;  %v2680_v27 = vmul.f32 %v9330_v50, %v9330_v50  ;;  %v2595_v17 = vsel %vm1272_vm4, %v9330_v50, 0.0 }
 0x321   :  { %v2596_v39 = vadd.f32 %v2595_v17, %v2594_v35  ;;  %v2795_v31 = vsel %vm1272_vm4, %v2681_v41, 0.0 }
 0x322   :  { %v2793_v15 = vsel %vm1272_vm4, %v2680_v27, 0.0 }
 0x323   :  { %v2794_v62 = vadd.f32 %v2793_v15, %v2792_v40  ;;  %v2598_v27 = vadd.f32 %v2597_v59, %v2596_v39 }
 0x324   :  { %v6657_v47 = vpop.f32.mrb[52].mxu0 }
 0x325   :  { %v2437_v18 = vpop.f32.mrb[53].mxu0  ;;  %v9353_v38 = vadd.f32 %v6657_v47, %v8883_v48  ;;  %v2796_v35 = vadd.f32 %v2795_v31, %v2794_v62 }
 0x326   :  { %v9348_v63 = vadd.f32 %v8883_v48, %v2437_v18 }
 0x327   :  { %14750 = vst [vmem:[#allocation12_spill] sm:$0xff] %v9353_v38  ;;  %v2683_v58 = vmul.f32 %v9353_v38, %v9353_v38  ;;  %v2601_v50 = vsel %vm1272_vm4, %v9353_v38, 0.0 }
 0x328   :  { %14749 = vst [vmem:[#allocation13_spill] sm:$0xff] %v9348_v63  ;;  %v2599_v21 = vsel %vm1272_vm4, %v9348_v63, 0.0  ;;  %v2682_v13 = vmul.f32 %v9348_v63, %v9348_v63 }
 0x329   :  { %v2600_v18 = vadd.f32 %v2599_v21, %v2598_v27  ;;  %v2799_v41 = vsel %vm1272_vm4, %v2683_v58, 0.0 }
 0x32a   :  { %v2797_v17 = vsel %vm1272_vm4, %v2682_v13, 0.0 }
 0x32b   :  { %v2798_v40 = vadd.f32 %v2797_v17, %v2796_v35  ;;  %v2602_v39 = vadd.f32 %v2601_v50, %v2600_v18 }
 0x32c   :  { %v6660_v15 = vpop.f32.mrb[54].mxu0 }
 0x32d   :  { %v9364_v47 = vadd.f32 %v6660_v15, %v8883_v48  ;;  %v2447_v33 = vpop.f32.mrb[55].mxu0  ;;  %v2800_v31 = vadd.f32 %v2799_v41, %v2798_v40 }
 0x32e   :  { %v9369_v59 = vadd.f32 %v8883_v48, %v2447_v33 }
 0x32f   :  { %14751 = vst [vmem:[#allocation15_spill] sm:$0xff] %v9364_v47  ;;  %v2685_v62 = vmul.f32 %v9364_v47, %v9364_v47  ;;  %v2605_v17 = vsel %vm1272_vm4, %v9364_v47, 0.0 }
 0x330   :  { %14752 = vst [vmem:[#allocation14_spill] sm:$0xff] %v9369_v59  ;;  %v2603_v21 = vsel %vm1272_vm4, %v9369_v59, 0.0  ;;  %v2684_v13 = vmul.f32 %v9369_v59, %v9369_v59 }
 0x331   :  { %v2604_v27 = vadd.f32 %v2603_v21, %v2602_v39  ;;  %v2803_v18 = vsel %vm1272_vm4, %v2685_v62, 0.0 }
 0x332   :  { %v2801_v33 = vsel %vm1272_vm4, %v2684_v13, 0.0 }
 0x333   :  { %v2802_v35 = vadd.f32 %v2801_v33, %v2800_v31  ;;  %v2606_v50 = vadd.f32 %v2605_v17, %v2604_v27 }
 0x334   :  { %v6663_v58 = vpop.f32.mrb[56].mxu0 }
 0x335   :  { %v9383_v15 = vadd.f32 %v6663_v58, %v8883_v48  ;;  %v2457_v38 = vpop.f32.mrb[57].mxu0  ;;  %v2804_v63 = vadd.f32 %v2803_v18, %v2802_v35 }
 0x336   :  { %v9386_v49 = vadd.f32 %v8883_v48, %v2457_v38 }
 0x337   :  { %14753 = vst [vmem:[#allocation18_spill] sm:$0xff] %v9383_v15  ;;  %v2687_v40 = vmul.f32 %v9383_v15, %v9383_v15  ;;  %v2609_v62 = vsel %vm1272_vm4, %v9383_v15, 0.0 }
 0x338   :  { %14754 = vst [vmem:[#allocation17_spill] sm:$0xff] %v9386_v49  ;;  %v2607_v39 = vsel %vm1272_vm4, %v9386_v49, 0.0  ;;  %v2686_v41 = vmul.f32 %v9386_v49, %v9386_v49 }
 0x339   :  { %v2608_v21 = vadd.f32 %v2607_v39, %v2606_v50  ;;  %v2807_v38 = vsel %vm1272_vm4, %v2687_v40, 0.0 }
 0x33a   :  { %v2805_v13 = vsel %vm1272_vm4, %v2686_v41, 0.0 }
 0x33b   :  { %v2806_v27 = vadd.f32 %v2805_v13, %v2804_v63  ;;  %v2610_v31 = vadd.f32 %v2609_v62, %v2608_v21 }
 0x33c   :  { %v6666_v17 = vpop.f32.mrb[58].mxu0 }
 0x33d   :  { %v9399_v33 = vadd.f32 %v6666_v17, %v8883_v48  ;;  %v2467_v35 = vpop.f32.mrb[59].mxu0  ;;  %v2808_v18 = vadd.f32 %v2807_v38, %v2806_v27 }
 0x33e   :  { %v9402_v58 = vadd.f32 %v8883_v48, %v2467_v35 }
 0x33f   :  { %14755 = vst [vmem:[#allocation22_spill] sm:$0xff] %v9399_v33  ;;  %v2689_v50 = vmul.f32 %v9399_v33, %v9399_v33  ;;  %v2613_v40 = vsel %vm1272_vm4, %v9399_v33, 0.0 }
 0x340   :  { %14756 = vst [vmem:[#allocation21_spill] sm:$0xff] %v9402_v58  ;;  %v2611_v39 = vsel %vm1272_vm4, %v9402_v58, 0.0  ;;  %v2688_v63 = vmul.f32 %v9402_v58, %v9402_v58 }
 0x341   :  { %v2612_v41 = vadd.f32 %v2611_v39, %v2610_v31  ;;  %v2811_v27 = vsel %vm1272_vm4, %v2689_v50, 0.0 }
 0x342   :  { %v2809_v21 = vsel %vm1272_vm4, %v2688_v63, 0.0 }
 0x343   :  { %v2810_v62 = vadd.f32 %v2809_v21, %v2808_v18  ;;  %v2614_v13 = vadd.f32 %v2613_v40, %v2612_v41 }
 0x344   :  { %v6669_v38 = vpop.f32.mrb[60].mxu0 }
 0x345   :  { %v9415_v17 = vadd.f32 %v6669_v38, %v8883_v48  ;;  %v2477_v35 = vpop.f32.mrb[61].mxu0  ;;  %v2812_v15 = vadd.f32 %v2811_v27, %v2810_v62 }
 0x346   :  { %v9418_v49 = vadd.f32 %v8883_v48, %v2477_v35 }
 0x347   :  { %14757 = vst [vmem:[#allocation26_spill] sm:$0xff] %v9415_v17  ;;  %v2691_v31 = vmul.f32 %v9415_v17, %v9415_v17  ;;  %v2617_v41 = vsel %vm1272_vm4, %v9415_v17, 0.0 }
 0x348   :  { %14758 = vst [vmem:[#allocation25_spill] sm:$0xff] %v9418_v49  ;;  %v2615_v39 = vsel %vm1272_vm4, %v9418_v49, 0.0  ;;  %v2690_v18 = vmul.f32 %v9418_v49, %v9418_v49 }
 0x349   :  { %v2616_v63 = vadd.f32 %v2615_v39, %v2614_v13  ;;  %v6672_v50 = vpop.f32.mrb[62].mxu0  ;;  %v2815_v33 = vsel %vm1272_vm4, %v2691_v31, 0.0 }
 0x34a   :  { %v2813_v40 = vsel %vm1272_vm4, %v2690_v18, 0.0  ;;  %v9430_v21 = vadd.f32 %v6672_v50, %v8883_v48  ;;  %v2487_v62 = vpop.f32.mrb[63].mxu0 }
 0x34b   :  { %v2814_v27 = vadd.f32 %v2813_v40, %v2812_v15  ;;  %v9433_v38 = vadd.f32 %v8883_v48, %v2487_v62  ;;  %v2618_v35 = vadd.f32 %v2617_v41, %v2616_v63 }
 0x34c   :  { %14759 = vst [vmem:[#allocation30_spill] sm:$0xff] %v9430_v21  ;;  %v2693_v13 = vmul.f32 %v9430_v21, %v9430_v21  ;;  %v2621_v15 = vsel %vm1272_vm4, %v9430_v21, 0.0 }
 0x34d   :  { %v2619_v39 = vsel %vm1272_vm4, %v9433_v38, 0.0  ;;  %v2692_v18 = vmul.f32 %v9433_v38, %v9433_v38  ;;  %v2816_v17 = vadd.f32 %v2815_v33, %v2814_v27 }
 0x34e   :  { %v2620_v50 = vadd.f32 %v2619_v39, %v2618_v35  ;;  %v2819_v31 = vsel %vm1272_vm4, %v2693_v13, 0.0  ;;  %v14779_v13 = vld [vmem:[#allocation26_spill] sm:$0xff] }
 0x34f   :  { %v2817_v48 = vsel %vm1272_vm4, %v2692_v18, 0.0 }
 0x350   :  { %v2622_v40 = vadd.f32 %v2621_v15, %v2620_v50  ;;  %v2818_v63 = vadd.f32 %v2817_v48, %v2816_v17  ;;  %v14778_v50 = vld [vmem:[#allocation25_spill] sm:$0xff] }
 0x352   :  { %v2623_v41 = vrot.slane %v2622_v40, 4  ;;  %v2820_v62 = vadd.f32 %v2819_v31, %v2818_v63  ;;  %v14769_v31 = vld [vmem:[#allocation11_spill] sm:$0xff] }
 0x353   :  { %v14781_v48 = vld [vmem:[#allocation30_spill] sm:$0xff] }
 0x354   :  { %v2624_v49 = vadd.f32 %v2623_v41, %v2622_v40  ;;  %v2821_v58 = vrot.slane %v2820_v62, 4 }
 0x356   :  { %v2625_v47 = vrot.slane %v2624_v49, 2  ;;  %v2822_v59 = vadd.f32 %v2821_v58, %v2820_v62  ;;  %v14761_v62 = vld [vmem:[#allocation24_spill] sm:$0xff] }
 0x358   :  { %v2626_v28 = vadd.f32 %v2625_v47, %v2624_v49  ;;  %v2823_v54 = vrot.slane %v2822_v59, 2  ;;  %v14777_v49 = vld [vmem:[#allocation22_spill] sm:$0xff] }
 0x35a   :  { %v2627_v22 = vrot.slane %v2626_v28, 1  ;;  %v2824_v33 = vadd.f32 %v2823_v54, %v2822_v59 }
 0x35c   :  { %v2628_v27 = vadd.f32 %v2627_v22, %v2626_v28  ;;  %v2825_v35 = vrot.slane %v2824_v33, 1  ;;  %v9569_v28 = vld [vmem:[%s14413_s3] ss:$0 sm:$0xff] }
 0x35e   :  { %v9446_v39 = vmul.f32 0.001953125, %v2628_v27  ;;  %v2826_v21 = vadd.f32 %v2825_v35, %v2824_v33  ;;  %v14762_v33 = vld [vmem:[#allocation27_spill] sm:$0xff]  ;;  %v14763_v27 = vld [vmem:[#allocation8_spill] sm:$0xff] }
 0x360   :  { %v2827_v18 = vmul.f32 0.001953125, %v2826_v21  ;;  %v2828_v17 = vmul.f32 %v9446_v39, %v9446_v39  ;;  %v14780_v41 = vsub.f32 %v9433_v38, %v9446_v39  ;;  %v14782_v47 = vsub.f32 %v8891_v60, %v9446_v39  ;;  %v9600_v38 = vld [vmem:[%s14414_s4] ss:$0 sm:$0xff]  ;;  %s6837_s4 = smov 16  }
 0x361   :  { %v14783_v21 = vsub.f32 %v8887_v12, %v9446_v39  ;;  %v14785_v60 = vsub.f32 %v8915_v3, %v9446_v39  ;;  %v14786_v12 = vsub.f32 %v8921_v1, %v9446_v39  ;;  %v14788_v58 = vsub.f32 %v8932_v14, %v9446_v39 }
 0x362   :  { %v2829_v54 = vsub.f32 %v2827_v18, %v2828_v17  ;;  %v14765_v18 = vld [vmem:[#allocation28_spill] sm:$0xff]  ;;  %v14766_v17 = vld [vmem:[#allocation38_spill] sm:$0xff]  ;;  %v14790_v3 = vsub.f32 %v8938_v53, %v9446_v39  ;;  %v14791_v1 = vsub.f32 %v8954_v29, %v9446_v39  ;;  %v14792_v14 = vsub.f32 %v8960_v8, %v9446_v39 }
 0x364   :  { %v2894_v40 = vadd.f32 1e-05, %v2829_v54  ;;  %v14760_v54 = vld [vmem:[#allocation5_spill] sm:$0xff] }
 0x366   :  { %6828 = vrsqrt.f32 %v2894_v40  ;;  %v14764_v40 = vld [vmem:[#allocation7_spill] sm:$0xff] }
 0x370   :  { %v9564_v35 = vpop.eup %6828 }
 0x371   :  { %v2958_v59 = vmul.f32 %v9564_v35, %v14780_v41  ;;  %v9589_v22 = vmul.f32 %v9564_v35, %v14782_v47  ;;  %v9595_v15 = vmul.f32 %v9564_v35, %v14783_v21  ;;  %v14784_v41 = vsub.f32 %v8895_v52, %v9446_v39 }
 0x372   :  { %v9612_v47 = vmul.f32 %v9564_v35, %v14785_v60  ;;  %v9618_v21 = vmul.f32 %v9564_v35, %v14786_v12  ;;  %v9624_v52 = vmul.f32 %v9564_v35, %v14788_v58  ;;  %v9631_v60 = vmul.f32 %v9564_v35, %v14790_v3 }
 0x373   :  { %v9606_v63 = vmul.f32 %v9564_v35, %v14784_v41  ;;  %v3028_v41 = vmul.f32 %v9569_v28, %v2958_v59  ;;  %v9637_v12 = vmul.f32 %v9564_v35, %v14791_v1  ;;  %v9643_v58 = vmul.f32 %v9564_v35, %v14792_v14 }
 0x374   :  { %14787 = vst [vmem:[#allocation29_spill] sm:$0xff] %v9618_v21  ;;  %14789 = vst [vmem:[#allocation36_spill] sm:$0xff] %v9624_v52  ;;  %v14793_v59 = vsub.f32 %v8972_v36, %v9446_v39  ;;  %v14794_v3 = vsub.f32 %v8978_v10, %v9446_v39  ;;  %v14795_v1 = vsub.f32 %v8990_v56, %v9446_v39 }
 0x375   :  { %v14796_v14 = vsub.f32 %v8996_v7, %v9446_v39  ;;  %v14798_v10 = vsub.f32 %v9012_v61, %v9446_v39  ;;  %v14799_v56 = vsub.f32 %v9018_v2, %v9446_v39  ;;  %v14800_v7 = vsub.f32 %v9030_v44, %v9446_v39 }
 0x376   :  { %v9649_v53 = vmul.f32 %v9564_v35, %v14793_v59  ;;  %v9655_v29 = vmul.f32 %v9564_v35, %v14794_v3  ;;  %v9661_v8 = vmul.f32 %v9564_v35, %v14795_v1  ;;  %v9670_v59 = vadd.f32 %v9600_v38, %v3028_v41 }
 0x377   :  { %v9667_v36 = vmul.f32 %v9564_v35, %v14796_v14  ;;  %v9676_v3 = vmul.f32 %v9564_v35, %v14798_v10  ;;  %v9682_v1 = vmul.f32 %v9564_v35, %v14799_v56  ;;  %v9688_v14 = vmul.f32 %v9564_v35, %v14800_v7 }
 0x378   :  { %14797 = vst [vmem:[#allocation35_spill] sm:$0xff] %v9670_v59  ;;  %v14801_v41 = vsub.f32 %v9036_v4, %v9446_v39  ;;  %v14802_v10 = vsub.f32 %v9048_v25, %v9446_v39  ;;  %v14803_v56 = vsub.f32 %v9054_v19, %v9446_v39  ;;  %v14804_v7 = vsub.f32 %v9070_v37, %v9446_v39 }
 0x379   :  { %v14806_v25 = vsub.f32 %v9076_v32, %v9446_v39  ;;  %v14807_v19 = vsub.f32 %v9088_v42, %v9446_v39  ;;  %v14808_v37 = vsub.f32 %v9094_v11, %v9446_v39 }
 0x37a   :  { %v9694_v61 = vmul.f32 %v9564_v35, %v14801_v41  ;;  %v9700_v2 = vmul.f32 %v9564_v35, %v14802_v10  ;;  %v9706_v44 = vmul.f32 %v9564_v35, %v14803_v56  ;;  %v9712_v4 = vmul.f32 %v9564_v35, %v14804_v7  ;;  %v14805_v41 = vld [vmem:[#allocation13_spill] sm:$0xff] }
 0x37b   :  { %v2882_v59 = vsub.f32 %v14805_v41, %v9446_v39  ;;  %v9720_v10 = vmul.f32 %v9564_v35, %v14806_v25  ;;  %v9726_v56 = vmul.f32 %v9564_v35, %v14807_v19  ;;  %v9732_v7 = vmul.f32 %v9564_v35, %v14808_v37 }
 0x37c   :  { %v14809_v41 = vsub.f32 %v9108_v46, %v9446_v39  ;;  %v14810_v25 = vsub.f32 %v9114_v20, %v9446_v39  ;;  %v14811_v19 = vsub.f32 %v9126_v9, %v9446_v39  ;;  %v14812_v37 = vsub.f32 %v9132_v34, %v9446_v39 }
 0x37d   :  { %v14814_v20 = vsub.f32 %v9144_v57, %v9446_v39  ;;  %v14815_v9 = vsub.f32 %v9150_v5, %v9446_v39  ;;  %v14816_v34 = vsub.f32 %v9162_v26, %v9446_v39 }
 0x37e   :  { %v9738_v32 = vmul.f32 %v9564_v35, %v14809_v41  ;;  %v9744_v42 = vmul.f32 %v9564_v35, %v14810_v25  ;;  %v9750_v11 = vmul.f32 %v9564_v35, %v14811_v19  ;;  %v9756_v46 = vmul.f32 %v9564_v35, %v14812_v37  ;;  %v14813_v41 = vld [vmem:[#allocation12_spill] sm:$0xff] }
 0x37f   :  { %v2883_v52 = vsub.f32 %v14813_v41, %v9446_v39  ;;  %v9764_v25 = vmul.f32 %v9564_v35, %v14814_v20  ;;  %v9770_v19 = vmul.f32 %v9564_v35, %v14815_v9  ;;  %v9776_v37 = vmul.f32 %v9564_v35, %v14816_v34 }
 0x380   :  { %v14817_v41 = vsub.f32 %v9167_v51, %v9446_v39  ;;  %v14818_v20 = vsub.f32 %v9179_v55, %v9446_v39  ;;  %v14819_v9 = vsub.f32 %v9184_v24, %v9446_v39  ;;  %v14820_v34 = vsub.f32 %v9195_v45, %v9446_v39 }
 0x382   :  { %v9782_v57 = vmul.f32 %v9564_v35, %v14817_v41  ;;  %v9788_v5 = vmul.f32 %v9564_v35, %v14818_v20  ;;  %v9794_v26 = vmul.f32 %v9564_v35, %v14819_v9  ;;  %v9800_v51 = vmul.f32 %v9564_v35, %v14820_v34 }
 0x383   :  { %v14821_v41 = vsub.f32 %v9200_v16, %v9446_v39  ;;  %v14822_v20 = vsub.f32 %v9211_v23, %v9446_v39  ;;  %v14823_v9 = vsub.f32 %v9216_v6, %v9446_v39  ;;  %v14824_v34 = vsub.f32 %v9227_v30, %v9446_v39 }
 0x385   :  { %v9806_v55 = vmul.f32 %v9564_v35, %v14821_v41  ;;  %v9812_v24 = vmul.f32 %v9564_v35, %v14822_v20  ;;  %v9818_v45 = vmul.f32 %v9564_v35, %v14823_v9  ;;  %v9824_v16 = vmul.f32 %v9564_v35, %v14824_v34 }
 0x386   :  { %v14825_v41 = vsub.f32 %v9232_v43, %v9446_v39  ;;  %v14826_v20 = vsub.f32 %v9243_v0, %v9446_v39  ;;  %v14827_v9 = vsub.f32 %v14760_v54, %v9446_v39  ;;  %v14828_v34 = vsub.f32 %v14761_v62, %v9446_v39 }
 0x388   :  { %v9830_v23 = vmul.f32 %v9564_v35, %v14825_v41  ;;  %v9836_v6 = vmul.f32 %v9564_v35, %v14826_v20  ;;  %v9842_v30 = vmul.f32 %v9564_v35, %v14827_v9  ;;  %v9848_v43 = vmul.f32 %v9564_v35, %v14828_v34 }
 0x389   :  { %v14829_v41 = vsub.f32 %v14762_v33, %v9446_v39  ;;  %v14830_v20 = vsub.f32 %v14763_v27, %v9446_v39  ;;  %v14831_v9 = vsub.f32 %v14764_v40, %v9446_v39  ;;  %v14833_v34 = vsub.f32 %v14765_v18, %v9446_v39 }
 0x38b   :  { %v9854_v0 = vmul.f32 %v9564_v35, %v14829_v41  ;;  %v9860_v54 = vmul.f32 %v9564_v35, %v14830_v20  ;;  %v9866_v62 = vmul.f32 %v9564_v35, %v14831_v9  ;;  %v9872_v33 = vmul.f32 %v9564_v35, %v14833_v34  ;;  %v14836_v20 = vld [vmem:[#allocation31_spill] sm:$0xff]  ;;  %v14839_v9 = vld [vmem:[#allocation34_spill] sm:$0xff] }
 0x38c   :  { %v14834_v41 = vsub.f32 %v14766_v17, %v9446_v39  ;;  %v14837_v21 = vsub.f32 %v14836_v20, %v9446_v39  ;;  %v14841_v34 = vsub.f32 %v14769_v31, %v9446_v39  ;;  %v9914_v31 = vmul.f32 %v9564_v35, %v2883_v52  ;;  %v14857_v52 = vld [vmem:[#allocation18_spill] sm:$0xff] }
 0x38d   :  { %14832 = vst [vmem:[#allocation39_spill] sm:$0xff] %v9866_v62  ;;  %v14840_v62 = vsub.f32 %v14839_v9, %v9446_v39 }
 0x38e   :  { %v9878_v27 = vmul.f32 %v9564_v35, %v14834_v41  ;;  %v9884_v40 = vmul.f32 %v9564_v35, %v14837_v21  ;;  %v9896_v17 = vmul.f32 %v9564_v35, %v14841_v34  ;;  %v14843_v41 = vld [vmem:[#allocation10_spill] sm:$0xff]  ;;  %v14846_v21 = vld [vmem:[#allocation37_spill] sm:$0xff]  ;;  %14849 = vst [vmem:[#allocation16_spill] sm:$0xff] %v9914_v31  ;;  %v14858_v31 = vsub.f32 %v14857_v52, %v9446_v39 }
 0x38f   :  { %v9890_v18 = vmul.f32 %v9564_v35, %v14840_v62  ;;  %v9911_v62 = vmul.f32 %v9564_v35, %v2882_v59  ;;  %v14850_v34 = vld [vmem:[#allocation14_spill] sm:$0xff] }
 0x390   :  { %14835 = vst [vmem:[#allocation42_spill] sm:$0xff] %v9878_v27  ;;  %14838 = vst [vmem:[#allocation44_spill] sm:$0xff] %v9884_v40  ;;  %v14844_v27 = vsub.f32 %v14843_v41, %v9446_v39  ;;  %v14847_v40 = vsub.f32 %v14846_v21, %v9446_v39 }
 0x391   :  { %14842 = vst [vmem:[#allocation41_spill] sm:$0xff] %v9896_v17  ;;  %v14851_v17 = vsub.f32 %v14850_v34, %v9446_v39  ;;  %v9938_v34 = vmul.f32 %v9564_v35, %v14858_v31  ;;  %v14863_v31 = vsub.f32 %v14779_v13, %v9446_v39  ;;  %v9980_v13 = vmul.f32 %v9569_v28, %v9612_v47 }
 0x392   :  { %v9902_v20 = vmul.f32 %v9564_v35, %v14844_v27  ;;  %v9908_v9 = vmul.f32 %v9564_v35, %v14847_v40  ;;  %v14853_v27 = vld [vmem:[#allocation15_spill] sm:$0xff]  ;;  %v14855_v40 = vld [vmem:[#allocation17_spill] sm:$0xff]  ;;  %v10002_v47 = vmul.f32 %v9569_v28, %v9655_v29  ;;  %v10022_v29 = vmul.f32 %v9569_v28, %v9688_v14 }
 0x393   :  { %v9920_v41 = vmul.f32 %v9564_v35, %v14851_v17  ;;  %v14859_v17 = vld [vmem:[#allocation21_spill] sm:$0xff]  ;;  %v10042_v14 = vmul.f32 %v9569_v28, %v9720_v10 }
 0x394   :  { %14845 = vst [vmem:[#allocation40_spill] sm:$0xff] %v9902_v20  ;;  %14848 = vst [vmem:[#allocation43_spill] sm:$0xff] %v9908_v9  ;;  %v14854_v20 = vsub.f32 %v14853_v27, %v9446_v39  ;;  %v14856_v9 = vsub.f32 %v14855_v40, %v9446_v39 }
 0x395   :  { %14852 = vst [vmem:[#allocation19_spill] sm:$0xff] %v9920_v41  ;;  %v14860_v41 = vsub.f32 %v14859_v17, %v9446_v39  ;;  %v9962_v17 = vmul.f32 %v9564_v35, %v14863_v31 }
 0x396   :  { %v9926_v21 = vmul.f32 %v9564_v35, %v14854_v20  ;;  %v9932_v59 = vmul.f32 %v9564_v35, %v14856_v9  ;;  %v14861_v20 = vsub.f32 %v14777_v49, %v9446_v39  ;;  %v14862_v9 = vsub.f32 %v14778_v50, %v9446_v39 }
 0x397   :  { %v9944_v27 = vmul.f32 %v9564_v35, %v14860_v41  ;;  %v14864_v41 = vsub.f32 %v14781_v48, %v9446_v39  ;;  %v2967_v50 = vmul.f32 %v9569_v28, %v9595_v15  ;;  %v9984_v39 = vmul.f32 %v9569_v28, %v9631_v60 }
 0x398   :  { %v9950_v40 = vmul.f32 %v9564_v35, %v14861_v20  ;;  %v9956_v52 = vmul.f32 %v9564_v35, %v14862_v9  ;;  %v2966_v20 = vmul.f32 %v9569_v28, %v9589_v22  ;;  %v9976_v9 = vmul.f32 %v9569_v28, %v9606_v63 }
 0x399   :  { %v9968_v49 = vmul.f32 %v9564_v35, %v14864_v41  ;;  %v3037_v35 = vadd.f32 %v9600_v38, %v2967_v50  ;;  %v9990_v22 = vmul.f32 %v9569_v28, %v9637_v12  ;;  %v9994_v15 = vmul.f32 %v9569_v28, %v9643_v58 }
 0x39a   :  { %v3036_v48 = vadd.f32 %v9600_v38, %v2966_v20  ;;  %v9998_v63 = vmul.f32 %v9569_v28, %v9649_v53  ;;  %v10006_v60 = vmul.f32 %v9569_v28, %v9661_v8  ;;  %v10010_v12 = vmul.f32 %v9569_v28, %v9667_v36 }
 0x39b   :  { %v3101_v41 = vmax.f32 %v3037_v35, 0.0  ;;  %v10014_v58 = vmul.f32 %v9569_v28, %v9676_v3  ;;  %v10018_v53 = vmul.f32 %v9569_v28, %v9682_v1  ;;  %v10026_v8 = vmul.f32 %v9569_v28, %v9694_v61 }
 0x39c   :  { %v3100_v31 = vmax.f32 %v3036_v48, 0.0  ;;  %v10030_v36 = vmul.f32 %v9569_v28, %v9700_v2  ;;  %v10034_v3 = vmul.f32 %v9569_v28, %v9706_v44  ;;  %v10038_v1 = vmul.f32 %v9569_v28, %v9712_v4 }
 0x39d   :  { %v3241_v50 = vrot.slane %v3101_v41, 7  ;;  %v10046_v61 = vmul.f32 %v9569_v28, %v9726_v56  ;;  %v10050_v2 = vmul.f32 %v9569_v28, %v9732_v7  ;;  %v10054_v44 = vmul.f32 %v9569_v28, %v9738_v32 }
 0x39e   :  { %v3240_v20 = vrot.slane %v3100_v31, 7  ;;  %v10058_v4 = vmul.f32 %v9569_v28, %v9744_v42  ;;  %v10068_v56 = vmul.f32 %v9569_v28, %v9750_v11  ;;  %v10072_v7 = vmul.f32 %v9569_v28, %v9756_v46 }
 0x39f   :  { %v10064_v10 = vsel %vm168_vm0, %v3241_v50, 0.0  ;;  %v10078_v42 = vmul.f32 %v9569_v28, %v9764_v25  ;;  %v10082_v31 = vmul.f32 %v9569_v28, %v9770_v19  ;;  %v10086_v11 = vmul.f32 %v9569_v28, %v9776_v37 }
 0x3a0   :  { %v10061_v48 = vsel %vm168_vm0, %v3240_v20, %v3241_v50  ;;  %14866 = vst [vmem:[#allocation3_spill] sm:$0xff] %v10064_v10  ;;  %v3563_v35 = vrot.slane %v10064_v10, 1  ;;  %v10090_v46 = vmul.f32 %v9569_v28, %v9782_v57  ;;  %v10094_v41 = vmul.f32 %v9569_v28, %v9788_v5  ;;  %v14871_v10 = vld [vmem:[#allocation44_spill] sm:$0xff] }
 0x3a1   :  { %14865 = vst [vmem:[#allocation20_spill] sm:$0xff] %v10061_v48  ;;  %v3561_v32 = vrot.slane %v10061_v48, 1  ;;  %v10098_v25 = vmul.f32 %v9569_v28, %v9794_v26  ;;  %v10103_v19 = vmul.f32 %v9569_v28, %v9800_v51  ;;  %v10107_v37 = vmul.f32 %v9569_v28, %v9806_v55  ;;  %v14874_v48 = vld [vmem:[#allocation41_spill] sm:$0xff] }
 0x3a2   :  { %v10111_v57 = vmul.f32 %v9569_v28, %v9812_v24  ;;  %v10116_v5 = vmul.f32 %v9569_v28, %v9818_v45  ;;  %v10120_v26 = vmul.f32 %v9569_v28, %v9824_v16  ;;  %v10124_v51 = vmul.f32 %v9569_v28, %v9830_v23 }
 0x3a3   :  { %v3564_v50 = vsel %vm490_vm1, %v3561_v32, %v3563_v35  ;;  %v10128_v55 = vmul.f32 %v9569_v28, %v9836_v6  ;;  %v10132_v24 = vmul.f32 %v9569_v28, %v9842_v30  ;;  %v10136_v45 = vmul.f32 %v9569_v28, %v9848_v43  ;;  %v14867_v35 = vld [vmem:[#allocation39_spill] sm:$0xff] }
 0x3a4   :  { %3724 = vrot.lane.b32.xlu1 %v3564_v50, %s6834_s26  ;;  %v10140_v16 = vmul.f32 %v9569_v28, %v9854_v0  ;;  %v10144_v23 = vmul.f32 %v9569_v28, %v9860_v54  ;;  %v10148_v6 = vmul.f32 %v9569_v28, %v14867_v35  ;;  %v10152_v30 = vmul.f32 %v9569_v28, %v9872_v33  ;;  %v14870_v50 = vld [vmem:[#allocation42_spill] sm:$0xff] }
 0x3a5   :  { %v10156_v43 = vmul.f32 %v9569_v28, %v14870_v50  ;;  %v10160_v0 = vmul.f32 %v9569_v28, %v14871_v10  ;;  %v10164_v54 = vmul.f32 %v9569_v28, %v9890_v18  ;;  %v10168_v35 = vmul.f32 %v9569_v28, %v14874_v48 }
 0x3a6   :  { %14868 = vst [vmem:[#allocation4_spill] sm:$0xff] %v10148_v6  ;;  %14869 = vst [vmem:[#allocation6_spill] sm:$0xff] %v10152_v30  ;;  %v14875_v6 = vld [vmem:[#allocation40_spill] sm:$0xff]  ;;  %v14876_v30 = vld [vmem:[#allocation43_spill] sm:$0xff]  ;;  %v10180_v10 = vmul.f32 %v9569_v28, %v9911_v62  ;;  %v10200_v62 = vmul.f32 %v9569_v28, %v9938_v34  ;;  %v10220_v34 = vmul.f32 %v9569_v28, %v9968_v49 }
 0x3a7   :  { %14872 = vst [vmem:[#allocation32_spill] sm:$0xff] %v10160_v0  ;;  %14873 = vst [vmem:[#allocation23_spill] sm:$0xff] %v10164_v54  ;;  %v10172_v33 = vmul.f32 %v9569_v28, %v14875_v6  ;;  %v10176_v50 = vmul.f32 %v9569_v28, %v14876_v30  ;;  %v14877_v0 = vld [vmem:[#allocation16_spill] sm:$0xff]  ;;  %v14878_v54 = vld [vmem:[#allocation19_spill] sm:$0xff]  ;;  %v10192_v6 = vmul.f32 %v9569_v28, %v9926_v21 }
 0x3a8   :  { %v10184_v18 = vmul.f32 %v9569_v28, %v14877_v0  ;;  %v10188_v48 = vmul.f32 %v9569_v28, %v14878_v54  ;;  %v10196_v30 = vmul.f32 %v9569_v28, %v9932_v59  ;;  %14879 = vst [vmem:[#allocation33_spill] sm:$0xff] %v10200_v62  ;;  %v10204_v0 = vmul.f32 %v9569_v28, %v9944_v27 }
 0x3a9   :  { %v10208_v54 = vmul.f32 %v9569_v28, %v9950_v40  ;;  %v10212_v21 = vmul.f32 %v9569_v28, %v9956_v52  ;;  %v10216_v59 = vmul.f32 %v9569_v28, %v9962_v17  ;;  %v10223_v62 = vsel %vm168_vm0, 0.0, %v3240_v20 }
 0x3aa   :  { %14880 = vst [vmem:[#allocation2_spill] sm:$0xff] %v10223_v62  ;;  %v3560_v27 = vrot.slane %v10223_v62, 1  ;;  %v10228_v40 = vadd.f32 %v9600_v38, %v9976_v9  ;;  %v10232_v52 = vadd.f32 %v9600_v38, %v9980_v13  ;;  %v10236_v17 = vadd.f32 %v9600_v38, %v9984_v39 }
 0x3ab   :  { %v10240_v49 = vadd.f32 %v9600_v38, %v9990_v22  ;;  %v10244_v20 = vadd.f32 %v9600_v38, %v9994_v15  ;;  %v10249_v9 = vadd.f32 %v9600_v38, %v9998_v63  ;;  %v10253_v13 = vadd.f32 %v9600_v38, %v10002_v47 }
 0x3ac   :  { %v3562_v62 = vsel %vm490_vm1, %v3560_v27, %v3561_v32  ;;  %v10257_v39 = vadd.f32 %v9600_v38, %v10006_v60  ;;  %v10262_v22 = vadd.f32 %v9600_v38, %v10010_v12  ;;  %v10266_v15 = vadd.f32 %v9600_v38, %v10014_v58 }
 0x3ad   :  { %3722 = vrot.lane.b32.xlu0 %v3562_v62, %s6834_s26  ;;  %v10270_v63 = vadd.f32 %v9600_v38, %v10018_v53  ;;  %v10274_v47 = vadd.f32 %v9600_v38, %v10022_v29  ;;  %v10278_v60 = vadd.f32 %v9600_v38, %v10026_v8  ;;  %v10282_v12 = vadd.f32 %v9600_v38, %v10030_v36  ;;  %v14883_v62 = vld [vmem:[#allocation6_spill] sm:$0xff] }
 0x3ae   :  { %v10286_v58 = vadd.f32 %v9600_v38, %v10034_v3  ;;  %v10290_v53 = vadd.f32 %v9600_v38, %v10038_v1  ;;  %v10294_v29 = vadd.f32 %v9600_v38, %v10042_v14  ;;  %v10298_v8 = vadd.f32 %v9600_v38, %v10046_v61  ;;  %v14884_v27 = vld [vmem:[#allocation32_spill] sm:$0xff] }
 0x3af   :  { %v10302_v36 = vadd.f32 %v9600_v38, %v10050_v2  ;;  %v10306_v3 = vadd.f32 %v9600_v38, %v10054_v44  ;;  %v10310_v1 = vadd.f32 %v9600_v38, %v10058_v4  ;;  %v10314_v14 = vadd.f32 %v9600_v38, %v10068_v56 }
 0x3b0   :  { %v10318_v61 = vadd.f32 %v9600_v38, %v10072_v7  ;;  %v10322_v2 = vadd.f32 %v9600_v38, %v10078_v42  ;;  %v10326_v44 = vadd.f32 %v9600_v38, %v10082_v31  ;;  %v10330_v4 = vadd.f32 %v9600_v38, %v10086_v11 }
 0x3b1   :  { %v10334_v56 = vadd.f32 %v9600_v38, %v10090_v46  ;;  %v10338_v7 = vadd.f32 %v9600_v38, %v10094_v41  ;;  %v10342_v32 = vadd.f32 %v9600_v38, %v10098_v25  ;;  %v10346_v42 = vadd.f32 %v9600_v38, %v10103_v19 }
 0x3b2   :  { %v10350_v31 = vadd.f32 %v9600_v38, %v10107_v37  ;;  %v10354_v11 = vadd.f32 %v9600_v38, %v10111_v57  ;;  %v10358_v46 = vadd.f32 %v9600_v38, %v10116_v5  ;;  %v10362_v41 = vadd.f32 %v9600_v38, %v10120_v26 }
 0x3b3   :  { %v10366_v25 = vadd.f32 %v9600_v38, %v10124_v51  ;;  %v10370_v19 = vadd.f32 %v9600_v38, %v10128_v55  ;;  %v10374_v37 = vadd.f32 %v9600_v38, %v10132_v24  ;;  %v10378_v57 = vadd.f32 %v9600_v38, %v10136_v45  ;;  %v14882_v51 = vld [vmem:[#allocation4_spill] sm:$0xff] }
 0x3b4   :  { %v10382_v5 = vadd.f32 %v9600_v38, %v10140_v16  ;;  %v10386_v26 = vadd.f32 %v9600_v38, %v10144_v23  ;;  %v10390_v55 = vadd.f32 %v9600_v38, %v14882_v51  ;;  %v10394_v24 = vadd.f32 %v9600_v38, %v14883_v62 }
 0x3b5   :  { %14881 = vst [vmem:[#allocation5_spill] sm:$0xff] %v10378_v57  ;;  %v10398_v45 = vadd.f32 %v9600_v38, %v10156_v43  ;;  %v10402_v16 = vadd.f32 %v9600_v38, %v14884_v27  ;;  %v14885_v57 = vld [vmem:[#allocation23_spill] sm:$0xff]  ;;  %v10410_v51 = vadd.f32 %v9600_v38, %v10168_v35  ;;  %v10414_v62 = vadd.f32 %v9600_v38, %v10172_v33 }
 0x3b6   :  { %v10406_v23 = vadd.f32 %v9600_v38, %v14885_v57  ;;  %v10418_v43 = vadd.f32 %v9600_v38, %v10176_v50  ;;  %v10422_v27 = vadd.f32 %v9600_v38, %v10180_v10  ;;  %v10426_v57 = vadd.f32 %v9600_v38, %v10184_v18 }
 0x3b7   :  { %14886 = vst [vmem:[#allocation24_spill] sm:$0xff] %v10414_v62  ;;  %v10430_v35 = vadd.f32 %v9600_v38, %v10188_v48  ;;  %v10434_v33 = vadd.f32 %v9600_v38, %v10192_v6  ;;  %v10438_v50 = vadd.f32 %v9600_v38, %v10196_v30  ;;  %v10446_v18 = vadd.f32 %v9600_v38, %v10204_v0 }
 0x3b8   :  { %14887 = vst [vmem:[#allocation27_spill] sm:$0xff] %v10418_v43  ;;  %14888 = vst [vmem:[#allocation8_spill] sm:$0xff] %v10422_v27  ;;  %v14893_v43 = vld [vmem:[#allocation33_spill] sm:$0xff]  ;;  %v10450_v48 = vadd.f32 %v9600_v38, %v10208_v54  ;;  %v10454_v6 = vadd.f32 %v9600_v38, %v10212_v21  ;;  %v10458_v30 = vadd.f32 %v9600_v38, %v10216_v59  ;;  %v3103_v0 = vmax.f32 %v10232_v52, 0.0 }
 0x3b9   :  { %14889 = vst [vmem:[#allocation7_spill] sm:$0xff] %v10426_v57  ;;  %14890 = vst [vmem:[#allocation28_spill] sm:$0xff] %v10430_v35  ;;  %v10442_v10 = vadd.f32 %v9600_v38, %v14893_v43  ;;  %v10462_v43 = vadd.f32 %v9600_v38, %v10220_v34  ;;  %v14901_v59 = vld [vmem:[#allocation29_spill] sm:$0xff] }
 0x3ba   :  { %14891 = vst [vmem:[#allocation38_spill] sm:$0xff] %v10434_v33  ;;  %14892 = vst [vmem:[#allocation11_spill] sm:$0xff] %v10438_v50  ;;  %v3244_v50 = vrot.slane %v3103_v0, 7  ;;  %v14902_v33 = vld [vmem:[#allocation36_spill] sm:$0xff] }
 0x3bb   :  { %14894 = vst [vmem:[#allocation22_spill] sm:$0xff] %v10442_v10  ;;  %14895 = vst [vmem:[#allocation25_spill] sm:$0xff] %v10446_v18  ;;  %v3102_v10 = vmax.f32 %v10228_v40, 0.0  ;;  %v2971_v34 = vmul.f32 %v9569_v28, %v14902_v33 }
 0x3bc   :  { %14896 = vst [vmem:[#allocation26_spill] sm:$0xff] %v10450_v48  ;;  %14897 = vst [vmem:[#allocation30_spill] sm:$0xff] %v10454_v6  ;;  %v3465_v21 = vsel %vm168_vm0, %v3244_v50, 0.0 }
 0x3bd   :  { %14898 = vst [vmem:[#allocation13_spill] sm:$0xff] %v10458_v30  ;;  %14899 = vst [vmem:[#allocation12_spill] sm:$0xff] %v10462_v43  ;;  %v3243_v18 = vrot.slane %v3102_v10, 7  ;;  %v3568_v48 = vrot.slane %v3465_v21, 1  ;;  %v2970_v30 = vmul.f32 %v9569_v28, %v14901_v59  ;;  %v3041_v10 = vadd.f32 %v9600_v38, %v2971_v34 }
 0x3bf   :  { %v10467_v54 = vsel %vm168_vm0, %v3243_v18, %v3244_v50  ;;  %v3040_v52 = vadd.f32 %v9600_v38, %v2970_v30  ;;  %v10480_v0 = vsel %vm168_vm0, 0.0, %v3243_v18  ;;  %v3105_v35 = vmax.f32 %v3041_v10, 0.0  ;;  %v14905_v30 = vld [vmem:[#allocation3_spill] sm:$0xff]  ;;  %v14906_v38 = vld [vmem:[#allocation2_spill] sm:$0xff] }
 0x3c0   :  { %14900 = vst [vmem:[#allocation31_spill] sm:$0xff] %v10467_v54  ;;  %v3566_v6 = vrot.slane %v10467_v54, 1  ;;  %14903 = vst [vmem:[#allocation34_spill] sm:$0xff] %v10480_v0  ;;  %v3565_v50 = vrot.slane %v10480_v0, 1  ;;  %v3918_v27 = vrot.slane %v14905_v30, 2  ;;  %v3915_v34 = vrot.slane %v14906_v38, 2 }
 0x3c1   :  { %v3104_v43 = vmax.f32 %v3040_v52, 0.0  ;;  %v3247_v33 = vrot.slane %v3105_v35, 7  ;;  %v3107_v30 = vmax.f32 %v10240_v49, 0.0  ;;  %v3111_v49 = vmax.f32 %v10257_v39, 0.0 }
 0x3c2   :  { %v3569_v40 = vsel %vm490_vm1, %v3566_v6, %v3568_v48  ;;  %v3567_v59 = vsel %vm490_vm1, %v3565_v50, %v3566_v6  ;;  %v3106_v48 = vmax.f32 %v10236_v17, 0.0  ;;  %v3108_v6 = vmax.f32 %v10244_v20, 0.0 }
 0x3c3   :  { %3728 = vrot.lane.b32.xlu1 %v3569_v40, %s6834_s26  ;;  %3726 = vrot.lane.b32.xlu0 %v3567_v59, %s6834_s26  ;;  %v3246_v28 = vrot.slane %v3104_v43, 7  ;;  %v14904_v40 = vld [vmem:[#allocation20_spill] sm:$0xff]  ;;  %v3920_v50 = vrot.slane %v10480_v0, 2  ;;  %v3921_v59 = vrot.slane %v10467_v54, 2  ;;  %v3250_v62 = vrot.slane %v3107_v30, 7 }
 0x3c4   :  { %v3916_v57 = vrot.slane %v14904_v40, 2  ;;  %v3249_v20 = vrot.slane %v3106_v48, 7  ;;  %v3110_v40 = vmax.f32 %v10253_v13, 0.0  ;;  %v3252_v38 = vrot.slane %v3108_v6, 7 }
 0x3c5   :  { %v10490_v18 = vsel %vm168_vm0, %v3246_v28, %v3247_v33  ;;  %v10493_v52 = vsel %vm168_vm0, 0.0, %v3246_v28  ;;  %v3466_v28 = vsel %vm168_vm0, %v3247_v33, 0.0  ;;  %v3922_v54 = vsel %vm848_vm2, %v3920_v50, %v3921_v59 }
 0x3c6   :  { %v3570_v10 = vrot.slane %v10493_v52, 1  ;;  %v3571_v35 = vrot.slane %v10490_v18, 1  ;;  %v3919_v17 = vsel %vm848_vm2, %v3916_v57, %v3918_v27  ;;  %v3917_v43 = vsel %vm848_vm2, %v3915_v34, %v3916_v57 }
 0x3c7   :  { %4079 = vrot.lane.b32.xlu1 %v3919_v17, %s6837_s4  ;;  %4077 = vrot.lane.b32.xlu0 %v3917_v43, %s6837_s4  ;;  %v3923_v27 = vrot.slane %v3465_v21, 2  ;;  %v3109_v57 = vmax.f32 %v10249_v9, 0.0  ;;  %v3573_v0 = vrot.slane %v3466_v28, 1  ;;  %v10513_v48 = vsel %vm168_vm0, %v3249_v20, %v3250_v62 }
 0x3c8   :  { %v3572_v34 = vsel %vm490_vm1, %v3570_v10, %v3571_v35  ;;  %v3255_v13 = vrot.slane %v3110_v40, 7  ;;  %v3926_v9 = vrot.slane %v10490_v18, 2  ;;  %v3928_v6 = vrot.slane %v3466_v28, 2 }
 0x3c9   :  { %v3253_v33 = vrot.slane %v3109_v57, 7  ;;  %v3924_v21 = vsel %vm848_vm2, %v3921_v59, %v3923_v27  ;;  %v3574_v10 = vsel %vm490_vm1, %v3571_v35, %v3573_v0  ;;  %v3925_v17 = vrot.slane %v10493_v52, 2 }
 0x3ca   :  { %v3112_v50 = vmax.f32 %v10262_v22, 0.0  ;;  %v3467_v39 = vsel %vm168_vm0, %v3250_v62, 0.0  ;;  %v10528_v40 = vsel %vm168_vm0, 0.0, %v3249_v20  ;;  %v3114_v59 = vmax.f32 %v10270_v63, 0.0 }
 0x3cb   :  { %3730 = vrot.lane.b32.xlu1 %v3572_v34, %s6834_s26  ;;  %4081 = vrot.lane.b32.xlu0 %v3922_v54, %s6837_s4  ;;  %v10521_v43 = vsel %vm168_vm0, %v3252_v38, %v3253_v33  ;;  %v3256_v54 = vrot.slane %v3111_v49, 7  ;;  %v3929_v0 = vsel %vm848_vm2, %v3926_v9, %v3928_v6  ;;  %v3927_v28 = vsel %vm848_vm2, %v3925_v17, %v3926_v9 }
 0x3cc   :  { %v3576_v22 = vrot.slane %v10513_v48, 1  ;;  %v3578_v30 = vrot.slane %v3467_v39, 1  ;;  %v3575_v27 = vrot.slane %v10528_v40, 1  ;;  %v10538_v57 = vrot.slane %v3112_v50, 7 }
 0x3cd   :  { %v10533_v35 = vsel %vm168_vm0, %v3255_v13, %v3256_v54  ;;  %v3113_v63 = vmax.f32 %v10266_v15, 0.0  ;;  %v3116_v62 = vmax.f32 %v10278_v60, 0.0  ;;  %v10544_v20 = vrot.slane %v3114_v59, 7 }
 0x3ce   :  { %v3115_v34 = vmax.f32 %v10274_v47, 0.0  ;;  %v3931_v49 = vrot.slane %v10513_v48, 2  ;;  %v10550_v9 = vsel %vm168_vm0, 0.0, %v3252_v38  ;;  %v3577_v17 = vsel %vm490_vm1, %v3575_v27, %v3576_v22 }
 0x3cf   :  { %3732 = vrot.lane.b32.xlu1 %v3574_v10, %s6834_s26  ;;  %4083 = vrot.lane.b32.xlu0 %v3924_v21, %s6837_s4  ;;  %v3930_v21 = vrot.slane %v10528_v40, 2  ;;  %v3259_v6 = vrot.slane %v3113_v63, 7  ;;  %v3579_v10 = vsel %vm490_vm1, %v3576_v22, %v3578_v30  ;;  %v3933_v50 = vrot.slane %v3467_v39, 2 }
 0x3d0   :  { %v10554_v15 = vrot.slane %v3115_v34, 7  ;;  %v3468_v47 = vsel %vm168_vm0, %v3253_v33, 0.0  ;;  %v3117_v38 = vmax.f32 %v10282_v12, 0.0  ;;  %v10564_v59 = vrot.slane %v3116_v62, 7 }
 0x3d1   :  { %v10561_v60 = vsel %vm168_vm0, %v10538_v57, %v3259_v6  ;;  %v3580_v39 = vrot.slane %v10550_v9, 1  ;;  %v3934_v33 = vsel %vm848_vm2, %v3931_v49, %v3933_v50  ;;  %v3932_v30 = vsel %vm848_vm2, %v3930_v21, %v3931_v49 }
 0x3d2   :  { %14907 = vst [vmem:[#allocation10_spill] sm:$0xff] %v10561_v60  ;;  %v10573_v22 = vrot.slane %v3117_v38, 7  ;;  %v3581_v27 = vrot.slane %v10521_v43, 1  ;;  %v3583_v12 = vrot.slane %v3468_v47, 1  ;;  %v3120_v63 = vmax.f32 %v10294_v29, 0.0 }
 0x3d3   :  { %4087 = vrot.lane.b32.xlu1 %v3929_v0, %s6837_s4  ;;  %4085 = vrot.lane.b32.xlu0 %v3927_v28, %s6837_s4  ;;  %v3118_v0 = vmax.f32 %v10286_v58, 0.0  ;;  %v10571_v28 = vsel %vm168_vm0, %v10544_v20, %v10554_v15  ;;  %v3935_v34 = vrot.slane %v10550_v9, 2  ;;  %v10590_v49 = vsel %vm168_vm0, 0.0, %v3255_v13 }
 0x3d4   :  { %14908 = vst [vmem:[#allocation37_spill] sm:$0xff] %v10571_v28  ;;  %v10584_v58 = vsel %vm168_vm0, %v10564_v59, %v10573_v22  ;;  %14910 = vst [vmem:[#allocation15_spill] sm:$0xff] %v10590_v49  ;;  %v3584_v21 = vsel %vm490_vm1, %v3581_v27, %v3583_v12  ;;  %v3582_v29 = vsel %vm490_vm1, %v3580_v39, %v3581_v27  ;;  %v10595_v50 = vrot.slane %v3120_v63, 7 }
 0x3d5   :  { %14909 = vst [vmem:[#allocation14_spill] sm:$0xff] %v10584_v58  ;;  %v10586_v62 = vrot.slane %v3118_v0, 7  ;;  %v3469_v38 = vsel %vm168_vm0, %v3256_v54, 0.0  ;;  %v3119_v0 = vmax.f32 %v10290_v53, 0.0  ;;  %v3121_v13 = vmax.f32 %v10298_v8, 0.0 }
 0x3d6   :  { %v3586_v63 = vrot.slane %v10533_v35, 1  ;;  %v3124_v54 = vmax.f32 %v10310_v1, 0.0  ;;  %v10637_v1 = vsel %vm168_vm0, 0.0, %v10538_v57 }
 0x3d7   :  { %3736 = vrot.lane.b32.xlu1 %v3579_v10, %s6834_s26  ;;  %3734 = vrot.lane.b32.xlu0 %v3577_v17, %s6834_s26  ;;  %v3936_v10 = vrot.slane %v10521_v43, 2  ;;  %v3938_v17 = vrot.slane %v3468_v47, 2  ;;  %v10604_v39 = vrot.slane %v3119_v0, 7  ;;  %v10606_v27 = vrot.slane %v3121_v13, 7  ;;  %14913 = vst [vmem:[#allocation21_spill] sm:$0xff] %v10637_v1 }
 0x3d9   :  { %v3939_v47 = vsel %vm848_vm2, %v3936_v10, %v3938_v17  ;;  %v3937_v12 = vsel %vm848_vm2, %v3935_v34, %v3936_v10  ;;  %v10616_v53 = vsel %vm168_vm0, %v10586_v62, %v10604_v39  ;;  %v10621_v8 = vsel %vm168_vm0, %v10595_v50, %v10606_v27 }
 0x3da   :  { %14911 = vst [vmem:[#allocation17_spill] sm:$0xff] %v10616_v53  ;;  %14912 = vst [vmem:[#allocation18_spill] sm:$0xff] %v10621_v8  ;;  %v3126_v34 = vmax.f32 %v10318_v61, 0.0  ;;  %v3941_v10 = vrot.slane %v10533_v35, 2  ;;  %v3943_v17 = vrot.slane %v3469_v38, 2 }
 0x3db   :  { %4091 = vrot.lane.b32.xlu1 %v3934_v33, %s6837_s4  ;;  %4089 = vrot.lane.b32.xlu0 %v3932_v30, %s6837_s4  ;;  %v3122_v33 = vmax.f32 %v10302_v36, 0.0  ;;  %v3585_v30 = vrot.slane %v10590_v49, 1  ;;  %v3123_v36 = vmax.f32 %v10306_v3, 0.0  ;;  %v3470_v3 = vsel %vm168_vm0, %v3259_v6, 0.0 }
 0x3dc   :  { %v3127_v6 = vmax.f32 %v10322_v2, 0.0  ;;  %v3945_v2 = vrot.slane %v10637_v1, 2 }
 0x3dd   :  { %v3587_v13 = vsel %vm490_vm1, %v3585_v30, %v3586_v63  ;;  %v10639_v61 = vrot.slane %v3123_v36, 7  ;;  %v3944_v30 = vsel %vm848_vm2, %v3941_v10, %v3943_v17  ;;  %v3593_v36 = vrot.slane %v3470_v3, 1 }
 0x3de   :  { %v3128_v17 = vmax.f32 %v10326_v44, 0.0 }
 0x3df   :  { %3740 = vrot.lane.b32.xlu1 %v3584_v21, %s6834_s26  ;;  %3738 = vrot.lane.b32.xlu0 %v3582_v29, %s6834_s26  ;;  %v3588_v21 = vrot.slane %v3469_v38, 1  ;;  %v10626_v29 = vrot.slane %v3122_v33, 7  ;;  %v10641_v33 = vrot.slane %v3124_v54, 7  ;;  %v3125_v38 = vmax.f32 %v10314_v14, 0.0 }
 0x3e0   :  { %v3590_v54 = vrot.slane %v10637_v1, 1 }
 0x3e1   :  { %v3589_v0 = vsel %vm490_vm1, %v3586_v63, %v3588_v21  ;;  %v10650_v63 = vsel %vm168_vm0, %v10626_v29, %v10639_v61  ;;  %v3591_v21 = vrot.slane %v10561_v60, 1  ;;  %v10658_v14 = vrot.slane %v3125_v38, 7 }
 0x3e2   :  { %14914 = vst [vmem:[#allocation39_spill] sm:$0xff] %v10650_v63 }
 0x3e3   :  { %4095 = vrot.lane.b32.xlu1 %v3939_v47, %s6837_s4  ;;  %4093 = vrot.lane.b32.xlu0 %v3937_v12, %s6837_s4  ;;  %v3940_v47 = vrot.slane %v10590_v49, 2  ;;  %v10644_v12 = vrot.slane %v3126_v34, 7  ;;  %v10660_v34 = vrot.slane %v3127_v6, 7  ;;  %v3592_v44 = vsel %vm490_vm1, %v3590_v54, %v3591_v21 }
 0x3e4   :  { %v10686_v6 = vrot.slane %v3128_v17, 7  ;;  %v3132_v17 = vmax.f32 %v10342_v32, 0.0  ;;  %v3149_v49 = vmax.f32 %v10410_v51, 0.0 }
 0x3e5   :  { %v3942_v57 = vsel %vm848_vm2, %v3940_v47, %v3941_v10  ;;  %v3946_v10 = vrot.slane %v10561_v60, 2  ;;  %v10669_v47 = vsel %vm168_vm0, %v10641_v33, %v10658_v14  ;;  %v10674_v38 = vsel %vm168_vm0, %v10644_v12, %v10660_v34 }
 0x3e6   :  { %14915 = vst [vmem:[#allocation42_spill] sm:$0xff] %v10669_v47  ;;  %14916 = vst [vmem:[#allocation44_spill] sm:$0xff] %v10674_v38  ;;  %v3134_v60 = vmax.f32 %v10350_v31, 0.0 }
 0x3e7   :  { %3744 = vrot.lane.b32.xlu1 %v3589_v0, %s6834_s26  ;;  %3742 = vrot.lane.b32.xlu0 %v3587_v13, %s6834_s26  ;;  %v3130_v0 = vmax.f32 %v10334_v56, 0.0  ;;  %v3948_v13 = vrot.slane %v3470_v3, 2  ;;  %v10680_v56 = vsel %vm168_vm0, 0.0, %v10544_v20  ;;  %v3471_v3 = vsel %vm168_vm0, %v10554_v15, 0.0 }
 0x3e8   :  { %14917 = vst [vmem:[#allocation41_spill] sm:$0xff] %v10680_v56  ;;  %v3596_v20 = vrot.slane %v10571_v28, 1  ;;  %v3598_v54 = vrot.slane %v3471_v3, 1  ;;  %v3135_v15 = vmax.f32 %v10354_v11, 0.0 }
 0x3e9   :  { %v3949_v1 = vsel %vm848_vm2, %v3946_v10, %v3948_v13  ;;  %v3953_v13 = vrot.slane %v3471_v3, 2  ;;  %v10723_v3 = vrot.slane %v3134_v60, 7 }
 0x3ea   :  { %v3599_v31 = vsel %vm490_vm1, %v3596_v20, %v3598_v54  ;;  %v3138_v54 = vmax.f32 %v10366_v25, 0.0  ;;  %v3140_v25 = vmax.f32 %v10374_v37, 0.0 }
 0x3eb   :  { %4099 = vrot.lane.b32.xlu1 %v3944_v30, %s6837_s4  ;;  %4097 = vrot.lane.b32.xlu0 %v3942_v57, %s6837_s4  ;;  %v3594_v30 = vsel %vm490_vm1, %v3591_v21, %v3593_v36  ;;  %v10688_v57 = vrot.slane %v3130_v0, 7  ;;  %v3947_v36 = vsel %vm848_vm2, %v3945_v2, %v3946_v10  ;;  %v3595_v21 = vrot.slane %v10680_v56, 1 }
 0x3ec   :  { %v3951_v10 = vrot.slane %v10571_v28, 2  ;;  %v3148_v28 = vmax.f32 %v10406_v23, 0.0  ;;  %v14933_v23 = vld [vmem:[#allocation27_spill] sm:$0xff] }
 0x3ed   :  { %v3597_v11 = vsel %vm490_vm1, %v3595_v21, %v3596_v20  ;;  %v3133_v21 = vmax.f32 %v10346_v42, 0.0  ;;  %v3136_v20 = vmax.f32 %v10358_v46, 0.0 }
 0x3ef   :  { %3748 = vrot.lane.b32.xlu1 %v3594_v30, %s6834_s26  ;;  %3746 = vrot.lane.b32.xlu0 %v3592_v44, %s6834_s26  ;;  %v3129_v30 = vmax.f32 %v10330_v4, 0.0  ;;  %v3131_v44 = vmax.f32 %v10338_v7, 0.0  ;;  %v3950_v4 = vrot.slane %v10680_v56, 2  ;;  %v10709_v7 = vsel %vm168_vm0, 0.0, %v10564_v59 }
 0x3f0   :  { %14918 = vst [vmem:[#allocation40_spill] sm:$0xff] %v10709_v7  ;;  %v3472_v59 = vsel %vm168_vm0, %v10573_v22, 0.0  ;;  %v3600_v60 = vrot.slane %v10709_v7, 1  ;;  %v10742_v42 = vrot.slane %v3133_v21, 7  ;;  %v10750_v22 = vrot.slane %v3136_v20, 7 }
 0x3f1   :  { %v10701_v0 = vrot.slane %v3129_v30, 7  ;;  %v10703_v2 = vrot.slane %v3131_v44, 7  ;;  %v10734_v30 = vrot.slane %v3132_v17, 7  ;;  %v3954_v44 = vsel %vm848_vm2, %v3951_v10, %v3953_v13 }
 0x3f2   :  { %v3956_v17 = vrot.slane %v10584_v58, 2  ;;  %v10759_v21 = vrot.slane %v3138_v54, 7  ;;  %v3955_v37 = vrot.slane %v10709_v7, 2  ;;  %v10770_v20 = vsel %vm168_vm0, 0.0, %v10586_v62 }
 0x3f3   :  { %4103 = vrot.lane.b32.xlu1 %v3949_v1, %s6837_s4  ;;  %4101 = vrot.lane.b32.xlu0 %v3947_v36, %s6837_s4  ;;  %v10716_v32 = vsel %vm168_vm0, %v10686_v6, %v10701_v0  ;;  %v10721_v1 = vsel %vm168_vm0, %v10688_v57, %v10703_v2  ;;  %v10725_v36 = vrot.slane %v3135_v15, 7  ;;  %v3952_v15 = vsel %vm848_vm2, %v3950_v4, %v3951_v10 }
 0x3f4   :  { %14919 = vst [vmem:[#allocation43_spill] sm:$0xff] %v10716_v32  ;;  %14920 = vst [vmem:[#allocation16_spill] sm:$0xff] %v10721_v1  ;;  %v3958_v10 = vrot.slane %v3472_v59, 2  ;;  %v10756_v13 = vsel %vm168_vm0, %v10734_v30, %v10742_v42  ;;  %v3137_v4 = vmax.f32 %v10362_v41, 0.0  ;;  %v3139_v54 = vmax.f32 %v10370_v19, 0.0 }
 0x3f5   :  { %v10747_v46 = vsel %vm168_vm0, %v10723_v3, %v10725_v36  ;;  %14922 = vst [vmem:[#allocation4_spill] sm:$0xff] %v10756_v13  ;;  %14923 = vst [vmem:[#allocation6_spill] sm:$0xff] %v10770_v20  ;;  %v3957_v62 = vsel %vm848_vm2, %v3955_v37, %v3956_v17  ;;  %v3605_v19 = vrot.slane %v10770_v20, 1  ;;  %v10804_v37 = vsel %vm168_vm0, 0.0, %v10595_v50 }
 0x3f6   :  { %14921 = vst [vmem:[#allocation19_spill] sm:$0xff] %v10747_v46  ;;  %v10772_v41 = vrot.slane %v3137_v4, 7  ;;  %v3606_v4 = vrot.slane %v10616_v53, 1  ;;  %14927 = vst [vmem:[#allocation33_spill] sm:$0xff] %v10804_v37  ;;  %v3143_v7 = vmax.f32 %v10386_v26, 0.0  ;;  %v3474_v50 = vsel %vm168_vm0, %v10606_v27, 0.0 }
 0x3f7   :  { %3752 = vrot.lane.b32.xlu1 %v3599_v31, %s6834_s26  ;;  %3750 = vrot.lane.b32.xlu0 %v3597_v11, %s6834_s26  ;;  %v3601_v31 = vrot.slane %v10584_v58, 1  ;;  %v3603_v11 = vrot.slane %v3472_v59, 1  ;;  %v3473_v59 = vsel %vm168_vm0, %v10604_v39, 0.0  ;;  %v10783_v39 = vrot.slane %v3139_v54, 7 }
 0x3f8   :  { %v10788_v58 = vrot.slane %v3140_v25, 7  ;;  %v3961_v25 = vrot.slane %v10616_v53, 2  ;;  %v10823_v26 = vrot.slane %v3143_v7, 7  ;;  %v3966_v53 = vrot.slane %v10621_v8, 2 }
 0x3fb   :  { %4107 = vrot.lane.b32.xlu1 %v3954_v44, %s6837_s4  ;;  %4105 = vrot.lane.b32.xlu0 %v3952_v15, %s6837_s4  ;;  %v3604_v44 = vsel %vm490_vm1, %v3601_v31, %v3603_v11  ;;  %v3602_v15 = vsel %vm490_vm1, %v3600_v60, %v3601_v31  ;;  %v3142_v11 = vmax.f32 %v10382_v5, 0.0  ;;  %v3144_v60 = vmax.f32 %v10390_v55, 0.0  ;;  %v14926_v55 = vld [vmem:[#allocation5_spill] sm:$0xff] }
 0x3fc   :  { %v3959_v31 = vsel %vm848_vm2, %v3956_v17, %v3958_v10  ;;  %v10795_v5 = vsel %vm168_vm0, %v10759_v21, %v10783_v39  ;;  %v3141_v10 = vmax.f32 %v14926_v55, 0.0  ;;  %v3607_v55 = vsel %vm490_vm1, %v3605_v19, %v3606_v4 }
 0x3fd   :  { %14925 = vst [vmem:[#allocation23_spill] sm:$0xff] %v10795_v5  ;;  %v10798_v54 = vrot.slane %v3142_v11, 7  ;;  %v10800_v17 = vrot.slane %v3144_v60, 7  ;;  %v3963_v11 = vrot.slane %v3473_v59, 2  ;;  %v3145_v60 = vmax.f32 %v10394_v24, 0.0 }
 0x3fe   :  { %v3610_v24 = vrot.slane %v10804_v37, 1  ;;  %v3613_v19 = vrot.slane %v3474_v50, 1 }
 0x3ff   :  { %3756 = vrot.lane.b32.xlu1 %v3604_v44, %s6834_s26  ;;  %3754 = vrot.lane.b32.xlu0 %v3602_v15, %s6834_s26  ;;  %v10781_v44 = vsel %vm168_vm0, %v10750_v22, %v10772_v41  ;;  %v3608_v15 = vrot.slane %v3473_v59, 1  ;;  %v3611_v59 = vrot.slane %v10621_v8, 1  ;;  %v3964_v27 = vsel %vm848_vm2, %v3961_v25, %v3963_v11 }
 0x400   :  { %14924 = vst [vmem:[#allocation32_spill] sm:$0xff] %v10781_v44  ;;  %v10869_v8 = vrot.slane %v3148_v28, 7  ;;  %v3971_v28 = vrot.slane %v10650_v63, 2 }
 0x401   :  { %v3609_v56 = vsel %vm490_vm1, %v3606_v4, %v3608_v15  ;;  %v10825_v15 = vrot.slane %v3145_v60, 7  ;;  %v3147_v60 = vmax.f32 %v10402_v16, 0.0  ;;  %v3614_v11 = vsel %vm490_vm1, %v3611_v59, %v3613_v19 }
 0x402   :  { %v10857_v16 = vsel %vm168_vm0, 0.0, %v10626_v29  ;;  %v10871_v29 = vrot.slane %v3149_v49, 7 }
 0x403   :  { %4111 = vrot.lane.b32.xlu1 %v3959_v31, %s6837_s4  ;;  %4109 = vrot.lane.b32.xlu0 %v3957_v62, %s6837_s4  ;;  %v3960_v31 = vrot.slane %v10770_v20, 2  ;;  %v10808_v62 = vrot.slane %v3141_v10, 7  ;;  %v10839_v7 = vsel %vm168_vm0, %v10800_v17, %v10825_v15  ;;  %v3968_v20 = vrot.slane %v3474_v50, 2  ;;  %14931 = vst [vmem:[#allocation5_spill] sm:$0xff] %v10857_v16 }
 0x404   :  { %14930 = vst [vmem:[#allocation3_spill] sm:$0xff] %v10839_v7 }
 0x405   :  { %v10821_v10 = vsel %vm168_vm0, %v10788_v58, %v10808_v62  ;;  %v3962_v4 = vsel %vm848_vm2, %v3960_v31, %v3961_v25  ;;  %v3612_v25 = vsel %vm490_vm1, %v3610_v24, %v3611_v59  ;;  %v3965_v31 = vrot.slane %v10804_v37, 2  ;;  %v14932_v24 = vld [vmem:[#allocation24_spill] sm:$0xff] }
 0x406   :  { %14928 = vst [vmem:[#allocation29_spill] sm:$0xff] %v10821_v10  ;;  %v10861_v59 = vrot.slane %v3147_v60, 7  ;;  %v3969_v51 = vsel %vm848_vm2, %v3966_v53, %v3968_v20  ;;  %14934 = vst [vmem:[#allocation24_spill] sm:$0xff] %v10871_v29 }
 0x407   :  { %3760 = vrot.lane.b32.xlu1 %v3609_v56, %s6834_s26  ;;  %3758 = vrot.lane.b32.xlu0 %v3607_v55, %s6834_s26  ;;  %v10832_v56 = vsel %vm168_vm0, %v10798_v54, %v10823_v26  ;;  %v3146_v55 = vmax.f32 %v10398_v45, 0.0  ;;  %v3475_v45 = vsel %vm168_vm0, %v10639_v61, 0.0  ;;  %v3967_v19 = vsel %vm848_vm2, %v3965_v31, %v3966_v53 }
 0x408   :  { %14929 = vst [vmem:[#allocation36_spill] sm:$0xff] %v10832_v56  ;;  %v3615_v61 = vrot.slane %v10857_v16, 1  ;;  %v3973_v49 = vrot.slane %v3475_v45, 2 }
 0x409   :  { %v10859_v50 = vrot.slane %v3146_v55, 7  ;;  %v14935_v55 = vld [vmem:[#allocation8_spill] sm:$0xff] }
 0x40a   :  { %v3152_v60 = vmax.f32 %v14935_v55, 0.0  ;;  %v3970_v55 = vrot.slane %v10857_v16, 2 }
 0x40b   :  { %4115 = vrot.lane.b32.xlu1 %v3964_v27, %s6837_s4  ;;  %4113 = vrot.lane.b32.xlu0 %v3962_v4, %s6837_s4  ;;  %v3150_v27 = vmax.f32 %v14932_v24, 0.0  ;;  %v3151_v4 = vmax.f32 %v14933_v23, 0.0  ;;  %v14936_v24 = vld [vmem:[#allocation7_spill] sm:$0xff]  ;;  %v10880_v53 = vsel %vm168_vm0, %v10859_v50, %v10861_v59 }
 0x40c   :  { %v3153_v23 = vmax.f32 %v14936_v24, 0.0  ;;  %14937 = vst [vmem:[#allocation27_spill] sm:$0xff] %v10880_v53  ;;  %v10892_v24 = vsel %vm168_vm0, 0.0, %v10641_v33  ;;  %v3972_v16 = vsel %vm848_vm2, %v3970_v55, %v3971_v28 }
 0x40d   :  { %v10882_v20 = vrot.slane %v3150_v27, 7  ;;  %v10884_v31 = vrot.slane %v3151_v4, 7  ;;  %14940 = vst [vmem:[#allocation45_spill] sm:$0xff] %v10892_v24  ;;  %v3476_v27 = vsel %vm168_vm0, %v10658_v14, 0.0  ;;  %v14942_v4 = vld [vmem:[#allocation28_spill] sm:$0xff]  ;;  %v3621_v14 = vrot.slane %v10669_v47, 1 }
 0x40e   :  { %v10907_v33 = vrot.slane %v3153_v23, 7  ;;  %v3623_v37 = vrot.slane %v3476_v27, 1 }
 0x40f   :  { %3764 = vrot.lane.b32.xlu1 %v3614_v11, %s6834_s26  ;;  %3762 = vrot.lane.b32.xlu0 %v3612_v25, %s6834_s26  ;;  %v3616_v11 = vrot.slane %v10650_v63, 1  ;;  %v3618_v25 = vrot.slane %v3475_v45, 1  ;;  %14938 = vst [vmem:[#allocation8_spill] sm:$0xff] %v10882_v20  ;;  %14939 = vst [vmem:[#allocation7_spill] sm:$0xff] %v10884_v31  ;;  %v10901_v45 = vsel %vm168_vm0, %v10869_v8, %v10871_v29  ;;  %v10905_v63 = vrot.slane %v3152_v60, 7  ;;  %v14946_v60 = vld [vmem:[#allocation11_spill] sm:$0xff] }
 0x410   :  { %14941 = vst [vmem:[#allocation46_spill] sm:$0xff] %v10901_v45  ;;  %14944 = vst [vmem:[#allocation28_spill] sm:$0xff] %v10907_v33  ;;  %v10916_v29 = vsel %vm168_vm0, %v10882_v20, %v10884_v31  ;;  %v3156_v23 = vmax.f32 %v14946_v60, 0.0  ;;  %v3624_v31 = vsel %vm490_vm1, %v3621_v14, %v3623_v37  ;;  %v3978_v60 = vrot.slane %v3476_v27, 2  ;;  %v14955_v27 = vld [vmem:[#allocation30_spill] sm:$0xff] }
 0x411   :  { %v10930_v55 = vsel %vm168_vm0, %v10905_v63, %v10907_v33 }
 0x412   :  { %14950 = vst [vmem:[#allocation47_spill] sm:$0xff] %v10930_v55  ;;  %v10945_v37 = vrot.slane %v3156_v23, 7  ;;  %v14957_v23 = vld [vmem:[#allocation13_spill] sm:$0xff] }
 0x413   :  { %4119 = vrot.lane.b32.xlu1 %v3969_v51, %s6837_s4  ;;  %4117 = vrot.lane.b32.xlu0 %v3967_v19, %s6837_s4  ;;  %v3619_v51 = vsel %vm490_vm1, %v3616_v11, %v3618_v25  ;;  %v3617_v19 = vsel %vm490_vm1, %v3615_v61, %v3616_v11  ;;  %v3154_v11 = vmax.f32 %v14942_v4, 0.0  ;;  %v14943_v25 = vld [vmem:[#allocation38_spill] sm:$0xff] }
 0x414   :  { %v3155_v61 = vmax.f32 %v14943_v25, 0.0  ;;  %14945 = vst [vmem:[#allocation38_spill] sm:$0xff] %v10916_v29  ;;  %v14947_v4 = vld [vmem:[#allocation22_spill] sm:$0xff]  ;;  %v14951_v29 = vld [vmem:[#allocation25_spill] sm:$0xff] }
 0x415   :  { %v10922_v25 = vrot.slane %v3154_v11, 7  ;;  %v14952_v11 = vld [vmem:[#allocation26_spill] sm:$0xff] }
 0x416   :  { %v10924_v45 = vrot.slane %v3155_v61, 7  ;;  %v3159_v20 = vmax.f32 %v14952_v11, 0.0  ;;  %v3477_v61 = vsel %vm168_vm0, %v10660_v34, 0.0 }
 0x417   :  { %3768 = vrot.lane.b32.xlu1 %v3619_v51, %s6834_s26  ;;  %3766 = vrot.lane.b32.xlu0 %v3617_v19, %s6834_s26  ;;  %v3974_v51 = vsel %vm848_vm2, %v3971_v28, %v3973_v49  ;;  %v3620_v19 = vrot.slane %v10892_v24, 1  ;;  %v3157_v49 = vmax.f32 %v14947_v4, 0.0  ;;  %14948 = vst [vmem:[#allocation11_spill] sm:$0xff] %v10922_v25  ;;  %v3975_v28 = vrot.slane %v10892_v24, 2 }
 0x418   :  { %14949 = vst [vmem:[#allocation22_spill] sm:$0xff] %v10924_v45  ;;  %v3158_v4 = vmax.f32 %v14951_v29, 0.0  ;;  %v10943_v24 = vsel %vm168_vm0, 0.0, %v10644_v12  ;;  %v3626_v29 = vrot.slane %v10674_v38, 1  ;;  %v3628_v11 = vrot.slane %v3477_v61, 1 }
 0x419   :  { %14953 = vst [vmem:[#allocation25_spill] sm:$0xff] %v10943_v24  ;;  %v3625_v12 = vrot.slane %v10943_v24, 1  ;;  %v10962_v33 = vrot.slane %v3159_v20, 7 }
 0x41a   :  { %v3629_v20 = vsel %vm490_vm1, %v3626_v29, %v3628_v11 }
 0x41b   :  { %4123 = vrot.lane.b32.xlu1 %v3974_v51, %s6837_s4  ;;  %4121 = vrot.lane.b32.xlu0 %v3972_v16, %s6837_s4  ;;  %v3622_v51 = vsel %vm490_vm1, %v3620_v19, %v3621_v14  ;;  %v3976_v16 = vrot.slane %v10669_v47, 2  ;;  %v10947_v19 = vrot.slane %v3157_v49, 7  ;;  %v3160_v14 = vmax.f32 %v14955_v27, 0.0  ;;  %14959 = vst [vmem:[#allocation48_spill] sm:$0xff] %v10962_v33 }
 0x41c   :  { %v3161_v47 = vmax.f32 %v14957_v23, 0.0  ;;  %v10960_v49 = vrot.slane %v3158_v4, 7  ;;  %v3983_v23 = vrot.slane %v3477_v61, 2  ;;  %v10989_v61 = vsel %vm168_vm0, 0.0, %v10686_v6 }
 0x41d   :  { %14954 = vst [vmem:[#allocation26_spill] sm:$0xff] %v10947_v19  ;;  %v3977_v34 = vsel %vm848_vm2, %v3975_v28, %v3976_v16  ;;  %v10969_v27 = vsel %vm168_vm0, %v10945_v37, %v10947_v19  ;;  %v10974_v4 = vrot.slane %v3160_v14, 7  ;;  %14964 = vst [vmem:[#allocation49_spill] sm:$0xff] %v10989_v61 }
 0x41e   :  { %14958 = vst [vmem:[#allocation13_spill] sm:$0xff] %v10960_v49  ;;  %v10994_v14 = vsel %vm168_vm0, %v10960_v49, %v10962_v33  ;;  %v14562_v49 = vrot.slane %v10821_v10, 1 }
 0x41f   :  { %3772 = vrot.lane.b32.xlu1 %v3624_v31, %s6834_s26  ;;  %3770 = vrot.lane.b32.xlu0 %v3622_v51, %s6834_s26  ;;  %v10954_v31 = vsel %vm168_vm0, %v10922_v25, %v10924_v45  ;;  %v3979_v51 = vsel %vm848_vm2, %v3976_v16, %v3978_v60  ;;  %v14960_v60 = vld [vmem:[#allocation35_spill] sm:$0xff]  ;;  %v14961_v16 = vld [vmem:[#allocation12_spill] sm:$0xff]  ;;  %v10979_v25 = vrot.slane %v3161_v47, 7  ;;  %14965 = vst [vmem:[#allocation50_spill] sm:$0xff] %v10994_v14 }
 0x420   :  { %14956 = vst [vmem:[#allocation30_spill] sm:$0xff] %v10954_v31  ;;  %v3162_v28 = vmax.f32 %v14960_v60, 0.0  ;;  %v3163_v45 = vmax.f32 %v14961_v16, 0.0  ;;  %v3981_v31 = vrot.slane %v10674_v38, 2  ;;  %14962 = vst [vmem:[#allocation35_spill] sm:$0xff] %v10974_v4  ;;  %v10983_v60 = vpop.permute.xlu1 %3720  ;;  %v3478_v16 = vsel %vm168_vm0, %v10701_v0, 0.0 }
 0x421   :  { %14963 = vst [vmem:[#allocation12_spill] sm:$0xff] %v10979_v25  ;;  %v3633_v0 = vrot.slane %v3478_v16, 1  ;;  %v11009_v6 = vsel %vm168_vm0, %v10974_v4, %v10979_v25  ;;  %v3988_v33 = vrot.slane %v3478_v16, 2  ;;  %v3636_v16 = vrot.slane %v10721_v1, 1 }
 0x422   :  { %v10996_v47 = vrot.slane %v3162_v28, 7  ;;  %v3984_v11 = vsel %vm848_vm2, %v3981_v31, %v3983_v23  ;;  %14968 = vst [vmem:[#allocation53_spill] sm:$0xff] %v11009_v6  ;;  %v11013_v28 = vpop.permute.xlu0 %3722  ;;  %v3985_v23 = vrot.slane %v10989_v61, 2  ;;  %v3479_v6 = vsel %vm168_vm0, %v10703_v2, 0.0 }
 0x423   :  { %4127 = vrot.lane.b32.xlu1 %v3979_v51, %s6837_s4  ;;  %4125 = vrot.lane.b32.xlu0 %v3977_v34, %s6837_s4  ;;  %v3627_v51 = vsel %vm490_vm1, %v3625_v12, %v3626_v29  ;;  %v3980_v34 = vrot.slane %v10943_v24, 2  ;;  %v10998_v29 = vrot.slane %v3163_v45, 7 }
 0x424   :  { %14966 = vst [vmem:[#allocation51_spill] sm:$0xff] %v10996_v47  ;;  %v11011_v45 = vpop.permute.xlu1 %3724 }
 0x425   :  { %14967 = vst [vmem:[#allocation52_spill] sm:$0xff] %v10998_v29  ;;  %v3982_v12 = vsel %vm848_vm2, %v3980_v34, %v3981_v31  ;;  %v3986_v31 = vrot.slane %v10716_v32, 2  ;;  %v11019_v34 = vsel %vm168_vm0, 0.0, %v10688_v57  ;;  %v11026_v25 = vsel %vm168_vm0, %v10996_v47, %v10998_v29 }
 0x426   :  { %14969 = vst [vmem:[#allocation54_spill] sm:$0xff] %v11019_v34  ;;  %14970 = vst [vmem:[#allocation55_spill] sm:$0xff] %v11026_v25  ;;  %v3635_v57 = vrot.slane %v11019_v34, 1 }
 0x427   :  { %3776 = vrot.lane.b32.xlu1 %v3629_v20, %s6834_s26  ;;  %3774 = vrot.lane.b32.xlu0 %v3627_v51, %s6834_s26  ;;  %v3631_v20 = vrot.slane %v10716_v32, 1  ;;  %v3630_v51 = vrot.slane %v10989_v61, 1  ;;  %v3989_v4 = vsel %vm848_vm2, %v3986_v31, %v3988_v33  ;;  %v3991_v33 = vrot.slane %v10721_v1, 2 }
 0x428   :  { %v3637_v29 = vsel %vm490_vm1, %v3635_v57, %v3636_v16  ;;  %v3641_v57 = vrot.slane %v10756_v13, 1  ;;  %v3646_v1 = vrot.slane %v10747_v46, 1 }
 0x42b   :  { %4131 = vrot.lane.b32.xlu1 %v3984_v11, %s6837_s4  ;;  %4129 = vrot.lane.b32.xlu0 %v3982_v12, %s6837_s4  ;;  %v3634_v11 = vsel %vm490_vm1, %v3631_v20, %v3633_v0  ;;  %v3632_v12 = vsel %vm490_vm1, %v3630_v51, %v3631_v20  ;;  %v3987_v0 = vsel %vm848_vm2, %v3985_v23, %v3986_v31  ;;  %v3638_v20 = vrot.slane %v3479_v6, 1 }
 0x42c   :  { %v3993_v31 = vrot.slane %v3479_v6, 2 }
 0x42d   :  { %v3639_v2 = vsel %vm490_vm1, %v3636_v16, %v3638_v20 }
 0x42e   :  { %v3994_v25 = vsel %vm848_vm2, %v3991_v33, %v3993_v31 }
 0x42f   :  { %3780 = vrot.lane.b32.xlu1 %v3634_v11, %s6834_s26  ;;  %3778 = vrot.lane.b32.xlu0 %v3632_v12, %s6834_s26  ;;  %v3990_v12 = vrot.slane %v11019_v34, 2 }
 0x431   :  { %v3992_v20 = vsel %vm848_vm2, %v3990_v12, %v3991_v33 }
 0x433   :  { %4135 = vrot.lane.b32.xlu1 %v3989_v4, %s6837_s4  ;;  %4133 = vrot.lane.b32.xlu0 %v3987_v0, %s6837_s4  ;;  %v3480_v4 = vsel %vm168_vm0, %v10742_v42, 0.0 }
 0x434   :  { %v3643_v16 = vrot.slane %v3480_v4, 1 }
 0x435   :  { %v11038_v51 = vpop.permute.xlu1 %3728  ;;  %v11040_v11 = vpop.permute.xlu0 %3726 }
 0x436   :  { %v3644_v12 = vsel %vm490_vm1, %v3641_v57, %v3643_v16 }
 0x437   :  { %3784 = vrot.lane.b32.xlu1 %v3639_v2, %s6834_s26  ;;  %3782 = vrot.lane.b32.xlu0 %v3637_v29, %s6834_s26  ;;  %v11061_v29 = vsel %vm168_vm0, 0.0, %v10734_v30  ;;  %v11069_v2 = vsel %vm168_vm0, 0.0, %v10723_v3  ;;  %v14973_v30 = vld [vmem:[#allocation9_spill] sm:$0xff] }
 0x438   :  { %14971 = vst [vmem:[#allocation56_spill] sm:$0xff] %v11061_v29  ;;  %14972 = vst [vmem:[#allocation57_spill] sm:$0xff] %v11069_v2  ;;  %v3995_v33 = vrot.slane %v11061_v29, 2  ;;  %v3640_v31 = vrot.slane %v11061_v29, 1  ;;  %v3645_v3 = vrot.slane %v11069_v2, 1  ;;  %v3481_v29 = vsel %vm168_vm0, %v10725_v36, 0.0 }
 0x439   :  { %v11050_v23 = vpop.permute.xlu1 %4079  ;;  %v11052_v0 = vpop.permute.xlu0 %4077  ;;  %v3648_v61 = vrot.slane %v3481_v29, 1 }
 0x43a   :  { %v3642_v34 = vsel %vm490_vm1, %v3640_v31, %v3641_v57  ;;  %v3651_v57 = vrot.slane %v10781_v44, 1 }
 0x43b   :  { %4139 = vrot.lane.b32.xlu1 %v3994_v25, %s6837_s4  ;;  %4137 = vrot.lane.b32.xlu0 %v3992_v20, %s6837_s4  ;;  %v3996_v25 = vrot.slane %v10756_v13, 2  ;;  %v3998_v13 = vrot.slane %v3480_v4, 2  ;;  %v3647_v4 = vsel %vm490_vm1, %v3645_v3, %v3646_v1 }
 0x43d   :  { %v11063_v42 = vpop.permute.xlu1 %3730  ;;  %v11065_v6 = vpop.permute.xlu0 %4081  ;;  %v3997_v16 = vsel %vm848_vm2, %v3995_v33, %v3996_v25  ;;  %v3999_v33 = vsel %vm848_vm2, %v3996_v25, %v3998_v13  ;;  %v3649_v13 = vsel %vm490_vm1, %v3646_v1, %v3648_v61  ;;  %v4000_v25 = vrot.slane %v11069_v2, 2 }
 0x43e   :  { %v4003_v61 = vrot.slane %v3481_v29, 2 }
 0x43f   :  { %3788 = vrot.lane.b32.xlu1 %v3644_v12, %s6834_s26  ;;  %4075 = vrot.lane.b32.xlu0 %v14973_v30, %s6837_s4  ;;  %v11092_v12 = vsel %vm168_vm0, %v10772_v41, 0.0  ;;  %v11106_v41 = vsel %vm168_vm0, %v10783_v39, 0.0  ;;  %v11122_v39 = vsel %vm168_vm0, %v10808_v62, 0.0  ;;  %v11136_v62 = vsel %vm168_vm0, %v10823_v26, 0.0 }
 0x440   :  { %v3653_v36 = vrot.slane %v11092_v12, 1 }
 0x441   :  { %v11078_v20 = vpop.permute.xlu1 %3732  ;;  %v11080_v47 = vpop.permute.xlu0 %4083 }
 0x442   :  { %v3654_v3 = vsel %vm490_vm1, %v3651_v57, %v3653_v36 }
 0x443   :  { %4141 = vrot.lane.b32.xlu1 %v3997_v16, %s6837_s4  ;;  %3786 = vrot.lane.b32.xlu0 %v3642_v34, %s6834_s26  ;;  %v3656_v16 = vrot.slane %v10795_v5, 1 }
 0x445   :  { %v11094_v30 = vpop.permute.xlu1 %4087  ;;  %v11096_v32 = vpop.permute.xlu0 %4085 }
 0x447   :  { %4143 = vrot.lane.b32.xlu1 %v3999_v33, %s6837_s4  ;;  %3790 = vrot.lane.b32.xlu0 %v3647_v4, %s6834_s26  ;;  %v3658_v33 = vrot.slane %v11106_v41, 1  ;;  %v4001_v4 = vrot.slane %v10747_v46, 2  ;;  %v3663_v46 = vrot.slane %v11122_v39, 1 }
 0x449   :  { %v11108_v34 = vpop.permute.xlu1 %3736  ;;  %v11110_v31 = vpop.permute.xlu0 %3734  ;;  %v3659_v36 = vsel %vm490_vm1, %v3656_v16, %v3658_v33  ;;  %v4002_v2 = vsel %vm848_vm2, %v4000_v25, %v4001_v4  ;;  %v4004_v25 = vsel %vm848_vm2, %v4001_v4, %v4003_v61  ;;  %v3664_v33 = vsel %vm490_vm1, %v14562_v49, %v3663_v46 }
 0x44a   :  { %v4006_v61 = vrot.slane %v10781_v44, 2 }
 0x44b   :  { %3796 = vrot.lane.b32.xlu1 %v3654_v3, %s6834_s26  ;;  %3792 = vrot.lane.b32.xlu0 %v3649_v13, %s6834_s26  ;;  %v11140_v13 = vsel %vm168_vm0, 0.0, %v10750_v22  ;;  %v11157_v22 = vsel %vm168_vm0, %v10825_v15, 0.0 }
 0x44c   :  { %14974 = vst [vmem:[#allocation9_spill] sm:$0xff] %v11140_v13  ;;  %v3650_v26 = vrot.slane %v11140_v13, 1  ;;  %v4005_v46 = vrot.slane %v11140_v13, 2  ;;  %v3673_v24 = vrot.slane %v11157_v22, 1 }
 0x44d   :  { %v11124_v14 = vpop.permute.xlu1 %4091  ;;  %v11126_v1 = vpop.permute.xlu0 %4089 }
 0x44f   :  { %3800 = vrot.lane.b32.xlu1 %v3659_v36, %s6834_s26  ;;  %4145 = vrot.lane.b32.xlu0 %v4002_v2, %s6837_s4  ;;  %v14566_v2 = vrot.slane %v10832_v56, 1  ;;  %v3668_v36 = vrot.slane %v11136_v62, 1 }
 0x451   :  { %v11142_v29 = vpop.permute.xlu1 %3740  ;;  %v11144_v3 = vpop.permute.xlu0 %3738  ;;  %v3669_v49 = vsel %vm490_vm1, %v14566_v2, %v3668_v36  ;;  %v4007_v36 = vsel %vm848_vm2, %v4005_v46, %v4006_v61 }
 0x453   :  { %3804 = vrot.lane.b32.xlu1 %v3664_v33, %s6834_s26  ;;  %4147 = vrot.lane.b32.xlu0 %v4004_v25, %s6837_s4  ;;  %v3652_v33 = vsel %vm490_vm1, %v3650_v26, %v3651_v57  ;;  %v14567_v25 = vrot.slane %v10839_v7, 1  ;;  %v4008_v57 = vrot.slane %v11092_v12, 2  ;;  %v14976_v26 = vld [vmem:[#allocation2_spill] sm:$0xff] }
 0x455   :  { %v11159_v38 = vpop.permute.xlu1 %4095  ;;  %v11161_v4 = vpop.permute.xlu0 %4093  ;;  %v3674_v13 = vsel %vm490_vm1, %v14567_v25, %v3673_v24  ;;  %v3164_v25 = vld [vmem:[%s14415_s5] sm:$0xff] }
 0x457   :  { %3808 = vrot.lane.b32.xlu1 %v3669_v49, %s6834_s26  ;;  %3794 = vrot.lane.b32.xlu0 %v3652_v33, %s6834_s26  ;;  %v11186_v49 = vsel %vm168_vm0, 0.0, %v10759_v21  ;;  %v4271_v33 = vsel %vm1272_vm4, %v14976_v26, %v11013_v28  ;;  %v14977_v21 = vld [vmem:[#allocation34_spill] sm:$0xff] }
 0x458   :  { %14975 = vst [vmem:[#allocation58_spill] sm:$0xff] %v11186_v49  ;;  %v11197_v12 = vsel %vm4335_vm9, %v4271_v33, %v11052_v0  ;;  %v3655_v46 = vrot.slane %v11186_v49, 1  ;;  %v4273_v28 = vsel %vm1272_vm4, %v14977_v21, %v11040_v11  ;;  %v4011_v33 = vrot.slane %v10795_v5, 2 }
 0x459   :  { %v11173_v15 = vpop.permute.xlu1 %3744  ;;  %v11175_v19 = vpop.permute.xlu0 %3742  ;;  %v11213_v0 = vsel %vm4335_vm9, %v4273_v28, %v11065_v6  ;;  %v4013_v6 = vrot.slane %v11106_v41, 2 }
 0x45b   :  { %3812 = vrot.lane.b32.xlu1 %v3674_v13, %s6834_s26  ;;  %4149 = vrot.lane.b32.xlu0 %v4007_v36, %s6837_s4  ;;  %v4009_v13 = vsel %vm848_vm2, %v4006_v61, %v4008_v57  ;;  %v3657_v61 = vsel %vm490_vm1, %v3655_v46, %v3656_v16  ;;  %v4010_v57 = vrot.slane %v11186_v49, 2  ;;  %v11232_v16 = vsel %vm168_vm0, 0.0, %v10788_v58 }
 0x45c   :  { %14978 = vst [vmem:[#allocation2_spill] sm:$0xff] %v11232_v16  ;;  %v4275_v46 = vsel %vm1272_vm4, %v10493_v52, %v11063_v42  ;;  %v4276_v52 = vsel %vm1272_vm4, %v10490_v18, %v11078_v20  ;;  %v14982_v49 = vrot.slane %v10832_v56, 1 }
 0x45d   :  { %v11191_v2 = vpop.permute.xlu1 %4099  ;;  %v11193_v24 = vpop.permute.xlu0 %4097  ;;  %v4012_v21 = vsel %vm848_vm2, %v4010_v57, %v4011_v33  ;;  %v11243_v41 = vsel %vm4335_vm9, %v4275_v46, %v11096_v32  ;;  %v4014_v57 = vsel %vm848_vm2, %v4011_v33, %v4013_v6  ;;  %v11259_v32 = vsel %vm4335_vm9, %v4276_v52, %v11094_v30 }
 0x45e   :  { %14979 = vst [vmem:[#allocation34_spill] sm:$0xff] %v11259_v32  ;;  %v14980_v33 = vrot.slane %v10821_v10, 1  ;;  %v4015_v46 = vrot.slane %v11232_v16, 2  ;;  %v4018_v52 = vrot.slane %v11122_v39, 2  ;;  %v3165_v39 = vld [vmem:[%s14415_s5 + $0x8] sm:$0xff] }
 0x45f   :  { %4151 = vrot.lane.b32.xlu0 %v4009_v13, %s6837_s4  ;;  %4465 = vrot.lane.b32.xlu1 %v11197_v12, %s6836_s15 }
 0x461   :  { %v11207_v36 = vpop.permute.xlu1 %3748  ;;  %v11209_v26 = vpop.permute.xlu0 %3746 }
 0x463   :  { %3798 = vrot.lane.b32.xlu0 %v3657_v61, %s6834_s26  ;;  %4658 = vrot.lane.b32.xlu1 %v11213_v0, %s6838_s20 }
 0x465   :  { %v11221_v11 = vpop.permute.xlu1 %4103  ;;  %v11223_v13 = vpop.permute.xlu0 %4101 }
 0x467   :  { %4153 = vrot.lane.b32.xlu0 %v4012_v21, %s6837_s4  ;;  %4469 = vrot.lane.b32.xlu1 %v11213_v0, %s6836_s15  ;;  %v3660_v21 = vrot.slane %v11232_v16, 1  ;;  %v6795_v16 = vpack.c.bf16 %v3165_v39, %v3164_v25 }
 0x469   :  { %v11237_v28 = vpop.permute.xlu1 %3752  ;;  %v11239_v61 = vpop.permute.xlu0 %3750  ;;  %v3662_v6 = vsel %vm490_vm1, %v3660_v21, %v14980_v33  ;;  %v11280_v21 = vsel %vm168_vm0, 0.0, %v10798_v54  ;;  %6796 = vmatprep.subr.bf16.mxu0 %v6795_v16  ;;  %v3166_v54 = vld [vmem:[%s14415_s5 + $0x10] sm:$0xff]  ;;  %6811 = vmatprep.subr.bf16.mxu1 %v6795_v16 }
 0x46a   :  { %14981 = vst [vmem:[#allocation59_spill] sm:$0xff] %v11280_v21  ;;  %6798 = vmatpush3.bf16.msra.mxu0 %v6795_v16  ;;  %6816 = vmatpush3.bf16.msra.mxu1 %v6795_v16  ;;  %v4020_v44 = vrot.slane %v11280_v21, 2 }
 0x46b   :  { %4155 = vrot.lane.b32.xlu0 %v4014_v57, %s6837_s4  ;;  %4662 = vrot.lane.b32.xlu1 %v11243_v41, %s6838_s20  ;;  %v4016_v57 = vrot.slane %v10821_v10, 2  ;;  %v3167_v10 = vld [vmem:[%s14415_s5 + $0x18] sm:$0xff] }
 0x46c   :  { %v6799_v39 = vpack.c.bf16 %v3167_v10, %v3166_v54  ;;  %v3169_v10 = vld [vmem:[%s14415_s5 + $0x28] sm:$0xff]  ;;  %v4023_v54 = vrot.slane %v11136_v62, 2 }
 0x46d   :  { %v11253_v58 = vpop.permute.xlu1 %4107  ;;  %v11255_v42 = vpop.permute.xlu0 %4105  ;;  %v4017_v30 = vsel %vm848_vm2, %v4015_v46, %v4016_v57  ;;  %v4019_v46 = vsel %vm848_vm2, %v4016_v57, %v4018_v52  ;;  %v4278_v57 = vsel %vm1272_vm4, %v10513_v48, %v11108_v34  ;;  %v3168_v48 = vld [vmem:[%s14415_s5 + $0x20] sm:$0xff] }
 0x46e   :  { %6800 = vmatprep.subr.bf16.mxu0 %v6799_v39  ;;  %6812 = vmatprep.subr.bf16.mxu1 %v6799_v39 }
 0x46f   :  { %3802 = vrot.lane.b32.xlu0 %v3662_v6, %s6834_s26  ;;  %4664 = vrot.lane.b32.xlu1 %v11259_v32, %s6838_s20 }
 0x470   :  { %6802 = vmatpush3.bf16.msra.mxu0 %v6799_v39  ;;  %6817 = vmatpush3.bf16.msra.mxu1 %v6799_v39 }
 0x471   :  { %v11269_v18 = vpop.permute.xlu1 %3756  ;;  %v11271_v20 = vpop.permute.xlu0 %3754 }
 0x473   :  { %4157 = vrot.lane.b32.xlu0 %v4017_v30, %s6837_s4  ;;  %4473 = vrot.lane.b32.xlu1 %v11243_v41, %s6836_s15  ;;  %v3665_v30 = vrot.slane %v11280_v21, 1 }
 0x475   :  { %v11282_v33 = vpop.permute.xlu1 %4111  ;;  %v11284_v6 = vpop.permute.xlu0 %4109  ;;  %v3667_v5 = vsel %vm490_vm1, %v3665_v30, %v14982_v49  ;;  %v6803_v49 = vpack.c.bf16 %v3169_v10, %v3168_v48  ;;  %v3172_v48 = vld [vmem:[%s14415_s5 + $0x40] sm:$0xff]  ;;  %v4280_v10 = vsel %vm1272_vm4, %v10521_v43, %v11142_v29  ;;  %v4279_v43 = vsel %vm1272_vm4, %v10550_v9, %v11144_v3  ;;  %v14985_v9 = vld [vmem:[#allocation20_spill] sm:$0xff] }
 0x476   :  { %v4272_v3 = vsel %vm1272_vm4, %v14985_v9, %v11011_v45  ;;  %v4282_v45 = vsel %vm1272_vm4, %v10533_v35, %v11173_v15  ;;  %v14987_v35 = vld [vmem:[#allocation15_spill] sm:$0xff] }
 0x477   :  { %4159 = vrot.lane.b32.xlu0 %v4019_v46, %s6837_s4  ;;  %4475 = vrot.lane.b32.xlu1 %v11259_v32, %s6836_s15  ;;  %v11312_v46 = vsel %vm4335_vm9, %v4278_v57, %v11124_v14  ;;  %v4021_v32 = vrot.slane %v10832_v56, 2  ;;  %v4277_v14 = vsel %vm1272_vm4, %v10528_v40, %v11110_v31  ;;  %v11346_v40 = vsel %vm168_vm0, 0.0, %v10800_v17  ;;  %v3170_v31 = vld [vmem:[%s14415_s5 + $0x30] sm:$0xff] }
 0x478   :  { %v11337_v16 = vsel %vm4335_vm9, %v4277_v14, %v11126_v1  ;;  %14983 = vst [vmem:[#allocation60_spill] sm:$0xff] %v11346_v40  ;;  %6804 = vmatprep.subr.bf16.mxu0 %v6803_v49  ;;  %6813 = vmatprep.subr.bf16.mxu1 %v6803_v49  ;;  %v3670_v39 = vrot.slane %v11346_v40, 1 }
 0x479   :  { %v11306_v25 = vpop.permute.xlu1 %3760  ;;  %v11308_v52 = vpop.permute.xlu0 %3758  ;;  %v4022_v30 = vsel %vm848_vm2, %v4020_v44, %v4021_v32  ;;  %v3171_v44 = vld [vmem:[%s14415_s5 + $0x38] sm:$0xff]  ;;  %6806 = vmatpush3.bf16.msra.mxu0 %v6803_v49  ;;  %6818 = vmatpush3.bf16.msra.mxu1 %v6803_v49  ;;  %v4024_v17 = vsel %vm848_vm2, %v4021_v32, %v4023_v54  ;;  %v11375_v49 = vsel %vm4335_vm9, %v4280_v10, %v11159_v38  ;;  %v14986_v10 = vld [vmem:[#allocation31_spill] sm:$0xff] }
 0x47a   :  { %v6807_v57 = vpack.c.bf16 %v3171_v44, %v3170_v31  ;;  %v4025_v31 = vrot.slane %v11346_v40, 2  ;;  %v14574_v44 = vrot.slane %v10839_v7, 2 }
 0x47b   :  { %3806 = vrot.lane.b32.xlu0 %v3667_v5, %s6834_s26  ;;  %4668 = vrot.lane.b32.xlu1 %v11312_v46, %s6838_s20 }
 0x47c   :  { %6808 = vmatprep.subr.bf16.mxu0 %v6807_v57  ;;  %6814 = vmatprep.subr.bf16.mxu1 %v6807_v57 }
 0x47d   :  { %v11331_v34 = vpop.permute.xlu1 %4115  ;;  %v11333_v5 = vpop.permute.xlu0 %4113  ;;  %6810 = vmatpush3.bf16.msra.mxu0 %v6807_v57  ;;  %6819 = vmatpush3.bf16.msra.mxu1 %v6807_v57  ;;  %v11394_v57 = vsel %vm4335_vm9, %v4279_v43, %v11161_v4  ;;  %v11411_v4 = vsel %vm4335_vm9, %v4272_v3, %v11050_v23  ;;  %v11433_v43 = vsel %vm4335_vm9, %v4282_v45, %v11191_v2  ;;  %v14990_v45 = vld [vmem:[#allocation21_spill] sm:$0xff] }
 0x47e   :  { %6689 = vmatprep.subr.mxu0 %v3172_v48  ;;  %6815 = vmatprep.subr.mxu1 %v3172_v48 }
 0x47f   :  { %4161 = vrot.lane.b32.xlu0 %v4022_v30, %s6837_s4  ;;  %4477 = vrot.lane.b32.xlu1 %v11337_v16, %s6836_s15  ;;  %v14984_v30 = vrot.slane %v10839_v7, 1 }
 0x481   :  { %v11354_v1 = vpop.permute.xlu1 %3764  ;;  %v11356_v62 = vpop.permute.xlu0 %3762  ;;  %v3672_v54 = vsel %vm490_vm1, %v3670_v39, %v14984_v30  ;;  %6690 = vmatpush3.msra.mxu0 %v3172_v48  ;;  %6820 = vmatpush3.msra.mxu1 %v3172_v48  ;;  %v4274_v30 = vsel %vm1272_vm4, %v14986_v10, %v11038_v51  ;;  %v4281_v51 = vsel %vm1272_vm4, %v14987_v35, %v11175_v19  ;;  %v14988_v19 = vld [vmem:[#allocation10_spill] sm:$0xff] }
 0x482   :  { %v11429_v23 = vsel %vm4335_vm9, %v4274_v30, %v11080_v47  ;;  %v11448_v47 = vsel %vm4335_vm9, %v4281_v51, %v11193_v24  ;;  %v4284_v24 = vsel %vm1272_vm4, %v14988_v19, %v11207_v36  ;;  %v4283_v35 = vsel %vm1272_vm4, %v14990_v45, %v11209_v26  ;;  %v14991_v26 = vld [vmem:[#allocation37_spill] sm:$0xff] }
 0x483   :  { %4163 = vrot.lane.b32.xlu0 %v4024_v17, %s6837_s4  ;;  %4479 = vrot.lane.b32.xlu1 %v11312_v46, %s6836_s15  ;;  %v4027_v17 = vsel %vm848_vm2, %v4025_v31, %v14574_v44  ;;  %v11471_v30 = vsel %vm4335_vm9, %v4284_v24, %v11221_v11  ;;  %v11486_v19 = vsel %vm4335_vm9, %v4283_v35, %v11223_v13  ;;  %v14992_v45 = vld [vmem:[#allocation41_spill] sm:$0xff] }
 0x484   :  { %14989 = vst [vmem:[#allocation20_spill] sm:$0xff] %v11471_v30  ;;  %v4286_v13 = vsel %vm1272_vm4, %v14991_v26, %v11237_v28  ;;  %v4285_v35 = vsel %vm1272_vm4, %v14992_v45, %v11239_v61  ;;  %v11525_v28 = vsel %vm168_vm0, 0.0, %v10859_v50  ;;  %v14997_v26 = vrot.slane %v10839_v7, 2 }
 0x485   :  { %v11369_v14 = vpop.permute.xlu1 %4119  ;;  %v11371_v32 = vpop.permute.xlu0 %4117  ;;  %v11512_v21 = vsel %vm4335_vm9, %v4286_v13, %v11253_v58  ;;  %v11516_v56 = vsel %vm4335_vm9, %v4285_v35, %v11255_v42  ;;  %14995 = vst [vmem:[#allocation10_spill] sm:$0xff] %v11525_v28  ;;  %v3676_v13 = vrot.slane %v10880_v53, 1  ;;  %v3487_v50 = vsel %vm168_vm0, %v10861_v59, 0.0 }
 0x486   :  { %14993 = vst [vmem:[#allocation31_spill] sm:$0xff] %v11512_v21  ;;  %14994 = vst [vmem:[#allocation15_spill] sm:$0xff] %v11516_v56 }
 0x487   :  { %3810 = vrot.lane.b32.xlu0 %v3672_v54, %s6834_s26  ;;  %4672 = vrot.lane.b32.xlu1 %v11375_v49, %s6838_s20 }
 0x489   :  { %v11388_v38 = vpop.permute.xlu1 %3768  ;;  %v11390_v29 = vpop.permute.xlu0 %3766 }
 0x48b   :  { %4165 = vrot.lane.b32.xlu0 %v4027_v17, %s6837_s4  ;;  %4481 = vrot.lane.b32.xlu1 %v11394_v57, %s6836_s15 }
 0x48d   :  { %v11405_v39 = vpop.permute.xlu1 %4123  ;;  %v11407_v48 = vpop.permute.xlu0 %4121 }
 0x48f   :  { %4467 = vrot.lane.b32.xlu0 %v11411_v4, %s6836_s15  ;;  %4483 = vrot.lane.b32.xlu1 %v11375_v49, %s6836_s15 }
 0x491   :  { %v11423_v54 = vpop.permute.xlu1 %3772  ;;  %v11425_v31 = vpop.permute.xlu0 %3770 }
 0x493   :  { %4660 = vrot.lane.b32.xlu0 %v11429_v23, %s6838_s20  ;;  %4676 = vrot.lane.b32.xlu1 %v11433_v43, %s6838_s20 }
 0x495   :  { %v11442_v15 = vpop.permute.xlu1 %4127  ;;  %v11444_v17 = vpop.permute.xlu0 %4125 }
 0x497   :  { %4471 = vrot.lane.b32.xlu0 %v11429_v23, %s6836_s15  ;;  %4485 = vrot.lane.b32.xlu1 %v11448_v47, %s6836_s15 }
 0x499   :  { %v11454_v2 = vpop.permute.xlu1 %3776  ;;  %v11456_v9 = vpop.permute.xlu0 %3774 }
 0x49b   :  { %4666 = vrot.lane.b32.xlu0 %v11337_v16, %s6838_s20  ;;  %4487 = vrot.lane.b32.xlu1 %v11433_v43, %s6836_s15 }
 0x49d   :  { %v11465_v3 = vpop.permute.xlu1 %4131  ;;  %v11467_v10 = vpop.permute.xlu0 %4129 }
 0x49f   :  { %4670 = vrot.lane.b32.xlu0 %v11394_v57, %s6838_s20  ;;  %4680 = vrot.lane.b32.xlu1 %v11471_v30, %s6838_s20 }
 0x4a1   :  { %v11480_v51 = vpop.permute.xlu1 %3780  ;;  %v11482_v36 = vpop.permute.xlu0 %3778 }
 0x4a3   :  { %4674 = vrot.lane.b32.xlu0 %v11448_v47, %s6838_s20  ;;  %4489 = vrot.lane.b32.xlu1 %v11486_v19, %s6836_s15 }
 0x4a5   :  { %v11492_v11 = vpop.permute.xlu1 %4135  ;;  %v11494_v24 = vpop.permute.xlu0 %4133 }
 0x4a7   :  { %4491 = vrot.lane.b32.xlu1 %v11471_v30, %s6836_s15  ;;  %4678 = vrot.lane.b32.xlu0 %v11486_v19, %s6838_s20  ;;  %v4028_v30 = vrot.slane %v11157_v22, 2  ;;  %v3675_v22 = vrot.slane %v11525_v28, 1 }
 0x4a9   :  { %v11506_v44 = vpop.permute.xlu1 %3784  ;;  %v11508_v40 = vpop.permute.xlu0 %3782  ;;  %v4029_v42 = vsel %vm848_vm2, %v14997_v26, %v4028_v30  ;;  %v3677_v7 = vsel %vm490_vm1, %v3675_v22, %v3676_v13  ;;  %v14999_v30 = vld [vmem:[#allocation40_spill] sm:$0xff] }
 0x4aa   :  { %v4287_v26 = vsel %vm1272_vm4, %v14999_v30, %v11271_v20 }
 0x4ab   :  { %4684 = vrot.lane.b32.xlu1 %v11512_v21, %s6838_s20  ;;  %4682 = vrot.lane.b32.xlu0 %v11516_v56, %s6838_s20  ;;  %v11558_v59 = vsel %vm4335_vm9, %v4287_v26, %v11284_v6  ;;  %v11583_v26 = vsel %vm168_vm0, 0.0, %v10869_v8 }
 0x4ac   :  { %15001 = vst [vmem:[#allocation40_spill] sm:$0xff] %v11558_v59  ;;  %15004 = vst [vmem:[#allocation61_spill] sm:$0xff] %v11583_v26 }
 0x4ad   :  { %v11527_v61 = vpop.permute.xlu1 %4139  ;;  %v11529_v58 = vpop.permute.xlu0 %4137 }
 0x4ae   :  { %14996 = vst [vmem:[#allocation21_spill] sm:$0xff] %v11527_v61  ;;  %v3678_v61 = vrot.slane %v3487_v50, 1 }
 0x4af   :  { %4493 = vrot.lane.b32.xlu1 %v11516_v56, %s6836_s15  ;;  %4167 = vrot.lane.b32.xlu0 %v4029_v42, %s6837_s4 }
 0x4b0   :  { %v3679_v22 = vsel %vm490_vm1, %v3676_v13, %v3678_v61  ;;  %v4033_v13 = vrot.slane %v3487_v50, 2  ;;  %v15007_v50 = vld [vmem:[#allocation24_spill] sm:$0xff] }
 0x4b1   :  { %v11541_v45 = vpop.permute.xlu1 %3788  ;;  %v11543_v35 = vpop.permute.xlu0 %4075 }
 0x4b2   :  { %14998 = vst [vmem:[#allocation37_spill] sm:$0xff] %v11541_v45  ;;  %v4030_v45 = vrot.slane %v11525_v28, 2 }
 0x4b3   :  { %4495 = vrot.lane.b32.xlu1 %v11512_v21, %s6836_s15  ;;  %3814 = vrot.lane.b32.xlu0 %v3677_v7, %s6834_s26  ;;  %v4031_v21 = vrot.slane %v10880_v53, 2  ;;  %v15002_v7 = vld [vmem:[#allocation14_spill] sm:$0xff] }
 0x4b4   :  { %v4288_v20 = vsel %vm1272_vm4, %v15002_v7, %v11269_v18 }
 0x4b5   :  { %v11552_v42 = vpop.permute.xlu1 %4141  ;;  %v11554_v56 = vpop.permute.xlu0 %3786  ;;  %v11575_v6 = vsel %vm4335_vm9, %v4288_v20, %v11282_v33  ;;  %v4032_v61 = vsel %vm848_vm2, %v4030_v45, %v4031_v21  ;;  %v4034_v7 = vsel %vm848_vm2, %v4031_v21, %v4033_v13  ;;  %v3680_v33 = vrot.slane %v11583_v26, 1  ;;  %v15006_v20 = vld [vmem:[#allocation46_spill] sm:$0xff] }
 0x4b6   :  { %15000 = vst [vmem:[#allocation41_spill] sm:$0xff] %v11552_v42  ;;  %15003 = vst [vmem:[#allocation14_spill] sm:$0xff] %v11575_v6  ;;  %v3681_v45 = vrot.slane %v15006_v20, 1  ;;  %v15009_v21 = vld [vmem:[#allocation6_spill] sm:$0xff] }
 0x4b7   :  { %3816 = vrot.lane.b32.xlu1 %v3679_v22, %s6834_s26  ;;  %4686 = vrot.lane.b32.xlu0 %v11558_v59, %s6838_s20  ;;  %v4289_v13 = vsel %vm1272_vm4, %v15009_v21, %v11308_v52 }
 0x4b8   :  { %v3682_v53 = vsel %vm490_vm1, %v3680_v33, %v3681_v45 }
 0x4b9   :  { %v11569_v30 = vpop.permute.xlu1 %4143  ;;  %v11571_v42 = vpop.permute.xlu0 %3790 }
 0x4bb   :  { %4688 = vrot.lane.b32.xlu1 %v11575_v6, %s6838_s20  ;;  %4169 = vrot.lane.b32.xlu0 %v4032_v61, %s6837_s4  ;;  %v3488_v61 = vsel %vm168_vm0, %v15007_v50, 0.0  ;;  %v11614_v50 = vsel %vm4335_vm9, %v4289_v13, %v11333_v5  ;;  %v15015_v13 = vld [vmem:[#allocation8_spill] sm:$0xff] }
 0x4bc   :  { %15011 = vst [vmem:[#allocation63_spill] sm:$0xff] %v11614_v50 }
 0x4bd   :  { %v11585_v18 = vpop.permute.xlu1 %3796  ;;  %v11587_v22 = vpop.permute.xlu0 %3792 }
 0x4be   :  { %15005 = vst [vmem:[#allocation62_spill] sm:$0xff] %v11585_v18  ;;  %v3683_v18 = vrot.slane %v3488_v61, 1 }
 0x4bf   :  { %4497 = vrot.lane.b32.xlu1 %v11558_v59, %s6836_s15  ;;  %4171 = vrot.lane.b32.xlu0 %v4034_v7, %s6837_s4 }
 0x4c0   :  { %v3684_v33 = vsel %vm490_vm1, %v3681_v45, %v3683_v18  ;;  %v4038_v45 = vrot.slane %v3488_v61, 2  ;;  %v15020_v61 = vld [vmem:[#allocation7_spill] sm:$0xff] }
 0x4c1   :  { %v11597_v8 = vpop.permute.xlu1 %3800  ;;  %v11599_v28 = vpop.permute.xlu0 %4145 }
 0x4c2   :  { %15008 = vst [vmem:[#allocation24_spill] sm:$0xff] %v11597_v8  ;;  %v4035_v8 = vrot.slane %v11583_v26, 2 }
 0x4c3   :  { %4499 = vrot.lane.b32.xlu1 %v11575_v6, %s6836_s15  ;;  %3818 = vrot.lane.b32.xlu0 %v3682_v53, %s6834_s26  ;;  %v4036_v6 = vrot.slane %v15006_v20, 2  ;;  %v15012_v53 = vld [vmem:[#allocation17_spill] sm:$0xff] }
 0x4c4   :  { %v4290_v52 = vsel %vm1272_vm4, %v15012_v53, %v11306_v25 }
 0x4c5   :  { %v11608_v7 = vpop.permute.xlu1 %3804  ;;  %v11610_v59 = vpop.permute.xlu0 %4147  ;;  %v11631_v5 = vsel %vm4335_vm9, %v4290_v52, %v11331_v34  ;;  %v4037_v18 = vsel %vm848_vm2, %v4035_v8, %v4036_v6  ;;  %v4039_v26 = vsel %vm848_vm2, %v4036_v6, %v4038_v45  ;;  %v15019_v52 = vld [vmem:[#allocation38_spill] sm:$0xff]  ;;  %v4270_v6 = vsel %vm1272_vm4, 0.0, %v10983_v60  ;;  %v15021_v45 = vld [vmem:[#allocation33_spill] sm:$0xff] }
 0x4c6   :  { %15010 = vst [vmem:[#allocation6_spill] sm:$0xff] %v11608_v7  ;;  %15014 = vst [vmem:[#allocation64_spill] sm:$0xff] %v11631_v5  ;;  %v3686_v8 = vrot.slane %v15019_v52, 1 }
 0x4c7   :  { %3820 = vrot.lane.b32.xlu1 %v3684_v33, %s6834_s26  ;;  %4690 = vrot.lane.b32.xlu0 %v11614_v50, %s6838_s20  ;;  %v11639_v33 = vsel %vm168_vm0, 0.0, %v15015_v13 }
 0x4c8   :  { %15016 = vst [vmem:[#allocation8_spill] sm:$0xff] %v11639_v33  ;;  %v3685_v34 = vrot.slane %v11639_v33, 1  ;;  %v4040_v60 = vrot.slane %v11639_v33, 2 }
 0x4c9   :  { %v11625_v21 = vpop.permute.xlu1 %3808  ;;  %v11627_v7 = vpop.permute.xlu0 %3794 }
 0x4ca   :  { %15013 = vst [vmem:[#allocation17_spill] sm:$0xff] %v11625_v21 }
 0x4cb   :  { %4692 = vrot.lane.b32.xlu1 %v11631_v5, %s6838_s20  ;;  %4173 = vrot.lane.b32.xlu0 %v4037_v18, %s6837_s4  ;;  %v3489_v18 = vsel %vm168_vm0, %v15020_v61, 0.0  ;;  %v4291_v61 = vsel %vm1272_vm4, %v15021_v45, %v11356_v62  ;;  %v15023_v62 = vld [vmem:[#allocation18_spill] sm:$0xff] }
 0x4cc   :  { %v3688_v21 = vrot.slane %v3489_v18, 1 }
 0x4cd   :  { %v11641_v25 = vpop.permute.xlu1 %3812  ;;  %v11643_v53 = vpop.permute.xlu0 %4149 }
 0x4ce   :  { %15017 = vst [vmem:[#allocation65_spill] sm:$0xff] %v11641_v25  ;;  %15018 = vst [vmem:[#allocation66_spill] sm:$0xff] %v11643_v53  ;;  %v3687_v25 = vsel %vm490_vm1, %v3685_v34, %v3686_v8 }
 0x4cf   :  { %4501 = vrot.lane.b32.xlu1 %v11614_v50, %s6836_s15  ;;  %4175 = vrot.lane.b32.xlu0 %v4039_v26, %s6837_s4  ;;  %v11663_v26 = vsel %vm4335_vm9, %v4270_v6, %v11543_v35  ;;  %v3689_v6 = vsel %vm490_vm1, %v3686_v8, %v3688_v21  ;;  %v4043_v8 = vrot.slane %v3489_v18, 2 }
 0x4d1   :  { %v4466_v13 = vpop.permute.xlu1 %4465  ;;  %v11653_v20 = vpop.permute.xlu0 %4151 }
 0x4d2   :  { %v4841_v34 = vsel %vm1843_vm7, %v11663_v26, %v4466_v13  ;;  %v4292_v13 = vsel %vm1272_vm4, %v15023_v62, %v11354_v1 }
 0x4d3   :  { %4503 = vrot.lane.b32.xlu1 %v11631_v5, %s6836_s15  ;;  %3822 = vrot.lane.b32.xlu0 %v3687_v25, %s6834_s26  ;;  %v11675_v25 = vsel %vm4335_vm9, %v4291_v61, %v11371_v32  ;;  %v4041_v5 = vrot.slane %v15019_v52, 2  ;;  %v11699_v61 = vsel %vm168_vm0, 0.0, %v10905_v63  ;;  %v3691_v63 = vrot.slane %v10930_v55, 1 }
 0x4d4   :  { %15022 = vst [vmem:[#allocation7_spill] sm:$0xff] %v11675_v25  ;;  %15025 = vst [vmem:[#allocation18_spill] sm:$0xff] %v11699_v61  ;;  %v3690_v18 = vrot.slane %v11699_v61, 1 }
 0x4d5   :  { %v4659_v50 = vpop.permute.xlu1 %4658  ;;  %v11670_v53 = vpop.permute.xlu0 %3798  ;;  %v4042_v21 = vsel %vm848_vm2, %v4040_v60, %v4041_v5  ;;  %v4044_v60 = vsel %vm848_vm2, %v4041_v5, %v4043_v8 }
 0x4d6   :  { %v4906_v35 = vsel %vm4905_vm10, %v4841_v34, %v4659_v50  ;;  %v11691_v50 = vsel %vm4335_vm9, %v4292_v13, %v11369_v14 }
 0x4d7   :  { %3824 = vrot.lane.b32.xlu1 %v3689_v6, %s6834_s26  ;;  %4694 = vrot.lane.b32.xlu0 %v11675_v25, %s6838_s20  ;;  %15024 = vst [vmem:[#allocation33_spill] sm:$0xff] %v11691_v50  ;;  %v15026_v6 = vld [vmem:[#allocation28_spill] sm:$0xff] }
 0x4d8   :  { %6691 = vmatprep.mubr.msk.f32.mxu0 %vm4976_vm11, %v4906_v35  ;;  %v3490_v62 = vsel %vm168_vm0, %v15026_v6, 0.0  ;;  %v4046_v6 = vrot.slane %v10930_v55, 2 }
 0x4d9   :  { %v4470_v45 = vpop.permute.xlu1 %4469  ;;  %v11687_v32 = vpop.permute.xlu0 %4153 }
 0x4da   :  { %v4843_v1 = vsel %vm1843_vm7, %v11197_v12, %v4470_v45  ;;  %v3693_v45 = vrot.slane %v3490_v62, 1 }
 0x4db   :  { %4696 = vrot.lane.b32.xlu1 %v11691_v50, %s6838_s20  ;;  %4177 = vrot.lane.b32.xlu0 %v4042_v21, %s6837_s4  ;;  %v3692_v21 = vsel %vm490_vm1, %v3690_v18, %v3691_v63  ;;  %v4045_v18 = vrot.slane %v11699_v61, 2  ;;  %v15033_v61 = vld [vmem:[#allocation30_spill] sm:$0xff] }
 0x4dd   :  { %v4663_v34 = vpop.permute.xlu1 %4662  ;;  %v11703_v35 = vpop.permute.xlu0 %4155 }
 0x4de   :  { %v4908_v14 = vsel %vm4905_vm10, %v4843_v1, %v4663_v34  ;;  %v15027_v1 = vld [vmem:[#allocation5_spill] sm:$0xff] }
 0x4df   :  { %6694 = vmatprep.mubr.msk.f32.mxu1 %vm4976_vm11, %v4908_v14  ;;  %4505 = vrot.lane.b32.xlu1 %v11675_v25, %s6836_s15  ;;  %v4293_v34 = vsel %vm1272_vm4, %v15027_v1, %v11390_v29  ;;  %v3694_v14 = vsel %vm490_vm1, %v3691_v63, %v3693_v45  ;;  %v4047_v45 = vsel %vm848_vm2, %v4045_v18, %v4046_v6  ;;  %v4048_v1 = vrot.slane %v3490_v62, 2  ;;  %v15034_v62 = vld [vmem:[#allocation22_spill] sm:$0xff] }
 0x4e0   :  { %4179 = vrot.lane.b32.xlu0 %v4044_v60, %s6837_s4  ;;  %v11733_v60 = vsel %vm4335_vm9, %v4293_v34, %v11407_v48  ;;  %v15031_v34 = vld [vmem:[#allocation11_spill] sm:$0xff]  ;;  %v3696_v18 = vrot.slane %v15033_v61, 1 }
 0x4e1   :  { %v11715_v12 = vpop.permute.xlu1 %4664  ;;  %v11717_v13 = vpop.permute.xlu0 %3802  ;;  %15028 = vst [vmem:[#allocation28_spill] sm:$0xff] %v11733_v60 }
 0x4e3   :  { %4507 = vrot.lane.b32.xlu1 %v11691_v50, %s6836_s15 }
 0x4e4   :  { %3826 = vrot.lane.b32.xlu0 %v3692_v21, %s6834_s26  ;;  %v15029_v21 = vld [vmem:[#allocation39_spill] sm:$0xff] }
 0x4e5   :  { %v11723_v5 = vpop.permute.xlu1 %4473  ;;  %v11725_v8 = vpop.permute.xlu0 %4157  ;;  %v4294_v33 = vsel %vm1272_vm4, %v15029_v21, %v11388_v38 }
 0x4e6   :  { %v11749_v48 = vsel %vm4335_vm9, %v4294_v33, %v11405_v39  ;;  %v4049_v39 = vsel %vm848_vm2, %v4046_v6, %v4048_v1 }
 0x4e7   :  { %3828 = vrot.lane.b32.xlu1 %v3694_v14, %s6834_s26  ;;  %15030 = vst [vmem:[#allocation5_spill] sm:$0xff] %v11749_v48  ;;  %v11757_v14 = vsel %vm168_vm0, 0.0, %v15031_v34 }
 0x4e8   :  { %4698 = vrot.lane.b32.xlu0 %v11733_v60, %s6838_s20  ;;  %15032 = vst [vmem:[#allocation39_spill] sm:$0xff] %v11757_v14  ;;  %v3695_v33 = vrot.slane %v11757_v14, 1 }
 0x4e9   :  { %v11743_v29 = vpop.permute.xlu1 %4475  ;;  %v11745_v63 = vpop.permute.xlu0 %4159 }
 0x4eb   :  { %4700 = vrot.lane.b32.xlu1 %v11749_v48, %s6838_s20 }
 0x4ec   :  { %4181 = vrot.lane.b32.xlu0 %v4047_v45, %s6837_s4  ;;  %v3491_v45 = vsel %vm168_vm0, %v15034_v62, 0.0  ;;  %v15036_v62 = vld [vmem:[#allocation45_spill] sm:$0xff] }
 0x4ed   :  { %v11759_v38 = vpop.permute.xlu1 %4668  ;;  %v11761_v21 = vpop.permute.xlu0 %3806  ;;  %v3698_v52 = vrot.slane %v3491_v45, 1 }
 0x4ef   :  { %4509 = vrot.lane.b32.xlu1 %v11733_v60, %s6836_s15  ;;  %v3697_v60 = vsel %vm490_vm1, %v3695_v33, %v3696_v18  ;;  %v3699_v50 = vsel %vm490_vm1, %v3696_v18, %v3698_v52  ;;  %v4050_v33 = vrot.slane %v11757_v14, 2  ;;  %v4053_v18 = vrot.slane %v3491_v45, 2  ;;  %v15042_v45 = vld [vmem:[#allocation26_spill] sm:$0xff] }
 0x4f0   :  { %4183 = vrot.lane.b32.xlu0 %v4049_v39, %s6837_s4  ;;  %v4295_v39 = vsel %vm1272_vm4, %v15036_v62, %v11425_v31  ;;  %v11813_v62 = vsel %vm168_vm0, 0.0, %v10945_v37 }
 0x4f1   :  { %v11771_v34 = vpop.permute.xlu1 %4477  ;;  %v11773_v55 = vpop.permute.xlu0 %4161  ;;  %v11789_v25 = vsel %vm4335_vm9, %v4295_v39, %v11444_v17  ;;  %v3701_v39 = vrot.slane %v10969_v27, 1 }
 0x4f2   :  { %15035 = vst [vmem:[#allocation11_spill] sm:$0xff] %v11773_v55  ;;  %15037 = vst [vmem:[#allocation22_spill] sm:$0xff] %v11789_v25 }
 0x4f3   :  { %4511 = vrot.lane.b32.xlu1 %v11749_v48, %s6836_s15  ;;  %v15038_v48 = vld [vmem:[#allocation42_spill] sm:$0xff] }
 0x4f4   :  { %3830 = vrot.lane.b32.xlu0 %v3697_v60, %s6834_s26  ;;  %v4051_v60 = vrot.slane %v15033_v61, 2  ;;  %v4296_v55 = vsel %vm1272_vm4, %v15038_v48, %v11423_v54 }
 0x4f5   :  { %v11779_v6 = vpop.permute.xlu1 %4479  ;;  %v11781_v1 = vpop.permute.xlu0 %4163  ;;  %v11805_v17 = vsel %vm4335_vm9, %v4296_v55, %v11442_v15  ;;  %v3700_v15 = vrot.slane %v11813_v62, 1 }
 0x4f6   :  { %15040 = vst [vmem:[#allocation42_spill] sm:$0xff] %v11805_v17  ;;  %v4054_v55 = vsel %vm848_vm2, %v4051_v60, %v4053_v18 }
 0x4f7   :  { %3832 = vrot.lane.b32.xlu1 %v3699_v50, %s6834_s26  ;;  %v4052_v50 = vsel %vm848_vm2, %v4050_v33, %v4051_v60  ;;  %v3492_v33 = vsel %vm168_vm0, %v15042_v45, 0.0  ;;  %v3702_v61 = vsel %vm490_vm1, %v3700_v15, %v3701_v39  ;;  %v4056_v15 = vrot.slane %v10969_v27, 2 }
 0x4f8   :  { %4702 = vrot.lane.b32.xlu0 %v11789_v25, %s6838_s20  ;;  %v3703_v14 = vrot.slane %v3492_v33, 1 }
 0x4f9   :  { %v11799_v31 = vpop.permute.xlu1 %4672  ;;  %v11801_v52 = vpop.permute.xlu0 %3810 }
 0x4fa   :  { %15039 = vst [vmem:[#allocation45_spill] sm:$0xff] %v11801_v52  ;;  %v3704_v52 = vsel %vm490_vm1, %v3701_v39, %v3703_v14 }
 0x4fb   :  { %4704 = vrot.lane.b32.xlu1 %v11805_v17, %s6838_s20 }
 0x4fc   :  { %4185 = vrot.lane.b32.xlu0 %v4052_v50, %s6837_s4 }
 0x4fd   :  { %v11815_v54 = vpop.permute.xlu1 %4481  ;;  %v11817_v48 = vpop.permute.xlu0 %4165 }
 0x4fe   :  { %15041 = vst [vmem:[#allocation67_spill] sm:$0xff] %v11817_v48  ;;  %v15043_v48 = vld [vmem:[#allocation25_spill] sm:$0xff] }
 0x4ff   :  { %4513 = vrot.lane.b32.xlu1 %v11789_v25, %s6836_s15  ;;  %v4297_v45 = vsel %vm1272_vm4, %v15043_v48, %v11456_v9  ;;  %v15044_v9 = vld [vmem:[#allocation44_spill] sm:$0xff] }
 0x500   :  { %4187 = vrot.lane.b32.xlu0 %v4054_v55, %s6837_s4 }
 0x501   :  { %v4484_v37 = vpop.permute.xlu1 %4483  ;;  %v4468_v50 = vpop.permute.xlu0 %4467 }
 0x502   :  { %v4842_v60 = vsel %vm1843_vm7, %v11663_v26, %v4468_v50 }
 0x503   :  { %4515 = vrot.lane.b32.xlu1 %v11805_v17, %s6836_s15  ;;  %v11840_v17 = vsel %vm4335_vm9, %v4297_v45, %v11467_v10  ;;  %v15045_v45 = vld [vmem:[#allocation13_spill] sm:$0xff] }
 0x504   :  { %3834 = vrot.lane.b32.xlu0 %v3702_v61, %s6834_s26  ;;  %v4055_v61 = vrot.slane %v11813_v62, 2 }
 0x505   :  { %v4677_v18 = vpop.permute.xlu1 %4676  ;;  %v4661_v25 = vpop.permute.xlu0 %4660 }
 0x506   :  { %v4907_v55 = vsel %vm4905_vm10, %v4842_v60, %v4661_v25  ;;  %v4298_v25 = vsel %vm1272_vm4, %v15044_v9, %v11454_v2  ;;  %v4057_v39 = vsel %vm848_vm2, %v4055_v61, %v4056_v15  ;;  %v4058_v60 = vrot.slane %v3492_v33, 2 }
 0x507   :  { %3836 = vrot.lane.b32.xlu1 %v3704_v52, %s6834_s26  ;;  %6692 = vmatmul.mubr.msk.f32.vlgmr.msra.gmra.mrb[64].mxu0 %vm4976_vm11, %v4907_v55  ;;  %v11853_v10 = vsel %vm4335_vm9, %v4298_v25, %v11465_v3  ;;  %v11864_v2 = vsel %vm168_vm0, 0.0, %v15045_v45  ;;  %v4846_v61 = vsel %vm1843_vm7, %v11429_v23, %v11743_v29  ;;  %v4847_v23 = vsel %vm1843_vm7, %v11243_v41, %v11771_v34 }
 0x508   :  { %4706 = vrot.lane.b32.xlu0 %v11840_v17, %s6838_s20  ;;  %v3705_v33 = vrot.slane %v11864_v2, 1  ;;  %v4911_v9 = vsel %vm4905_vm10, %v4846_v61, %v11759_v38  ;;  %v4059_v25 = vsel %vm848_vm2, %v4056_v15, %v4058_v60  ;;  %v4849_v41 = vsel %vm1843_vm7, %v11337_v16, %v11815_v54 }
 0x509   :  { %v4486_v14 = vpop.permute.xlu1 %4485  ;;  %v4472_v48 = vpop.permute.xlu0 %4471  ;;  %v4850_v61 = vsel %vm1843_vm7, %v11312_v46, %v4484_v37  ;;  %v4060_v16 = vrot.slane %v11864_v2, 2  ;;  %v15050_v46 = vld [vmem:[#allocation43_spill] sm:$0xff] }
 0x50a   :  { %v4844_v52 = vsel %vm1843_vm7, %v11411_v4, %v4472_v48  ;;  %v4845_v4 = vsel %vm1843_vm7, %v11213_v0, %v11723_v5  ;;  %v15046_v0 = vld [vmem:[#allocation50_spill] sm:$0xff]  ;;  %v15047_v48 = vld [vmem:[#allocation48_spill] sm:$0xff]  ;;  %v4851_v54 = vsel %vm1843_vm7, %v11394_v57, %v4486_v14 }
 0x50b   :  { %4708 = vrot.lane.b32.xlu1 %v11853_v10, %s6838_s20  ;;  %v4909_v50 = vsel %vm4905_vm10, %v4844_v52, %v11715_v12  ;;  %v3706_v5 = vrot.slane %v15046_v0, 1  ;;  %v3493_v52 = vsel %vm168_vm0, %v15047_v48, 0.0 }
 0x50c   :  { %4189 = vrot.lane.b32.xlu0 %v4057_v39, %s6837_s4  ;;  %6695 = vmatmul.mubr.msk.f32.vlgmr.msra.gmra.mrb[0].mxu1 %vm4976_vm11, %v4909_v50  ;;  %v15048_v39 = vld [vmem:[#allocation34_spill] sm:$0xff]  ;;  %v3708_v60 = vrot.slane %v3493_v52, 1  ;;  %v4063_v57 = vrot.slane %v3493_v52, 2 }
 0x50d   :  { %v4488_v3 = vpop.permute.xlu1 %4487  ;;  %v4667_v55 = vpop.permute.xlu0 %4666  ;;  %v4848_v15 = vsel %vm1843_vm7, %v15048_v39, %v11779_v6 }
 0x50e   :  { %v4910_v12 = vsel %vm4905_vm10, %v4845_v4, %v4667_v55  ;;  %v4913_v45 = vsel %vm4905_vm10, %v4848_v15, %v11799_v31  ;;  %v3707_v4 = vsel %vm490_vm1, %v3705_v33, %v3706_v5  ;;  %v15049_v55 = vld [vmem:[#allocation49_spill] sm:$0xff]  ;;  %v3709_v33 = vsel %vm490_vm1, %v3706_v5, %v3708_v60 }
 0x50f   :  { %4517 = vrot.lane.b32.xlu1 %v11840_v17, %s6836_s15  ;;  %6697 = vmatprep.mubr.msk.f32.mxu1 %vm4976_vm11, %v4910_v12  ;;  %v4299_v31 = vsel %vm1272_vm4, %v15049_v55, %v11482_v36  ;;  %v4061_v36 = vrot.slane %v15046_v0, 2  ;;  %v4852_v48 = vsel %vm1843_vm7, %v11375_v49, %v4488_v3 }
 0x510   :  { %4191 = vrot.lane.b32.xlu0 %v4059_v25, %s6837_s4  ;;  %6698 = vmatmul.mubr.msk.f32.gmra.mrb[2].mxu1 %vm4976_vm11, %v4911_v9  ;;  %v11914_v9 = vsel %vm4335_vm9, %v4299_v31, %v11494_v24  ;;  %v4915_v25 = vsel %vm4905_vm10, %v4850_v61, %v4677_v18  ;;  %v4300_v24 = vsel %vm1272_vm4, %v15050_v46, %v11480_v51 }
 0x511   :  { %v4681_v29 = vpop.permute.xlu1 %4680  ;;  %v4671_v38 = vpop.permute.xlu0 %4670  ;;  %v11931_v5 = vsel %vm4335_vm9, %v4300_v24, %v11492_v11  ;;  %v4062_v51 = vsel %vm848_vm2, %v4060_v16, %v4061_v36  ;;  %v15051_v11 = vld [vmem:[#allocation35_spill] sm:$0xff]  ;;  %v15055_v24 = vld [vmem:[#allocation16_spill] sm:$0xff] }
 0x512   :  { %v4912_v50 = vsel %vm4905_vm10, %v4847_v23, %v4671_v38  ;;  %v4917_v38 = vsel %vm4905_vm10, %v4852_v48, %v4681_v29  ;;  %v11945_v14 = vsel %vm168_vm0, 0.0, %v15051_v11  ;;  %v15056_v48 = vld [vmem:[#allocation21_spill] sm:$0xff] }
 0x513   :  { %4519 = vrot.lane.b32.xlu1 %v11853_v10, %s6836_s15  ;;  %6700 = vmatprep.mubr.msk.f32.mxu1 %vm4976_vm11, %v4912_v50  ;;  %v4064_v50 = vsel %vm848_vm2, %v4061_v36, %v4063_v57  ;;  %v3710_v60 = vrot.slane %v11945_v14, 1  ;;  %v4065_v36 = vrot.slane %v11945_v14, 2  ;;  %v15058_v57 = vld [vmem:[#allocation20_spill] sm:$0xff] }
 0x514   :  { %3838 = vrot.lane.b32.xlu0 %v3707_v4, %s6834_s26  ;;  %6701 = vmatmul.mubr.msk.f32.gmra.mrb[4].mxu1 %vm4976_vm11, %v4913_v45  ;;  %v15052_v45 = vld [vmem:[#allocation53_spill] sm:$0xff]  ;;  %v15053_v4 = vld [vmem:[#allocation12_spill] sm:$0xff] }
 0x515   :  { %v4490_v34 = vpop.permute.xlu1 %4489  ;;  %v4675_v6 = vpop.permute.xlu0 %4674  ;;  %v4066_v46 = vrot.slane %v15052_v45, 2 }
 0x516   :  { %v4914_v12 = vsel %vm4905_vm10, %v4849_v41, %v4675_v6  ;;  %v4853_v49 = vsel %vm1843_vm7, %v11448_v47, %v4490_v34  ;;  %v3711_v47 = vrot.slane %v15052_v45, 1 }
 0x517   :  { %3840 = vrot.lane.b32.xlu1 %v3709_v33, %s6834_s26  ;;  %6703 = vmatprep.mubr.msk.f32.mxu1 %vm4976_vm11, %v4914_v12  ;;  %v15054_v12 = vld [vmem:[#allocation54_spill] sm:$0xff] }
 0x518   :  { %4710 = vrot.lane.b32.xlu0 %v11914_v9, %s6838_s20  ;;  %6704 = vmatmul.mubr.msk.f32.gmra.mrb[6].mxu1 %vm4976_vm11, %v4915_v25  ;;  %v3712_v55 = vsel %vm490_vm1, %v3710_v60, %v3711_v47  ;;  %v4301_v33 = vsel %vm1272_vm4, %v15054_v12, %v11508_v40  ;;  %v15060_v60 = vld [vmem:[#allocation52_spill] sm:$0xff] }
 0x519   :  { %v4492_v37 = vpop.permute.xlu1 %4491  ;;  %v4679_v18 = vpop.permute.xlu0 %4678  ;;  %v4367_v16 = vsel %vm4335_vm9, %v4301_v33, %v11529_v58 }
 0x51a   :  { %v4916_v23 = vsel %vm4905_vm10, %v4851_v54, %v4679_v18  ;;  %v4854_v3 = vsel %vm1843_vm7, %v11433_v43, %v4492_v37  ;;  %v3494_v43 = vsel %vm168_vm0, %v15053_v4, 0.0  ;;  %v4302_v54 = vsel %vm1272_vm4, %v15055_v24, %v11506_v44  ;;  %v15057_v44 = vld [vmem:[#allocation51_spill] sm:$0xff] }
 0x51b   :  { %4712 = vrot.lane.b32.xlu1 %v11931_v5, %s6838_s20  ;;  %6706 = vmatprep.mubr.msk.f32.mxu1 %vm4976_vm11, %v4916_v23  ;;  %v3713_v6 = vrot.slane %v3494_v43, 1  ;;  %v4368_v58 = vsel %vm4335_vm9, %v4302_v54, %v15056_v48 }
 0x51c   :  { %4193 = vrot.lane.b32.xlu0 %v4062_v51, %s6837_s4  ;;  %6707 = vmatmul.mubr.msk.f32.gmra.mrb[8].mxu1 %vm4976_vm11, %v4917_v38  ;;  %v4067_v38 = vsel %vm848_vm2, %v4065_v36, %v4066_v46  ;;  %v4068_v51 = vrot.slane %v3494_v43, 2  ;;  %v15061_v36 = vld [vmem:[#allocation15_spill] sm:$0xff] }
 0x51d   :  { %v4685_v29 = vpop.permute.xlu1 %4684  ;;  %v4683_v39 = vpop.permute.xlu0 %4682  ;;  %v3714_v25 = vsel %vm490_vm1, %v3711_v47, %v3713_v6  ;;  %v3495_v47 = vsel %vm168_vm0, %v15060_v60, 0.0  ;;  %v15067_v60 = vld [vmem:[#allocation19_spill] sm:$0xff] }
 0x51e   :  { %v4919_v15 = vsel %vm4905_vm10, %v4854_v3, %v4685_v29  ;;  %v4918_v52 = vsel %vm4905_vm10, %v4853_v49, %v4683_v39  ;;  %v4069_v39 = vsel %vm848_vm2, %v4066_v46, %v4068_v51  ;;  %v15064_v51 = vld [vmem:[#allocation4_spill] sm:$0xff] }
 0x51f   :  { %4521 = vrot.lane.b32.xlu1 %v11914_v9, %s6836_s15  ;;  %6709 = vmatprep.mubr.msk.f32.mxu1 %vm4976_vm11, %v4918_v52  ;;  %v15059_v52 = vld [vmem:[#allocation55_spill] sm:$0xff] }
 0x520   :  { %4195 = vrot.lane.b32.xlu0 %v4064_v50, %s6837_s4  ;;  %6710 = vmatmul.mubr.msk.f32.gmra.mrb[10].mxu1 %vm4976_vm11, %v4919_v15  ;;  %v3716_v50 = vrot.slane %v15059_v52, 1  ;;  %v4071_v33 = vrot.slane %v15059_v52, 2 }
 0x521   :  { %v4494_v41 = vpop.permute.xlu1 %4493  ;;  %v11963_v34 = vpop.permute.xlu0 %4167 }
 0x522   :  { %v4855_v40 = vsel %vm1843_vm7, %v11486_v19, %v4494_v41  ;;  %v11997_v19 = vsel %vm168_vm0, 0.0, %v15057_v44  ;;  %v3718_v41 = vrot.slane %v3495_v47, 1 }
 0x523   :  { %4523 = vrot.lane.b32.xlu1 %v11931_v5, %s6836_s15  ;;  %v3715_v15 = vrot.slane %v11997_v19, 1 }
 0x524   :  { %3842 = vrot.lane.b32.xlu0 %v3712_v55, %s6834_s26  ;;  %v3719_v12 = vsel %vm490_vm1, %v3716_v50, %v3718_v41  ;;  %v15068_v41 = vld [vmem:[#allocation57_spill] sm:$0xff] }
 0x525   :  { %v4496_v31 = vpop.permute.xlu1 %4495  ;;  %v11969_v61 = vpop.permute.xlu0 %3814  ;;  %v3717_v6 = vsel %vm490_vm1, %v3715_v15, %v3716_v50 }
 0x526   :  { %v4856_v11 = vsel %vm1843_vm7, %v15058_v57, %v4496_v31  ;;  %v15065_v57 = vld [vmem:[#allocation31_spill] sm:$0xff] }
 0x527   :  { %3844 = vrot.lane.b32.xlu1 %v3714_v25, %s6834_s26  ;;  %v4073_v25 = vrot.slane %v3495_v47, 2  ;;  %v4306_v47 = vsel %vm1272_vm4, %v15067_v60, %v11587_v22 }
 0x528   :  { %4714 = vrot.lane.b32.xlu0 %v4367_v16, %s6838_s20 }
 0x529   :  { %v11986_v37 = vpop.permute.xlu1 %3816  ;;  %v4687_v18 = vpop.permute.xlu0 %4686 }
 0x52a   :  { %v4920_v23 = vsel %vm4905_vm10, %v4855_v40, %v4687_v18  ;;  %v4074_v18 = vsel %vm848_vm2, %v4071_v33, %v4073_v25  ;;  %v15071_v25 = vld [vmem:[#allocation40_spill] sm:$0xff] }
 0x52b   :  { %4716 = vrot.lane.b32.xlu1 %v4368_v58, %s6838_s20  ;;  %6712 = vmatprep.mubr.msk.f32.mxu1 %vm4976_vm11, %v4920_v23 }
 0x52c   :  { %4197 = vrot.lane.b32.xlu0 %v4067_v38, %s6837_s4  ;;  %v15063_v38 = vld [vmem:[#allocation37_spill] sm:$0xff] }
 0x52d   :  { %v4689_v49 = vpop.permute.xlu1 %4688  ;;  %v12001_v3 = vpop.permute.xlu0 %4169  ;;  %v4304_v44 = vsel %vm1272_vm4, %v15064_v51, %v15063_v38  ;;  %v15074_v38 = vld [vmem:[#allocation14_spill] sm:$0xff] }
 0x52e   :  { %v4921_v29 = vsel %vm4905_vm10, %v4856_v11, %v4689_v49 }
 0x52f   :  { %4525 = vrot.lane.b32.xlu1 %v4367_v16, %s6836_s15  ;;  %6713 = vmatmul.mubr.msk.f32.gmra.mrb[12].mxu1 %vm4976_vm11, %v4921_v29  ;;  %v4070_v16 = vrot.slane %v11997_v19, 2 }
 0x530   :  { %4199 = vrot.lane.b32.xlu0 %v4069_v39, %s6837_s4  ;;  %v12047_v39 = vsel %vm4335_vm9, %v4304_v44, %v11569_v30 }
 0x531   :  { %v4498_v4 = vpop.permute.xlu1 %4497  ;;  %v12012_v43 = vpop.permute.xlu0 %4171  ;;  %v4072_v48 = vsel %vm848_vm2, %v4070_v16, %v4071_v33 }
 0x532   :  { %v4857_v46 = vsel %vm1843_vm7, %v15061_v36, %v4498_v4 }
 0x533   :  { %4527 = vrot.lane.b32.xlu1 %v4368_v58, %s6836_s15  ;;  %v15062_v58 = vld [vmem:[#allocation56_spill] sm:$0xff] }
 0x534   :  { %3846 = vrot.lane.b32.xlu0 %v3717_v6, %s6834_s26  ;;  %v4303_v23 = vsel %vm1272_vm4, %v15062_v58, %v11554_v56  ;;  %v15066_v56 = vld [vmem:[#allocation41_spill] sm:$0xff]  ;;  %v4305_v6 = vsel %vm1272_vm4, %v15068_v41, %v11571_v42  ;;  %v15069_v42 = vld [vmem:[#allocation62_spill] sm:$0xff] }
 0x535   :  { %v4500_v55 = vpop.permute.xlu1 %4499  ;;  %v12017_v31 = vpop.permute.xlu0 %3818  ;;  %v12054_v50 = vsel %vm4335_vm9, %v4303_v23, %v15066_v56  ;;  %v15073_v58 = vld [vmem:[#allocation66_spill] sm:$0xff] }
 0x536   :  { %v4858_v11 = vsel %vm1843_vm7, %v15065_v57, %v4500_v55  ;;  %v12069_v55 = vsel %vm4335_vm9, %v4306_v47, %v11610_v59  ;;  %v15070_v59 = vld [vmem:[#allocation32_spill] sm:$0xff]  ;;  %v15077_v56 = vld [vmem:[#allocation58_spill] sm:$0xff] }
 0x537   :  { %3848 = vrot.lane.b32.xlu1 %v3719_v12, %s6834_s26  ;;  %v12073_v12 = vsel %vm4335_vm9, %v4305_v6, %v11599_v28  ;;  %v4308_v28 = vsel %vm1272_vm4, %v15070_v59, %v15069_v42  ;;  %v15075_v57 = vld [vmem:[#allocation24_spill] sm:$0xff]  ;;  %v4309_v60 = vsel %vm1272_vm4, %v15077_v56, %v11670_v53  ;;  %v15078_v53 = vld [vmem:[#allocation6_spill] sm:$0xff] }
 0x538   :  { %4718 = vrot.lane.b32.xlu0 %v11663_v26, %s6838_s20  ;;  %v12133_v41 = vsel %vm4335_vm9, %v4309_v60, %v11687_v32  ;;  %v15080_v59 = vld [vmem:[#allocation2_spill] sm:$0xff]  ;;  %v15086_v60 = vld [vmem:[#allocation11_spill] sm:$0xff] }
 0x539   :  { %v12027_v24 = vpop.permute.xlu1 %3820  ;;  %v4691_v54 = vpop.permute.xlu0 %4690 }
 0x53a   :  { %v4922_v40 = vsel %vm4905_vm10, %v4857_v46, %v4691_v54  ;;  %v15072_v54 = vld [vmem:[#allocation9_spill] sm:$0xff] }
 0x53b   :  { %4203 = vrot.lane.b32.xlu1 %v4074_v18, %s6837_s4  ;;  %6715 = vmatprep.mubr.msk.f32.mxu1 %vm4976_vm11, %v4922_v40  ;;  %v4307_v40 = vsel %vm1272_vm4, %v15072_v54, %v11627_v7  ;;  %v12097_v18 = vsel %vm4335_vm9, %v4308_v28, %v11653_v20  ;;  %v4311_v28 = vsel %vm1272_vm4, %v15080_v59, %v11717_v13  ;;  %v15082_v13 = vld [vmem:[#allocation64_spill] sm:$0xff] }
 0x53c   :  { %4201 = vrot.lane.b32.xlu0 %v4072_v48, %s6837_s4  ;;  %v12102_v23 = vsel %vm4335_vm9, %v4307_v40, %v15073_v58  ;;  %v12161_v40 = vsel %vm4335_vm9, %v4311_v28, %v11725_v8  ;;  %v15083_v8 = vld [vmem:[#allocation17_spill] sm:$0xff] }
 0x53d   :  { %v4693_v49 = vpop.permute.xlu1 %4692  ;;  %v12043_v29 = vpop.permute.xlu0 %4173  ;;  %v15089_v28 = vld [vmem:[#allocation45_spill] sm:$0xff] }
 0x53e   :  { %v4923_v15 = vsel %vm4905_vm10, %v4858_v11, %v4693_v49  ;;  %v15076_v11 = vld [vmem:[#allocation23_spill] sm:$0xff] }
 0x53f   :  { %4531 = vrot.lane.b32.xlu1 %v12047_v39, %s6836_s15  ;;  %6716 = vmatmul.mubr.msk.f32.gmra.mrb[14].mxu1 %vm4976_vm11, %v4923_v15  ;;  %v4310_v49 = vsel %vm1272_vm4, %v15076_v11, %v15075_v57  ;;  %v15085_v11 = vld [vmem:[#allocation59_spill] sm:$0xff] }
 0x540   :  { %4529 = vrot.lane.b32.xlu0 %v12054_v50, %s6836_s15  ;;  %v12127_v47 = vsel %vm4335_vm9, %v4310_v49, %v11703_v35  ;;  %v15079_v35 = vld [vmem:[#allocation29_spill] sm:$0xff]  ;;  %v4313_v49 = vsel %vm1272_vm4, %v15085_v11, %v11761_v21 }
 0x541   :  { %v4502_v30 = vpop.permute.xlu1 %4501  ;;  %v12062_v4 = vpop.permute.xlu0 %4175  ;;  %v4312_v32 = vsel %vm1272_vm4, %v15079_v35, %v15078_v53  ;;  %v15087_v21 = vld [vmem:[#allocation65_spill] sm:$0xff] }
 0x542   :  { %v4859_v16 = vsel %vm1843_vm7, %v15071_v25, %v4502_v30  ;;  %v12155_v25 = vsel %vm4335_vm9, %v4312_v32, %v11745_v63 }
 0x543   :  { %4722 = vrot.lane.b32.xlu1 %v12069_v55, %s6838_s20 }
 0x544   :  { %4720 = vrot.lane.b32.xlu0 %v12073_v12, %s6838_s20 }
 0x545   :  { %v4504_v22 = vpop.permute.xlu1 %4503  ;;  %v12079_v33 = vpop.permute.xlu0 %3822 }
 0x546   :  { %v4860_v7 = vsel %vm1843_vm7, %v15074_v38, %v4504_v22 }
 0x547   :  { %4535 = vrot.lane.b32.xlu1 %v12069_v55, %s6836_s15 }
 0x548   :  { %4533 = vrot.lane.b32.xlu0 %v12073_v12, %s6836_s15 }
 0x549   :  { %v12090_v36 = vpop.permute.xlu1 %3824  ;;  %v4695_v46 = vpop.permute.xlu0 %4694 }
 0x54a   :  { %v4924_v48 = vsel %vm4905_vm10, %v4859_v16, %v4695_v46  ;;  %v15081_v16 = vld [vmem:[#allocation63_spill] sm:$0xff] }
 0x54b   :  { %4726 = vrot.lane.b32.xlu1 %v12097_v18, %s6838_s20  ;;  %6718 = vmatprep.mubr.msk.f32.mxu1 %vm4976_vm11, %v4924_v48 }
 0x54c   :  { %4724 = vrot.lane.b32.xlu0 %v12102_v23, %s6838_s20 }
 0x54d   :  { %v4697_v51 = vpop.permute.xlu1 %4696  ;;  %v12111_v20 = vpop.permute.xlu0 %4177 }
 0x54e   :  { %v4925_v44 = vsel %vm4905_vm10, %v4860_v7, %v4697_v51  ;;  %v15084_v51 = vld [vmem:[#allocation36_spill] sm:$0xff] }
 0x54f   :  { %4539 = vrot.lane.b32.xlu1 %v12097_v18, %s6836_s15  ;;  %6719 = vmatmul.mubr.msk.f32.gmra.mrb[16].mxu1 %vm4976_vm11, %v4925_v44  ;;  %v4314_v44 = vsel %vm1272_vm4, %v15084_v51, %v15083_v8 }
 0x550   :  { %4537 = vrot.lane.b32.xlu0 %v12102_v23, %s6836_s15 }
 0x551   :  { %v4506_v15 = vpop.permute.xlu1 %4505 }
 0x552   :  { %v12129_v30 = vpop.permute.xlu0 %4179  ;;  %v4861_v46 = vsel %vm1843_vm7, %v15081_v16, %v4506_v15  ;;  %v12187_v15 = vsel %vm4335_vm9, %v4314_v44, %v11781_v1  ;;  %v15088_v1 = vld [vmem:[#allocation3_spill] sm:$0xff]  ;;  %v15090_v16 = vld [vmem:[#allocation60_spill] sm:$0xff] }
 0x553   :  { %4730 = vrot.lane.b32.xlu1 %v12127_v47, %s6838_s20  ;;  %v4316_v32 = vsel %vm1272_vm4, %v15088_v1, %v15087_v21 }
 0x554   :  { %4728 = vrot.lane.b32.xlu0 %v12133_v41, %s6838_s20 }
 0x555   :  { %v4508_v6 = vpop.permute.xlu1 %4507 }
 0x556   :  { %v12139_v22 = vpop.permute.xlu0 %3826  ;;  %v4862_v63 = vsel %vm1843_vm7, %v15082_v13, %v4508_v6  ;;  %v12193_v6 = vsel %vm4335_vm9, %v4313_v49, %v15086_v60  ;;  %v15094_v49 = vld [vmem:[#allocation27_spill] sm:$0xff] }
 0x557   :  { %4543 = vrot.lane.b32.xlu1 %v12127_v47, %s6836_s15  ;;  %v4318_v60 = vsel %vm1272_vm4, %v15094_v49, %v11986_v37 }
 0x558   :  { %4541 = vrot.lane.b32.xlu0 %v12133_v41, %s6836_s15 }
 0x559   :  { %v12148_v42 = vpop.permute.xlu1 %3828 }
 0x55a   :  { %v4699_v54 = vpop.permute.xlu0 %4698 }
 0x55b   :  { %v4926_v48 = vsel %vm4905_vm10, %v4861_v46, %v4699_v54  ;;  %4734 = vrot.lane.b32.xlu1 %v12155_v25, %s6838_s20  ;;  %v4315_v46 = vsel %vm1272_vm4, %v15090_v16, %v15089_v28  ;;  %v12215_v54 = vsel %vm4335_vm9, %v4316_v32, %v11963_v34  ;;  %v15093_v34 = vld [vmem:[#allocation33_spill] sm:$0xff]  ;;  %v12247_v32 = vsel %vm4335_vm9, %v4318_v60, %v12012_v43 }
 0x55c   :  { %4732 = vrot.lane.b32.xlu0 %v12161_v40, %s6838_s20  ;;  %6721 = vmatprep.mubr.msk.f32.mxu1 %vm4976_vm11, %v4926_v48  ;;  %v15091_v48 = vld [vmem:[#allocation7_spill] sm:$0xff] }
 0x55d   :  { %v4701_v58 = vpop.permute.xlu1 %4700 }
 0x55e   :  { %v4927_v38 = vsel %vm4905_vm10, %v4862_v63, %v4701_v58  ;;  %v12172_v7 = vpop.permute.xlu0 %4181  ;;  %v15092_v58 = vld [vmem:[#allocation67_spill] sm:$0xff] }
 0x55f   :  { %4547 = vrot.lane.b32.xlu1 %v12155_v25, %s6836_s15  ;;  %6722 = vmatmul.mubr.msk.f32.gmra.mrb[18].mxu1 %vm4976_vm11, %v4927_v38  ;;  %v12221_v38 = vsel %vm4335_vm9, %v4315_v46, %v15092_v58  ;;  %v15098_v58 = vld [vmem:[#allocation28_spill] sm:$0xff] }
 0x560   :  { %4545 = vrot.lane.b32.xlu0 %v12161_v40, %s6836_s15 }
 0x561   :  { %v4510_v57 = vpop.permute.xlu1 %4509 }
 0x562   :  { %v12189_v56 = vpop.permute.xlu0 %4183  ;;  %v4863_v13 = vsel %vm1843_vm7, %v15091_v48, %v4510_v57  ;;  %v15097_v48 = vld [vmem:[#allocation61_spill] sm:$0xff] }
 0x563   :  { %4738 = vrot.lane.b32.xlu1 %v12187_v15, %s6838_s20 }
 0x564   :  { %4736 = vrot.lane.b32.xlu0 %v12193_v6, %s6838_s20 }
 0x565   :  { %v4512_v53 = vpop.permute.xlu1 %4511 }
 0x566   :  { %v12199_v35 = vpop.permute.xlu0 %3830  ;;  %v4864_v51 = vsel %vm1843_vm7, %v15093_v34, %v4512_v53  ;;  %v15095_v53 = vld [vmem:[#allocation10_spill] sm:$0xff] }
 0x567   :  { %4551 = vrot.lane.b32.xlu1 %v12187_v15, %s6836_s15  ;;  %v4317_v1 = vsel %vm1272_vm4, %v15095_v53, %v11969_v61  ;;  %v15096_v61 = vld [vmem:[#allocation46_spill] sm:$0xff]  ;;  %v15101_v53 = vld [vmem:[#allocation8_spill] sm:$0xff] }
 0x568   :  { %4549 = vrot.lane.b32.xlu0 %v12193_v6, %s6836_s15  ;;  %v12251_v16 = vsel %vm4335_vm9, %v4317_v1, %v12001_v3  ;;  %v4320_v3 = vsel %vm1272_vm4, %v15096_v61, %v12027_v24  ;;  %v4321_v1 = vsel %vm1272_vm4, %v15101_v53, %v12079_v33  ;;  %v15102_v33 = vld [vmem:[#allocation47_spill] sm:$0xff] }
 0x569   :  { %v12208_v59 = vpop.permute.xlu1 %3832  ;;  %v15107_v53 = vld [vmem:[#allocation39_spill] sm:$0xff] }
 0x56a   :  { %v4703_v63 = vpop.permute.xlu0 %4702 }
 0x56b   :  { %v4928_v8 = vsel %vm4905_vm10, %v4863_v13, %v4703_v63  ;;  %4742 = vrot.lane.b32.xlu1 %v12215_v54, %s6838_s20  ;;  %v4319_v13 = vsel %vm1272_vm4, %v15097_v48, %v12017_v31  ;;  %v12271_v63 = vsel %vm4335_vm9, %v4320_v3, %v12062_v4  ;;  %v15099_v31 = vld [vmem:[#allocation5_spill] sm:$0xff]  ;;  %v12305_v3 = vsel %vm4335_vm9, %v4321_v1, %v12111_v20 }
 0x56c   :  { %4740 = vrot.lane.b32.xlu0 %v12221_v38, %s6838_s20  ;;  %6724 = vmatprep.mubr.msk.f32.mxu1 %vm4976_vm11, %v4928_v8  ;;  %v4325_v1 = vsel %vm1272_vm4, %v15107_v53, %v12199_v35 }
 0x56d   :  { %v4705_v44 = vpop.permute.xlu1 %4704 }
 0x56e   :  { %v4929_v57 = vsel %vm4905_vm10, %v4864_v51, %v4705_v44  ;;  %v12232_v11 = vpop.permute.xlu0 %4185  ;;  %v12277_v51 = vsel %vm4335_vm9, %v4319_v13, %v12043_v29  ;;  %v15100_v29 = vld [vmem:[#allocation38_spill] sm:$0xff] }
 0x56f   :  { %4555 = vrot.lane.b32.xlu1 %v12215_v54, %s6836_s15  ;;  %6725 = vmatmul.mubr.msk.f32.gmra.mrb[20].mxu1 %vm4976_vm11, %v4929_v57  ;;  %v4322_v60 = vsel %vm1272_vm4, %v15100_v29, %v12090_v36  ;;  %v15103_v13 = vld [vmem:[#allocation18_spill] sm:$0xff] }
 0x570   :  { %4553 = vrot.lane.b32.xlu0 %v12221_v38, %s6836_s15 }
 0x571   :  { %v4514_v21 = vpop.permute.xlu1 %4513 }
 0x572   :  { %v4188_v28 = vpop.permute.xlu0 %4187  ;;  %v4865_v8 = vsel %vm1843_vm7, %v15098_v58, %v4514_v21  ;;  %v4323_v58 = vsel %vm1272_vm4, %v15103_v13, %v12139_v22  ;;  %v15105_v22 = vld [vmem:[#allocation42_spill] sm:$0xff] }
 0x573   :  { %4746 = vrot.lane.b32.xlu1 %v12247_v32, %s6838_s20 }
 0x574   :  { %4744 = vrot.lane.b32.xlu0 %v12251_v16, %s6838_s20 }
 0x575   :  { %v4516_v37 = vpop.permute.xlu1 %4515 }
 0x576   :  { %v12257_v46 = vpop.permute.xlu0 %3834  ;;  %v4866_v24 = vsel %vm1843_vm7, %v15099_v31, %v4516_v37  ;;  %v12301_v37 = vsel %vm4335_vm9, %v4322_v60, %v12129_v30  ;;  %v4324_v30 = vsel %vm1272_vm4, %v15102_v33, %v12148_v42 }
 0x577   :  { %4559 = vrot.lane.b32.xlu1 %v12247_v32, %s6836_s15 }
 0x578   :  { %4557 = vrot.lane.b32.xlu0 %v12251_v16, %s6836_s15 }
 0x579   :  { %v3837_v43 = vpop.permute.xlu1 %3836 }
 0x57a   :  { %v4707_v34 = vpop.permute.xlu0 %4706  ;;  %v4328_v35 = vsel %vm1272_vm4, %v10969_v27, %v3837_v43 }
 0x57b   :  { %v4930_v44 = vsel %vm4905_vm10, %v4865_v8, %v4707_v34  ;;  %4750 = vrot.lane.b32.xlu1 %v12271_v63, %s6838_s20  ;;  %v12323_v8 = vsel %vm4335_vm9, %v4324_v30, %v12189_v56  ;;  %v15104_v34 = vld [vmem:[#allocation22_spill] sm:$0xff]  ;;  %v12356_v30 = vsel %vm4335_vm9, %v4325_v1, %v12232_v11  ;;  %v4327_v11 = vsel %vm1272_vm4, %v11813_v62, %v12257_v46 }
 0x57c   :  { %4748 = vrot.lane.b32.xlu0 %v12277_v51, %s6838_s20  ;;  %6727 = vmatprep.mubr.msk.f32.mxu1 %vm4976_vm11, %v4930_v44 }
 0x57d   :  { %v4709_v4 = vpop.permute.xlu1 %4708 }
 0x57e   :  { %v4931_v57 = vsel %vm4905_vm10, %v4866_v24, %v4709_v4  ;;  %v4190_v49 = vpop.permute.xlu0 %4189  ;;  %v12329_v24 = vsel %vm4335_vm9, %v4323_v58, %v12172_v7  ;;  %v15106_v7 = vld [vmem:[#allocation30_spill] sm:$0xff] }
 0x57f   :  { %4563 = vrot.lane.b32.xlu1 %v12271_v63, %s6836_s15  ;;  %6728 = vmatmul.mubr.msk.f32.gmra.mrb[22].mxu1 %vm4976_vm11, %v4931_v57  ;;  %v4326_v60 = vsel %vm1272_vm4, %v15106_v7, %v12208_v59 }
 0x580   :  { %4561 = vrot.lane.b32.xlu0 %v12277_v51, %s6836_s15 }
 0x581   :  { %v4518_v21 = vpop.permute.xlu1 %4517 }
 0x582   :  { %v4192_v61 = vpop.permute.xlu0 %4191  ;;  %v4867_v44 = vsel %vm1843_vm7, %v15104_v34, %v4518_v21 }
 0x583   :  { %4754 = vrot.lane.b32.xlu1 %v12301_v37, %s6838_s20  ;;  %v12372_v58 = vsel %vm4335_vm9, %v4328_v35, %v4192_v61 }
 0x584   :  { %4752 = vrot.lane.b32.xlu0 %v12305_v3, %s6838_s20 }
 0x585   :  { %v4520_v36 = vpop.permute.xlu1 %4519 }
 0x586   :  { %v3839_v48 = vpop.permute.xlu0 %3838  ;;  %v4868_v42 = vsel %vm1843_vm7, %v15105_v22, %v4520_v36  ;;  %v12352_v36 = vsel %vm4335_vm9, %v4326_v60, %v4188_v28 }
 0x587   :  { %4567 = vrot.lane.b32.xlu1 %v12301_v37, %s6836_s15  ;;  %v4329_v61 = vsel %vm1272_vm4, %v11864_v2, %v3839_v48 }
 0x588   :  { %4565 = vrot.lane.b32.xlu0 %v12305_v3, %s6836_s15 }
 0x589   :  { %v3841_v20 = vpop.permute.xlu1 %3840 }
 0x58a   :  { %v4711_v31 = vpop.permute.xlu0 %4710  ;;  %v4330_v43 = vsel %vm1272_vm4, %v15046_v0, %v3841_v20 }
 0x58b   :  { %v4932_v4 = vsel %vm4905_vm10, %v4867_v44, %v4711_v31  ;;  %4758 = vrot.lane.b32.xlu1 %v12323_v8, %s6838_s20  ;;  %v12377_v31 = vsel %vm4335_vm9, %v4327_v11, %v4190_v49 }
 0x58c   :  { %4756 = vrot.lane.b32.xlu0 %v12329_v24, %s6838_s20  ;;  %6730 = vmatprep.mubr.msk.f32.mxu1 %vm4976_vm11, %v4932_v4 }
 0x58d   :  { %v4713_v56 = vpop.permute.xlu1 %4712 }
 0x58e   :  { %v4933_v57 = vsel %vm4905_vm10, %v4868_v42, %v4713_v56  ;;  %v4194_v29 = vpop.permute.xlu0 %4193 }
 0x58f   :  { %4571 = vrot.lane.b32.xlu1 %v12323_v8, %s6836_s15  ;;  %6731 = vmatmul.mubr.msk.f32.gmra.mrb[24].mxu1 %vm4976_vm11, %v4933_v57  ;;  %v12401_v42 = vsel %vm4335_vm9, %v4329_v61, %v4194_v29 }
 0x590   :  { %4569 = vrot.lane.b32.xlu0 %v12329_v24, %s6836_s15 }
 0x591   :  { %v4522_v21 = vpop.permute.xlu1 %4521 }
 0x592   :  { %v4196_v33 = vpop.permute.xlu0 %4195  ;;  %v4869_v34 = vsel %vm1843_vm7, %v11840_v17, %v4522_v21 }
 0x593   :  { %4762 = vrot.lane.b32.xlu1 %v12352_v36, %s6838_s20 }
 0x594   :  { %4760 = vrot.lane.b32.xlu0 %v12356_v30, %s6838_s20 }
 0x595   :  { %v4524_v59 = vpop.permute.xlu1 %4523 }
 0x596   :  { %v3843_v13 = vpop.permute.xlu0 %3842  ;;  %v4870_v27 = vsel %vm1843_vm7, %v11853_v10, %v4524_v59  ;;  %v12398_v10 = vsel %vm4335_vm9, %v4330_v43, %v4196_v33 }
 0x597   :  { %4575 = vrot.lane.b32.xlu1 %v12352_v36, %s6836_s15  ;;  %v4331_v48 = vsel %vm1272_vm4, %v11945_v14, %v3843_v13 }
 0x598   :  { %4573 = vrot.lane.b32.xlu0 %v12356_v30, %s6836_s15 }
 0x599   :  { %v3845_v28 = vpop.permute.xlu1 %3844 }
 0x59a   :  { %v4715_v44 = vpop.permute.xlu0 %4714  ;;  %v4332_v2 = vsel %vm1272_vm4, %v15052_v45, %v3845_v28 }
 0x59b   :  { %v4934_v4 = vsel %vm4905_vm10, %v4869_v34, %v4715_v44  ;;  %4766 = vrot.lane.b32.xlu1 %v12372_v58, %s6838_s20 }
 0x59c   :  { %4764 = vrot.lane.b32.xlu0 %v12377_v31, %s6838_s20  ;;  %6733 = vmatprep.mubr.msk.f32.mxu1 %vm4976_vm11, %v4934_v4 }
 0x59d   :  { %v4717_v62 = vpop.permute.xlu1 %4716 }
 0x59e   :  { %v4935_v17 = vsel %vm4905_vm10, %v4870_v27, %v4717_v62  ;;  %v4198_v46 = vpop.permute.xlu0 %4197 }
 0x59f   :  { %4579 = vrot.lane.b32.xlu1 %v12372_v58, %s6836_s15  ;;  %6734 = vmatmul.mubr.msk.f32.gmra.mrb[26].mxu1 %vm4976_vm11, %v4935_v17  ;;  %v12425_v21 = vsel %vm4335_vm9, %v4331_v48, %v4198_v46 }
 0x5a0   :  { %4577 = vrot.lane.b32.xlu0 %v12377_v31, %s6836_s15 }
 0x5a1   :  { %v4526_v49 = vpop.permute.xlu1 %4525 }
 0x5a2   :  { %v4200_v22 = vpop.permute.xlu0 %4199  ;;  %v4871_v20 = vsel %vm1843_vm7, %v11914_v9, %v4526_v49 }
 0x5a3   :  { %4770 = vrot.lane.b32.xlu1 %v12398_v10, %s6838_s20  ;;  %v12418_v29 = vsel %vm4335_vm9, %v4332_v2, %v4200_v22 }
 0x5a4   :  { %4768 = vrot.lane.b32.xlu0 %v12401_v42, %s6838_s20 }
 0x5a5   :  { %v4528_v56 = vpop.permute.xlu1 %4527 }
 0x5a6   :  { %v3847_v57 = vpop.permute.xlu0 %3846  ;;  %v4872_v7 = vsel %vm1843_vm7, %v11931_v5, %v4528_v56 }
 0x5a7   :  { %4583 = vrot.lane.b32.xlu1 %v12398_v10, %s6836_s15  ;;  %v4333_v33 = vsel %vm1272_vm4, %v11997_v19, %v3847_v57 }
 0x5a8   :  { %4581 = vrot.lane.b32.xlu0 %v12401_v42, %s6836_s15 }
 0x5a9   :  { %v3849_v0 = vpop.permute.xlu1 %3848 }
 0x5aa   :  { %v12422_v60 = vpop.permute.xlu0 %4718  ;;  %v4334_v53 = vsel %vm1272_vm4, %v15059_v52, %v3849_v0 }
 0x5ab   :  { %4774 = vrot.lane.b32.xlu1 %v12418_v29, %s6838_s20  ;;  %v4936_v14 = vsel %vm4905_vm10, %v4871_v20, %v12422_v60  ;;  %v4937_v9 = vsel %vm4905_vm10, %v4872_v7, %v12422_v60 }
 0x5ac   :  { %4772 = vrot.lane.b32.xlu0 %v12425_v21, %s6838_s20  ;;  %6736 = vmatprep.mubr.msk.f32.mxu1 %vm4976_vm11, %v4936_v14 }
 0x5ad   :  { %6737 = vmatmul.mubr.msk.f32.gmra.mrb[28].mxu1 %vm4976_vm11, %v4937_v9  ;;  %v4204_v5 = vpop.permute.xlu1 %4203 }
 0x5ae   :  { %v4202_v45 = vpop.permute.xlu0 %4201  ;;  %v4400_v59 = vsel %vm4335_vm9, %v4334_v53, %v4204_v5 }
 0x5af   :  { %4587 = vrot.lane.b32.xlu1 %v12418_v29, %s6836_s15  ;;  %v4399_v35 = vsel %vm4335_vm9, %v4333_v33, %v4202_v45 }
 0x5b0   :  { %4585 = vrot.lane.b32.xlu0 %v12425_v21, %s6836_s15 }
 0x5b1   :  { %v4532_v1 = vpop.permute.xlu1 %4531 }
 0x5b2   :  { %v4530_v13 = vpop.permute.xlu0 %4529  ;;  %v4874_v28 = vsel %vm1843_vm7, %v11663_v26, %v4532_v1 }
 0x5b3   :  { %4778 = vrot.lane.b32.xlu1 %v4400_v59, %s6838_s20  ;;  %v4873_v52 = vsel %vm1843_vm7, %v11663_v26, %v4530_v13 }
 0x5b4   :  { %4776 = vrot.lane.b32.xlu0 %v4399_v35, %s6838_s20 }
 0x5b5   :  { %v4723_v11 = vpop.permute.xlu1 %4722 }
 0x5b6   :  { %v4939_v34 = vsel %vm4905_vm10, %v4874_v28, %v4723_v11  ;;  %v4721_v44 = vpop.permute.xlu0 %4720 }
 0x5b7   :  { %v4938_v19 = vsel %vm4905_vm10, %v4873_v52, %v4721_v44  ;;  %4591 = vrot.lane.b32.xlu1 %v4400_v59, %s6836_s15 }
 0x5b8   :  { %4589 = vrot.lane.b32.xlu0 %v4399_v35, %s6836_s15  ;;  %6739 = vmatprep.mubr.msk.f32.mxu1 %vm4976_vm11, %v4938_v19 }
 0x5b9   :  { %6740 = vmatmul.mubr.msk.f32.gmra.mrb[30].mxu1 %vm4976_vm11, %v4939_v34  ;;  %v4536_v4 = vpop.permute.xlu1 %4535 }
 0x5ba   :  { %v4534_v27 = vpop.permute.xlu0 %4533  ;;  %v4876_v62 = vsel %vm1843_vm7, %v12047_v39, %v4536_v4 }
 0x5bb   :  { %v4875_v26 = vsel %vm1843_vm7, %v12054_v50, %v4534_v27 }
 0x5bd   :  { %v4727_v17 = vpop.permute.xlu1 %4726 }
 0x5be   :  { %v4941_v46 = vsel %vm4905_vm10, %v4876_v62, %v4727_v17  ;;  %v4725_v43 = vpop.permute.xlu0 %4724 }
 0x5bf   :  { %v4940_v49 = vsel %vm4905_vm10, %v4875_v26, %v4725_v43 }
 0x5c0   :  { %6742 = vmatprep.mubr.msk.f32.mxu1 %vm4976_vm11, %v4940_v49 }
 0x5c1   :  { %6743 = vmatmul.mubr.msk.f32.gmra.mrb[32].mxu1 %vm4976_vm11, %v4941_v46  ;;  %v4540_v61 = vpop.permute.xlu1 %4539 }
 0x5c2   :  { %v4538_v22 = vpop.permute.xlu0 %4537  ;;  %v4878_v56 = vsel %vm1843_vm7, %v12069_v55, %v4540_v61 }
 0x5c3   :  { %v4877_v39 = vsel %vm1843_vm7, %v12073_v12, %v4538_v22 }
 0x5c5   :  { %v4731_v57 = vpop.permute.xlu1 %4730 }
 0x5c6   :  { %v4943_v50 = vsel %vm4905_vm10, %v4878_v56, %v4731_v57  ;;  %v4729_v2 = vpop.permute.xlu0 %4728 }
 0x5c7   :  { %v4942_v0 = vsel %vm4905_vm10, %v4877_v39, %v4729_v2 }
 0x5c8   :  { %6745 = vmatprep.mubr.msk.f32.mxu1 %vm4976_vm11, %v4942_v0 }
 0x5c9   :  { %6746 = vmatmul.mubr.msk.f32.gmra.mrb[34].mxu1 %vm4976_vm11, %v4943_v50  ;;  %v4544_v48 = vpop.permute.xlu1 %4543 }
 0x5ca   :  { %v4542_v20 = vpop.permute.xlu0 %4541  ;;  %v4880_v7 = vsel %vm1843_vm7, %v12097_v18, %v4544_v48 }
 0x5cb   :  { %v4879_v55 = vsel %vm1843_vm7, %v12102_v23, %v4542_v20 }
 0x5cd   :  { %v4735_v14 = vpop.permute.xlu1 %4734 }
 0x5ce   :  { %v4945_v12 = vsel %vm4905_vm10, %v4880_v7, %v4735_v14  ;;  %v4733_v9 = vpop.permute.xlu0 %4732 }
 0x5cf   :  { %v4944_v5 = vsel %vm4905_vm10, %v4879_v55, %v4733_v9 }
 0x5d0   :  { %6748 = vmatprep.mubr.msk.f32.mxu1 %vm4976_vm11, %v4944_v5 }
 0x5d1   :  { %6749 = vmatmul.mubr.msk.f32.gmra.mrb[36].mxu1 %vm4976_vm11, %v4945_v12  ;;  %v4548_v45 = vpop.permute.xlu1 %4547 }
 0x5d2   :  { %v4546_v53 = vpop.permute.xlu0 %4545  ;;  %v4882_v1 = vsel %vm1843_vm7, %v12127_v47, %v4548_v45 }
 0x5d3   :  { %v4881_v18 = vsel %vm1843_vm7, %v12133_v41, %v4546_v53 }
 0x5d5   :  { %v4739_v33 = vpop.permute.xlu1 %4738 }
 0x5d6   :  { %v4947_v23 = vsel %vm4905_vm10, %v4882_v1, %v4739_v33  ;;  %v4737_v59 = vpop.permute.xlu0 %4736 }
 0x5d7   :  { %v4946_v13 = vsel %vm4905_vm10, %v4881_v18, %v4737_v59 }
 0x5d8   :  { %6751 = vmatprep.mubr.msk.f32.mxu1 %vm4976_vm11, %v4946_v13 }
 0x5d9   :  { %6752 = vmatmul.mubr.msk.f32.gmra.mrb[38].mxu1 %vm4976_vm11, %v4947_v23  ;;  %v4552_v35 = vpop.permute.xlu1 %4551 }
 0x5da   :  { %v4550_v28 = vpop.permute.xlu0 %4549  ;;  %v12491_v11 = vpop.f32.mrb[64].mxu0  ;;  %v4884_v47 = vsel %vm1843_vm7, %v12155_v25, %v4552_v35 }
 0x5db   :  { %v12493_v52 = vpop.f32.mrb[65].mxu0  ;;  %v4883_v41 = vsel %vm1843_vm7, %v12161_v40, %v4550_v28 }
 0x5dd   :  { %v4743_v34 = vpop.permute.xlu1 %4742 }
 0x5de   :  { %v4949_v44 = vsel %vm4905_vm10, %v4884_v47, %v4743_v34  ;;  %v4741_v19 = vpop.permute.xlu0 %4740 }
 0x5df   :  { %v4948_v4 = vsel %vm4905_vm10, %v4883_v41, %v4741_v19  ;;  %v12501_v27 = vpop.f32.mrb[0].mxu1 }
 0x5e0   :  { %6754 = vmatprep.mubr.msk.f32.mxu1 %vm4976_vm11, %v4948_v4  ;;  %v12504_v62 = vpop.f32.mrb[1].mxu1 }
 0x5e1   :  { %6755 = vmatmul.mubr.msk.f32.gmra.mrb[40].mxu1 %vm4976_vm11, %v4949_v44  ;;  %v4556_v17 = vpop.permute.xlu1 %4555 }
 0x5e2   :  { %v4554_v26 = vpop.permute.xlu0 %4553  ;;  %v4886_v43 = vsel %vm1843_vm7, %v12187_v15, %v4556_v17 }
 0x5e3   :  { %v12507_v25 = vpop.f32.mrb[2].mxu1  ;;  %v4885_v49 = vsel %vm1843_vm7, %v12193_v6, %v4554_v26 }
 0x5e4   :  { %v12509_v46 = vpop.f32.mrb[3].mxu1 }
 0x5e5   :  { %v4747_v40 = vpop.permute.xlu1 %4746 }
 0x5e6   :  { %v4745_v61 = vpop.permute.xlu0 %4744  ;;  %v4951_v22 = vsel %vm4905_vm10, %v4886_v43, %v4747_v40 }
 0x5e7   :  { %v4950_v56 = vsel %vm4905_vm10, %v4885_v49, %v4745_v61  ;;  %v12517_v57 = vpop.f32.mrb[4].mxu1 }
 0x5e8   :  { %6757 = vmatprep.mubr.msk.f32.mxu1 %vm4976_vm11, %v4950_v56  ;;  %v12520_v39 = vpop.f32.mrb[5].mxu1 }
 0x5e9   :  { %6758 = vmatmul.mubr.msk.f32.gmra.mrb[42].mxu1 %vm4976_vm11, %v4951_v22  ;;  %v4560_v50 = vpop.permute.xlu1 %4559 }
 0x5ea   :  { %v4558_v2 = vpop.permute.xlu0 %4557  ;;  %v4888_v48 = vsel %vm1843_vm7, %v12215_v54, %v4560_v50 }
 0x5eb   :  { %v12523_v0 = vpop.f32.mrb[6].mxu1  ;;  %v4887_v20 = vsel %vm1843_vm7, %v12221_v38, %v4558_v2 }
 0x5ec   :  { %v12525_v15 = vpop.f32.mrb[7].mxu1 }
 0x5ed   :  { %v4751_v6 = vpop.permute.xlu1 %4750 }
 0x5ee   :  { %v4749_v7 = vpop.permute.xlu0 %4748  ;;  %v4953_v14 = vsel %vm4905_vm10, %v4888_v48, %v4751_v6 }
 0x5ef   :  { %v4952_v55 = vsel %vm4905_vm10, %v4887_v20, %v4749_v7  ;;  %v12533_v12 = vpop.f32.mrb[8].mxu1 }
 0x5f0   :  { %6760 = vmatprep.mubr.msk.f32.mxu1 %vm4976_vm11, %v4952_v55  ;;  %v12536_v9 = vpop.f32.mrb[9].mxu1 }
 0x5f1   :  { %6761 = vmatmul.mubr.msk.f32.gmra.mrb[44].mxu1 %vm4976_vm11, %v4953_v14  ;;  %v4564_v5 = vpop.permute.xlu1 %4563 }
 0x5f2   :  { %v4562_v45 = vpop.permute.xlu0 %4561  ;;  %v4890_v1 = vsel %vm1843_vm7, %v12247_v32, %v4564_v5 }
 0x5f3   :  { %v12539_v53 = vpop.f32.mrb[10].mxu1  ;;  %v4889_v33 = vsel %vm1843_vm7, %v12251_v16, %v4562_v45 }
 0x5f4   :  { %v12541_v54 = vpop.f32.mrb[11].mxu1 }
 0x5f5   :  { %v4755_v38 = vpop.permute.xlu1 %4754 }
 0x5f6   :  { %v4753_v18 = vpop.permute.xlu0 %4752  ;;  %v4955_v23 = vsel %vm4905_vm10, %v4890_v1, %v4755_v38 }
 0x5f7   :  { %v4954_v59 = vsel %vm4905_vm10, %v4889_v33, %v4753_v18 }
 0x5f8   :  { %6763 = vmatprep.mubr.msk.f32.mxu1 %vm4976_vm11, %v4954_v59 }
 0x5f9   :  { %6764 = vmatmul.mubr.msk.f32.gmra.mrb[46].mxu1 %vm4976_vm11, %v4955_v23  ;;  %v4568_v13 = vpop.permute.xlu1 %4567 }
 0x5fa   :  { %v4566_v35 = vpop.permute.xlu0 %4565  ;;  %v4892_v28 = vsel %vm1843_vm7, %v12271_v63, %v4568_v13 }
 0x5fb   :  { %v4891_v32 = vsel %vm1843_vm7, %v12277_v51, %v4566_v35 }
 0x5fd   :  { %v4759_v47 = vpop.permute.xlu1 %4758 }
 0x5fe   :  { %v4957_v16 = vsel %vm4905_vm10, %v4892_v28, %v4759_v47  ;;  %v4757_v34 = vpop.permute.xlu0 %4756 }
 0x5ff   :  { %v4956_v41 = vsel %vm4905_vm10, %v4891_v32, %v4757_v34 }
 0x600   :  { %6766 = vmatprep.mubr.msk.f32.mxu1 %vm4976_vm11, %v4956_v41 }
 0x601   :  { %6767 = vmatmul.mubr.msk.f32.gmra.mrb[48].mxu1 %vm4976_vm11, %v4957_v16  ;;  %v4572_v44 = vpop.permute.xlu1 %4571 }
 0x602   :  { %v4570_v19 = vpop.permute.xlu0 %4569  ;;  %v12559_v4 = vpop.f32.mrb[12].mxu1  ;;  %v4894_v63 = vsel %vm1843_vm7, %v12301_v37, %v4572_v44 }
 0x603   :  { %v12561_v17 = vpop.f32.mrb[13].mxu1  ;;  %v4893_v51 = vsel %vm1843_vm7, %v12305_v3, %v4570_v19 }
 0x605   :  { %v4763_v26 = vpop.permute.xlu1 %4762 }
 0x606   :  { %v4959_v40 = vsel %vm4905_vm10, %v4894_v63, %v4763_v26  ;;  %v4761_v43 = vpop.permute.xlu0 %4760 }
 0x607   :  { %v4958_v49 = vsel %vm4905_vm10, %v4893_v51, %v4761_v43 }
 0x608   :  { %6769 = vmatprep.mubr.msk.f32.mxu1 %vm4976_vm11, %v4958_v49 }
 0x609   :  { %6770 = vmatmul.mubr.msk.f32.gmra.mrb[50].mxu1 %vm4976_vm11, %v4959_v40  ;;  %v4576_v61 = vpop.permute.xlu1 %4575 }
 0x60a   :  { %v4574_v22 = vpop.permute.xlu0 %4573  ;;  %v4896_v56 = vsel %vm1843_vm7, %v12323_v8, %v4576_v61 }
 0x60b   :  { %v4895_v37 = vsel %vm1843_vm7, %v12329_v24, %v4574_v22 }
 0x60d   :  { %v4767_v50 = vpop.permute.xlu1 %4766 }
 0x60e   :  { %v4961_v3 = vsel %vm4905_vm10, %v4896_v56, %v4767_v50  ;;  %v4765_v2 = vpop.permute.xlu0 %4764 }
 0x60f   :  { %v4960_v6 = vsel %vm4905_vm10, %v4895_v37, %v4765_v2 }
 0x610   :  { %6772 = vmatprep.mubr.msk.f32.mxu1 %vm4976_vm11, %v4960_v6 }
 0x611   :  { %6773 = vmatmul.mubr.msk.f32.gmra.mrb[52].mxu1 %vm4976_vm11, %v4961_v3  ;;  %v4580_v48 = vpop.permute.xlu1 %4579 }
 0x612   :  { %v4578_v20 = vpop.permute.xlu0 %4577  ;;  %v12579_v7 = vpop.f32.mrb[14].mxu1  ;;  %v4898_v8 = vsel %vm1843_vm7, %v12352_v36, %v4580_v48 }
 0x613   :  { %v12581_v14 = vpop.f32.mrb[15].mxu1  ;;  %v4897_v24 = vsel %vm1843_vm7, %v12356_v30, %v4578_v20 }
 0x615   :  { %v4771_v55 = vpop.permute.xlu1 %4770 }
 0x616   :  { %v4963_v5 = vsel %vm4905_vm10, %v4898_v8, %v4771_v55  ;;  %v4769_v45 = vpop.permute.xlu0 %4768 }
 0x617   :  { %v4962_v38 = vsel %vm4905_vm10, %v4897_v24, %v4769_v45 }
 0x618   :  { %6775 = vmatprep.mubr.msk.f32.mxu1 %vm4976_vm11, %v4962_v38 }
 0x619   :  { %6776 = vmatmul.mubr.msk.f32.gmra.mrb[54].mxu1 %vm4976_vm11, %v4963_v5  ;;  %v4584_v1 = vpop.permute.xlu1 %4583 }
 0x61a   :  { %v4582_v33 = vpop.permute.xlu0 %4581  ;;  %v4900_v18 = vsel %vm1843_vm7, %v12372_v58, %v4584_v1 }
 0x61b   :  { %v4899_v36 = vsel %vm1843_vm7, %v12377_v31, %v4582_v33 }
 0x61d   :  { %v4775_v23 = vpop.permute.xlu1 %4774 }
 0x61e   :  { %v4965_v30 = vsel %vm4905_vm10, %v4900_v18, %v4775_v23  ;;  %v4773_v59 = vpop.permute.xlu0 %4772 }
 0x61f   :  { %v4964_v13 = vsel %vm4905_vm10, %v4899_v36, %v4773_v59 }
 0x620   :  { %6778 = vmatprep.mubr.msk.f32.mxu1 %vm4976_vm11, %v4964_v13 }
 0x621   :  { %6779 = vmatmul.mubr.msk.f32.gmra.mrb[56].mxu1 %vm4976_vm11, %v4965_v30  ;;  %v4588_v35 = vpop.permute.xlu1 %4587 }
 0x622   :  { %v4586_v28 = vpop.permute.xlu0 %4585  ;;  %v12599_v47 = vpop.f32.mrb[16].mxu1  ;;  %v4902_v58 = vsel %vm1843_vm7, %v12398_v10, %v4588_v35 }
 0x623   :  { %v12601_v32 = vpop.f32.mrb[17].mxu1  ;;  %v4901_v31 = vsel %vm1843_vm7, %v12401_v42, %v4586_v28 }
 0x625   :  { %v4779_v16 = vpop.permute.xlu1 %4778 }
 0x626   :  { %v4967_v34 = vsel %vm4905_vm10, %v4902_v58, %v4779_v16  ;;  %v4777_v41 = vpop.permute.xlu0 %4776 }
 0x627   :  { %v4966_v44 = vsel %vm4905_vm10, %v4901_v31, %v4777_v41 }
 0x628   :  { %6781 = vmatprep.mubr.msk.f32.mxu1 %vm4976_vm11, %v4966_v44 }
 0x629   :  { %6782 = vmatmul.mubr.msk.f32.gmra.mrb[58].mxu1 %vm4976_vm11, %v4967_v34  ;;  %v4592_v19 = vpop.permute.xlu1 %4591 }
 0x62a   :  { %v4904_v63 = vsel %vm1843_vm7, %v12418_v29, %v4592_v19  ;;  %v4590_v26 = vpop.permute.xlu0 %4589  ;;  %v12628_v29 = vld [vmem:[%s14416_s6] ss:$0 sm:$0xff] }
 0x62b   :  { %v4903_v10 = vsel %vm1843_vm7, %v12425_v21, %v4590_v26  ;;  %v4969_v42 = vsel %vm4905_vm10, %v4904_v63, %v12422_v60  ;;  %v12632_v21 = vadd.f32 %v12491_v11, %v12628_v29  ;;  %v12640_v49 = vadd.f32 %v12628_v29, %v12504_v62 }
 0x62c   :  { %v4968_v51 = vsel %vm4905_vm10, %v4903_v10, %v12422_v60  ;;  %v12636_v60 = vadd.f32 %v12628_v29, %v12493_v52  ;;  %v12656_v37 = vadd.f32 %v12501_v27, %v12628_v29  ;;  %v12663_v48 = vadd.f32 %v12628_v29, %v12509_v46 }
 0x62d   :  { %6784 = vmatprep.mubr.msk.f32.mxu1 %vm4976_vm11, %v4968_v51  ;;  %v5689_v61 = vmul.f32 %v12632_v21, %v12632_v21  ;;  %v5555_v56 = vsel %vm1272_vm4, %v12632_v21, 0.0  ;;  %v5690_v52 = vmul.f32 %v12640_v49, %v12640_v49  ;;  %v5557_v3 = vsel %vm1272_vm4, %v12640_v49, 0.0 }
 0x62e   :  { %6785 = vmatmul.mubr.msk.f32.gmra.mrb[60].mxu1 %vm4976_vm11, %v4969_v42  ;;  %v5688_v22 = vmul.f32 %v12636_v60, %v12636_v60  ;;  %v5554_v11 = vsel %vm1272_vm4, %v12636_v60, 0.0  ;;  %v5691_v27 = vmul.f32 %v12656_v37, %v12656_v37  ;;  %v5559_v45 = vsel %vm1272_vm4, %v12656_v37, 0.0 }
 0x62f   :  { %v5753_v50 = vsel %vm1272_vm4, %v5689_v61, 0.0  ;;  %v5556_v2 = vadd.f32 %v5555_v56, %v5554_v11  ;;  %v5755_v6 = vsel %vm1272_vm4, %v5690_v52, 0.0  ;;  %v5692_v38 = vmul.f32 %v12663_v48, %v12663_v48 }
 0x630   :  { %v5752_v62 = vsel %vm1272_vm4, %v5688_v22, 0.0  ;;  %v5757_v46 = vsel %vm1272_vm4, %v5691_v27, 0.0  ;;  %v12678_v33 = vadd.f32 %v12507_v25, %v12628_v29  ;;  %v5561_v18 = vsel %vm1272_vm4, %v12663_v48, 0.0 }
 0x631   :  { %v5754_v8 = vadd.f32 %v5753_v50, %v5752_v62  ;;  %v5558_v55 = vadd.f32 %v5557_v3, %v5556_v2  ;;  %v5759_v36 = vsel %vm1272_vm4, %v5692_v38, 0.0  ;;  %v12685_v30 = vadd.f32 %v12628_v29, %v12520_v39 }
 0x632   :  { %v12621_v40 = vpop.f32.mrb[18].mxu1  ;;  %v5693_v13 = vmul.f32 %v12678_v33, %v12678_v33  ;;  %v5563_v28 = vsel %vm1272_vm4, %v12678_v33, 0.0  ;;  %v12696_v31 = vadd.f32 %v12517_v57, %v12628_v29  ;;  %v12703_v44 = vadd.f32 %v12628_v29, %v12525_v15 }
 0x633   :  { %v12623_v43 = vpop.f32.mrb[19].mxu1  ;;  %v5756_v5 = vadd.f32 %v5755_v6, %v5754_v8  ;;  %v5560_v1 = vadd.f32 %v5559_v45, %v5558_v55  ;;  %v5694_v25 = vmul.f32 %v12685_v30, %v12685_v30  ;;  %v5565_v39 = vsel %vm1272_vm4, %v12685_v30, 0.0 }
 0x634   :  { %v5761_v16 = vsel %vm1272_vm4, %v5693_v13, 0.0  ;;  %v5695_v10 = vmul.f32 %v12696_v31, %v12696_v31  ;;  %v5567_v42 = vsel %vm1272_vm4, %v12696_v31, 0.0  ;;  %v5696_v51 = vmul.f32 %v12703_v44, %v12703_v44 }
 0x635   :  { %v5758_v23 = vadd.f32 %v5757_v46, %v5756_v5  ;;  %v5562_v59 = vadd.f32 %v5561_v18, %v5560_v1  ;;  %v5763_v41 = vsel %vm1272_vm4, %v5694_v25, 0.0  ;;  %v12718_v15 = vadd.f32 %v12523_v0, %v12628_v29 }
 0x636   :  { %v5765_v22 = vsel %vm1272_vm4, %v5695_v10, 0.0  ;;  %v5569_v56 = vsel %vm1272_vm4, %v12703_v44, 0.0  ;;  %v5767_v52 = vsel %vm1272_vm4, %v5696_v51, 0.0  ;;  %v12725_v50 = vadd.f32 %v12628_v29, %v12536_v9 }
 0x637   :  { %v5760_v35 = vadd.f32 %v5759_v36, %v5758_v23  ;;  %v5564_v58 = vadd.f32 %v5563_v28, %v5562_v59  ;;  %v5697_v3 = vmul.f32 %v12718_v15, %v12718_v15  ;;  %v5571_v6 = vsel %vm1272_vm4, %v12718_v15, 0.0 }
 0x638   :  { %v5698_v0 = vmul.f32 %v12725_v50, %v12725_v50  ;;  %v12736_v27 = vadd.f32 %v12533_v12, %v12628_v29  ;;  %v5573_v9 = vsel %vm1272_vm4, %v12725_v50, 0.0  ;;  %v12743_v38 = vadd.f32 %v12628_v29, %v12541_v54 }
 0x639   :  { %v5762_v34 = vadd.f32 %v5761_v16, %v5760_v35  ;;  %v5566_v63 = vadd.f32 %v5565_v39, %v5564_v58  ;;  %v5769_v55 = vsel %vm1272_vm4, %v5697_v3, 0.0  ;;  %v12758_v54 = vadd.f32 %v12539_v53, %v12628_v29 }
 0x63a   :  { %v5771_v45 = vsel %vm1272_vm4, %v5698_v0, 0.0  ;;  %v5699_v23 = vmul.f32 %v12736_v27, %v12736_v27  ;;  %v5575_v36 = vsel %vm1272_vm4, %v12736_v27, 0.0  ;;  %v5700_v59 = vmul.f32 %v12743_v38, %v12743_v38 }
 0x63b   :  { %v5764_v57 = vadd.f32 %v5763_v41, %v5762_v34  ;;  %v5568_v61 = vadd.f32 %v5567_v42, %v5566_v63  ;;  %v5577_v28 = vsel %vm1272_vm4, %v12743_v38, 0.0  ;;  %v12764_v25 = vadd.f32 %v12628_v29, %v12561_v17 }
 0x63c   :  { %v5773_v35 = vsel %vm1272_vm4, %v5699_v23, 0.0  ;;  %v5775_v16 = vsel %vm1272_vm4, %v5700_v59, 0.0  ;;  %v5701_v34 = vmul.f32 %v12758_v54, %v12758_v54  ;;  %v5579_v53 = vsel %vm1272_vm4, %v12758_v54, 0.0 }
 0x63d   :  { %v5766_v11 = vadd.f32 %v5765_v22, %v5764_v57  ;;  %v5570_v62 = vadd.f32 %v5569_v56, %v5568_v61  ;;  %v5702_v41 = vmul.f32 %v12764_v25, %v12764_v25  ;;  %v12775_v10 = vadd.f32 %v12559_v4, %v12628_v29 }
 0x63e   :  { %v5581_v17 = vsel %vm1272_vm4, %v12764_v25, 0.0  ;;  %v12781_v57 = vadd.f32 %v12628_v29, %v12581_v14  ;;  %v5777_v51 = vsel %vm1272_vm4, %v5701_v34, 0.0  ;;  %v12803_v0 = vadd.f32 %v12628_v29, %v12601_v32 }
 0x63f   :  { %v5768_v2 = vadd.f32 %v5767_v52, %v5766_v11  ;;  %v5572_v8 = vadd.f32 %v5571_v6, %v5570_v62  ;;  %v5779_v61 = vsel %vm1272_vm4, %v5702_v41, 0.0  ;;  %v5703_v11 = vmul.f32 %v12775_v10, %v12775_v10 }
 0x640   :  { %v5704_v4 = vmul.f32 %v12781_v57, %v12781_v57  ;;  %v5583_v14 = vsel %vm1272_vm4, %v12775_v10, 0.0  ;;  %v5585_v6 = vsel %vm1272_vm4, %v12781_v57, 0.0  ;;  %v12815_v32 = vadd.f32 %v12599_v47, %v12628_v29 }
 0x641   :  { %v5770_v5 = vadd.f32 %v5769_v55, %v5768_v2  ;;  %v5574_v46 = vadd.f32 %v5573_v9, %v5572_v8  ;;  %v12797_v2 = vadd.f32 %v12579_v7, %v12628_v29  ;;  %v5781_v55 = vsel %vm1272_vm4, %v5703_v11, 0.0 }
 0x642   :  { %v12665_v20 = vpop.f32.mrb[20].mxu1  ;;  %v5783_v9 = vsel %vm1272_vm4, %v5704_v4, 0.0  ;;  %v5706_v7 = vmul.f32 %v12803_v0, %v12803_v0  ;;  %v12821_v59 = vadd.f32 %v12628_v29, %v12623_v43  ;;  %v5591_v41 = vsel %vm1272_vm4, %v12815_v32, 0.0 }
 0x643   :  { %v12667_v24 = vpop.f32.mrb[21].mxu1  ;;  %v5772_v12 = vadd.f32 %v5771_v45, %v5770_v5  ;;  %v5576_v13 = vadd.f32 %v5575_v36, %v5574_v46  ;;  %v5705_v46 = vmul.f32 %v12797_v2, %v12797_v2  ;;  %v5589_v36 = vsel %vm1272_vm4, %v12803_v0, 0.0 }
 0x644   :  { %v5708_v47 = vmul.f32 %v12821_v59, %v12821_v59  ;;  %v12833_v43 = vadd.f32 %v12621_v40, %v12628_v29 }
 0x645   :  { %v5774_v58 = vadd.f32 %v5773_v35, %v5772_v12  ;;  %v5578_v39 = vadd.f32 %v5577_v28, %v5576_v13  ;;  %v5587_v12 = vsel %vm1272_vm4, %v12797_v2, 0.0  ;;  %v5785_v35 = vsel %vm1272_vm4, %v5705_v46, 0.0 }
 0x646   :  { %v5787_v28 = vsel %vm1272_vm4, %v5706_v7, 0.0  ;;  %v5709_v40 = vmul.f32 %v12833_v43, %v12833_v43 }
 0x647   :  { %v5776_v63 = vadd.f32 %v5775_v16, %v5774_v58  ;;  %v5580_v42 = vadd.f32 %v5579_v53, %v5578_v39  ;;  %v5707_v39 = vmul.f32 %v12815_v32, %v12815_v32  ;;  %v12839_v53 = vadd.f32 %v12628_v29, %v12667_v24 }
 0x648   :  { %v5595_v24 = vsel %vm1272_vm4, %v12833_v43, 0.0 }
 0x649   :  { %v5582_v22 = vadd.f32 %v5581_v17, %v5580_v42  ;;  %v5778_v56 = vadd.f32 %v5777_v51, %v5776_v63  ;;  %v5593_v63 = vsel %vm1272_vm4, %v12821_v59, 0.0  ;;  %v5710_v4 = vmul.f32 %v12839_v53, %v12839_v53 }
 0x64b   :  { %v5780_v62 = vadd.f32 %v5779_v61, %v5778_v56  ;;  %v5584_v8 = vadd.f32 %v5583_v14, %v5582_v22  ;;  %v5789_v61 = vsel %vm1272_vm4, %v5707_v39, 0.0  ;;  %v5791_v22 = vsel %vm1272_vm4, %v5708_v47, 0.0 }
 0x64c   :  { %v12853_v14 = vadd.f32 %v12665_v20, %v12628_v29 }
 0x64d   :  { %v5586_v5 = vadd.f32 %v5585_v6, %v5584_v8  ;;  %v5782_v45 = vadd.f32 %v5781_v55, %v5780_v62  ;;  %v5597_v6 = vsel %vm1272_vm4, %v12839_v53, 0.0 }
 0x64e   :  { %v5711_v7 = vmul.f32 %v12853_v14, %v12853_v14 }
 0x64f   :  { %v5784_v23 = vadd.f32 %v5783_v9, %v5782_v45  ;;  %v5588_v13 = vadd.f32 %v5587_v12, %v5586_v5  ;;  %v5793_v9 = vsel %vm1272_vm4, %v5709_v40, 0.0  ;;  %v5795_v5 = vsel %vm1272_vm4, %v5710_v4, 0.0 }
 0x650   :  { %v5599_v12 = vsel %vm1272_vm4, %v12853_v14, 0.0 }
 0x651   :  { %v5590_v58 = vadd.f32 %v5589_v36, %v5588_v13  ;;  %v5786_v16 = vadd.f32 %v5785_v35, %v5784_v23 }
 0x652   :  { %v12705_v19 = vpop.f32.mrb[22].mxu1 }
 0x653   :  { %v12707_v26 = vpop.f32.mrb[23].mxu1  ;;  %v5788_v34 = vadd.f32 %v5787_v28, %v5786_v16  ;;  %v5592_v42 = vadd.f32 %v5591_v41, %v5590_v58  ;;  %v5797_v16 = vsel %vm1272_vm4, %v5711_v7, 0.0 }
 0x654   :  { %v12859_v8 = vadd.f32 %v12628_v29, %v12707_v26  ;;  %v12871_v26 = vadd.f32 %v12705_v19, %v12628_v29 }
 0x655   :  { %v5594_v56 = vadd.f32 %v5593_v63, %v5592_v42  ;;  %v5790_v11 = vadd.f32 %v5789_v61, %v5788_v34 }
 0x656   :  { %v5712_v20 = vmul.f32 %v12859_v8, %v12859_v8  ;;  %v5601_v36 = vsel %vm1272_vm4, %v12859_v8, 0.0  ;;  %v5713_v19 = vmul.f32 %v12871_v26, %v12871_v26 }
 0x657   :  { %v5792_v62 = vadd.f32 %v5791_v22, %v5790_v11  ;;  %v5596_v55 = vadd.f32 %v5595_v24, %v5594_v56 }
 0x658   :  { %v5799_v39 = vsel %vm1272_vm4, %v5712_v20, 0.0  ;;  %v5801_v11 = vsel %vm1272_vm4, %v5713_v19, 0.0 }
 0x659   :  { %v5598_v45 = vadd.f32 %v5597_v6, %v5596_v55  ;;  %v5794_v46 = vadd.f32 %v5793_v9, %v5792_v62 }
 0x65b   :  { %v5796_v23 = vadd.f32 %v5795_v5, %v5794_v46  ;;  %v5600_v28 = vadd.f32 %v5599_v12, %v5598_v45 }
 0x65d   :  { %v5602_v47 = vadd.f32 %v5601_v36, %v5600_v28  ;;  %v5798_v34 = vadd.f32 %v5797_v16, %v5796_v23 }
 0x65f   :  { %v5800_v63 = vadd.f32 %v5799_v39, %v5798_v34 }
 0x661   :  { %v5802_v24 = vadd.f32 %v5801_v11, %v5800_v63 }
 0x662   :  { %v12745_v1 = vpop.f32.mrb[24].mxu1 }
 0x663   :  { %v12747_v18 = vpop.f32.mrb[25].mxu1  ;;  %v12889_v42 = vadd.f32 %v12745_v1, %v12628_v29 }
 0x664   :  { %v12877_v13 = vadd.f32 %v12628_v29, %v12747_v18  ;;  %v5603_v18 = vsel %vm1272_vm4, %v12871_v26, 0.0 }
 0x665   :  { %v5604_v56 = vadd.f32 %v5603_v18, %v5602_v47  ;;  %v5715_v1 = vmul.f32 %v12889_v42, %v12889_v42 }
 0x666   :  { %v5714_v41 = vmul.f32 %v12877_v13, %v12877_v13  ;;  %v5605_v61 = vsel %vm1272_vm4, %v12877_v13, 0.0 }
 0x667   :  { %v5606_v62 = vadd.f32 %v5605_v61, %v5604_v56  ;;  %v5805_v20 = vsel %vm1272_vm4, %v5715_v1, 0.0 }
 0x668   :  { %v5803_v40 = vsel %vm1272_vm4, %v5714_v41, 0.0 }
 0x669   :  { %v5804_v9 = vadd.f32 %v5803_v40, %v5802_v24 }
 0x66b   :  { %v5806_v36 = vadd.f32 %v5805_v20, %v5804_v9 }
 0x672   :  { %v12789_v52 = vpop.f32.mrb[26].mxu1 }
 0x673   :  { %v12791_v3 = vpop.f32.mrb[27].mxu1  ;;  %v12907_v5 = vadd.f32 %v12789_v52, %v12628_v29 }
 0x674   :  { %v12895_v22 = vadd.f32 %v12628_v29, %v12791_v3  ;;  %v5607_v3 = vsel %vm1272_vm4, %v12889_v42, 0.0 }
 0x675   :  { %v5608_v7 = vadd.f32 %v5607_v3, %v5606_v62  ;;  %v5717_v28 = vmul.f32 %v12907_v5, %v12907_v5 }
 0x676   :  { %v5716_v55 = vmul.f32 %v12895_v22, %v12895_v22  ;;  %v5609_v45 = vsel %vm1272_vm4, %v12895_v22, 0.0 }
 0x677   :  { %v5610_v12 = vadd.f32 %v5609_v45, %v5608_v7  ;;  %v5809_v18 = vsel %vm1272_vm4, %v5717_v28, 0.0 }
 0x678   :  { %v5807_v23 = vsel %vm1272_vm4, %v5716_v55, 0.0 }
 0x679   :  { %v5808_v39 = vadd.f32 %v5807_v23, %v5806_v36 }
 0x67b   :  { %v5810_v11 = vadd.f32 %v5809_v18, %v5808_v39 }
 0x680   :  { %v12841_v17 = vpop.f32.mrb[28].mxu1 }
 0x681   :  { %v5385_v51 = vpop.f32.mrb[29].mxu1  ;;  %v12924_v34 = vadd.f32 %v12841_v17, %v12628_v29 }
 0x682   :  { %v12912_v46 = vadd.f32 %v12628_v29, %v5385_v51  ;;  %v5611_v51 = vsel %vm1272_vm4, %v12907_v5, 0.0 }
 0x683   :  { %15108 = vst [vmem:[#allocation26_spill] sm:$0xff] %v12924_v34  ;;  %v5612_v63 = vadd.f32 %v5611_v51, %v5610_v12  ;;  %v5719_v40 = vmul.f32 %v12924_v34, %v12924_v34  ;;  %v5615_v24 = vsel %vm1272_vm4, %v12924_v34, 0.0 }
 0x684   :  { %v5718_v52 = vmul.f32 %v12912_v46, %v12912_v46  ;;  %v5613_v19 = vsel %vm1272_vm4, %v12912_v46, 0.0 }
 0x685   :  { %v5614_v56 = vadd.f32 %v5613_v19, %v5612_v63  ;;  %v5813_v7 = vsel %vm1272_vm4, %v5719_v40, 0.0 }
 0x686   :  { %v5811_v61 = vsel %vm1272_vm4, %v5718_v52, 0.0 }
 0x687   :  { %v5812_v62 = vadd.f32 %v5811_v61, %v5810_v11  ;;  %v5616_v3 = vadd.f32 %v5615_v24, %v5614_v56 }
 0x689   :  { %v5814_v12 = vadd.f32 %v5813_v7, %v5812_v62 }
 0x68c   :  { %v6741_v35 = vpop.f32.mrb[30].mxu1 }
 0x68d   :  { %v5395_v58 = vpop.f32.mrb[31].mxu1 }
 0x68e   :  { %v12929_v41 = vadd.f32 %v12628_v29, %v5395_v58  ;;  %v12940_v58 = vadd.f32 %v6741_v35, %v12628_v29 }
 0x690   :  { %15109 = vst [vmem:[#allocation25_spill] sm:$0xff] %v12929_v41  ;;  %v5720_v17 = vmul.f32 %v12929_v41, %v12929_v41  ;;  %15110 = vst [vmem:[#allocation44_spill] sm:$0xff] %v12940_v58  ;;  %v5617_v1 = vsel %vm1272_vm4, %v12929_v41, 0.0  ;;  %v5721_v36 = vmul.f32 %v12940_v58, %v12940_v58 }
 0x691   :  { %v5618_v23 = vadd.f32 %v5617_v1, %v5616_v3 }
 0x692   :  { %v5815_v20 = vsel %vm1272_vm4, %v5720_v17, 0.0  ;;  %v5817_v63 = vsel %vm1272_vm4, %v5721_v36, 0.0 }
 0x693   :  { %v5816_v28 = vadd.f32 %v5815_v20, %v5814_v12 }
 0x694   :  { %v6744_v4 = vpop.f32.mrb[32].mxu1 }
 0x695   :  { %v5405_v6 = vpop.f32.mrb[33].mxu1  ;;  %v12956_v52 = vadd.f32 %v6744_v4, %v12628_v29  ;;  %v5818_v11 = vadd.f32 %v5817_v63, %v5816_v28 }
 0x696   :  { %v12945_v55 = vadd.f32 %v12628_v29, %v5405_v6  ;;  %v5619_v6 = vsel %vm1272_vm4, %v12940_v58, 0.0 }
 0x697   :  { %15112 = vst [vmem:[#allocation50_spill] sm:$0xff] %v12956_v52  ;;  %v5620_v19 = vadd.f32 %v5619_v6, %v5618_v23  ;;  %v5723_v17 = vmul.f32 %v12956_v52, %v12956_v52 }
 0x698   :  { %15111 = vst [vmem:[#allocation13_spill] sm:$0xff] %v12945_v55  ;;  %v5722_v35 = vmul.f32 %v12945_v55, %v12945_v55  ;;  %v5621_v39 = vsel %vm1272_vm4, %v12945_v55, 0.0 }
 0x699   :  { %v5622_v56 = vadd.f32 %v5621_v39, %v5620_v19  ;;  %v5821_v20 = vsel %vm1272_vm4, %v5723_v17, 0.0 }
 0x69a   :  { %v5819_v18 = vsel %vm1272_vm4, %v5722_v35, 0.0 }
 0x69b   :  { %v5820_v62 = vadd.f32 %v5819_v18, %v5818_v11 }
 0x69c   :  { %v6747_v16 = vpop.f32.mrb[34].mxu1 }
 0x69d   :  { %v5415_v47 = vpop.f32.mrb[35].mxu1  ;;  %v12972_v24 = vadd.f32 %v6747_v16, %v12628_v29  ;;  %v5822_v36 = vadd.f32 %v5821_v20, %v5820_v62 }
 0x69e   :  { %v12961_v51 = vadd.f32 %v12628_v29, %v5415_v47  ;;  %v5623_v47 = vsel %vm1272_vm4, %v12956_v52, 0.0 }
 0x69f   :  { %15114 = vst [vmem:[#allocation34_spill] sm:$0xff] %v12972_v24  ;;  %v5624_v7 = vadd.f32 %v5623_v47, %v5622_v56  ;;  %v5725_v35 = vmul.f32 %v12972_v24, %v12972_v24 }
 0x6a0   :  { %15113 = vst [vmem:[#allocation48_spill] sm:$0xff] %v12961_v51  ;;  %v5724_v4 = vmul.f32 %v12961_v51, %v12961_v51  ;;  %v5625_v1 = vsel %vm1272_vm4, %v12961_v51, 0.0 }
 0x6a1   :  { %v5626_v12 = vadd.f32 %v5625_v1, %v5624_v7  ;;  %v5825_v11 = vsel %vm1272_vm4, %v5725_v35, 0.0 }
 0x6a2   :  { %v5823_v23 = vsel %vm1272_vm4, %v5724_v4, 0.0 }
 0x6a3   :  { %v5824_v6 = vadd.f32 %v5823_v23, %v5822_v36 }
 0x6a4   :  { %v6750_v9 = vpop.f32.mrb[36].mxu1 }
 0x6a5   :  { %v5425_v45 = vpop.f32.mrb[37].mxu1  ;;  %v12988_v19 = vadd.f32 %v6750_v9, %v12628_v29  ;;  %v5826_v62 = vadd.f32 %v5825_v11, %v5824_v6 }
 0x6a6   :  { %v12977_v3 = vadd.f32 %v12628_v29, %v5425_v45  ;;  %v5627_v45 = vsel %vm1272_vm4, %v12972_v24, 0.0 }
 0x6a7   :  { %15116 = vst [vmem:[#allocation43_spill] sm:$0xff] %v12988_v19  ;;  %v5628_v56 = vadd.f32 %v5627_v45, %v5626_v12  ;;  %v5727_v47 = vmul.f32 %v12988_v19, %v12988_v19  ;;  %v5631_v7 = vsel %vm1272_vm4, %v12988_v19, 0.0 }
 0x6a8   :  { %15115 = vst [vmem:[#allocation49_spill] sm:$0xff] %v12977_v3  ;;  %v5726_v16 = vmul.f32 %v12977_v3, %v12977_v3  ;;  %v5629_v63 = vsel %vm1272_vm4, %v12977_v3, 0.0 }
 0x6a9   :  { %v5630_v4 = vadd.f32 %v5629_v63, %v5628_v56 }
 0x6aa   :  { %v5827_v17 = vsel %vm1272_vm4, %v5726_v16, 0.0  ;;  %v5829_v16 = vsel %vm1272_vm4, %v5727_v47, 0.0 }
 0x6ab   :  { %v5828_v1 = vadd.f32 %v5827_v17, %v5826_v62  ;;  %v5632_v36 = vadd.f32 %v5631_v7, %v5630_v4 }
 0x6ac   :  { %v6753_v61 = vpop.f32.mrb[38].mxu1 }
 0x6ad   :  { %v5435_v40 = vpop.f32.mrb[39].mxu1  ;;  %v5830_v63 = vadd.f32 %v5829_v16, %v5828_v1 }
 0x6ae   :  { %v12993_v18 = vadd.f32 %v12628_v29, %v5435_v40  ;;  %v13004_v40 = vadd.f32 %v6753_v61, %v12628_v29 }
 0x6b0   :  { %15117 = vst [vmem:[#allocation35_spill] sm:$0xff] %v12993_v18  ;;  %v5728_v9 = vmul.f32 %v12993_v18, %v12993_v18  ;;  %15118 = vst [vmem:[#allocation53_spill] sm:$0xff] %v13004_v40  ;;  %v5633_v20 = vsel %vm1272_vm4, %v12993_v18, 0.0  ;;  %v5729_v56 = vmul.f32 %v13004_v40, %v13004_v40 }
 0x6b1   :  { %v5634_v45 = vadd.f32 %v5633_v20, %v5632_v36 }
 0x6b2   :  { %v5831_v6 = vsel %vm1272_vm4, %v5728_v9, 0.0  ;;  %v5833_v9 = vsel %vm1272_vm4, %v5729_v56, 0.0 }
 0x6b3   :  { %v5832_v11 = vadd.f32 %v5831_v6, %v5830_v63 }
 0x6b4   :  { %v6756_v28 = vpop.f32.mrb[40].mxu1 }
 0x6b5   :  { %v5445_v39 = vpop.f32.mrb[41].mxu1  ;;  %v13020_v17 = vadd.f32 %v6756_v28, %v12628_v29  ;;  %v5834_v36 = vadd.f32 %v5833_v9, %v5832_v11 }
 0x6b6   :  { %v13009_v23 = vadd.f32 %v12628_v29, %v5445_v39  ;;  %v5635_v39 = vsel %vm1272_vm4, %v13004_v40, 0.0 }
 0x6b7   :  { %15120 = vst [vmem:[#allocation54_spill] sm:$0xff] %v13020_v17  ;;  %v5636_v47 = vadd.f32 %v5635_v39, %v5634_v45  ;;  %v5731_v6 = vmul.f32 %v13020_v17, %v13020_v17 }
 0x6b8   :  { %15119 = vst [vmem:[#allocation12_spill] sm:$0xff] %v13009_v23  ;;  %v5730_v61 = vmul.f32 %v13009_v23, %v13009_v23  ;;  %v5637_v4 = vsel %vm1272_vm4, %v13009_v23, 0.0 }
 0x6b9   :  { %v5638_v20 = vadd.f32 %v5637_v4, %v5636_v47  ;;  %v5837_v39 = vsel %vm1272_vm4, %v5731_v6, 0.0 }
 0x6ba   :  { %v5835_v1 = vsel %vm1272_vm4, %v5730_v61, 0.0 }
 0x6bb   :  { %v5836_v63 = vadd.f32 %v5835_v1, %v5834_v36 }
 0x6bc   :  { %v6759_v12 = vpop.f32.mrb[42].mxu1 }
 0x6bd   :  { %v5455_v35 = vpop.f32.mrb[43].mxu1  ;;  %v13036_v45 = vadd.f32 %v6759_v12, %v12628_v29  ;;  %v5838_v9 = vadd.f32 %v5837_v39, %v5836_v63 }
 0x6be   :  { %v13025_v62 = vadd.f32 %v12628_v29, %v5455_v35  ;;  %v5639_v35 = vsel %vm1272_vm4, %v13020_v17, 0.0 }
 0x6bf   :  { %15122 = vst [vmem:[#allocation21_spill] sm:$0xff] %v13036_v45  ;;  %v5640_v11 = vadd.f32 %v5639_v35, %v5638_v20  ;;  %v5733_v1 = vmul.f32 %v13036_v45, %v13036_v45 }
 0x6c0   :  { %15121 = vst [vmem:[#allocation16_spill] sm:$0xff] %v13025_v62  ;;  %v5732_v28 = vmul.f32 %v13025_v62, %v13025_v62  ;;  %v5641_v56 = vsel %vm1272_vm4, %v13025_v62, 0.0 }
 0x6c1   :  { %v5642_v47 = vadd.f32 %v5641_v56, %v5640_v11  ;;  %v5841_v35 = vsel %vm1272_vm4, %v5733_v1, 0.0 }
 0x6c2   :  { %v5839_v4 = vsel %vm1272_vm4, %v5732_v28, 0.0 }
 0x6c3   :  { %v5840_v17 = vadd.f32 %v5839_v4, %v5838_v9 }
 0x6c4   :  { %v6762_v7 = vpop.f32.mrb[44].mxu1 }
 0x6c5   :  { %v5465_v16 = vpop.f32.mrb[45].mxu1  ;;  %v13052_v20 = vadd.f32 %v6762_v7, %v12628_v29  ;;  %v5842_v39 = vadd.f32 %v5841_v35, %v5840_v17 }
 0x6c6   :  { %v13041_v61 = vadd.f32 %v12628_v29, %v5465_v16  ;;  %v5643_v16 = vsel %vm1272_vm4, %v13036_v45, 0.0 }
 0x6c7   :  { %15124 = vst [vmem:[#allocation20_spill] sm:$0xff] %v13052_v20  ;;  %v5644_v63 = vadd.f32 %v5643_v16, %v5642_v47  ;;  %v5735_v4 = vmul.f32 %v13052_v20, %v13052_v20 }
 0x6c8   :  { %15123 = vst [vmem:[#allocation51_spill] sm:$0xff] %v13041_v61  ;;  %v5734_v12 = vmul.f32 %v13041_v61, %v13041_v61  ;;  %v5645_v6 = vsel %vm1272_vm4, %v13041_v61, 0.0  ;;  %v5647_v61 = vsel %vm1272_vm4, %v13052_v20, 0.0 }
 0x6c9   :  { %v5646_v11 = vadd.f32 %v5645_v6, %v5644_v63  ;;  %v5845_v17 = vsel %vm1272_vm4, %v5735_v4, 0.0 }
 0x6ca   :  { %v5843_v56 = vsel %vm1272_vm4, %v5734_v12, 0.0 }
 0x6cb   :  { %v5844_v9 = vadd.f32 %v5843_v56, %v5842_v39  ;;  %v5648_v12 = vadd.f32 %v5647_v61, %v5646_v11 }
 0x6cc   :  { %v6765_v36 = vpop.f32.mrb[46].mxu1 }
 0x6cd   :  { %v5475_v23 = vpop.f32.mrb[47].mxu1  ;;  %v5846_v56 = vadd.f32 %v5845_v17, %v5844_v9 }
 0x6ce   :  { %v13057_v28 = vadd.f32 %v12628_v29, %v5475_v23  ;;  %v13068_v23 = vadd.f32 %v6765_v36, %v12628_v29 }
 0x6d0   :  { %15125 = vst [vmem:[#allocation55_spill] sm:$0xff] %v13057_v28  ;;  %v5736_v7 = vmul.f32 %v13057_v28, %v13057_v28  ;;  %15126 = vst [vmem:[#allocation52_spill] sm:$0xff] %v13068_v23  ;;  %v5649_v47 = vsel %vm1272_vm4, %v13057_v28, 0.0  ;;  %v5737_v39 = vmul.f32 %v13068_v23, %v13068_v23  ;;  %v5651_v61 = vsel %vm1272_vm4, %v13068_v23, 0.0 }
 0x6d1   :  { %v5650_v35 = vadd.f32 %v5649_v47, %v5648_v12 }
 0x6d2   :  { %v5847_v6 = vsel %vm1272_vm4, %v5736_v7, 0.0  ;;  %v5849_v47 = vsel %vm1272_vm4, %v5737_v39, 0.0 }
 0x6d3   :  { %v5848_v20 = vadd.f32 %v5847_v6, %v5846_v56  ;;  %v5652_v7 = vadd.f32 %v5651_v61, %v5650_v35 }
 0x6d4   :  { %v6768_v1 = vpop.f32.mrb[48].mxu1 }
 0x6d5   :  { %v5485_v16 = vpop.f32.mrb[49].mxu1  ;;  %v13084_v11 = vadd.f32 %v6768_v1, %v12628_v29  ;;  %v5850_v17 = vadd.f32 %v5849_v47, %v5848_v20 }
 0x6d6   :  { %v13075_v63 = vadd.f32 %v12628_v29, %v5485_v16 }
 0x6d7   :  { %15128 = vst [vmem:[#allocation56_spill] sm:$0xff] %v13084_v11  ;;  %v5739_v6 = vmul.f32 %v13084_v11, %v13084_v11  ;;  %v5655_v23 = vsel %vm1272_vm4, %v13084_v11, 0.0 }
 0x6d8   :  { %15127 = vst [vmem:[#allocation15_spill] sm:$0xff] %v13075_v63  ;;  %v5738_v36 = vmul.f32 %v13075_v63, %v13075_v63  ;;  %v5653_v4 = vsel %vm1272_vm4, %v13075_v63, 0.0 }
 0x6d9   :  { %v5654_v16 = vadd.f32 %v5653_v4, %v5652_v7  ;;  %v5853_v61 = vsel %vm1272_vm4, %v5739_v6, 0.0 }
 0x6da   :  { %v5851_v9 = vsel %vm1272_vm4, %v5738_v36, 0.0 }
 0x6db   :  { %v5852_v1 = vadd.f32 %v5851_v9, %v5850_v17  ;;  %v5656_v36 = vadd.f32 %v5655_v23, %v5654_v16 }
 0x6dc   :  { %v6771_v12 = vpop.f32.mrb[50].mxu1 }
 0x6dd   :  { %v5495_v28 = vpop.f32.mrb[51].mxu1  ;;  %v13098_v35 = vadd.f32 %v6771_v12, %v12628_v29  ;;  %v5854_v7 = vadd.f32 %v5853_v61, %v5852_v1 }
 0x6de   :  { %v13093_v56 = vadd.f32 %v12628_v29, %v5495_v28 }
 0x6df   :  { %15130 = vst [vmem:[#allocation4_spill] sm:$0xff] %v13098_v35  ;;  %v5741_v47 = vmul.f32 %v13098_v35, %v13098_v35  ;;  %v5659_v63 = vsel %vm1272_vm4, %v13098_v35, 0.0 }
 0x6e0   :  { %15129 = vst [vmem:[#allocation37_spill] sm:$0xff] %v13093_v56  ;;  %v5657_v39 = vsel %vm1272_vm4, %v13093_v56, 0.0  ;;  %v5740_v20 = vmul.f32 %v13093_v56, %v13093_v56 }
 0x6e1   :  { %v5658_v28 = vadd.f32 %v5657_v39, %v5656_v36  ;;  %v5857_v6 = vsel %vm1272_vm4, %v5741_v47, 0.0 }
 0x6e2   :  { %v5855_v4 = vsel %vm1272_vm4, %v5740_v20, 0.0 }
 0x6e3   :  { %v5856_v17 = vadd.f32 %v5855_v4, %v5854_v7  ;;  %v5660_v16 = vadd.f32 %v5659_v63, %v5658_v28 }
 0x6e4   :  { %v6774_v9 = vpop.f32.mrb[52].mxu1 }
 0x6e5   :  { %v13109_v12 = vadd.f32 %v6774_v9, %v12628_v29  ;;  %v5505_v11 = vpop.f32.mrb[53].mxu1  ;;  %v5858_v61 = vadd.f32 %v5857_v6, %v5856_v17 }
 0x6e6   :  { %v13114_v23 = vadd.f32 %v12628_v29, %v5505_v11 }
 0x6e7   :  { %15131 = vst [vmem:[#allocation31_spill] sm:$0xff] %v13109_v12  ;;  %v5743_v1 = vmul.f32 %v13109_v12, %v13109_v12  ;;  %v5663_v4 = vsel %vm1272_vm4, %v13109_v12, 0.0 }
 0x6e8   :  { %v5661_v39 = vsel %vm1272_vm4, %v13114_v23, 0.0  ;;  %v5742_v20 = vmul.f32 %v13114_v23, %v13114_v23 }
 0x6e9   :  { %v5662_v36 = vadd.f32 %v5661_v39, %v5660_v16  ;;  %v5861_v28 = vsel %vm1272_vm4, %v5743_v1, 0.0 }
 0x6ea   :  { %v5859_v11 = vsel %vm1272_vm4, %v5742_v20, 0.0 }
 0x6eb   :  { %v5860_v7 = vadd.f32 %v5859_v11, %v5858_v61  ;;  %v5664_v63 = vadd.f32 %v5663_v4, %v5662_v36 }
 0x6ec   :  { %v6777_v47 = vpop.f32.mrb[54].mxu1 }
 0x6ed   :  { %v13128_v9 = vadd.f32 %v6777_v47, %v12628_v29  ;;  %v5515_v35 = vpop.f32.mrb[55].mxu1  ;;  %v5862_v56 = vadd.f32 %v5861_v28, %v5860_v7 }
 0x6ee   :  { %v13131_v45 = vadd.f32 %v12628_v29, %v5515_v35 }
 0x6ef   :  { %15132 = vst [vmem:[#allocation41_spill] sm:$0xff] %v13128_v9  ;;  %v5745_v17 = vmul.f32 %v13128_v9, %v13128_v9  ;;  %v5667_v1 = vsel %vm1272_vm4, %v13128_v9, 0.0  ;;  %v15161_v9 = vld [vmem:[#allocation37_spill] sm:$0xff] }
 0x6f0   :  { %15133 = vst [vmem:[#allocation19_spill] sm:$0xff] %v13131_v45  ;;  %v5665_v16 = vsel %vm1272_vm4, %v13131_v45, 0.0  ;;  %v5744_v6 = vmul.f32 %v13131_v45, %v13131_v45  ;;  %v15162_v45 = vld [vmem:[#allocation4_spill] sm:$0xff] }
 0x6f1   :  { %v5666_v39 = vadd.f32 %v5665_v16, %v5664_v63  ;;  %v5865_v35 = vsel %vm1272_vm4, %v5745_v17, 0.0 }
 0x6f2   :  { %v5863_v20 = vsel %vm1272_vm4, %v5744_v6, 0.0 }
 0x6f3   :  { %v5864_v36 = vadd.f32 %v5863_v20, %v5862_v56  ;;  %v5668_v61 = vadd.f32 %v5667_v1, %v5666_v39 }
 0x6f4   :  { %v6780_v4 = vpop.f32.mrb[56].mxu1 }
 0x6f5   :  { %v13144_v11 = vadd.f32 %v6780_v4, %v12628_v29  ;;  %v5525_v7 = vpop.f32.mrb[57].mxu1  ;;  %v5866_v28 = vadd.f32 %v5865_v35, %v5864_v36 }
 0x6f6   :  { %v13147_v47 = vadd.f32 %v12628_v29, %v5525_v7 }
 0x6f7   :  { %15134 = vst [vmem:[#allocation57_spill] sm:$0xff] %v13144_v11  ;;  %v5747_v63 = vmul.f32 %v13144_v11, %v13144_v11  ;;  %v5671_v17 = vsel %vm1272_vm4, %v13144_v11, 0.0 }
 0x6f8   :  { %15135 = vst [vmem:[#allocation62_spill] sm:$0xff] %v13147_v47  ;;  %v5669_v16 = vsel %vm1272_vm4, %v13147_v47, 0.0  ;;  %v5746_v56 = vmul.f32 %v13147_v47, %v13147_v47  ;;  %v15160_v47 = vld [vmem:[#allocation56_spill] sm:$0xff] }
 0x6f9   :  { %v5670_v6 = vadd.f32 %v5669_v16, %v5668_v61  ;;  %v5869_v36 = vsel %vm1272_vm4, %v5747_v63, 0.0 }
 0x6fa   :  { %v5867_v39 = vsel %vm1272_vm4, %v5746_v56, 0.0 }
 0x6fb   :  { %v5868_v1 = vadd.f32 %v5867_v39, %v5866_v28  ;;  %v5672_v20 = vadd.f32 %v5671_v17, %v5670_v6 }
 0x6fc   :  { %v6783_v35 = vpop.f32.mrb[58].mxu1 }
 0x6fd   :  { %v13160_v4 = vadd.f32 %v6783_v35, %v12628_v29  ;;  %v5535_v7 = vpop.f32.mrb[59].mxu1  ;;  %v5870_v62 = vadd.f32 %v5869_v36, %v5868_v1 }
 0x6fe   :  { %v13163_v40 = vadd.f32 %v12628_v29, %v5535_v7 }
 0x6ff   :  { %15136 = vst [vmem:[#allocation32_spill] sm:$0xff] %v13160_v4  ;;  %v5749_v61 = vmul.f32 %v13160_v4, %v13160_v4  ;;  %v5675_v6 = vsel %vm1272_vm4, %v13160_v4, 0.0 }
 0x700   :  { %15137 = vst [vmem:[#allocation40_spill] sm:$0xff] %v13163_v40  ;;  %v5673_v16 = vsel %vm1272_vm4, %v13163_v40, 0.0  ;;  %v5748_v28 = vmul.f32 %v13163_v40, %v13163_v40 }
 0x701   :  { %v5674_v56 = vadd.f32 %v5673_v16, %v5672_v20  ;;  %v6786_v63 = vpop.f32.mrb[60].mxu1  ;;  %v5873_v18 = vsel %vm1272_vm4, %v5749_v61, 0.0 }
 0x702   :  { %v5871_v17 = vsel %vm1272_vm4, %v5748_v28, 0.0  ;;  %v13175_v39 = vadd.f32 %v6786_v63, %v12628_v29  ;;  %v5545_v1 = vpop.f32.mrb[61].mxu1 }
 0x703   :  { %v5872_v36 = vadd.f32 %v5871_v17, %v5870_v62  ;;  %v13178_v35 = vadd.f32 %v12628_v29, %v5545_v1  ;;  %v5676_v7 = vadd.f32 %v5675_v6, %v5674_v56 }
 0x704   :  { %15138 = vst [vmem:[#allocation9_spill] sm:$0xff] %v13175_v39  ;;  %v5751_v20 = vmul.f32 %v13175_v39, %v13175_v39  ;;  %v5679_v62 = vsel %vm1272_vm4, %v13175_v39, 0.0 }
 0x705   :  { %15139 = vst [vmem:[#allocation66_spill] sm:$0xff] %v13178_v35  ;;  %v5677_v16 = vsel %vm1272_vm4, %v13178_v35, 0.0  ;;  %v5750_v28 = vmul.f32 %v13178_v35, %v13178_v35  ;;  %v5874_v19 = vadd.f32 %v5873_v18, %v5872_v36 }
 0x706   :  { %v5678_v63 = vadd.f32 %v5677_v16, %v5676_v7  ;;  %v5877_v61 = vsel %vm1272_vm4, %v5751_v20, 0.0 }
 0x707   :  { %v5875_v29 = vsel %vm1272_vm4, %v5750_v28, 0.0 }
 0x708   :  { %v5680_v17 = vadd.f32 %v5679_v62, %v5678_v63  ;;  %v5876_v56 = vadd.f32 %v5875_v29, %v5874_v19 }
 0x70a   :  { %v5681_v6 = vrot.slane %v5680_v17, 4  ;;  %v5878_v1 = vadd.f32 %v5877_v61, %v5876_v56 }
 0x70c   :  { %v5682_v3 = vadd.f32 %v5681_v6, %v5680_v17  ;;  %v5879_v24 = vrot.slane %v5878_v1, 4 }
 0x70e   :  { %v5683_v51 = vrot.slane %v5682_v3, 2  ;;  %v5880_v52 = vadd.f32 %v5879_v24, %v5878_v1 }
 0x710   :  { %v5684_v55 = vadd.f32 %v5683_v51, %v5682_v3  ;;  %v5881_v58 = vrot.slane %v5880_v52, 2 }
 0x712   :  { %v5685_v41 = vrot.slane %v5684_v55, 1  ;;  %v5882_v18 = vadd.f32 %v5881_v58, %v5880_v52 }
 0x714   :  { %v5686_v36 = vadd.f32 %v5685_v41, %v5684_v55  ;;  %v5883_v7 = vrot.slane %v5882_v18, 1 }
 0x716   :  { %v13191_v16 = vmul.f32 0.001953125, %v5686_v36  ;;  %v5884_v34 = vadd.f32 %v5883_v7, %v5882_v18 }
 0x718   :  { %v5885_v28 = vmul.f32 0.001953125, %v5884_v34  ;;  %v5886_v19 = vmul.f32 %v13191_v16, %v13191_v16  ;;  %v5895_v7 = vsub.f32 %v12696_v31, %v13191_v16  ;;  %v5898_v61 = vsub.f32 %v12725_v50, %v13191_v16 }
 0x719   :  { %v5899_v6 = vsub.f32 %v12736_v27, %v13191_v16  ;;  %v5900_v1 = vsub.f32 %v12743_v38, %v13191_v16  ;;  %v5902_v31 = vsub.f32 %v12764_v25, %v13191_v16  ;;  %v5905_v50 = vsub.f32 %v12797_v2, %v13191_v16 }
 0x71a   :  { %v5887_v20 = vsub.f32 %v5885_v28, %v5886_v19  ;;  %v5896_v28 = vsub.f32 %v12703_v44, %v13191_v16  ;;  %v5897_v19 = vsub.f32 %v12718_v15, %v13191_v16  ;;  %v5903_v44 = vsub.f32 %v12775_v10, %v13191_v16 }
 0x71b   :  { %v5904_v15 = vsub.f32 %v12781_v57, %v13191_v16  ;;  %v5906_v27 = vsub.f32 %v12803_v0, %v13191_v16  ;;  %v5907_v38 = vsub.f32 %v12815_v32, %v13191_v16  ;;  %v5909_v25 = vsub.f32 %v12833_v43, %v13191_v16 }
 0x71c   :  { %v5952_v36 = vadd.f32 1e-05, %v5887_v20  ;;  %v5901_v20 = vsub.f32 %v12758_v54, %v13191_v16  ;;  %v5908_v54 = vsub.f32 %v12821_v59, %v13191_v16  ;;  %v5910_v10 = vsub.f32 %v12839_v53, %v13191_v16 }
 0x71d   :  { %v5911_v57 = vsub.f32 %v12853_v14, %v13191_v16  ;;  %v5912_v2 = vsub.f32 %v12859_v8, %v13191_v16  ;;  %v5913_v0 = vsub.f32 %v12871_v26, %v13191_v16  ;;  %v5914_v32 = vsub.f32 %v12877_v13, %v13191_v16  ;;  %v15140_v8 = vld [vmem:[#allocation26_spill] sm:$0xff]  ;;  %v15141_v26 = vld [vmem:[#allocation25_spill] sm:$0xff]  ;;  %v15142_v13 = vld [vmem:[#allocation44_spill] sm:$0xff] }
 0x71e   :  { %6830 = vrsqrt.f32 %v5952_v36  ;;  %v5915_v59 = vsub.f32 %v12889_v42, %v13191_v16  ;;  %v5916_v43 = vsub.f32 %v12895_v22, %v13191_v16  ;;  %v5917_v53 = vsub.f32 %v12907_v5, %v13191_v16  ;;  %v15143_v42 = vld [vmem:[#allocation13_spill] sm:$0xff]  ;;  %v15144_v22 = vld [vmem:[#allocation50_spill] sm:$0xff]  ;;  %v15145_v5 = vld [vmem:[#allocation48_spill] sm:$0xff] }
 0x71f   :  { %v5918_v14 = vsub.f32 %v12912_v46, %v13191_v16  ;;  %v5919_v36 = vsub.f32 %v15140_v8, %v13191_v16  ;;  %v5920_v18 = vsub.f32 %v15141_v26, %v13191_v16  ;;  %v5921_v56 = vsub.f32 %v15142_v13, %v13191_v16  ;;  %v15146_v46 = vld [vmem:[#allocation34_spill] sm:$0xff]  ;;  %v15147_v8 = vld [vmem:[#allocation49_spill] sm:$0xff]  ;;  %v15148_v26 = vld [vmem:[#allocation43_spill] sm:$0xff] }
 0x720   :  { %v5922_v17 = vsub.f32 %v15143_v42, %v13191_v16  ;;  %v5923_v29 = vsub.f32 %v15144_v22, %v13191_v16  ;;  %v5924_v62 = vsub.f32 %v15145_v5, %v13191_v16  ;;  %v5925_v3 = vsub.f32 %v15146_v46, %v13191_v16  ;;  %v15149_v13 = vld [vmem:[#allocation35_spill] sm:$0xff]  ;;  %v15150_v42 = vld [vmem:[#allocation53_spill] sm:$0xff]  ;;  %v15151_v22 = vld [vmem:[#allocation12_spill] sm:$0xff] }
 0x721   :  { %v5926_v52 = vsub.f32 %v15147_v8, %v13191_v16  ;;  %v5927_v55 = vsub.f32 %v15148_v26, %v13191_v16  ;;  %v5928_v34 = vsub.f32 %v15149_v13, %v13191_v16  ;;  %v5929_v58 = vsub.f32 %v15150_v42, %v13191_v16  ;;  %v15152_v5 = vld [vmem:[#allocation54_spill] sm:$0xff]  ;;  %v15153_v46 = vld [vmem:[#allocation16_spill] sm:$0xff]  ;;  %v15154_v8 = vld [vmem:[#allocation21_spill] sm:$0xff] }
 0x722   :  { %v5930_v41 = vsub.f32 %v15151_v22, %v13191_v16  ;;  %v5931_v51 = vsub.f32 %v15152_v5, %v13191_v16  ;;  %v5932_v24 = vsub.f32 %v15153_v46, %v13191_v16  ;;  %v5933_v63 = vsub.f32 %v15154_v8, %v13191_v16  ;;  %v15155_v26 = vld [vmem:[#allocation51_spill] sm:$0xff]  ;;  %v15156_v13 = vld [vmem:[#allocation20_spill] sm:$0xff] }
 0x723   :  { %v5934_v39 = vsub.f32 %v15155_v26, %v13191_v16  ;;  %v5935_v35 = vsub.f32 %v15156_v13, %v13191_v16  ;;  %v15157_v42 = vld [vmem:[#allocation55_spill] sm:$0xff]  ;;  %v15158_v22 = vld [vmem:[#allocation52_spill] sm:$0xff]  ;;  %v5939_v8 = vsub.f32 %v15160_v47, %v13191_v16  ;;  %v5940_v26 = vsub.f32 %v15161_v9, %v13191_v16 }
 0x724   :  { %v5936_v4 = vsub.f32 %v15157_v42, %v13191_v16  ;;  %v5937_v40 = vsub.f32 %v15158_v22, %v13191_v16  ;;  %v15159_v5 = vld [vmem:[#allocation15_spill] sm:$0xff]  ;;  %v5941_v13 = vsub.f32 %v15162_v45, %v13191_v16  ;;  %v15163_v42 = vsub.f32 %v12636_v60, %v13191_v16 }
 0x725   :  { %v5938_v46 = vsub.f32 %v15159_v5, %v13191_v16  ;;  %v15164_v22 = vsub.f32 %v12632_v21, %v13191_v16  ;;  %v15165_v47 = vsub.f32 %v12640_v49, %v13191_v16  ;;  %v15166_v45 = vsub.f32 %v12656_v37, %v13191_v16 }
 0x728   :  { %v13315_v11 = vpop.eup %6830 }
 0x729   :  { %v13329_v12 = vmul.f32 %v13315_v11, %v15163_v42  ;;  %v13335_v5 = vmul.f32 %v13315_v11, %v15164_v22  ;;  %v13341_v9 = vmul.f32 %v13315_v11, %v15165_v47  ;;  %v13347_v60 = vmul.f32 %v13315_v11, %v15166_v45 }
 0x72a   :  { %v15167_v42 = vsub.f32 %v12663_v48, %v13191_v16  ;;  %v15168_v22 = vsub.f32 %v12678_v33, %v13191_v16  ;;  %v15169_v47 = vsub.f32 %v12685_v30, %v13191_v16  ;;  %v13368_v45 = vmul.f32 %v13315_v11, %v5895_v7 }
 0x72b   :  { %v13371_v48 = vmul.f32 %v13315_v11, %v5896_v28  ;;  %v13377_v33 = vmul.f32 %v13315_v11, %v5898_v61  ;;  %v13383_v30 = vmul.f32 %v13315_v11, %v5900_v1  ;;  %v13389_v7 = vmul.f32 %v13315_v11, %v5902_v31 }
 0x72c   :  { %v13353_v21 = vmul.f32 %v13315_v11, %v15167_v42  ;;  %v13359_v49 = vmul.f32 %v13315_v11, %v15168_v22  ;;  %v13365_v37 = vmul.f32 %v13315_v11, %v15169_v47  ;;  %v13374_v42 = vmul.f32 %v13315_v11, %v5897_v19 }
 0x72d   :  { %v13380_v22 = vmul.f32 %v13315_v11, %v5899_v6  ;;  %v13386_v47 = vmul.f32 %v13315_v11, %v5901_v20  ;;  %v13392_v28 = vmul.f32 %v13315_v11, %v5903_v44  ;;  %v13395_v19 = vmul.f32 %v13315_v11, %v5904_v15 }
 0x72e   :  { %v13398_v61 = vmul.f32 %v13315_v11, %v5905_v50  ;;  %v13401_v6 = vmul.f32 %v13315_v11, %v5906_v27  ;;  %v13404_v1 = vmul.f32 %v13315_v11, %v5907_v38  ;;  %v13407_v20 = vmul.f32 %v13315_v11, %v5908_v54 }
 0x72f   :  { %v13410_v31 = vmul.f32 %v13315_v11, %v5909_v25  ;;  %v13413_v44 = vmul.f32 %v13315_v11, %v5910_v10  ;;  %v13416_v15 = vmul.f32 %v13315_v11, %v5911_v57  ;;  %v13419_v50 = vmul.f32 %v13315_v11, %v5912_v2 }
 0x730   :  { %v13422_v27 = vmul.f32 %v13315_v11, %v5913_v0  ;;  %v13425_v38 = vmul.f32 %v13315_v11, %v5914_v32  ;;  %v13428_v54 = vmul.f32 %v13315_v11, %v5915_v59  ;;  %v13431_v25 = vmul.f32 %v13315_v11, %v5916_v43 }
 0x731   :  { %v13434_v10 = vmul.f32 %v13315_v11, %v5917_v53  ;;  %v13437_v57 = vmul.f32 %v13315_v11, %v5918_v14  ;;  %v13440_v2 = vmul.f32 %v13315_v11, %v5919_v36  ;;  %v13443_v0 = vmul.f32 %v13315_v11, %v5920_v18 }
 0x732   :  { %v13446_v32 = vmul.f32 %v13315_v11, %v5921_v56  ;;  %v13449_v59 = vmul.f32 %v13315_v11, %v5922_v17  ;;  %v13452_v43 = vmul.f32 %v13315_v11, %v5923_v29  ;;  %v13455_v53 = vmul.f32 %v13315_v11, %v5924_v62 }
 0x733   :  { %v13458_v14 = vmul.f32 %v13315_v11, %v5925_v3  ;;  %v13461_v36 = vmul.f32 %v13315_v11, %v5926_v52  ;;  %v13464_v18 = vmul.f32 %v13315_v11, %v5927_v55  ;;  %v13467_v56 = vmul.f32 %v13315_v11, %v5928_v34 }
 0x734   :  { %v13470_v17 = vmul.f32 %v13315_v11, %v5929_v58  ;;  %v13473_v29 = vmul.f32 %v13315_v11, %v5930_v41  ;;  %v13476_v62 = vmul.f32 %v13315_v11, %v5931_v51  ;;  %v13479_v3 = vmul.f32 %v13315_v11, %v5932_v24 }
 0x735   :  { %v13482_v52 = vmul.f32 %v13315_v11, %v5933_v63  ;;  %v13485_v55 = vmul.f32 %v13315_v11, %v5934_v39  ;;  %v13488_v34 = vmul.f32 %v13315_v11, %v5935_v35  ;;  %v13491_v58 = vmul.f32 %v13315_v11, %v5936_v4  ;;  %v13505_v39 = vld [vmem:[%s14417_s7] ss:$0 sm:$0xff] }
 0x736   :  { %v13494_v41 = vmul.f32 %v13315_v11, %v5937_v40  ;;  %v13497_v51 = vmul.f32 %v13315_v11, %v5938_v46  ;;  %v13500_v24 = vmul.f32 %v13315_v11, %v5939_v8  ;;  %v13508_v35 = vmul.f32 %v13315_v11, %v5940_v26  ;;  %v15176_v46 = vld [vmem:[#allocation31_spill] sm:$0xff] }
 0x737   :  { %v13511_v4 = vmul.f32 %v13315_v11, %v5941_v13  ;;  %v15174_v40 = vsub.f32 %v13114_v23, %v13191_v16  ;;  %v15177_v8 = vsub.f32 %v15176_v46, %v13191_v16  ;;  %v15182_v13 = vld [vmem:[#allocation41_spill] sm:$0xff] }
 0x738   :  { %15170 = vst [vmem:[#allocation14_spill] sm:$0xff] %v13494_v41  ;;  %15171 = vst [vmem:[#allocation24_spill] sm:$0xff] %v13497_v51  ;;  %v15179_v51 = vld [vmem:[#allocation19_spill] sm:$0xff] }
 0x739   :  { %15172 = vst [vmem:[#allocation23_spill] sm:$0xff] %v13500_v24  ;;  %15173 = vst [vmem:[#allocation58_spill] sm:$0xff] %v13511_v4  ;;  %v13517_v63 = vmul.f32 %v13315_v11, %v15174_v40  ;;  %v13523_v24 = vmul.f32 %v13315_v11, %v15177_v8  ;;  %v15180_v41 = vsub.f32 %v15179_v51, %v13191_v16  ;;  %v15185_v40 = vld [vmem:[#allocation62_spill] sm:$0xff]  ;;  %v15188_v8 = vld [vmem:[#allocation57_spill] sm:$0xff] }
 0x73a   :  { %v15183_v4 = vsub.f32 %v15182_v13, %v13191_v16 }
 0x73b   :  { %15175 = vst [vmem:[#allocation6_spill] sm:$0xff] %v13517_v63  ;;  %15178 = vst [vmem:[#allocation29_spill] sm:$0xff] %v13523_v24  ;;  %v13529_v26 = vmul.f32 %v13315_v11, %v15180_v41  ;;  %v15186_v63 = vsub.f32 %v15185_v40, %v13191_v16  ;;  %v15189_v24 = vsub.f32 %v15188_v8, %v13191_v16  ;;  %v15191_v41 = vld [vmem:[#allocation40_spill] sm:$0xff] }
 0x73c   :  { %v13535_v23 = vmul.f32 %v13315_v11, %v15183_v4  ;;  %v15193_v4 = vld [vmem:[#allocation32_spill] sm:$0xff] }
 0x73d   :  { %15181 = vst [vmem:[#allocation2_spill] sm:$0xff] %v13529_v26  ;;  %v13541_v46 = vmul.f32 %v13315_v11, %v15186_v63  ;;  %v13547_v51 = vmul.f32 %v13315_v11, %v15189_v24  ;;  %v15192_v26 = vsub.f32 %v15191_v41, %v13191_v16  ;;  %v15195_v63 = vld [vmem:[#allocation66_spill] sm:$0xff]  ;;  %v15197_v24 = vld [vmem:[#allocation9_spill] sm:$0xff] }
 0x73e   :  { %15184 = vst [vmem:[#allocation63_spill] sm:$0xff] %v13535_v23  ;;  %v15194_v23 = vsub.f32 %v15193_v4, %v13191_v16  ;;  %v13583_v4 = vmul.f32 %v13505_v39, %v13341_v9  ;;  %v13607_v9 = vmul.f32 %v13505_v39, %v13371_v48  ;;  %v13631_v48 = vmul.f32 %v13505_v39, %v13389_v7 }
 0x73f   :  { %15187 = vst [vmem:[#allocation64_spill] sm:$0xff] %v13541_v46  ;;  %15190 = vst [vmem:[#allocation17_spill] sm:$0xff] %v13547_v51  ;;  %v13553_v13 = vmul.f32 %v13315_v11, %v15192_v26  ;;  %v15196_v46 = vsub.f32 %v15195_v63, %v13191_v16  ;;  %v15198_v51 = vsub.f32 %v15197_v24, %v13191_v16 }
 0x740   :  { %v13559_v40 = vmul.f32 %v13315_v11, %v15194_v23  ;;  %v13575_v26 = vmul.f32 %v13505_v39, %v13329_v12  ;;  %v13579_v23 = vmul.f32 %v13505_v39, %v13335_v5  ;;  %v13595_v12 = vmul.f32 %v13505_v39, %v13359_v49  ;;  %v15205_v63 = vld [vmem:[#allocation23_spill] sm:$0xff]  ;;  %v15208_v24 = vld [vmem:[#allocation58_spill] sm:$0xff] }
 0x741   :  { %v13565_v8 = vmul.f32 %v13315_v11, %v15196_v46  ;;  %v13571_v41 = vmul.f32 %v13315_v11, %v15198_v51  ;;  %v13587_v46 = vmul.f32 %v13505_v39, %v13347_v60  ;;  %v13591_v11 = vmul.f32 %v13505_v39, %v13353_v21  ;;  %v15203_v51 = vld [vmem:[#allocation24_spill] sm:$0xff] }
 0x742   :  { %v13599_v16 = vmul.f32 %v13505_v39, %v13365_v37  ;;  %v13603_v5 = vmul.f32 %v13505_v39, %v13368_v45  ;;  %v13611_v60 = vmul.f32 %v13505_v39, %v13374_v42  ;;  %v13615_v21 = vmul.f32 %v13505_v39, %v13377_v33 }
 0x743   :  { %v13619_v49 = vmul.f32 %v13505_v39, %v13380_v22  ;;  %v13623_v37 = vmul.f32 %v13505_v39, %v13383_v30  ;;  %v13627_v45 = vmul.f32 %v13505_v39, %v13386_v47  ;;  %v13635_v42 = vmul.f32 %v13505_v39, %v13392_v28 }
 0x744   :  { %v13639_v33 = vmul.f32 %v13505_v39, %v13395_v19  ;;  %v13643_v22 = vmul.f32 %v13505_v39, %v13398_v61  ;;  %v13647_v30 = vmul.f32 %v13505_v39, %v13401_v6  ;;  %v13651_v47 = vmul.f32 %v13505_v39, %v13404_v1 }
 0x745   :  { %v13655_v7 = vmul.f32 %v13505_v39, %v13407_v20  ;;  %v13659_v28 = vmul.f32 %v13505_v39, %v13410_v31  ;;  %v13663_v19 = vmul.f32 %v13505_v39, %v13413_v44  ;;  %v13667_v61 = vmul.f32 %v13505_v39, %v13416_v15 }
 0x746   :  { %v13671_v6 = vmul.f32 %v13505_v39, %v13419_v50  ;;  %v13675_v1 = vmul.f32 %v13505_v39, %v13422_v27  ;;  %v13679_v20 = vmul.f32 %v13505_v39, %v13425_v38  ;;  %v13683_v31 = vmul.f32 %v13505_v39, %v13428_v54 }
 0x747   :  { %v13687_v44 = vmul.f32 %v13505_v39, %v13431_v25  ;;  %v13691_v15 = vmul.f32 %v13505_v39, %v13434_v10  ;;  %v13695_v50 = vmul.f32 %v13505_v39, %v13437_v57  ;;  %v13699_v27 = vmul.f32 %v13505_v39, %v13440_v2 }
 0x748   :  { %v13703_v38 = vmul.f32 %v13505_v39, %v13443_v0  ;;  %v13707_v54 = vmul.f32 %v13505_v39, %v13446_v32  ;;  %v13711_v25 = vmul.f32 %v13505_v39, %v13449_v59  ;;  %v13715_v10 = vmul.f32 %v13505_v39, %v13452_v43 }
 0x749   :  { %v13719_v57 = vmul.f32 %v13505_v39, %v13455_v53  ;;  %v13723_v2 = vmul.f32 %v13505_v39, %v13458_v14  ;;  %v13727_v0 = vmul.f32 %v13505_v39, %v13461_v36  ;;  %v13731_v32 = vmul.f32 %v13505_v39, %v13464_v18 }
 0x74a   :  { %v13735_v59 = vmul.f32 %v13505_v39, %v13467_v56  ;;  %v13739_v43 = vmul.f32 %v13505_v39, %v13470_v17  ;;  %v13743_v53 = vmul.f32 %v13505_v39, %v13473_v29  ;;  %v13747_v14 = vmul.f32 %v13505_v39, %v13476_v62  ;;  %v15201_v62 = vld [vmem:[#allocation14_spill] sm:$0xff] }
 0x74b   :  { %v13751_v36 = vmul.f32 %v13505_v39, %v13479_v3  ;;  %v13755_v18 = vmul.f32 %v13505_v39, %v13482_v52  ;;  %v13759_v56 = vmul.f32 %v13505_v39, %v13485_v55  ;;  %v13763_v17 = vmul.f32 %v13505_v39, %v13488_v34  ;;  %v13784_v34 = vld [vmem:[%s14418_s8] ss:$0 sm:$0xff] }
 0x74c   :  { %v13767_v29 = vmul.f32 %v13505_v39, %v13491_v58  ;;  %v13771_v3 = vmul.f32 %v13505_v39, %v15201_v62  ;;  %v13775_v52 = vmul.f32 %v13505_v39, %v15203_v51  ;;  %v13779_v55 = vmul.f32 %v13505_v39, %v15205_v63 }
 0x74d   :  { %15199 = vst [vmem:[#allocation36_spill] sm:$0xff] %v13763_v17  ;;  %v13788_v58 = vmul.f32 %v13505_v39, %v13508_v35  ;;  %v13792_v62 = vmul.f32 %v13505_v39, %v15208_v24  ;;  %v15213_v17 = vld [vmem:[#allocation63_spill] sm:$0xff] }
 0x74e   :  { %15200 = vst [vmem:[#allocation59_spill] sm:$0xff] %v13767_v29  ;;  %15202 = vst [vmem:[#allocation11_spill] sm:$0xff] %v13771_v3  ;;  %v15210_v3 = vld [vmem:[#allocation6_spill] sm:$0xff]  ;;  %v13808_v35 = vmul.f32 %v13505_v39, %v15213_v17  ;;  %v13828_v17 = vmul.f32 %v13505_v39, %v13565_v8  ;;  %v13848_v8 = vadd.f32 %v13784_v34, %v13587_v46 }
 0x74f   :  { %15204 = vst [vmem:[#allocation65_spill] sm:$0xff] %v13775_v52  ;;  %15206 = vst [vmem:[#allocation3_spill] sm:$0xff] %v13779_v55  ;;  %v13796_v51 = vmul.f32 %v13505_v39, %v15210_v3  ;;  %v15211_v52 = vld [vmem:[#allocation29_spill] sm:$0xff]  ;;  %v15212_v55 = vld [vmem:[#allocation2_spill] sm:$0xff]  ;;  %v13872_v46 = vadd.f32 %v13784_v34, %v13611_v60  ;;  %v13896_v60 = vadd.f32 %v13784_v34, %v13635_v42 }
 0x750   :  { %15207 = vst [vmem:[#allocation45_spill] sm:$0xff] %v13788_v58  ;;  %15209 = vst [vmem:[#allocation60_spill] sm:$0xff] %v13792_v62  ;;  %v13800_v63 = vmul.f32 %v13505_v39, %v15211_v52  ;;  %v13804_v29 = vmul.f32 %v13505_v39, %v15212_v55  ;;  %v15214_v58 = vld [vmem:[#allocation64_spill] sm:$0xff]  ;;  %v15215_v62 = vld [vmem:[#allocation17_spill] sm:$0xff]  ;;  %v13820_v52 = vmul.f32 %v13505_v39, %v13553_v13 }
 0x751   :  { %v13812_v24 = vmul.f32 %v13505_v39, %v15214_v58  ;;  %v13816_v3 = vmul.f32 %v13505_v39, %v15215_v62  ;;  %v13824_v55 = vmul.f32 %v13505_v39, %v13559_v40  ;;  %v13832_v58 = vmul.f32 %v13505_v39, %v13571_v41 }
 0x752   :  { %v13836_v62 = vadd.f32 %v13784_v34, %v13575_v26  ;;  %v13840_v13 = vadd.f32 %v13784_v34, %v13579_v23  ;;  %v13844_v40 = vadd.f32 %v13784_v34, %v13583_v4  ;;  %v13852_v39 = vadd.f32 %v13784_v34, %v13591_v11 }
 0x753   :  { %v13856_v41 = vadd.f32 %v13784_v34, %v13595_v12  ;;  %v13860_v26 = vadd.f32 %v13784_v34, %v13599_v16  ;;  %v13864_v23 = vadd.f32 %v13784_v34, %v13603_v5  ;;  %v13868_v4 = vadd.f32 %v13784_v34, %v13607_v9 }
 0x754   :  { %v13876_v11 = vadd.f32 %v13784_v34, %v13615_v21  ;;  %v13880_v12 = vadd.f32 %v13784_v34, %v13619_v49  ;;  %v13884_v16 = vadd.f32 %v13784_v34, %v13623_v37  ;;  %v13888_v5 = vadd.f32 %v13784_v34, %v13627_v45 }
 0x755   :  { %v13892_v9 = vadd.f32 %v13784_v34, %v13631_v48  ;;  %v13900_v21 = vadd.f32 %v13784_v34, %v13639_v33  ;;  %v13904_v49 = vadd.f32 %v13784_v34, %v13643_v22  ;;  %v13908_v37 = vadd.f32 %v13784_v34, %v13647_v30 }
 0x756   :  { %v13912_v45 = vadd.f32 %v13784_v34, %v13651_v47  ;;  %v13916_v48 = vadd.f32 %v13784_v34, %v13655_v7  ;;  %v13920_v42 = vadd.f32 %v13784_v34, %v13659_v28  ;;  %v13924_v33 = vadd.f32 %v13784_v34, %v13663_v19 }
 0x757   :  { %v13928_v22 = vadd.f32 %v13784_v34, %v13667_v61  ;;  %v13932_v30 = vadd.f32 %v13784_v34, %v13671_v6  ;;  %v13936_v47 = vadd.f32 %v13784_v34, %v13675_v1  ;;  %v13940_v7 = vadd.f32 %v13784_v34, %v13679_v20 }
 0x758   :  { %v13944_v28 = vadd.f32 %v13784_v34, %v13683_v31  ;;  %v13948_v19 = vadd.f32 %v13784_v34, %v13687_v44  ;;  %v13952_v61 = vadd.f32 %v13784_v34, %v13691_v15  ;;  %v13956_v6 = vadd.f32 %v13784_v34, %v13695_v50 }
 0x759   :  { %v13960_v1 = vadd.f32 %v13784_v34, %v13699_v27  ;;  %v13964_v20 = vadd.f32 %v13784_v34, %v13703_v38  ;;  %v13968_v31 = vadd.f32 %v13784_v34, %v13707_v54  ;;  %v13972_v44 = vadd.f32 %v13784_v34, %v13711_v25 }
 0x75a   :  { %v13976_v15 = vadd.f32 %v13784_v34, %v13715_v10  ;;  %v13980_v50 = vadd.f32 %v13784_v34, %v13719_v57  ;;  %v13984_v27 = vadd.f32 %v13784_v34, %v13723_v2  ;;  %v13988_v38 = vadd.f32 %v13784_v34, %v13727_v0 }
 0x75b   :  { %v13992_v54 = vadd.f32 %v13784_v34, %v13731_v32  ;;  %v13996_v25 = vadd.f32 %v13784_v34, %v13735_v59  ;;  %v14000_v10 = vadd.f32 %v13784_v34, %v13739_v43  ;;  %v14004_v57 = vadd.f32 %v13784_v34, %v13743_v53  ;;  %v15221_v43 = vld [vmem:[#allocation36_spill] sm:$0xff] }
 0x75c   :  { %v14008_v2 = vadd.f32 %v13784_v34, %v13747_v14  ;;  %v14012_v0 = vadd.f32 %v13784_v34, %v13751_v36  ;;  %v14016_v32 = vadd.f32 %v13784_v34, %v13755_v18  ;;  %v14020_v59 = vadd.f32 %v13784_v34, %v13759_v56 }
 0x75d   :  { %15216 = vst [vmem:[#allocation7_spill] sm:$0xff] %v14004_v57  ;;  %v14024_v53 = vadd.f32 %v13784_v34, %v15221_v43  ;;  %v15223_v57 = vld [vmem:[#allocation59_spill] sm:$0xff] }
 0x75e   :  { %15217 = vst [vmem:[#allocation67_spill] sm:$0xff] %v14008_v2  ;;  %15218 = vst [vmem:[#allocation33_spill] sm:$0xff] %v14012_v0  ;;  %v14028_v14 = vadd.f32 %v13784_v34, %v15223_v57  ;;  %v15224_v2 = vld [vmem:[#allocation11_spill] sm:$0xff]  ;;  %v15225_v0 = vld [vmem:[#allocation65_spill] sm:$0xff] }
 0x75f   :  { %15219 = vst [vmem:[#allocation27_spill] sm:$0xff] %v14016_v32  ;;  %15220 = vst [vmem:[#allocation10_spill] sm:$0xff] %v14020_v59  ;;  %v14032_v36 = vadd.f32 %v13784_v34, %v15224_v2  ;;  %v14036_v18 = vadd.f32 %v13784_v34, %v15225_v0  ;;  %v15226_v32 = vld [vmem:[#allocation3_spill] sm:$0xff]  ;;  %v15227_v59 = vld [vmem:[#allocation45_spill] sm:$0xff]  ;;  %v14052_v2 = vadd.f32 %v13784_v34, %v13796_v51 }
 0x760   :  { %15222 = vst [vmem:[#allocation46_spill] sm:$0xff] %v14024_v53  ;;  %v14040_v56 = vadd.f32 %v13784_v34, %v15226_v32  ;;  %v14044_v43 = vadd.f32 %v13784_v34, %v15227_v59  ;;  %v15228_v53 = vld [vmem:[#allocation60_spill] sm:$0xff]  ;;  %v14056_v0 = vadd.f32 %v13784_v34, %v13800_v63  ;;  %v14060_v32 = vadd.f32 %v13784_v34, %v13804_v29 }
 0x761   :  { %v14048_v57 = vadd.f32 %v13784_v34, %v15228_v53  ;;  %v14064_v59 = vadd.f32 %v13784_v34, %v13808_v35  ;;  %v14068_v53 = vadd.f32 %v13784_v34, %v13812_v24  ;;  %v14072_v51 = vadd.f32 %v13784_v34, %v13816_v3 }
 0x762   :  { %v14076_v63 = vadd.f32 %v13784_v34, %v13820_v52  ;;  %v14080_v29 = vadd.f32 %v13784_v34, %v13824_v55  ;;  %v14084_v35 = vadd.f32 %v13784_v34, %v13828_v17  ;;  %v14088_v24 = vadd.f32 %v13784_v34, %v13832_v58 }
 0x763   :  { %15229 = vst [vmem:[#allocation61_spill] sm:$0xff] %v14068_v53  ;;  %15230 = vst [vmem:[#allocation28_spill] sm:$0xff] %v14072_v51  ;;  %v6158_v53 = vmax.f32 %v13836_v62, 0.0  ;;  %v6159_v3 = vmax.f32 %v13840_v13, 0.0  ;;  %v6160_v51 = vmax.f32 %v13844_v40, 0.0  ;;  %v6161_v52 = vmax.f32 %v13848_v8, 0.0 }
 0x764   :  { %15231 = vst [vmem:[#allocation5_spill] sm:$0xff] %v14076_v63  ;;  %15232 = vst [vmem:[#allocation38_spill] sm:$0xff] %v14080_v29  ;;  %v6162_v63 = vmax.f32 %v13852_v39, 0.0  ;;  %v6163_v55 = vmax.f32 %v13856_v41, 0.0  ;;  %v6164_v29 = vmax.f32 %v13860_v26, 0.0  ;;  %v6165_v17 = vmax.f32 %v13864_v23, 0.0 }
 0x765   :  { %15233 = vst [vmem:[#allocation8_spill] sm:$0xff] %v14084_v35  ;;  %v6166_v35 = vmax.f32 %v13868_v4, 0.0  ;;  %v6167_v34 = vmax.f32 %v13872_v46, 0.0  ;;  %v6168_v58 = vmax.f32 %v13876_v11, 0.0  ;;  %v6169_v62 = vmax.f32 %v13880_v12, 0.0  ;;  %6222 = vst.msk [vmem:[%s14419_s9] sm:$0xff] %vm1272_vm4, %v6158_v53 }
 0x766   :  { %6223 = vst.msk [vmem:[%s14419_s9 + $0x8] sm:$0xff] %vm1272_vm4, %v6159_v3  ;;  %6224 = vst.msk [vmem:[%s14419_s9 + $0x10] sm:$0xff] %vm1272_vm4, %v6160_v51  ;;  %v6170_v13 = vmax.f32 %v13884_v16, 0.0  ;;  %v6171_v40 = vmax.f32 %v13888_v5, 0.0  ;;  %v6172_v8 = vmax.f32 %v13892_v9, 0.0  ;;  %v6173_v39 = vmax.f32 %v13896_v60, 0.0 }
 0x767   :  { %6225 = vst.msk [vmem:[%s14419_s9 + $0x18] sm:$0xff] %vm1272_vm4, %v6161_v52  ;;  %6226 = vst.msk [vmem:[%s14419_s9 + $0x20] sm:$0xff] %vm1272_vm4, %v6162_v63  ;;  %v6174_v41 = vmax.f32 %v13900_v21, 0.0  ;;  %v6175_v26 = vmax.f32 %v13904_v49, 0.0  ;;  %v6176_v23 = vmax.f32 %v13908_v37, 0.0  ;;  %v6177_v4 = vmax.f32 %v13912_v45, 0.0 }
 0x768   :  { %6227 = vst.msk [vmem:[%s14419_s9 + $0x28] sm:$0xff] %vm1272_vm4, %v6163_v55  ;;  %6228 = vst.msk [vmem:[%s14419_s9 + $0x30] sm:$0xff] %vm1272_vm4, %v6164_v29  ;;  %v6178_v46 = vmax.f32 %v13916_v48, 0.0  ;;  %v6179_v11 = vmax.f32 %v13920_v42, 0.0  ;;  %v6180_v12 = vmax.f32 %v13924_v33, 0.0  ;;  %v6181_v16 = vmax.f32 %v13928_v22, 0.0 }
 0x769   :  { %6229 = vst.msk [vmem:[%s14419_s9 + $0x38] sm:$0xff] %vm1272_vm4, %v6165_v17  ;;  %6230 = vst.msk [vmem:[%s14419_s9 + $0x40] sm:$0xff] %vm1272_vm4, %v6166_v35  ;;  %v6182_v5 = vmax.f32 %v13932_v30, 0.0  ;;  %v6183_v9 = vmax.f32 %v13936_v47, 0.0  ;;  %v6184_v60 = vmax.f32 %v13940_v7, 0.0  ;;  %v6185_v21 = vmax.f32 %v13944_v28, 0.0 }
 0x76a   :  { %6231 = vst.msk [vmem:[%s14419_s9 + $0x48] sm:$0xff] %vm1272_vm4, %v6167_v34  ;;  %6232 = vst.msk [vmem:[%s14419_s9 + $0x50] sm:$0xff] %vm1272_vm4, %v6168_v58  ;;  %v6186_v49 = vmax.f32 %v13948_v19, 0.0  ;;  %v6187_v37 = vmax.f32 %v13952_v61, 0.0  ;;  %v6188_v45 = vmax.f32 %v13956_v6, 0.0  ;;  %v6189_v48 = vmax.f32 %v13960_v1, 0.0 }
 0x76b   :  { %6233 = vst.msk [vmem:[%s14419_s9 + $0x58] sm:$0xff] %vm1272_vm4, %v6169_v62  ;;  %6234 = vst.msk [vmem:[%s14419_s9 + $0x60] sm:$0xff] %vm1272_vm4, %v6170_v13  ;;  %v6190_v42 = vmax.f32 %v13964_v20, 0.0  ;;  %v6191_v33 = vmax.f32 %v13968_v31, 0.0  ;;  %v6192_v22 = vmax.f32 %v13972_v44, 0.0  ;;  %v6193_v30 = vmax.f32 %v13976_v15, 0.0 }
 0x76c   :  { %6235 = vst.msk [vmem:[%s14419_s9 + $0x68] sm:$0xff] %vm1272_vm4, %v6171_v40  ;;  %6236 = vst.msk [vmem:[%s14419_s9 + $0x70] sm:$0xff] %vm1272_vm4, %v6172_v8  ;;  %v6194_v47 = vmax.f32 %v13980_v50, 0.0  ;;  %v6195_v7 = vmax.f32 %v13984_v27, 0.0  ;;  %v6196_v28 = vmax.f32 %v13988_v38, 0.0  ;;  %v6197_v19 = vmax.f32 %v13992_v54, 0.0 }
 0x76d   :  { %6237 = vst.msk [vmem:[%s14419_s9 + $0x78] sm:$0xff] %vm1272_vm4, %v6173_v39  ;;  %6238 = vst.msk [vmem:[%s14419_s9 + $0x80] sm:$0xff] %vm1272_vm4, %v6174_v41  ;;  %v6198_v61 = vmax.f32 %v13996_v25, 0.0  ;;  %v6199_v6 = vmax.f32 %v14000_v10, 0.0  ;;  %v15234_v1 = vld [vmem:[#allocation7_spill] sm:$0xff]  ;;  %v15236_v15 = vld [vmem:[#allocation33_spill] sm:$0xff] }
 0x76e   :  { %6239 = vst.msk [vmem:[%s14419_s9 + $0x88] sm:$0xff] %vm1272_vm4, %v6175_v26  ;;  %6240 = vst.msk [vmem:[%s14419_s9 + $0x90] sm:$0xff] %vm1272_vm4, %v6176_v23  ;;  %v6200_v20 = vmax.f32 %v15234_v1, 0.0  ;;  %v15235_v31 = vld [vmem:[#allocation67_spill] sm:$0xff]  ;;  %v6202_v50 = vmax.f32 %v15236_v15, 0.0  ;;  %v15238_v54 = vld [vmem:[#allocation10_spill] sm:$0xff] }
 0x76f   :  { %6241 = vst.msk [vmem:[%s14419_s9 + $0x98] sm:$0xff] %vm1272_vm4, %v6177_v4  ;;  %6242 = vst.msk [vmem:[%s14419_s9 + $0xa0] sm:$0xff] %vm1272_vm4, %v6178_v46  ;;  %v6201_v44 = vmax.f32 %v15235_v31, 0.0  ;;  %v15237_v27 = vld [vmem:[#allocation27_spill] sm:$0xff]  ;;  %v6204_v25 = vmax.f32 %v15238_v54, 0.0  ;;  %v15239_v10 = vld [vmem:[#allocation46_spill] sm:$0xff] }
 0x770   :  { %6243 = vst.msk [vmem:[%s14419_s9 + $0xa8] sm:$0xff] %vm1272_vm4, %v6179_v11  ;;  %6244 = vst.msk [vmem:[%s14419_s9 + $0xb0] sm:$0xff] %vm1272_vm4, %v6180_v12  ;;  %v6203_v38 = vmax.f32 %v15237_v27, 0.0  ;;  %v6205_v53 = vmax.f32 %v15239_v10, 0.0  ;;  %v6206_v51 = vmax.f32 %v14028_v14, 0.0  ;;  %v6207_v63 = vmax.f32 %v14032_v36, 0.0 }
 0x771   :  { %6245 = vst.msk [vmem:[%s14419_s9 + $0xb8] sm:$0xff] %vm1272_vm4, %v6181_v16  ;;  %6246 = vst.msk [vmem:[%s14419_s9 + $0xc0] sm:$0xff] %vm1272_vm4, %v6182_v5  ;;  %v6208_v29 = vmax.f32 %v14036_v18, 0.0  ;;  %v6209_v35 = vmax.f32 %v14040_v56, 0.0  ;;  %v6210_v14 = vmax.f32 %v14044_v43, 0.0  ;;  %v6211_v36 = vmax.f32 %v14048_v57, 0.0 }
 0x772   :  { %6247 = vst.msk [vmem:[%s14419_s9 + $0xc8] sm:$0xff] %vm1272_vm4, %v6183_v9  ;;  %6248 = vst.msk [vmem:[%s14419_s9 + $0xd0] sm:$0xff] %vm1272_vm4, %v6184_v60  ;;  %v6212_v18 = vmax.f32 %v14052_v2, 0.0  ;;  %v6213_v56 = vmax.f32 %v14056_v0, 0.0  ;;  %v6214_v43 = vmax.f32 %v14060_v32, 0.0  ;;  %v6215_v57 = vmax.f32 %v14064_v59, 0.0 }
 0x773   :  { %6249 = vst.msk [vmem:[%s14419_s9 + $0xd8] sm:$0xff] %vm1272_vm4, %v6185_v21  ;;  %6250 = vst.msk [vmem:[%s14419_s9 + $0xe0] sm:$0xff] %vm1272_vm4, %v6186_v49  ;;  %v15240_v2 = vld [vmem:[#allocation61_spill] sm:$0xff]  ;;  %v15241_v3 = vld [vmem:[#allocation28_spill] sm:$0xff]  ;;  %v6221_v62 = vmax.f32 %v14088_v24, 0.0 }
 0x774   :  { %6251 = vst.msk [vmem:[%s14419_s9 + $0xe8] sm:$0xff] %vm1272_vm4, %v6187_v37  ;;  %6252 = vst.msk [vmem:[%s14419_s9 + $0xf0] sm:$0xff] %vm1272_vm4, %v6188_v45  ;;  %v6216_v0 = vmax.f32 %v15240_v2, 0.0  ;;  %v6217_v52 = vmax.f32 %v15241_v3, 0.0  ;;  %v15242_v32 = vld [vmem:[#allocation5_spill] sm:$0xff]  ;;  %v15243_v55 = vld [vmem:[#allocation38_spill] sm:$0xff] }
 0x775   :  { %6253 = vst.msk [vmem:[%s14419_s9 + $0xf8] sm:$0xff] %vm1272_vm4, %v6189_v48  ;;  %6254 = vst.msk [vmem:[%s14419_s9 + $0x100] sm:$0xff] %vm1272_vm4, %v6190_v42  ;;  %v6218_v59 = vmax.f32 %v15242_v32, 0.0  ;;  %v6219_v17 = vmax.f32 %v15243_v55, 0.0  ;;  %v15244_v34 = vld [vmem:[#allocation8_spill] sm:$0xff] }
 0x776   :  { %6255 = vst.msk [vmem:[%s14419_s9 + $0x108] sm:$0xff] %vm1272_vm4, %v6191_v33  ;;  %6256 = vst.msk [vmem:[%s14419_s9 + $0x110] sm:$0xff] %vm1272_vm4, %v6192_v22  ;;  %v6220_v58 = vmax.f32 %v15244_v34, 0.0 }
 0x777   :  { %6257 = vst.msk [vmem:[%s14419_s9 + $0x118] sm:$0xff] %vm1272_vm4, %v6193_v30  ;;  %6258 = vst.msk [vmem:[%s14419_s9 + $0x120] sm:$0xff] %vm1272_vm4, %v6194_v47 }
 0x778   :  { %6259 = vst.msk [vmem:[%s14419_s9 + $0x128] sm:$0xff] %vm1272_vm4, %v6195_v7  ;;  %6260 = vst.msk [vmem:[%s14419_s9 + $0x130] sm:$0xff] %vm1272_vm4, %v6196_v28 }
 0x779   :  { %6261 = vst.msk [vmem:[%s14419_s9 + $0x138] sm:$0xff] %vm1272_vm4, %v6197_v19  ;;  %6262 = vst.msk [vmem:[%s14419_s9 + $0x140] sm:$0xff] %vm1272_vm4, %v6198_v61 }
 0x77a   :  { %6263 = vst.msk [vmem:[%s14419_s9 + $0x148] sm:$0xff] %vm1272_vm4, %v6199_v6  ;;  %6264 = vst.msk [vmem:[%s14419_s9 + $0x150] sm:$0xff] %vm1272_vm4, %v6200_v20 }
 0x77b   :  { %6265 = vst.msk [vmem:[%s14419_s9 + $0x158] sm:$0xff] %vm1272_vm4, %v6201_v44  ;;  %6266 = vst.msk [vmem:[%s14419_s9 + $0x160] sm:$0xff] %vm1272_vm4, %v6202_v50 }
 0x77c   :  { %6267 = vst.msk [vmem:[%s14419_s9 + $0x168] sm:$0xff] %vm1272_vm4, %v6203_v38  ;;  %6268 = vst.msk [vmem:[%s14419_s9 + $0x170] sm:$0xff] %vm1272_vm4, %v6204_v25 }
 0x77d   :  { %6269 = vst.msk [vmem:[%s14419_s9 + $0x178] sm:$0xff] %vm1272_vm4, %v6205_v53  ;;  %6270 = vst.msk [vmem:[%s14419_s9 + $0x180] sm:$0xff] %vm1272_vm4, %v6206_v51 }
 0x77e   :  { %6271 = vst.msk [vmem:[%s14419_s9 + $0x188] sm:$0xff] %vm1272_vm4, %v6207_v63  ;;  %6272 = vst.msk [vmem:[%s14419_s9 + $0x190] sm:$0xff] %vm1272_vm4, %v6208_v29 }
 0x77f   :  { %6273 = vst.msk [vmem:[%s14419_s9 + $0x198] sm:$0xff] %vm1272_vm4, %v6209_v35  ;;  %6274 = vst.msk [vmem:[%s14419_s9 + $0x1a0] sm:$0xff] %vm1272_vm4, %v6210_v14 }
 0x780   :  { %6275 = vst.msk [vmem:[%s14419_s9 + $0x1a8] sm:$0xff] %vm1272_vm4, %v6211_v36  ;;  %6276 = vst.msk [vmem:[%s14419_s9 + $0x1b0] sm:$0xff] %vm1272_vm4, %v6212_v18 }
 0x781   :  { %6277 = vst.msk [vmem:[%s14419_s9 + $0x1b8] sm:$0xff] %vm1272_vm4, %v6213_v56  ;;  %6278 = vst.msk [vmem:[%s14419_s9 + $0x1c0] sm:$0xff] %vm1272_vm4, %v6214_v43 }
 0x782   :  { %6279 = vst.msk [vmem:[%s14419_s9 + $0x1c8] sm:$0xff] %vm1272_vm4, %v6215_v57  ;;  %6280 = vst.msk [vmem:[%s14419_s9 + $0x1d0] sm:$0xff] %vm1272_vm4, %v6216_v0 }
 0x783   :  { %6281 = vst.msk [vmem:[%s14419_s9 + $0x1d8] sm:$0xff] %vm1272_vm4, %v6217_v52  ;;  %6282 = vst.msk [vmem:[%s14419_s9 + $0x1e0] sm:$0xff] %vm1272_vm4, %v6218_v59 }
 0x784   :  { %6283 = vst.msk [vmem:[%s14419_s9 + $0x1e8] sm:$0xff] %vm1272_vm4, %v6219_v17  ;;  %6284 = vst.msk [vmem:[%s14419_s9 + $0x1f0] sm:$0xff] %vm1272_vm4, %v6220_v58 }
 0x785   :  { %6285 = vst.msk [vmem:[%s14419_s9 + $0x1f8] sm:$0xff] %vm1272_vm4, %v6221_v62 }

</bundles_post_ra>
